<compile_context>
chip_gen: v5e
topology: v5e:2x2
jax: 0.10.0
libtpu: 0.0.40
codegen_flags: <defaults>
</compile_context>

<pallas_src>
import functools

import numpy as np
import jax
import jax.numpy as jnp
from jax.experimental import pallas as pl
from jax.experimental.pallas import tpu as pltpu

_VMEM = pl.BlockSpec(memory_space=pltpu.MemorySpace.VMEM)
_CIN_PAD = 16   # first-layer input channels (5 + 4 + 4 = 13) zero-padded to 16


def _vmem_limit(est_bytes):
    """Scoped-VMEM limit: 2x headroom, floor 32 MiB, cap 64 MiB (v7x physical)."""
    return int(min(64 * 2 ** 20, max(32 * 2 ** 20, 2 * est_bytes)))


# ----------------------------------------------------------------------------
# Attention kernel: scores = X @ x_np_k^T, exact row softmax, ctx = attn @ X
# ----------------------------------------------------------------------------
def _attn_kernel(x_ref, knp_ref, attn_ref, ctx_ref):
    n = x_ref.shape[0]
    x = x_ref[...]                                           # (N, N) f32, loaded once
    blocks = []
    for b in range(4):
        kb = knp_ref[b * n:(b + 1) * n, :]                   # (N, N) f32 ref slice
        # scores_b = X @ x_np_b^T  (f32: softmax fidelity; negligible FLOPs)
        sb = jax.lax.dot_general(x, kb, (((1,), (1,)), ((), ())),
                                 preferred_element_type=jnp.float32)
        sb = sb - jnp.max(sb, axis=-1, keepdims=True)
        eb = jnp.exp(sb)
        blocks.append(eb / jnp.sum(eb, axis=-1, keepdims=True))  # exact softmax
    p = jnp.concatenate(blocks, axis=0)                      # (4N, N) f32
    attn_ref[...] = p
    # single stacked PV matmul on the MXU: bf16 operands, f32 accumulation
    ctx_ref[...] = jnp.dot(p.astype(jnp.bfloat16), x.astype(jnp.bfloat16),
                           preferred_element_type=jnp.float32)


def attention_pallas(x2d, knp):
    # TODO(synk): for large N add a query-row grid ("parallel") and flash-style
    # streaming so scores/exp are not fully resident and both v7x TCs are used.
    n = x2d.shape[0]
    est = (13 * n * n) * 4 * 2 + 10 * 4 * n * n * 4
    return pl.pallas_call(
        _attn_kernel,
        out_shape=(jax.ShapeDtypeStruct((4 * n, n), jnp.float32),
                   jax.ShapeDtypeStruct((4 * n, n), jnp.float32)),
        in_specs=[_VMEM, _VMEM],
        out_specs=(_VMEM, _VMEM),
        compiler_params=pltpu.CompilerParams(
            vmem_limit_bytes=_vmem_limit(est)),
    )(x2d, knp)


# ----------------------------------------------------------------------------
# Fused conv tower kernel
# ----------------------------------------------------------------------------
def _tower_kernel(x_ref, xnp_ref, attn_ref, ctx_ref, rc_ref,
                  w1_ref, b1_ref, w3a_ref, b3a_ref, w3_ref, b3_ref,
                  wh_ref, bh_ref, out_ref, cols_ref, act_ref,
                  *, H, W, include_pi):
    hw = H * W
    row = rc_ref[0:1, :]                                     # (1, HW) int32
    col = rc_ref[1:2, :]

    def conv(act, ksz, w_ref, b_ref, relu):
        # in-kernel im2col into the shared bf16 cols scratch, then one matmul.
        # TODO(synk): when W % 128 == 0, split the dh*W shift into lane-group
        # aligned addressing and share the 4 dw lane-rolls (25 -> 4 XLU rolls).
        # TODO(synk): on v7x, per-tap accumulation (MRB in-place) would remove
        # the cols scratch entirely; keep big-K matmul on v5e/v6e.
        c = act.shape[0]
        p = ksz // 2
        t = 0
        for dh in range(-p, p + 1):
            for dw in range(-p, p + 1):
                d = dh * W + dw
                if d == 0:
                    tap = act
                else:
                    tap = pltpu.roll(act, shift=(-d) % hw, axis=1)
                    conds = []
                    if dh < 0:
                        conds.append(row >= -dh)
                    if dh > 0:
                        conds.append(row < H - dh)
                    if dw < 0:
                        conds.append(col >= -dw)
                    if dw > 0:
                        conds.append(col < W - dw)
                    m = functools.reduce(jnp.logical_and, conds)
                    tap = jnp.where(m, tap, 0.0)              # zero padding
                cols_ref[t * c:(t + 1) * c, :] = tap.astype(jnp.bfloat16)
                t += 1
        k = ksz * ksz * c
        out = jnp.dot(w_ref[...], cols_ref[0:k, :],
                      preferred_element_type=jnp.float32) + b_ref[...]
        return jnp.maximum(out, 0.0) if relu else out

    # assemble the 16-channel (padded) first-layer input in VMEM
    act_ref[0:1, :] = x_ref[...]
    act_ref[1:5, :] = xnp_ref[...]
    act_ref[5:9, :] = attn_ref[...]
    act_ref[9:13, :] = ctx_ref[...]
    act_ref[13:16, :] = jnp.zeros((3, hw), jnp.float32)

    h = conv(act_ref[...], 5, w1_ref, b1_ref, True)          # (48, HW)
    h = conv(h, 5, w3a_ref, b3a_ref, True)                   # (48, HW)
    h = conv(h, 3, w3_ref, b3_ref, True)                     # (24, HW)
    heads = conv(h, 3, wh_ref, bh_ref, False)                # (nh, HW)

    mu_theta = heads[0:2, :] + 1.0
    mu_theta = mu_theta * mu_theta                           # (x + 1)^2
    if include_pi:
        out_ref[0:2, :] = mu_theta
        out_ref[2:3, :] = jnp.clip(heads[2:3, :], 0.0, 1.0)
    else:
        out_ref[...] = mu_theta


def conv_tower_pallas(x_flat, xnp_flat, attn_flat, ctx_flat, rowcol, tower_w,
                      *, H, W, include_pi):
    # TODO(synk): for large N, tile over image rows with a 6-row halo
    # (BlockSpec grid, "parallel") to bound VMEM and use both v7x TensorCores;
    # single-shot is appropriate at demo / moderate N.
    n_heads = 3 if include_pi else 2
    hw = H * W
    w1, b1, w3a, b3a, w3, b3, wh, bh = tower_w
    est = (25 * 48 * hw * 2                      # bf16 im2col scratch
           + 16 * hw * 4                         # act0 scratch
           + 2 * (15 + 2 + n_heads) * hw * 4     # in / out buffers
           + 200 * hw * 4                        # live activations / spill
           + (48 * 400 + 48 * 1200 + 24 * 432 + 3 * 216) * 2 + 64 * 1024)
    kernel = functools.partial(_tower_kernel, H=H, W=W, include_pi=include_pi)
    return pl.pallas_call(
        kernel,
        out_shape=jax.ShapeDtypeStruct((n_heads, hw), jnp.float32),
        in_specs=[_VMEM] * 13,
        out_specs=_VMEM,
        scratch_shapes=[pltpu.VMEM((25 * 48, hw), jnp.bfloat16),  # shared cols
                        pltpu.VMEM((_CIN_PAD, hw), jnp.float32)],  # act0
        compiler_params=pltpu.CompilerParams(
            vmem_limit_bytes=_vmem_limit(est)),
    )(x_flat, xnp_flat, attn_flat, ctx_flat, rowcol,
      w1, b1, w3a, b3a, w3, b3, wh, bh)


# ----------------------------------------------------------------------------
# Parameters (deterministic, PyTorch-Conv2d-style uniform init).
# Weights kept in tap-major layout (Cout, ksz*ksz, Cin); tap index t maps to
# (kh, kw) = (t // ksz, t % ksz), matching the kernel's (dh, dw) enumeration.
# ----------------------------------------------------------------------------
_CONV_DEFS = {
    "conv1a": (5, 16, 5),
    "conv1b": (4, 16, 5),
    "conv1c": (4, 16, 5),
    "conv3a": (48, 48, 5),
    "conv3":  (48, 24, 3),
    "conv4":  (24, 1, 3),
    "conv5":  (24, 1, 3),
    "conv6":  (24, 1, 3),
}


def init_params(key):
    params = {}
    keys = jax.random.split(key, len(_CONV_DEFS))
    for k, (name, (cin, cout, ksz)) in zip(keys, _CONV_DEFS.items()):
        kw, kb = jax.random.split(k)
        bound = 1.0 / np.sqrt(cin * ksz * ksz)
        w = jax.random.uniform(kw, (cout, ksz * ksz, cin),
                               minval=-bound, maxval=bound, dtype=jnp.float32)
        b = jax.random.uniform(kb, (cout,), minval=-bound, maxval=bound,
                               dtype=jnp.float32)
        params[name] = (w, b)
    return params


def prepare_tower_weights(params, include_pi=False):
    """Assemble fused weights ONCE (hoisted out of the per-call path)."""
    (w1a, b1a) = params["conv1a"]
    (w1b, b1b) = params["conv1b"]
    (w1c, b1c) = params["conv1c"]
    # fused conv1a/b/c: block-diagonal over the padded 16-channel input
    w1 = jnp.zeros((48, 25, _CIN_PAD), jnp.float32)
    w1 = w1.at[0:16, :, 0:5].set(w1a)      # conv1a: [X, x_np1..4]
    w1 = w1.at[16:32, :, 5:9].set(w1b)     # conv1b: attn1..4
    w1 = w1.at[32:48, :, 9:13].set(w1c)    # conv1c: ctx1..4
    w1 = w1.reshape(48, 25 * _CIN_PAD)
    b1 = jnp.concatenate([b1a, b1b, b1c])

    w3a, b3a = params["conv3a"]
    w3a = w3a.reshape(48, 25 * 48)
    w3, b3 = params["conv3"]
    w3 = w3.reshape(24, 9 * 48)

    head_names = ["conv4", "conv5"] + (["conv6"] if include_pi else [])
    wh = jnp.concatenate([params[n][0].reshape(1, 9 * 24) for n in head_names],
                         axis=0)
    bh = jnp.concatenate([params[n][1] for n in head_names])

    bf = lambda w: w.astype(jnp.bfloat16)            # MXU operands in bf16
    cl = lambda b: b.reshape(-1, 1).astype(jnp.float32)
    return (bf(w1), cl(b1), bf(w3a), cl(b3a), bf(w3), cl(b3), bf(wh), cl(bh))


# ----------------------------------------------------------------------------
# Forward pass (mirrors NBAttnCPU.forward with default side / round / include_pi)
# ----------------------------------------------------------------------------
@functools.partial(jax.jit, static_argnames=("include_pi", "round_mu"))
def _device_forward(X, xnp, tower_w, include_pi=False, round_mu=False):
    n = X.shape[0]
    hw = n * n
    knp = xnp.reshape(4 * n, n)                              # free contiguous view
    attn_st, ctx_st = attention_pallas(X, knp)               # each (4N, N)

    # trace-time constant: (row, col) index of each flattened pixel (2, HW) i32
    r = np.repeat(np.arange(n, dtype=np.int32), n)
    c = np.tile(np.arange(n, dtype=np.int32), n)
    rowcol = jnp.asarray(np.stack([r, c]))

    out = conv_tower_pallas(
        X.reshape(1, hw), xnp.reshape(4, hw),
        attn_st.reshape(4, hw), ctx_st.reshape(4, hw),       # free contiguous views
        rowcol, tower_w, H=n, W=n, include_pi=include_pi)    # (nh, HW)
    out = out.reshape(-1, n, n)
    if round_mu:
        out = out.at[0].set(jnp.round(out[0]))
    return out[None]                                         # (1, nh, N, N)


def nb_attn_forward(x, tower_w, include_pi=False, round_mu=False):
    """x: (1, 1, N, N) float32 -> (1, 2 (+1 if include_pi), N, N) float32."""
    xn = np.asarray(x, dtype=np.float32)[0, 0]
    X = np.log2(xn + np.float32(1.0))                        # (N, N)
    # TODO(synk): sklearn TruncatedSVD (randomized, n_iter=7, seed=42) has no
    # Pallas equivalent; replaced with exact host-side np.linalg.svd (the
    # rank-k reconstructions V_k^T S_k V_k are sign-invariant, same semantics).
    _, S, Vt = np.linalg.svd(X, full_matrices=False)
    xnp = np.stack([Vt[:k].T @ (S[:k, None] * Vt[:k]) for k in (1, 2, 3, 4)])
    return _device_forward(jnp.asarray(X), jnp.asarray(xnp.astype(np.float32)),
                           tower_w, include_pi=include_pi, round_mu=round_mu)


# ----------------------------------------------------------------------------
if __name__ == "__main__":
    N = 16
    key = jax.random.PRNGKey(0)
    kx, kp = jax.random.split(key)

    # synthetic Hi-C-like non-negative symmetric count matrix, batch=1, ch=1
    counts = jax.random.uniform(kx, (N, N), minval=0.0, maxval=20.0,
                                dtype=jnp.float32)
    counts = (counts + counts.T) * 0.5
    x = counts[None, None]                                   # (1, 1, 16, 16)

    params = init_params(kp)
    tower_w = prepare_tower_weights(params, include_pi=False)  # assembled once

    out = nb_attn_forward(x, tower_w)
    out = jax.block_until_ready(out)

    assert out.shape == (1, 2, N, N), out.shape
    assert out.dtype == jnp.float32
    assert bool(jnp.all(jnp.isfinite(out)))
    print("KERNEL_OK")
</pallas_src>

<mosaic_0001>
module attributes {stable_mosaic.version = 11 : i64} {
  func.func @_attn_kernel(%arg0: memref<16x16xf32, #tpu.memory_space<vmem>>, %arg1: memref<64x16xf32, #tpu.memory_space<vmem>>, %arg2: memref<64x16xf32, #tpu.memory_space<vmem>>, %arg3: memref<64x16xf32, #tpu.memory_space<vmem>>) attributes {dimension_semantics = [], scalar_prefetch = 0 : i64, scratch_operands = 0 : i64, tpu.core_type = #tpu.core_type<tc>} {
    %c0 = arith.constant 0 : index
    %c0_0 = arith.constant 0 : index
    %0 = vector.load %arg0[%c0, %c0_0] : memref<16x16xf32, #tpu.memory_space<vmem>>, vector<16x16xf32>
    %c0_1 = arith.constant 0 : index
    %c0_2 = arith.constant 0 : index
    %1 = vector.load %arg1[%c0_1, %c0_2] : memref<64x16xf32, #tpu.memory_space<vmem>>, vector<16x16xf32>
    %cst = arith.constant dense<0.000000e+00> : vector<16x16xf32>
    %2 = tpu.matmul %0, %1, %cst {dimension_numbers = #tpu.dot_dimension_numbers<[1], [1], [0], [0], [0, 0, 1, 0], [], []>} : vector<16x16xf32>, vector<16x16xf32>, vector<16x16xf32> -> vector<16x16xf32>
    %cst_3 = arith.constant dense<0xFF800000> : vector<16xf32>
    %3 = vector.multi_reduction <maximumf>, %2, %cst_3 [1] : vector<16x16xf32> to vector<16xf32>
    %4 = vector.shape_cast %3 : vector<16xf32> to vector<16x1xf32>
    %5 = vector.broadcast %4 : vector<16x1xf32> to vector<16x16xf32>
    %6 = arith.subf %2, %5 : vector<16x16xf32>
    %7 = math.exp %6 : vector<16x16xf32>
    %cst_4 = arith.constant dense<0.000000e+00> : vector<16xf32>
    %8 = vector.multi_reduction <add>, %7, %cst_4 [1] : vector<16x16xf32> to vector<16xf32>
    %9 = vector.shape_cast %8 : vector<16xf32> to vector<16x1xf32>
    %10 = vector.broadcast %9 : vector<16x1xf32> to vector<16x16xf32>
    %11 = arith.divf %7, %10 : vector<16x16xf32>
    %c16 = arith.constant 16 : index
    %c0_5 = arith.constant 0 : index
    %12 = vector.load %arg1[%c16, %c0_5] : memref<64x16xf32, #tpu.memory_space<vmem>>, vector<16x16xf32>
    %cst_6 = arith.constant dense<0.000000e+00> : vector<16x16xf32>
    %13 = tpu.matmul %0, %12, %cst_6 {dimension_numbers = #tpu.dot_dimension_numbers<[1], [1], [0], [0], [0, 0, 1, 0], [], []>} : vector<16x16xf32>, vector<16x16xf32>, vector<16x16xf32> -> vector<16x16xf32>
    %cst_7 = arith.constant dense<0xFF800000> : vector<16xf32>
    %14 = vector.multi_reduction <maximumf>, %13, %cst_7 [1] : vector<16x16xf32> to vector<16xf32>
    %15 = vector.shape_cast %14 : vector<16xf32> to vector<16x1xf32>
    %16 = vector.broadcast %15 : vector<16x1xf32> to vector<16x16xf32>
    %17 = arith.subf %13, %16 : vector<16x16xf32>
    %18 = math.exp %17 : vector<16x16xf32>
    %cst_8 = arith.constant dense<0.000000e+00> : vector<16xf32>
    %19 = vector.multi_reduction <add>, %18, %cst_8 [1] : vector<16x16xf32> to vector<16xf32>
    %20 = vector.shape_cast %19 : vector<16xf32> to vector<16x1xf32>
    %21 = vector.broadcast %20 : vector<16x1xf32> to vector<16x16xf32>
    %22 = arith.divf %18, %21 : vector<16x16xf32>
    %c32 = arith.constant 32 : index
    %c0_9 = arith.constant 0 : index
    %23 = vector.load %arg1[%c32, %c0_9] : memref<64x16xf32, #tpu.memory_space<vmem>>, vector<16x16xf32>
    %cst_10 = arith.constant dense<0.000000e+00> : vector<16x16xf32>
    %24 = tpu.matmul %0, %23, %cst_10 {dimension_numbers = #tpu.dot_dimension_numbers<[1], [1], [0], [0], [0, 0, 1, 0], [], []>} : vector<16x16xf32>, vector<16x16xf32>, vector<16x16xf32> -> vector<16x16xf32>
    %cst_11 = arith.constant dense<0xFF800000> : vector<16xf32>
    %25 = vector.multi_reduction <maximumf>, %24, %cst_11 [1] : vector<16x16xf32> to vector<16xf32>
    %26 = vector.shape_cast %25 : vector<16xf32> to vector<16x1xf32>
    %27 = vector.broadcast %26 : vector<16x1xf32> to vector<16x16xf32>
    %28 = arith.subf %24, %27 : vector<16x16xf32>
    %29 = math.exp %28 : vector<16x16xf32>
    %cst_12 = arith.constant dense<0.000000e+00> : vector<16xf32>
    %30 = vector.multi_reduction <add>, %29, %cst_12 [1] : vector<16x16xf32> to vector<16xf32>
    %31 = vector.shape_cast %30 : vector<16xf32> to vector<16x1xf32>
    %32 = vector.broadcast %31 : vector<16x1xf32> to vector<16x16xf32>
    %33 = arith.divf %29, %32 : vector<16x16xf32>
    %c48 = arith.constant 48 : index
    %c0_13 = arith.constant 0 : index
    %34 = vector.load %arg1[%c48, %c0_13] : memref<64x16xf32, #tpu.memory_space<vmem>>, vector<16x16xf32>
    %cst_14 = arith.constant dense<0.000000e+00> : vector<16x16xf32>
    %35 = tpu.matmul %0, %34, %cst_14 {dimension_numbers = #tpu.dot_dimension_numbers<[1], [1], [0], [0], [0, 0, 1, 0], [], []>} : vector<16x16xf32>, vector<16x16xf32>, vector<16x16xf32> -> vector<16x16xf32>
    %cst_15 = arith.constant dense<0xFF800000> : vector<16xf32>
    %36 = vector.multi_reduction <maximumf>, %35, %cst_15 [1] : vector<16x16xf32> to vector<16xf32>
    %37 = vector.shape_cast %36 : vector<16xf32> to vector<16x1xf32>
    %38 = vector.broadcast %37 : vector<16x1xf32> to vector<16x16xf32>
    %39 = arith.subf %35, %38 : vector<16x16xf32>
    %40 = math.exp %39 : vector<16x16xf32>
    %cst_16 = arith.constant dense<0.000000e+00> : vector<16xf32>
    %41 = vector.multi_reduction <add>, %40, %cst_16 [1] : vector<16x16xf32> to vector<16xf32>
    %42 = vector.shape_cast %41 : vector<16xf32> to vector<16x1xf32>
    %43 = vector.broadcast %42 : vector<16x1xf32> to vector<16x16xf32>
    %44 = arith.divf %40, %43 : vector<16x16xf32>
    %45 = tpu.concatenate %11, %22, %33, %44 in 0 : vector<16x16xf32>, vector<16x16xf32>, vector<16x16xf32>, vector<16x16xf32> -> vector<64x16xf32>
    %c0_17 = arith.constant 0 : index
    %c0_18 = arith.constant 0 : index
    %46 = vector.load %arg2[%c0_17, %c0_18] : memref<64x16xf32, #tpu.memory_space<vmem>>, vector<64x16xf32>
    tpu.vector_store %arg2[%c0_17, %c0_18], %45 {strides = array<i32>} : memref<64x16xf32, #tpu.memory_space<vmem>>, vector<64x16xf32>,
    %47 = arith.truncf %45 : vector<64x16xf32> to vector<64x16xbf16>
    %48 = arith.truncf %0 : vector<16x16xf32> to vector<16x16xbf16>
    %cst_19 = arith.constant dense<0.000000e+00> : vector<64x16xf32>
    %49 = tpu.matmul %47, %48, %cst_19 {dimension_numbers = #tpu.dot_dimension_numbers<[1], [0], [0], [1], [0, 0, 1, 1], [], []>} : vector<64x16xbf16>, vector<16x16xbf16>, vector<64x16xf32> -> vector<64x16xf32>
    %c0_20 = arith.constant 0 : index
    %c0_21 = arith.constant 0 : index
    %50 = vector.load %arg3[%c0_20, %c0_21] : memref<64x16xf32, #tpu.memory_space<vmem>>, vector<64x16xf32>
    tpu.vector_store %arg3[%c0_20, %c0_21], %49 {strides = array<i32>} : memref<64x16xf32, #tpu.memory_space<vmem>>, vector<64x16xf32>,
    return
  }
}

module attributes {stable_mosaic.version = 11 : i64} {
  func.func @_tower_kernel(%arg0: memref<1x256xf32, #tpu.memory_space<vmem>>, %arg1: memref<4x256xf32, #tpu.memory_space<vmem>>, %arg2: memref<4x256xf32, #tpu.memory_space<vmem>>, %arg3: memref<4x256xf32, #tpu.memory_space<vmem>>, %arg4: memref<2x256xi32, #tpu.memory_space<vmem>>, %arg5: memref<48x400xbf16, #tpu.memory_space<vmem>>, %arg6: memref<48x1xf32, #tpu.memory_space<vmem>>, %arg7: memref<48x1200xbf16, #tpu.memory_space<vmem>>, %arg8: memref<48x1xf32, #tpu.memory_space<vmem>>, %arg9: memref<24x432xbf16, #tpu.memory_space<vmem>>, %arg10: memref<24x1xf32, #tpu.memory_space<vmem>>, %arg11: memref<2x216xbf16, #tpu.memory_space<vmem>>, %arg12: memref<2x1xf32, #tpu.memory_space<vmem>>, %arg13: memref<2x256xf32, #tpu.memory_space<vmem>>, %arg14: memref<1200x256xbf16, #tpu.memory_space<vmem>>, %arg15: memref<16x256xf32, #tpu.memory_space<vmem>>) attributes {dimension_semantics = [], scalar_prefetch = 0 : i64, scratch_operands = 2 : i64, tpu.core_type = #tpu.core_type<tc>} {
    %c0 = arith.constant 0 : index
    %c0_0 = arith.constant 0 : index
    %0 = vector.load %arg4[%c0, %c0_0] : memref<2x256xi32, #tpu.memory_space<vmem>>, vector<1x256xi32>
    %c1 = arith.constant 1 : index
    %c0_1 = arith.constant 0 : index
    %1 = vector.load %arg4[%c1, %c0_1] : memref<2x256xi32, #tpu.memory_space<vmem>>, vector<1x256xi32>
    %c0_2 = arith.constant 0 : index
    %c0_3 = arith.constant 0 : index
    %2 = vector.load %arg0[%c0_2, %c0_3] : memref<1x256xf32, #tpu.memory_space<vmem>>, vector<1x256xf32>
    %c0_4 = arith.constant 0 : index
    %c0_5 = arith.constant 0 : index
    %3 = vector.load %arg15[%c0_4, %c0_5] : memref<16x256xf32, #tpu.memory_space<vmem>>, vector<1x256xf32>
    tpu.vector_store %arg15[%c0_4, %c0_5], %2 {strides = array<i32>} : memref<16x256xf32, #tpu.memory_space<vmem>>, vector<1x256xf32>,
    %c0_6 = arith.constant 0 : index
    %c0_7 = arith.constant 0 : index
    %4 = vector.load %arg1[%c0_6, %c0_7] : memref<4x256xf32, #tpu.memory_space<vmem>>, vector<4x256xf32>
    %c1_8 = arith.constant 1 : index
    %c0_9 = arith.constant 0 : index
    %5 = vector.load %arg15[%c1_8, %c0_9] : memref<16x256xf32, #tpu.memory_space<vmem>>, vector<4x256xf32>
    tpu.vector_store %arg15[%c1_8, %c0_9], %4 {strides = array<i32>} : memref<16x256xf32, #tpu.memory_space<vmem>>, vector<4x256xf32>,
    %c0_10 = arith.constant 0 : index
    %c0_11 = arith.constant 0 : index
    %6 = vector.load %arg2[%c0_10, %c0_11] : memref<4x256xf32, #tpu.memory_space<vmem>>, vector<4x256xf32>
    %c5 = arith.constant 5 : index
    %c0_12 = arith.constant 0 : index
    %7 = vector.load %arg15[%c5, %c0_12] : memref<16x256xf32, #tpu.memory_space<vmem>>, vector<4x256xf32>
    tpu.vector_store %arg15[%c5, %c0_12], %6 {strides = array<i32>} : memref<16x256xf32, #tpu.memory_space<vmem>>, vector<4x256xf32>,
    %c0_13 = arith.constant 0 : index
    %c0_14 = arith.constant 0 : index
    %8 = vector.load %arg3[%c0_13, %c0_14] : memref<4x256xf32, #tpu.memory_space<vmem>>, vector<4x256xf32>
    %c9 = arith.constant 9 : index
    %c0_15 = arith.constant 0 : index
    %9 = vector.load %arg15[%c9, %c0_15] : memref<16x256xf32, #tpu.memory_space<vmem>>, vector<4x256xf32>
    tpu.vector_store %arg15[%c9, %c0_15], %8 {strides = array<i32>} : memref<16x256xf32, #tpu.memory_space<vmem>>, vector<4x256xf32>,
    %cst = arith.constant 0.000000e+00 : f32
    %10 = vector.broadcast %cst : f32 to vector<3x256xf32>
    %c13 = arith.constant 13 : index
    %c0_16 = arith.constant 0 : index
    %11 = vector.load %arg15[%c13, %c0_16] : memref<16x256xf32, #tpu.memory_space<vmem>>, vector<3x256xf32>
    tpu.vector_store %arg15[%c13, %c0_16], %10 {strides = array<i32>} : memref<16x256xf32, #tpu.memory_space<vmem>>, vector<3x256xf32>,
    %c0_17 = arith.constant 0 : index
    %c0_18 = arith.constant 0 : index
    %12 = vector.load %arg15[%c0_17, %c0_18] : memref<16x256xf32, #tpu.memory_space<vmem>>, vector<16x256xf32>
    %c34_i32 = arith.constant 34 : i32
    %13 = tpu.dynamic_rotate %12 by %c34_i32 dim 1 : vector<16x256xf32>, i32 -> vector<16x256xf32>
    %c2_i32 = arith.constant 2 : i32
    %14 = vector.broadcast %c2_i32 : i32 to vector<1x256xi32>
    %15 = arith.cmpi sge, %0, %14 : vector<1x256xi32>
    %c2_i32_19 = arith.constant 2 : i32
    %16 = vector.broadcast %c2_i32_19 : i32 to vector<1x256xi32>
    %17 = arith.cmpi sge, %1, %16 : vector<1x256xi32>
    %18 = arith.andi %15, %17 : vector<1x256xi1>
    %cst_20 = arith.constant 0.000000e+00 : f32
    %19 = vector.shape_cast %18 : vector<1x256xi1> to vector<1x256xi1>
    %20 = vector.broadcast %19 : vector<1x256xi1> to vector<16x256xi1>
    %21 = vector.broadcast %cst_20 : f32 to vector<16x256xf32>
    %22 = arith.select %20, %13, %21 : vector<16x256xi1>, vector<16x256xf32>
    %23 = arith.truncf %22 : vector<16x256xf32> to vector<16x256xbf16>
    %c0_21 = arith.constant 0 : index
    %c0_22 = arith.constant 0 : index
    %24 = vector.load %arg14[%c0_21, %c0_22] : memref<1200x256xbf16, #tpu.memory_space<vmem>>, vector<16x256xbf16>
    tpu.vector_store %arg14[%c0_21, %c0_22], %23 {strides = array<i32>} : memref<1200x256xbf16, #tpu.memory_space<vmem>>, vector<16x256xbf16>,
    %c33_i32 = arith.constant 33 : i32
    %25 = tpu.dynamic_rotate %12 by %c33_i32 dim 1 : vector<16x256xf32>, i32 -> vector<16x256xf32>
    %c2_i32_23 = arith.constant 2 : i32
    %26 = vector.broadcast %c2_i32_23 : i32 to vector<1x256xi32>
    %27 = arith.cmpi sge, %0, %26 : vector<1x256xi32>
    %c1_i32 = arith.constant 1 : i32
    %28 = vector.broadcast %c1_i32 : i32 to vector<1x256xi32>
    %29 = arith.cmpi sge, %1, %28 : vector<1x256xi32>
    %30 = arith.andi %27, %29 : vector<1x256xi1>
    %cst_24 = arith.constant 0.000000e+00 : f32
    %31 = vector.shape_cast %30 : vector<1x256xi1> to vector<1x256xi1>
    %32 = vector.broadcast %31 : vector<1x256xi1> to vector<16x256xi1>
    %33 = vector.broadcast %cst_24 : f32 to vector<16x256xf32>
    %34 = arith.select %32, %25, %33 : vector<16x256xi1>, vector<16x256xf32>
    %35 = arith.truncf %34 : vector<16x256xf32> to vector<16x256xbf16>
    %c16 = arith.constant 16 : index
    %c0_25 = arith.constant 0 : index
    %36 = vector.load %arg14[%c16, %c0_25] : memref<1200x256xbf16, #tpu.memory_space<vmem>>, vector<16x256xbf16>
    tpu.vector_store %arg14[%c16, %c0_25], %35 {strides = array<i32>} : memref<1200x256xbf16, #tpu.memory_space<vmem>>, vector<16x256xbf16>,
    %c32_i32 = arith.constant 32 : i32
    %37 = tpu.dynamic_rotate %12 by %c32_i32 dim 1 : vector<16x256xf32>, i32 -> vector<16x256xf32>
    %c2_i32_26 = arith.constant 2 : i32
    %38 = vector.broadcast %c2_i32_26 : i32 to vector<1x256xi32>
    %39 = arith.cmpi sge, %0, %38 : vector<1x256xi32>
    %cst_27 = arith.constant 0.000000e+00 : f32
    %40 = vector.shape_cast %39 : vector<1x256xi1> to vector<1x256xi1>
    %41 = vector.broadcast %40 : vector<1x256xi1> to vector<16x256xi1>
    %42 = vector.broadcast %cst_27 : f32 to vector<16x256xf32>
    %43 = arith.select %41, %37, %42 : vector<16x256xi1>, vector<16x256xf32>
    %44 = arith.truncf %43 : vector<16x256xf32> to vector<16x256xbf16>
    %c32 = arith.constant 32 : index
    %c0_28 = arith.constant 0 : index
    %45 = vector.load %arg14[%c32, %c0_28] : memref<1200x256xbf16, #tpu.memory_space<vmem>>, vector<16x256xbf16>
    tpu.vector_store %arg14[%c32, %c0_28], %44 {strides = array<i32>} : memref<1200x256xbf16, #tpu.memory_space<vmem>>, vector<16x256xbf16>,
    %c31_i32 = arith.constant 31 : i32
    %46 = tpu.dynamic_rotate %12 by %c31_i32 dim 1 : vector<16x256xf32>, i32 -> vector<16x256xf32>
    %c2_i32_29 = arith.constant 2 : i32
    %47 = vector.broadcast %c2_i32_29 : i32 to vector<1x256xi32>
    %48 = arith.cmpi sge, %0, %47 : vector<1x256xi32>
    %c15_i32 = arith.constant 15 : i32
    %49 = vector.broadcast %c15_i32 : i32 to vector<1x256xi32>
    %50 = arith.cmpi slt, %1, %49 : vector<1x256xi32>
    %51 = arith.andi %48, %50 : vector<1x256xi1>
    %cst_30 = arith.constant 0.000000e+00 : f32
    %52 = vector.shape_cast %51 : vector<1x256xi1> to vector<1x256xi1>
    %53 = vector.broadcast %52 : vector<1x256xi1> to vector<16x256xi1>
    %54 = vector.broadcast %cst_30 : f32 to vector<16x256xf32>
    %55 = arith.select %53, %46, %54 : vector<16x256xi1>, vector<16x256xf32>
    %56 = arith.truncf %55 : vector<16x256xf32> to vector<16x256xbf16>
    %c48 = arith.constant 48 : index
    %c0_31 = arith.constant 0 : index
    %57 = vector.load %arg14[%c48, %c0_31] : memref<1200x256xbf16, #tpu.memory_space<vmem>>, vector<16x256xbf16>
    tpu.vector_store %arg14[%c48, %c0_31], %56 {strides = array<i32>} : memref<1200x256xbf16, #tpu.memory_space<vmem>>, vector<16x256xbf16>,
    %c30_i32 = arith.constant 30 : i32
    %58 = tpu.dynamic_rotate %12 by %c30_i32 dim 1 : vector<16x256xf32>, i32 -> vector<16x256xf32>
    %c2_i32_32 = arith.constant 2 : i32
    %59 = vector.broadcast %c2_i32_32 : i32 to vector<1x256xi32>
    %60 = arith.cmpi sge, %0, %59 : vector<1x256xi32>
    %c14_i32 = arith.constant 14 : i32
    %61 = vector.broadcast %c14_i32 : i32 to vector<1x256xi32>
    %62 = arith.cmpi slt, %1, %61 : vector<1x256xi32>
    %63 = arith.andi %60, %62 : vector<1x256xi1>
    %cst_33 = arith.constant 0.000000e+00 : f32
    %64 = vector.shape_cast %63 : vector<1x256xi1> to vector<1x256xi1>
    %65 = vector.broadcast %64 : vector<1x256xi1> to vector<16x256xi1>
    %66 = vector.broadcast %cst_33 : f32 to vector<16x256xf32>
    %67 = arith.select %65, %58, %66 : vector<16x256xi1>, vector<16x256xf32>
    %68 = arith.truncf %67 : vector<16x256xf32> to vector<16x256xbf16>
    %c64 = arith.constant 64 : index
    %c0_34 = arith.constant 0 : index
    %69 = vector.load %arg14[%c64, %c0_34] : memref<1200x256xbf16, #tpu.memory_space<vmem>>, vector<16x256xbf16>
    tpu.vector_store %arg14[%c64, %c0_34], %68 {strides = array<i32>} : memref<1200x256xbf16, #tpu.memory_space<vmem>>, vector<16x256xbf16>,
    %c18_i32 = arith.constant 18 : i32
    %70 = tpu.dynamic_rotate %12 by %c18_i32 dim 1 : vector<16x256xf32>, i32 -> vector<16x256xf32>
    %c1_i32_35 = arith.constant 1 : i32
    %71 = vector.broadcast %c1_i32_35 : i32 to vector<1x256xi32>
    %72 = arith.cmpi sge, %0, %71 : vector<1x256xi32>
    %c2_i32_36 = arith.constant 2 : i32
    %73 = vector.broadcast %c2_i32_36 : i32 to vector<1x256xi32>
    %74 = arith.cmpi sge, %1, %73 : vector<1x256xi32>
    %75 = arith.andi %72, %74 : vector<1x256xi1>
    %cst_37 = arith.constant 0.000000e+00 : f32
    %76 = vector.shape_cast %75 : vector<1x256xi1> to vector<1x256xi1>
    %77 = vector.broadcast %76 : vector<1x256xi1> to vector<16x256xi1>
    %78 = vector.broadcast %cst_37 : f32 to vector<16x256xf32>
    %79 = arith.select %77, %70, %78 : vector<16x256xi1>, vector<16x256xf32>
    %80 = arith.truncf %79 : vector<16x256xf32> to vector<16x256xbf16>
    %c80 = arith.constant 80 : index
    %c0_38 = arith.constant 0 : index
    %81 = vector.load %arg14[%c80, %c0_38] : memref<1200x256xbf16, #tpu.memory_space<vmem>>, vector<16x256xbf16>
    tpu.vector_store %arg14[%c80, %c0_38], %80 {strides = array<i32>} : memref<1200x256xbf16, #tpu.memory_space<vmem>>, vector<16x256xbf16>,
    %c17_i32 = arith.constant 17 : i32
    %82 = tpu.dynamic_rotate %12 by %c17_i32 dim 1 : vector<16x256xf32>, i32 -> vector<16x256xf32>
    %c1_i32_39 = arith.constant 1 : i32
    %83 = vector.broadcast %c1_i32_39 : i32 to vector<1x256xi32>
    %84 = arith.cmpi sge, %0, %83 : vector<1x256xi32>
    %c1_i32_40 = arith.constant 1 : i32
    %85 = vector.broadcast %c1_i32_40 : i32 to vector<1x256xi32>
    %86 = arith.cmpi sge, %1, %85 : vector<1x256xi32>
    %87 = arith.andi %84, %86 : vector<1x256xi1>
    %cst_41 = arith.constant 0.000000e+00 : f32
    %88 = vector.shape_cast %87 : vector<1x256xi1> to vector<1x256xi1>
    %89 = vector.broadcast %88 : vector<1x256xi1> to vector<16x256xi1>
    %90 = vector.broadcast %cst_41 : f32 to vector<16x256xf32>
    %91 = arith.select %89, %82, %90 : vector<16x256xi1>, vector<16x256xf32>
    %92 = arith.truncf %91 : vector<16x256xf32> to vector<16x256xbf16>
    %c96 = arith.constant 96 : index
    %c0_42 = arith.constant 0 : index
    %93 = vector.load %arg14[%c96, %c0_42] : memref<1200x256xbf16, #tpu.memory_space<vmem>>, vector<16x256xbf16>
    tpu.vector_store %arg14[%c96, %c0_42], %92 {strides = array<i32>} : memref<1200x256xbf16, #tpu.memory_space<vmem>>, vector<16x256xbf16>,
    %c16_i32 = arith.constant 16 : i32
    %94 = tpu.dynamic_rotate %12 by %c16_i32 dim 1 : vector<16x256xf32>, i32 -> vector<16x256xf32>
    %c1_i32_43 = arith.constant 1 : i32
    %95 = vector.broadcast %c1_i32_43 : i32 to vector<1x256xi32>
    %96 = arith.cmpi sge, %0, %95 : vector<1x256xi32>
    %cst_44 = arith.constant 0.000000e+00 : f32
    %97 = vector.shape_cast %96 : vector<1x256xi1> to vector<1x256xi1>
    %98 = vector.broadcast %97 : vector<1x256xi1> to vector<16x256xi1>
    %99 = vector.broadcast %cst_44 : f32 to vector<16x256xf32>
    %100 = arith.select %98, %94, %99 : vector<16x256xi1>, vector<16x256xf32>
    %101 = arith.truncf %100 : vector<16x256xf32> to vector<16x256xbf16>
    %c112 = arith.constant 112 : index
    %c0_45 = arith.constant 0 : index
    %102 = vector.load %arg14[%c112, %c0_45] : memref<1200x256xbf16, #tpu.memory_space<vmem>>, vector<16x256xbf16>
    tpu.vector_store %arg14[%c112, %c0_45], %101 {strides = array<i32>} : memref<1200x256xbf16, #tpu.memory_space<vmem>>, vector<16x256xbf16>,
    %c15_i32_46 = arith.constant 15 : i32
    %103 = tpu.dynamic_rotate %12 by %c15_i32_46 dim 1 : vector<16x256xf32>, i32 -> vector<16x256xf32>
    %c1_i32_47 = arith.constant 1 : i32
    %104 = vector.broadcast %c1_i32_47 : i32 to vector<1x256xi32>
    %105 = arith.cmpi sge, %0, %104 : vector<1x256xi32>
    %c15_i32_48 = arith.constant 15 : i32
    %106 = vector.broadcast %c15_i32_48 : i32 to vector<1x256xi32>
    %107 = arith.cmpi slt, %1, %106 : vector<1x256xi32>
    %108 = arith.andi %105, %107 : vector<1x256xi1>
    %cst_49 = arith.constant 0.000000e+00 : f32
    %109 = vector.shape_cast %108 : vector<1x256xi1> to vector<1x256xi1>
    %110 = vector.broadcast %109 : vector<1x256xi1> to vector<16x256xi1>
    %111 = vector.broadcast %cst_49 : f32 to vector<16x256xf32>
    %112 = arith.select %110, %103, %111 : vector<16x256xi1>, vector<16x256xf32>
    %113 = arith.truncf %112 : vector<16x256xf32> to vector<16x256xbf16>
    %c128 = arith.constant 128 : index
    %c0_50 = arith.constant 0 : index
    %114 = vector.load %arg14[%c128, %c0_50] : memref<1200x256xbf16, #tpu.memory_space<vmem>>, vector<16x256xbf16>
    tpu.vector_store %arg14[%c128, %c0_50], %113 {strides = array<i32>} : memref<1200x256xbf16, #tpu.memory_space<vmem>>, vector<16x256xbf16>,
    %c14_i32_51 = arith.constant 14 : i32
    %115 = tpu.dynamic_rotate %12 by %c14_i32_51 dim 1 : vector<16x256xf32>, i32 -> vector<16x256xf32>
    %c1_i32_52 = arith.constant 1 : i32
    %116 = vector.broadcast %c1_i32_52 : i32 to vector<1x256xi32>
    %117 = arith.cmpi sge, %0, %116 : vector<1x256xi32>
    %c14_i32_53 = arith.constant 14 : i32
    %118 = vector.broadcast %c14_i32_53 : i32 to vector<1x256xi32>
    %119 = arith.cmpi slt, %1, %118 : vector<1x256xi32>
    %120 = arith.andi %117, %119 : vector<1x256xi1>
    %cst_54 = arith.constant 0.000000e+00 : f32
    %121 = vector.shape_cast %120 : vector<1x256xi1> to vector<1x256xi1>
    %122 = vector.broadcast %121 : vector<1x256xi1> to vector<16x256xi1>
    %123 = vector.broadcast %cst_54 : f32 to vector<16x256xf32>
    %124 = arith.select %122, %115, %123 : vector<16x256xi1>, vector<16x256xf32>
    %125 = arith.truncf %124 : vector<16x256xf32> to vector<16x256xbf16>
    %c144 = arith.constant 144 : index
    %c0_55 = arith.constant 0 : index
    %126 = vector.load %arg14[%c144, %c0_55] : memref<1200x256xbf16, #tpu.memory_space<vmem>>, vector<16x256xbf16>
    tpu.vector_store %arg14[%c144, %c0_55], %125 {strides = array<i32>} : memref<1200x256xbf16, #tpu.memory_space<vmem>>, vector<16x256xbf16>,
    %c2_i32_56 = arith.constant 2 : i32
    %127 = tpu.dynamic_rotate %12 by %c2_i32_56 dim 1 : vector<16x256xf32>, i32 -> vector<16x256xf32>
    %c2_i32_57 = arith.constant 2 : i32
    %128 = vector.broadcast %c2_i32_57 : i32 to vector<1x256xi32>
    %129 = arith.cmpi sge, %1, %128 : vector<1x256xi32>
    %cst_58 = arith.constant 0.000000e+00 : f32
    %130 = vector.shape_cast %129 : vector<1x256xi1> to vector<1x256xi1>
    %131 = vector.broadcast %130 : vector<1x256xi1> to vector<16x256xi1>
    %132 = vector.broadcast %cst_58 : f32 to vector<16x256xf32>
    %133 = arith.select %131, %127, %132 : vector<16x256xi1>, vector<16x256xf32>
    %134 = arith.truncf %133 : vector<16x256xf32> to vector<16x256xbf16>
    %c160 = arith.constant 160 : index
    %c0_59 = arith.constant 0 : index
    %135 = vector.load %arg14[%c160, %c0_59] : memref<1200x256xbf16, #tpu.memory_space<vmem>>, vector<16x256xbf16>
    tpu.vector_store %arg14[%c160, %c0_59], %134 {strides = array<i32>} : memref<1200x256xbf16, #tpu.memory_space<vmem>>, vector<16x256xbf16>,
    %c1_i32_60 = arith.constant 1 : i32
    %136 = tpu.dynamic_rotate %12 by %c1_i32_60 dim 1 : vector<16x256xf32>, i32 -> vector<16x256xf32>
    %c1_i32_61 = arith.constant 1 : i32
    %137 = vector.broadcast %c1_i32_61 : i32 to vector<1x256xi32>
    %138 = arith.cmpi sge, %1, %137 : vector<1x256xi32>
    %cst_62 = arith.constant 0.000000e+00 : f32
    %139 = vector.shape_cast %138 : vector<1x256xi1> to vector<1x256xi1>
    %140 = vector.broadcast %139 : vector<1x256xi1> to vector<16x256xi1>
    %141 = vector.broadcast %cst_62 : f32 to vector<16x256xf32>
    %142 = arith.select %140, %136, %141 : vector<16x256xi1>, vector<16x256xf32>
    %143 = arith.truncf %142 : vector<16x256xf32> to vector<16x256xbf16>
    %c176 = arith.constant 176 : index
    %c0_63 = arith.constant 0 : index
    %144 = vector.load %arg14[%c176, %c0_63] : memref<1200x256xbf16, #tpu.memory_space<vmem>>, vector<16x256xbf16>
    tpu.vector_store %arg14[%c176, %c0_63], %143 {strides = array<i32>} : memref<1200x256xbf16, #tpu.memory_space<vmem>>, vector<16x256xbf16>,
    %145 = arith.truncf %12 : vector<16x256xf32> to vector<16x256xbf16>
    %c192 = arith.constant 192 : index
    %c0_64 = arith.constant 0 : index
    %146 = vector.load %arg14[%c192, %c0_64] : memref<1200x256xbf16, #tpu.memory_space<vmem>>, vector<16x256xbf16>
    tpu.vector_store %arg14[%c192, %c0_64], %145 {strides = array<i32>} : memref<1200x256xbf16, #tpu.memory_space<vmem>>, vector<16x256xbf16>,
    %c255_i32 = arith.constant 255 : i32
    %147 = tpu.dynamic_rotate %12 by %c255_i32 dim 1 : vector<16x256xf32>, i32 -> vector<16x256xf32>
    %c15_i32_65 = arith.constant 15 : i32
    %148 = vector.broadcast %c15_i32_65 : i32 to vector<1x256xi32>
    %149 = arith.cmpi slt, %1, %148 : vector<1x256xi32>
    %cst_66 = arith.constant 0.000000e+00 : f32
    %150 = vector.shape_cast %149 : vector<1x256xi1> to vector<1x256xi1>
    %151 = vector.broadcast %150 : vector<1x256xi1> to vector<16x256xi1>
    %152 = vector.broadcast %cst_66 : f32 to vector<16x256xf32>
    %153 = arith.select %151, %147, %152 : vector<16x256xi1>, vector<16x256xf32>
    %154 = arith.truncf %153 : vector<16x256xf32> to vector<16x256xbf16>
    %c208 = arith.constant 208 : index
    %c0_67 = arith.constant 0 : index
    %155 = vector.load %arg14[%c208, %c0_67] : memref<1200x256xbf16, #tpu.memory_space<vmem>>, vector<16x256xbf16>
    tpu.vector_store %arg14[%c208, %c0_67], %154 {strides = array<i32>} : memref<1200x256xbf16, #tpu.memory_space<vmem>>, vector<16x256xbf16>,
    %c254_i32 = arith.constant 254 : i32
    %156 = tpu.dynamic_rotate %12 by %c254_i32 dim 1 : vector<16x256xf32>, i32 -> vector<16x256xf32>
    %c14_i32_68 = arith.constant 14 : i32
    %157 = vector.broadcast %c14_i32_68 : i32 to vector<1x256xi32>
    %158 = arith.cmpi slt, %1, %157 : vector<1x256xi32>
    %cst_69 = arith.constant 0.000000e+00 : f32
    %159 = vector.shape_cast %158 : vector<1x256xi1> to vector<1x256xi1>
    %160 = vector.broadcast %159 : vector<1x256xi1> to vector<16x256xi1>
    %161 = vector.broadcast %cst_69 : f32 to vector<16x256xf32>
    %162 = arith.select %160, %156, %161 : vector<16x256xi1>, vector<16x256xf32>
    %163 = arith.truncf %162 : vector<16x256xf32> to vector<16x256xbf16>
    %c224 = arith.constant 224 : index
    %c0_70 = arith.constant 0 : index
    %164 = vector.load %arg14[%c224, %c0_70] : memref<1200x256xbf16, #tpu.memory_space<vmem>>, vector<16x256xbf16>
    tpu.vector_store %arg14[%c224, %c0_70], %163 {strides = array<i32>} : memref<1200x256xbf16, #tpu.memory_space<vmem>>, vector<16x256xbf16>,
    %c242_i32 = arith.constant 242 : i32
    %165 = tpu.dynamic_rotate %12 by %c242_i32 dim 1 : vector<16x256xf32>, i32 -> vector<16x256xf32>
    %c15_i32_71 = arith.constant 15 : i32
    %166 = vector.broadcast %c15_i32_71 : i32 to vector<1x256xi32>
    %167 = arith.cmpi slt, %0, %166 : vector<1x256xi32>
    %c2_i32_72 = arith.constant 2 : i32
    %168 = vector.broadcast %c2_i32_72 : i32 to vector<1x256xi32>
    %169 = arith.cmpi sge, %1, %168 : vector<1x256xi32>
    %170 = arith.andi %167, %169 : vector<1x256xi1>
    %cst_73 = arith.constant 0.000000e+00 : f32
    %171 = vector.shape_cast %170 : vector<1x256xi1> to vector<1x256xi1>
    %172 = vector.broadcast %171 : vector<1x256xi1> to vector<16x256xi1>
    %173 = vector.broadcast %cst_73 : f32 to vector<16x256xf32>
    %174 = arith.select %172, %165, %173 : vector<16x256xi1>, vector<16x256xf32>
    %175 = arith.truncf %174 : vector<16x256xf32> to vector<16x256xbf16>
    %c240 = arith.constant 240 : index
    %c0_74 = arith.constant 0 : index
    %176 = vector.load %arg14[%c240, %c0_74] : memref<1200x256xbf16, #tpu.memory_space<vmem>>, vector<16x256xbf16>
    tpu.vector_store %arg14[%c240, %c0_74], %175 {strides = array<i32>} : memref<1200x256xbf16, #tpu.memory_space<vmem>>, vector<16x256xbf16>,
    %c241_i32 = arith.constant 241 : i32
    %177 = tpu.dynamic_rotate %12 by %c241_i32 dim 1 : vector<16x256xf32>, i32 -> vector<16x256xf32>
    %c15_i32_75 = arith.constant 15 : i32
    %178 = vector.broadcast %c15_i32_75 : i32 to vector<1x256xi32>
    %179 = arith.cmpi slt, %0, %178 : vector<1x256xi32>
    %c1_i32_76 = arith.constant 1 : i32
    %180 = vector.broadcast %c1_i32_76 : i32 to vector<1x256xi32>
    %181 = arith.cmpi sge, %1, %180 : vector<1x256xi32>
    %182 = arith.andi %179, %181 : vector<1x256xi1>
    %cst_77 = arith.constant 0.000000e+00 : f32
    %183 = vector.shape_cast %182 : vector<1x256xi1> to vector<1x256xi1>
    %184 = vector.broadcast %183 : vector<1x256xi1> to vector<16x256xi1>
    %185 = vector.broadcast %cst_77 : f32 to vector<16x256xf32>
    %186 = arith.select %184, %177, %185 : vector<16x256xi1>, vector<16x256xf32>
    %187 = arith.truncf %186 : vector<16x256xf32> to vector<16x256xbf16>
    %c256 = arith.constant 256 : index
    %c0_78 = arith.constant 0 : index
    %188 = vector.load %arg14[%c256, %c0_78] : memref<1200x256xbf16, #tpu.memory_space<vmem>>, vector<16x256xbf16>
    tpu.vector_store %arg14[%c256, %c0_78], %187 {strides = array<i32>} : memref<1200x256xbf16, #tpu.memory_space<vmem>>, vector<16x256xbf16>,
    %c240_i32 = arith.constant 240 : i32
    %189 = tpu.dynamic_rotate %12 by %c240_i32 dim 1 : vector<16x256xf32>, i32 -> vector<16x256xf32>
    %c15_i32_79 = arith.constant 15 : i32
    %190 = vector.broadcast %c15_i32_79 : i32 to vector<1x256xi32>
    %191 = arith.cmpi slt, %0, %190 : vector<1x256xi32>
    %cst_80 = arith.constant 0.000000e+00 : f32
    %192 = vector.shape_cast %191 : vector<1x256xi1> to vector<1x256xi1>
    %193 = vector.broadcast %192 : vector<1x256xi1> to vector<16x256xi1>
    %194 = vector.broadcast %cst_80 : f32 to vector<16x256xf32>
    %195 = arith.select %193, %189, %194 : vector<16x256xi1>, vector<16x256xf32>
    %196 = arith.truncf %195 : vector<16x256xf32> to vector<16x256xbf16>
    %c272 = arith.constant 272 : index
    %c0_81 = arith.constant 0 : index
    %197 = vector.load %arg14[%c272, %c0_81] : memref<1200x256xbf16, #tpu.memory_space<vmem>>, vector<16x256xbf16>
    tpu.vector_store %arg14[%c272, %c0_81], %196 {strides = array<i32>} : memref<1200x256xbf16, #tpu.memory_space<vmem>>, vector<16x256xbf16>,
    %c239_i32 = arith.constant 239 : i32
    %198 = tpu.dynamic_rotate %12 by %c239_i32 dim 1 : vector<16x256xf32>, i32 -> vector<16x256xf32>
    %c15_i32_82 = arith.constant 15 : i32
    %199 = vector.broadcast %c15_i32_82 : i32 to vector<1x256xi32>
    %200 = arith.cmpi slt, %0, %199 : vector<1x256xi32>
    %c15_i32_83 = arith.constant 15 : i32
    %201 = vector.broadcast %c15_i32_83 : i32 to vector<1x256xi32>
    %202 = arith.cmpi slt, %1, %201 : vector<1x256xi32>
    %203 = arith.andi %200, %202 : vector<1x256xi1>
    %cst_84 = arith.constant 0.000000e+00 : f32
    %204 = vector.shape_cast %203 : vector<1x256xi1> to vector<1x256xi1>
    %205 = vector.broadcast %204 : vector<1x256xi1> to vector<16x256xi1>
    %206 = vector.broadcast %cst_84 : f32 to vector<16x256xf32>
    %207 = arith.select %205, %198, %206 : vector<16x256xi1>, vector<16x256xf32>
    %208 = arith.truncf %207 : vector<16x256xf32> to vector<16x256xbf16>
    %c288 = arith.constant 288 : index
    %c0_85 = arith.constant 0 : index
    %209 = vector.load %arg14[%c288, %c0_85] : memref<1200x256xbf16, #tpu.memory_space<vmem>>, vector<16x256xbf16>
    tpu.vector_store %arg14[%c288, %c0_85], %208 {strides = array<i32>} : memref<1200x256xbf16, #tpu.memory_space<vmem>>, vector<16x256xbf16>,
    %c238_i32 = arith.constant 238 : i32
    %210 = tpu.dynamic_rotate %12 by %c238_i32 dim 1 : vector<16x256xf32>, i32 -> vector<16x256xf32>
    %c15_i32_86 = arith.constant 15 : i32
    %211 = vector.broadcast %c15_i32_86 : i32 to vector<1x256xi32>
    %212 = arith.cmpi slt, %0, %211 : vector<1x256xi32>
    %c14_i32_87 = arith.constant 14 : i32
    %213 = vector.broadcast %c14_i32_87 : i32 to vector<1x256xi32>
    %214 = arith.cmpi slt, %1, %213 : vector<1x256xi32>
    %215 = arith.andi %212, %214 : vector<1x256xi1>
    %cst_88 = arith.constant 0.000000e+00 : f32
    %216 = vector.shape_cast %215 : vector<1x256xi1> to vector<1x256xi1>
    %217 = vector.broadcast %216 : vector<1x256xi1> to vector<16x256xi1>
    %218 = vector.broadcast %cst_88 : f32 to vector<16x256xf32>
    %219 = arith.select %217, %210, %218 : vector<16x256xi1>, vector<16x256xf32>
    %220 = arith.truncf %219 : vector<16x256xf32> to vector<16x256xbf16>
    %c304 = arith.constant 304 : index
    %c0_89 = arith.constant 0 : index
    %221 = vector.load %arg14[%c304, %c0_89] : memref<1200x256xbf16, #tpu.memory_space<vmem>>, vector<16x256xbf16>
    tpu.vector_store %arg14[%c304, %c0_89], %220 {strides = array<i32>} : memref<1200x256xbf16, #tpu.memory_space<vmem>>, vector<16x256xbf16>,
    %c226_i32 = arith.constant 226 : i32
    %222 = tpu.dynamic_rotate %12 by %c226_i32 dim 1 : vector<16x256xf32>, i32 -> vector<16x256xf32>
    %c14_i32_90 = arith.constant 14 : i32
    %223 = vector.broadcast %c14_i32_90 : i32 to vector<1x256xi32>
    %224 = arith.cmpi slt, %0, %223 : vector<1x256xi32>
    %c2_i32_91 = arith.constant 2 : i32
    %225 = vector.broadcast %c2_i32_91 : i32 to vector<1x256xi32>
    %226 = arith.cmpi sge, %1, %225 : vector<1x256xi32>
    %227 = arith.andi %224, %226 : vector<1x256xi1>
    %cst_92 = arith.constant 0.000000e+00 : f32
    %228 = vector.shape_cast %227 : vector<1x256xi1> to vector<1x256xi1>
    %229 = vector.broadcast %228 : vector<1x256xi1> to vector<16x256xi1>
    %230 = vector.broadcast %cst_92 : f32 to vector<16x256xf32>
    %231 = arith.select %229, %222, %230 : vector<16x256xi1>, vector<16x256xf32>
    %232 = arith.truncf %231 : vector<16x256xf32> to vector<16x256xbf16>
    %c320 = arith.constant 320 : index
    %c0_93 = arith.constant 0 : index
    %233 = vector.load %arg14[%c320, %c0_93] : memref<1200x256xbf16, #tpu.memory_space<vmem>>, vector<16x256xbf16>
    tpu.vector_store %arg14[%c320, %c0_93], %232 {strides = array<i32>} : memref<1200x256xbf16, #tpu.memory_space<vmem>>, vector<16x256xbf16>,
    %c225_i32 = arith.constant 225 : i32
    %234 = tpu.dynamic_rotate %12 by %c225_i32 dim 1 : vector<16x256xf32>, i32 -> vector<16x256xf32>
    %c14_i32_94 = arith.constant 14 : i32
    %235 = vector.broadcast %c14_i32_94 : i32 to vector<1x256xi32>
    %236 = arith.cmpi slt, %0, %235 : vector<1x256xi32>
    %c1_i32_95 = arith.constant 1 : i32
    %237 = vector.broadcast %c1_i32_95 : i32 to vector<1x256xi32>
    %238 = arith.cmpi sge, %1, %237 : vector<1x256xi32>
    %239 = arith.andi %236, %238 : vector<1x256xi1>
    %cst_96 = arith.constant 0.000000e+00 : f32
    %240 = vector.shape_cast %239 : vector<1x256xi1> to vector<1x256xi1>
    %241 = vector.broadcast %240 : vector<1x256xi1> to vector<16x256xi1>
    %242 = vector.broadcast %cst_96 : f32 to vector<16x256xf32>
    %243 = arith.select %241, %234, %242 : vector<16x256xi1>, vector<16x256xf32>
    %244 = arith.truncf %243 : vector<16x256xf32> to vector<16x256xbf16>
    %c336 = arith.constant 336 : index
    %c0_97 = arith.constant 0 : index
    %245 = vector.load %arg14[%c336, %c0_97] : memref<1200x256xbf16, #tpu.memory_space<vmem>>, vector<16x256xbf16>
    tpu.vector_store %arg14[%c336, %c0_97], %244 {strides = array<i32>} : memref<1200x256xbf16, #tpu.memory_space<vmem>>, vector<16x256xbf16>,
    %c224_i32 = arith.constant 224 : i32
    %246 = tpu.dynamic_rotate %12 by %c224_i32 dim 1 : vector<16x256xf32>, i32 -> vector<16x256xf32>
    %c14_i32_98 = arith.constant 14 : i32
    %247 = vector.broadcast %c14_i32_98 : i32 to vector<1x256xi32>
    %248 = arith.cmpi slt, %0, %247 : vector<1x256xi32>
    %cst_99 = arith.constant 0.000000e+00 : f32
    %249 = vector.shape_cast %248 : vector<1x256xi1> to vector<1x256xi1>
    %250 = vector.broadcast %249 : vector<1x256xi1> to vector<16x256xi1>
    %251 = vector.broadcast %cst_99 : f32 to vector<16x256xf32>
    %252 = arith.select %250, %246, %251 : vector<16x256xi1>, vector<16x256xf32>
    %253 = arith.truncf %252 : vector<16x256xf32> to vector<16x256xbf16>
    %c352 = arith.constant 352 : index
    %c0_100 = arith.constant 0 : index
    %254 = vector.load %arg14[%c352, %c0_100] : memref<1200x256xbf16, #tpu.memory_space<vmem>>, vector<16x256xbf16>
    tpu.vector_store %arg14[%c352, %c0_100], %253 {strides = array<i32>} : memref<1200x256xbf16, #tpu.memory_space<vmem>>, vector<16x256xbf16>,
    %c223_i32 = arith.constant 223 : i32
    %255 = tpu.dynamic_rotate %12 by %c223_i32 dim 1 : vector<16x256xf32>, i32 -> vector<16x256xf32>
    %c14_i32_101 = arith.constant 14 : i32
    %256 = vector.broadcast %c14_i32_101 : i32 to vector<1x256xi32>
    %257 = arith.cmpi slt, %0, %256 : vector<1x256xi32>
    %c15_i32_102 = arith.constant 15 : i32
    %258 = vector.broadcast %c15_i32_102 : i32 to vector<1x256xi32>
    %259 = arith.cmpi slt, %1, %258 : vector<1x256xi32>
    %260 = arith.andi %257, %259 : vector<1x256xi1>
    %cst_103 = arith.constant 0.000000e+00 : f32
    %261 = vector.shape_cast %260 : vector<1x256xi1> to vector<1x256xi1>
    %262 = vector.broadcast %261 : vector<1x256xi1> to vector<16x256xi1>
    %263 = vector.broadcast %cst_103 : f32 to vector<16x256xf32>
    %264 = arith.select %262, %255, %263 : vector<16x256xi1>, vector<16x256xf32>
    %265 = arith.truncf %264 : vector<16x256xf32> to vector<16x256xbf16>
    %c368 = arith.constant 368 : index
    %c0_104 = arith.constant 0 : index
    %266 = vector.load %arg14[%c368, %c0_104] : memref<1200x256xbf16, #tpu.memory_space<vmem>>, vector<16x256xbf16>
    tpu.vector_store %arg14[%c368, %c0_104], %265 {strides = array<i32>} : memref<1200x256xbf16, #tpu.memory_space<vmem>>, vector<16x256xbf16>,
    %c222_i32 = arith.constant 222 : i32
    %267 = tpu.dynamic_rotate %12 by %c222_i32 dim 1 : vector<16x256xf32>, i32 -> vector<16x256xf32>
    %c14_i32_105 = arith.constant 14 : i32
    %268 = vector.broadcast %c14_i32_105 : i32 to vector<1x256xi32>
    %269 = arith.cmpi slt, %0, %268 : vector<1x256xi32>
    %c14_i32_106 = arith.constant 14 : i32
    %270 = vector.broadcast %c14_i32_106 : i32 to vector<1x256xi32>
    %271 = arith.cmpi slt, %1, %270 : vector<1x256xi32>
    %272 = arith.andi %269, %271 : vector<1x256xi1>
    %cst_107 = arith.constant 0.000000e+00 : f32
    %273 = vector.shape_cast %272 : vector<1x256xi1> to vector<1x256xi1>
    %274 = vector.broadcast %273 : vector<1x256xi1> to vector<16x256xi1>
    %275 = vector.broadcast %cst_107 : f32 to vector<16x256xf32>
    %276 = arith.select %274, %267, %275 : vector<16x256xi1>, vector<16x256xf32>
    %277 = arith.truncf %276 : vector<16x256xf32> to vector<16x256xbf16>
    %c384 = arith.constant 384 : index
    %c0_108 = arith.constant 0 : index
    %278 = vector.load %arg14[%c384, %c0_108] : memref<1200x256xbf16, #tpu.memory_space<vmem>>, vector<16x256xbf16>
    tpu.vector_store %arg14[%c384, %c0_108], %277 {strides = array<i32>} : memref<1200x256xbf16, #tpu.memory_space<vmem>>, vector<16x256xbf16>,
    %c0_109 = arith.constant 0 : index
    %c0_110 = arith.constant 0 : index
    %279 = vector.load %arg5[%c0_109, %c0_110] : memref<48x400xbf16, #tpu.memory_space<vmem>>, vector<48x400xbf16>
    %c0_111 = arith.constant 0 : index
    %c0_112 = arith.constant 0 : index
    %280 = vector.load %arg14[%c0_111, %c0_112] : memref<1200x256xbf16, #tpu.memory_space<vmem>>, vector<400x256xbf16>
    %cst_113 = arith.constant dense<0.000000e+00> : vector<48x256xf32>
    %281 = tpu.matmul %279, %280, %cst_113 {dimension_numbers = #tpu.dot_dimension_numbers<[1], [0], [0], [1], [0, 0, 1, 1], [], []>} : vector<48x400xbf16>, vector<400x256xbf16>, vector<48x256xf32> -> vector<48x256xf32>
    %c0_114 = arith.constant 0 : index
    %c0_115 = arith.constant 0 : index
    %282 = vector.load %arg6[%c0_114, %c0_115] : memref<48x1xf32, #tpu.memory_space<vmem>>, vector<48x1xf32>
    %283 = vector.broadcast %282 : vector<48x1xf32> to vector<48x256xf32>
    %284 = arith.addf %281, %283 : vector<48x256xf32>
    %cst_116 = arith.constant 0.000000e+00 : f32
    %285 = vector.broadcast %cst_116 : f32 to vector<48x256xf32>
    %286 = arith.maximumf %284, %285 : vector<48x256xf32>
    %c34_i32_117 = arith.constant 34 : i32
    %287 = tpu.dynamic_rotate %286 by %c34_i32_117 dim 1 : vector<48x256xf32>, i32 -> vector<48x256xf32>
    %c2_i32_118 = arith.constant 2 : i32
    %288 = vector.broadcast %c2_i32_118 : i32 to vector<1x256xi32>
    %289 = arith.cmpi sge, %0, %288 : vector<1x256xi32>
    %c2_i32_119 = arith.constant 2 : i32
    %290 = vector.broadcast %c2_i32_119 : i32 to vector<1x256xi32>
    %291 = arith.cmpi sge, %1, %290 : vector<1x256xi32>
    %292 = arith.andi %289, %291 : vector<1x256xi1>
    %cst_120 = arith.constant 0.000000e+00 : f32
    %293 = vector.shape_cast %292 : vector<1x256xi1> to vector<1x256xi1>
    %294 = vector.broadcast %293 : vector<1x256xi1> to vector<48x256xi1>
    %295 = vector.broadcast %cst_120 : f32 to vector<48x256xf32>
    %296 = arith.select %294, %287, %295 : vector<48x256xi1>, vector<48x256xf32>
    %297 = arith.truncf %296 : vector<48x256xf32> to vector<48x256xbf16>
    %c0_121 = arith.constant 0 : index
    %c0_122 = arith.constant 0 : index
    %298 = vector.load %arg14[%c0_121, %c0_122] : memref<1200x256xbf16, #tpu.memory_space<vmem>>, vector<48x256xbf16>
    tpu.vector_store %arg14[%c0_121, %c0_122], %297 {strides = array<i32>} : memref<1200x256xbf16, #tpu.memory_space<vmem>>, vector<48x256xbf16>,
    %c33_i32_123 = arith.constant 33 : i32
    %299 = tpu.dynamic_rotate %286 by %c33_i32_123 dim 1 : vector<48x256xf32>, i32 -> vector<48x256xf32>
    %c2_i32_124 = arith.constant 2 : i32
    %300 = vector.broadcast %c2_i32_124 : i32 to vector<1x256xi32>
    %301 = arith.cmpi sge, %0, %300 : vector<1x256xi32>
    %c1_i32_125 = arith.constant 1 : i32
    %302 = vector.broadcast %c1_i32_125 : i32 to vector<1x256xi32>
    %303 = arith.cmpi sge, %1, %302 : vector<1x256xi32>
    %304 = arith.andi %301, %303 : vector<1x256xi1>
    %cst_126 = arith.constant 0.000000e+00 : f32
    %305 = vector.shape_cast %304 : vector<1x256xi1> to vector<1x256xi1>
    %306 = vector.broadcast %305 : vector<1x256xi1> to vector<48x256xi1>
    %307 = vector.broadcast %cst_126 : f32 to vector<48x256xf32>
    %308 = arith.select %306, %299, %307 : vector<48x256xi1>, vector<48x256xf32>
    %309 = arith.truncf %308 : vector<48x256xf32> to vector<48x256xbf16>
    %c48_127 = arith.constant 48 : index
    %c0_128 = arith.constant 0 : index
    %310 = vector.load %arg14[%c48_127, %c0_128] : memref<1200x256xbf16, #tpu.memory_space<vmem>>, vector<48x256xbf16>
    tpu.vector_store %arg14[%c48_127, %c0_128], %309 {strides = array<i32>} : memref<1200x256xbf16, #tpu.memory_space<vmem>>, vector<48x256xbf16>,
    %c32_i32_129 = arith.constant 32 : i32
    %311 = tpu.dynamic_rotate %286 by %c32_i32_129 dim 1 : vector<48x256xf32>, i32 -> vector<48x256xf32>
    %c2_i32_130 = arith.constant 2 : i32
    %312 = vector.broadcast %c2_i32_130 : i32 to vector<1x256xi32>
    %313 = arith.cmpi sge, %0, %312 : vector<1x256xi32>
    %cst_131 = arith.constant 0.000000e+00 : f32
    %314 = vector.shape_cast %313 : vector<1x256xi1> to vector<1x256xi1>
    %315 = vector.broadcast %314 : vector<1x256xi1> to vector<48x256xi1>
    %316 = vector.broadcast %cst_131 : f32 to vector<48x256xf32>
    %317 = arith.select %315, %311, %316 : vector<48x256xi1>, vector<48x256xf32>
    %318 = arith.truncf %317 : vector<48x256xf32> to vector<48x256xbf16>
    %c96_132 = arith.constant 96 : index
    %c0_133 = arith.constant 0 : index
    %319 = vector.load %arg14[%c96_132, %c0_133] : memref<1200x256xbf16, #tpu.memory_space<vmem>>, vector<48x256xbf16>
    tpu.vector_store %arg14[%c96_132, %c0_133], %318 {strides = array<i32>} : memref<1200x256xbf16, #tpu.memory_space<vmem>>, vector<48x256xbf16>,
    %c31_i32_134 = arith.constant 31 : i32
    %320 = tpu.dynamic_rotate %286 by %c31_i32_134 dim 1 : vector<48x256xf32>, i32 -> vector<48x256xf32>
    %c2_i32_135 = arith.constant 2 : i32
    %321 = vector.broadcast %c2_i32_135 : i32 to vector<1x256xi32>
    %322 = arith.cmpi sge, %0, %321 : vector<1x256xi32>
    %c15_i32_136 = arith.constant 15 : i32
    %323 = vector.broadcast %c15_i32_136 : i32 to vector<1x256xi32>
    %324 = arith.cmpi slt, %1, %323 : vector<1x256xi32>
    %325 = arith.andi %322, %324 : vector<1x256xi1>
    %cst_137 = arith.constant 0.000000e+00 : f32
    %326 = vector.shape_cast %325 : vector<1x256xi1> to vector<1x256xi1>
    %327 = vector.broadcast %326 : vector<1x256xi1> to vector<48x256xi1>
    %328 = vector.broadcast %cst_137 : f32 to vector<48x256xf32>
    %329 = arith.select %327, %320, %328 : vector<48x256xi1>, vector<48x256xf32>
    %330 = arith.truncf %329 : vector<48x256xf32> to vector<48x256xbf16>
    %c144_138 = arith.constant 144 : index
    %c0_139 = arith.constant 0 : index
    %331 = vector.load %arg14[%c144_138, %c0_139] : memref<1200x256xbf16, #tpu.memory_space<vmem>>, vector<48x256xbf16>
    tpu.vector_store %arg14[%c144_138, %c0_139], %330 {strides = array<i32>} : memref<1200x256xbf16, #tpu.memory_space<vmem>>, vector<48x256xbf16>,
    %c30_i32_140 = arith.constant 30 : i32
    %332 = tpu.dynamic_rotate %286 by %c30_i32_140 dim 1 : vector<48x256xf32>, i32 -> vector<48x256xf32>
    %c2_i32_141 = arith.constant 2 : i32
    %333 = vector.broadcast %c2_i32_141 : i32 to vector<1x256xi32>
    %334 = arith.cmpi sge, %0, %333 : vector<1x256xi32>
    %c14_i32_142 = arith.constant 14 : i32
    %335 = vector.broadcast %c14_i32_142 : i32 to vector<1x256xi32>
    %336 = arith.cmpi slt, %1, %335 : vector<1x256xi32>
    %337 = arith.andi %334, %336 : vector<1x256xi1>
    %cst_143 = arith.constant 0.000000e+00 : f32
    %338 = vector.shape_cast %337 : vector<1x256xi1> to vector<1x256xi1>
    %339 = vector.broadcast %338 : vector<1x256xi1> to vector<48x256xi1>
    %340 = vector.broadcast %cst_143 : f32 to vector<48x256xf32>
    %341 = arith.select %339, %332, %340 : vector<48x256xi1>, vector<48x256xf32>
    %342 = arith.truncf %341 : vector<48x256xf32> to vector<48x256xbf16>
    %c192_144 = arith.constant 192 : index
    %c0_145 = arith.constant 0 : index
    %343 = vector.load %arg14[%c192_144, %c0_145] : memref<1200x256xbf16, #tpu.memory_space<vmem>>, vector<48x256xbf16>
    tpu.vector_store %arg14[%c192_144, %c0_145], %342 {strides = array<i32>} : memref<1200x256xbf16, #tpu.memory_space<vmem>>, vector<48x256xbf16>,
    %c18_i32_146 = arith.constant 18 : i32
    %344 = tpu.dynamic_rotate %286 by %c18_i32_146 dim 1 : vector<48x256xf32>, i32 -> vector<48x256xf32>
    %c1_i32_147 = arith.constant 1 : i32
    %345 = vector.broadcast %c1_i32_147 : i32 to vector<1x256xi32>
    %346 = arith.cmpi sge, %0, %345 : vector<1x256xi32>
    %c2_i32_148 = arith.constant 2 : i32
    %347 = vector.broadcast %c2_i32_148 : i32 to vector<1x256xi32>
    %348 = arith.cmpi sge, %1, %347 : vector<1x256xi32>
    %349 = arith.andi %346, %348 : vector<1x256xi1>
    %cst_149 = arith.constant 0.000000e+00 : f32
    %350 = vector.shape_cast %349 : vector<1x256xi1> to vector<1x256xi1>
    %351 = vector.broadcast %350 : vector<1x256xi1> to vector<48x256xi1>
    %352 = vector.broadcast %cst_149 : f32 to vector<48x256xf32>
    %353 = arith.select %351, %344, %352 : vector<48x256xi1>, vector<48x256xf32>
    %354 = arith.truncf %353 : vector<48x256xf32> to vector<48x256xbf16>
    %c240_150 = arith.constant 240 : index
    %c0_151 = arith.constant 0 : index
    %355 = vector.load %arg14[%c240_150, %c0_151] : memref<1200x256xbf16, #tpu.memory_space<vmem>>, vector<48x256xbf16>
    tpu.vector_store %arg14[%c240_150, %c0_151], %354 {strides = array<i32>} : memref<1200x256xbf16, #tpu.memory_space<vmem>>, vector<48x256xbf16>,
    %c17_i32_152 = arith.constant 17 : i32
    %356 = tpu.dynamic_rotate %286 by %c17_i32_152 dim 1 : vector<48x256xf32>, i32 -> vector<48x256xf32>
    %c1_i32_153 = arith.constant 1 : i32
    %357 = vector.broadcast %c1_i32_153 : i32 to vector<1x256xi32>
    %358 = arith.cmpi sge, %0, %357 : vector<1x256xi32>
    %c1_i32_154 = arith.constant 1 : i32
    %359 = vector.broadcast %c1_i32_154 : i32 to vector<1x256xi32>
    %360 = arith.cmpi sge, %1, %359 : vector<1x256xi32>
    %361 = arith.andi %358, %360 : vector<1x256xi1>
    %cst_155 = arith.constant 0.000000e+00 : f32
    %362 = vector.shape_cast %361 : vector<1x256xi1> to vector<1x256xi1>
    %363 = vector.broadcast %362 : vector<1x256xi1> to vector<48x256xi1>
    %364 = vector.broadcast %cst_155 : f32 to vector<48x256xf32>
    %365 = arith.select %363, %356, %364 : vector<48x256xi1>, vector<48x256xf32>
    %366 = arith.truncf %365 : vector<48x256xf32> to vector<48x256xbf16>
    %c288_156 = arith.constant 288 : index
    %c0_157 = arith.constant 0 : index
    %367 = vector.load %arg14[%c288_156, %c0_157] : memref<1200x256xbf16, #tpu.memory_space<vmem>>, vector<48x256xbf16>
    tpu.vector_store %arg14[%c288_156, %c0_157], %366 {strides = array<i32>} : memref<1200x256xbf16, #tpu.memory_space<vmem>>, vector<48x256xbf16>,
    %c16_i32_158 = arith.constant 16 : i32
    %368 = tpu.dynamic_rotate %286 by %c16_i32_158 dim 1 : vector<48x256xf32>, i32 -> vector<48x256xf32>
    %c1_i32_159 = arith.constant 1 : i32
    %369 = vector.broadcast %c1_i32_159 : i32 to vector<1x256xi32>
    %370 = arith.cmpi sge, %0, %369 : vector<1x256xi32>
    %cst_160 = arith.constant 0.000000e+00 : f32
    %371 = vector.shape_cast %370 : vector<1x256xi1> to vector<1x256xi1>
    %372 = vector.broadcast %371 : vector<1x256xi1> to vector<48x256xi1>
    %373 = vector.broadcast %cst_160 : f32 to vector<48x256xf32>
    %374 = arith.select %372, %368, %373 : vector<48x256xi1>, vector<48x256xf32>
    %375 = arith.truncf %374 : vector<48x256xf32> to vector<48x256xbf16>
    %c336_161 = arith.constant 336 : index
    %c0_162 = arith.constant 0 : index
    %376 = vector.load %arg14[%c336_161, %c0_162] : memref<1200x256xbf16, #tpu.memory_space<vmem>>, vector<48x256xbf16>
    tpu.vector_store %arg14[%c336_161, %c0_162], %375 {strides = array<i32>} : memref<1200x256xbf16, #tpu.memory_space<vmem>>, vector<48x256xbf16>,
    %c15_i32_163 = arith.constant 15 : i32
    %377 = tpu.dynamic_rotate %286 by %c15_i32_163 dim 1 : vector<48x256xf32>, i32 -> vector<48x256xf32>
    %c1_i32_164 = arith.constant 1 : i32
    %378 = vector.broadcast %c1_i32_164 : i32 to vector<1x256xi32>
    %379 = arith.cmpi sge, %0, %378 : vector<1x256xi32>
    %c15_i32_165 = arith.constant 15 : i32
    %380 = vector.broadcast %c15_i32_165 : i32 to vector<1x256xi32>
    %381 = arith.cmpi slt, %1, %380 : vector<1x256xi32>
    %382 = arith.andi %379, %381 : vector<1x256xi1>
    %cst_166 = arith.constant 0.000000e+00 : f32
    %383 = vector.shape_cast %382 : vector<1x256xi1> to vector<1x256xi1>
    %384 = vector.broadcast %383 : vector<1x256xi1> to vector<48x256xi1>
    %385 = vector.broadcast %cst_166 : f32 to vector<48x256xf32>
    %386 = arith.select %384, %377, %385 : vector<48x256xi1>, vector<48x256xf32>
    %387 = arith.truncf %386 : vector<48x256xf32> to vector<48x256xbf16>
    %c384_167 = arith.constant 384 : index
    %c0_168 = arith.constant 0 : index
    %388 = vector.load %arg14[%c384_167, %c0_168] : memref<1200x256xbf16, #tpu.memory_space<vmem>>, vector<48x256xbf16>
    tpu.vector_store %arg14[%c384_167, %c0_168], %387 {strides = array<i32>} : memref<1200x256xbf16, #tpu.memory_space<vmem>>, vector<48x256xbf16>,
    %c14_i32_169 = arith.constant 14 : i32
    %389 = tpu.dynamic_rotate %286 by %c14_i32_169 dim 1 : vector<48x256xf32>, i32 -> vector<48x256xf32>
    %c1_i32_170 = arith.constant 1 : i32
    %390 = vector.broadcast %c1_i32_170 : i32 to vector<1x256xi32>
    %391 = arith.cmpi sge, %0, %390 : vector<1x256xi32>
    %c14_i32_171 = arith.constant 14 : i32
    %392 = vector.broadcast %c14_i32_171 : i32 to vector<1x256xi32>
    %393 = arith.cmpi slt, %1, %392 : vector<1x256xi32>
    %394 = arith.andi %391, %393 : vector<1x256xi1>
    %cst_172 = arith.constant 0.000000e+00 : f32
    %395 = vector.shape_cast %394 : vector<1x256xi1> to vector<1x256xi1>
    %396 = vector.broadcast %395 : vector<1x256xi1> to vector<48x256xi1>
    %397 = vector.broadcast %cst_172 : f32 to vector<48x256xf32>
    %398 = arith.select %396, %389, %397 : vector<48x256xi1>, vector<48x256xf32>
    %399 = arith.truncf %398 : vector<48x256xf32> to vector<48x256xbf16>
    %c432 = arith.constant 432 : index
    %c0_173 = arith.constant 0 : index
    %400 = vector.load %arg14[%c432, %c0_173] : memref<1200x256xbf16, #tpu.memory_space<vmem>>, vector<48x256xbf16>
    tpu.vector_store %arg14[%c432, %c0_173], %399 {strides = array<i32>} : memref<1200x256xbf16, #tpu.memory_space<vmem>>, vector<48x256xbf16>,
    %c2_i32_174 = arith.constant 2 : i32
    %401 = tpu.dynamic_rotate %286 by %c2_i32_174 dim 1 : vector<48x256xf32>, i32 -> vector<48x256xf32>
    %c2_i32_175 = arith.constant 2 : i32
    %402 = vector.broadcast %c2_i32_175 : i32 to vector<1x256xi32>
    %403 = arith.cmpi sge, %1, %402 : vector<1x256xi32>
    %cst_176 = arith.constant 0.000000e+00 : f32
    %404 = vector.shape_cast %403 : vector<1x256xi1> to vector<1x256xi1>
    %405 = vector.broadcast %404 : vector<1x256xi1> to vector<48x256xi1>
    %406 = vector.broadcast %cst_176 : f32 to vector<48x256xf32>
    %407 = arith.select %405, %401, %406 : vector<48x256xi1>, vector<48x256xf32>
    %408 = arith.truncf %407 : vector<48x256xf32> to vector<48x256xbf16>
    %c480 = arith.constant 480 : index
    %c0_177 = arith.constant 0 : index
    %409 = vector.load %arg14[%c480, %c0_177] : memref<1200x256xbf16, #tpu.memory_space<vmem>>, vector<48x256xbf16>
    tpu.vector_store %arg14[%c480, %c0_177], %408 {strides = array<i32>} : memref<1200x256xbf16, #tpu.memory_space<vmem>>, vector<48x256xbf16>,
    %c1_i32_178 = arith.constant 1 : i32
    %410 = tpu.dynamic_rotate %286 by %c1_i32_178 dim 1 : vector<48x256xf32>, i32 -> vector<48x256xf32>
    %c1_i32_179 = arith.constant 1 : i32
    %411 = vector.broadcast %c1_i32_179 : i32 to vector<1x256xi32>
    %412 = arith.cmpi sge, %1, %411 : vector<1x256xi32>
    %cst_180 = arith.constant 0.000000e+00 : f32
    %413 = vector.shape_cast %412 : vector<1x256xi1> to vector<1x256xi1>
    %414 = vector.broadcast %413 : vector<1x256xi1> to vector<48x256xi1>
    %415 = vector.broadcast %cst_180 : f32 to vector<48x256xf32>
    %416 = arith.select %414, %410, %415 : vector<48x256xi1>, vector<48x256xf32>
    %417 = arith.truncf %416 : vector<48x256xf32> to vector<48x256xbf16>
    %c528 = arith.constant 528 : index
    %c0_181 = arith.constant 0 : index
    %418 = vector.load %arg14[%c528, %c0_181] : memref<1200x256xbf16, #tpu.memory_space<vmem>>, vector<48x256xbf16>
    tpu.vector_store %arg14[%c528, %c0_181], %417 {strides = array<i32>} : memref<1200x256xbf16, #tpu.memory_space<vmem>>, vector<48x256xbf16>,
    %419 = arith.truncf %286 : vector<48x256xf32> to vector<48x256xbf16>
    %c576 = arith.constant 576 : index
    %c0_182 = arith.constant 0 : index
    %420 = vector.load %arg14[%c576, %c0_182] : memref<1200x256xbf16, #tpu.memory_space<vmem>>, vector<48x256xbf16>
    tpu.vector_store %arg14[%c576, %c0_182], %419 {strides = array<i32>} : memref<1200x256xbf16, #tpu.memory_space<vmem>>, vector<48x256xbf16>,
    %c255_i32_183 = arith.constant 255 : i32
    %421 = tpu.dynamic_rotate %286 by %c255_i32_183 dim 1 : vector<48x256xf32>, i32 -> vector<48x256xf32>
    %c15_i32_184 = arith.constant 15 : i32
    %422 = vector.broadcast %c15_i32_184 : i32 to vector<1x256xi32>
    %423 = arith.cmpi slt, %1, %422 : vector<1x256xi32>
    %cst_185 = arith.constant 0.000000e+00 : f32
    %424 = vector.shape_cast %423 : vector<1x256xi1> to vector<1x256xi1>
    %425 = vector.broadcast %424 : vector<1x256xi1> to vector<48x256xi1>
    %426 = vector.broadcast %cst_185 : f32 to vector<48x256xf32>
    %427 = arith.select %425, %421, %426 : vector<48x256xi1>, vector<48x256xf32>
    %428 = arith.truncf %427 : vector<48x256xf32> to vector<48x256xbf16>
    %c624 = arith.constant 624 : index
    %c0_186 = arith.constant 0 : index
    %429 = vector.load %arg14[%c624, %c0_186] : memref<1200x256xbf16, #tpu.memory_space<vmem>>, vector<48x256xbf16>
    tpu.vector_store %arg14[%c624, %c0_186], %428 {strides = array<i32>} : memref<1200x256xbf16, #tpu.memory_space<vmem>>, vector<48x256xbf16>,
    %c254_i32_187 = arith.constant 254 : i32
    %430 = tpu.dynamic_rotate %286 by %c254_i32_187 dim 1 : vector<48x256xf32>, i32 -> vector<48x256xf32>
    %c14_i32_188 = arith.constant 14 : i32
    %431 = vector.broadcast %c14_i32_188 : i32 to vector<1x256xi32>
    %432 = arith.cmpi slt, %1, %431 : vector<1x256xi32>
    %cst_189 = arith.constant 0.000000e+00 : f32
    %433 = vector.shape_cast %432 : vector<1x256xi1> to vector<1x256xi1>
    %434 = vector.broadcast %433 : vector<1x256xi1> to vector<48x256xi1>
    %435 = vector.broadcast %cst_189 : f32 to vector<48x256xf32>
    %436 = arith.select %434, %430, %435 : vector<48x256xi1>, vector<48x256xf32>
    %437 = arith.truncf %436 : vector<48x256xf32> to vector<48x256xbf16>
    %c672 = arith.constant 672 : index
    %c0_190 = arith.constant 0 : index
    %438 = vector.load %arg14[%c672, %c0_190] : memref<1200x256xbf16, #tpu.memory_space<vmem>>, vector<48x256xbf16>
    tpu.vector_store %arg14[%c672, %c0_190], %437 {strides = array<i32>} : memref<1200x256xbf16, #tpu.memory_space<vmem>>, vector<48x256xbf16>,
    %c242_i32_191 = arith.constant 242 : i32
    %439 = tpu.dynamic_rotate %286 by %c242_i32_191 dim 1 : vector<48x256xf32>, i32 -> vector<48x256xf32>
    %c15_i32_192 = arith.constant 15 : i32
    %440 = vector.broadcast %c15_i32_192 : i32 to vector<1x256xi32>
    %441 = arith.cmpi slt, %0, %440 : vector<1x256xi32>
    %c2_i32_193 = arith.constant 2 : i32
    %442 = vector.broadcast %c2_i32_193 : i32 to vector<1x256xi32>
    %443 = arith.cmpi sge, %1, %442 : vector<1x256xi32>
    %444 = arith.andi %441, %443 : vector<1x256xi1>
    %cst_194 = arith.constant 0.000000e+00 : f32
    %445 = vector.shape_cast %444 : vector<1x256xi1> to vector<1x256xi1>
    %446 = vector.broadcast %445 : vector<1x256xi1> to vector<48x256xi1>
    %447 = vector.broadcast %cst_194 : f32 to vector<48x256xf32>
    %448 = arith.select %446, %439, %447 : vector<48x256xi1>, vector<48x256xf32>
    %449 = arith.truncf %448 : vector<48x256xf32> to vector<48x256xbf16>
    %c720 = arith.constant 720 : index
    %c0_195 = arith.constant 0 : index
    %450 = vector.load %arg14[%c720, %c0_195] : memref<1200x256xbf16, #tpu.memory_space<vmem>>, vector<48x256xbf16>
    tpu.vector_store %arg14[%c720, %c0_195], %449 {strides = array<i32>} : memref<1200x256xbf16, #tpu.memory_space<vmem>>, vector<48x256xbf16>,
    %c241_i32_196 = arith.constant 241 : i32
    %451 = tpu.dynamic_rotate %286 by %c241_i32_196 dim 1 : vector<48x256xf32>, i32 -> vector<48x256xf32>
    %c15_i32_197 = arith.constant 15 : i32
    %452 = vector.broadcast %c15_i32_197 : i32 to vector<1x256xi32>
    %453 = arith.cmpi slt, %0, %452 : vector<1x256xi32>
    %c1_i32_198 = arith.constant 1 : i32
    %454 = vector.broadcast %c1_i32_198 : i32 to vector<1x256xi32>
    %455 = arith.cmpi sge, %1, %454 : vector<1x256xi32>
    %456 = arith.andi %453, %455 : vector<1x256xi1>
    %cst_199 = arith.constant 0.000000e+00 : f32
    %457 = vector.shape_cast %456 : vector<1x256xi1> to vector<1x256xi1>
    %458 = vector.broadcast %457 : vector<1x256xi1> to vector<48x256xi1>
    %459 = vector.broadcast %cst_199 : f32 to vector<48x256xf32>
    %460 = arith.select %458, %451, %459 : vector<48x256xi1>, vector<48x256xf32>
    %461 = arith.truncf %460 : vector<48x256xf32> to vector<48x256xbf16>
    %c768 = arith.constant 768 : index
    %c0_200 = arith.constant 0 : index
    %462 = vector.load %arg14[%c768, %c0_200] : memref<1200x256xbf16, #tpu.memory_space<vmem>>, vector<48x256xbf16>
    tpu.vector_store %arg14[%c768, %c0_200], %461 {strides = array<i32>} : memref<1200x256xbf16, #tpu.memory_space<vmem>>, vector<48x256xbf16>,
    %c240_i32_201 = arith.constant 240 : i32
    %463 = tpu.dynamic_rotate %286 by %c240_i32_201 dim 1 : vector<48x256xf32>, i32 -> vector<48x256xf32>
    %c15_i32_202 = arith.constant 15 : i32
    %464 = vector.broadcast %c15_i32_202 : i32 to vector<1x256xi32>
    %465 = arith.cmpi slt, %0, %464 : vector<1x256xi32>
    %cst_203 = arith.constant 0.000000e+00 : f32
    %466 = vector.shape_cast %465 : vector<1x256xi1> to vector<1x256xi1>
    %467 = vector.broadcast %466 : vector<1x256xi1> to vector<48x256xi1>
    %468 = vector.broadcast %cst_203 : f32 to vector<48x256xf32>
    %469 = arith.select %467, %463, %468 : vector<48x256xi1>, vector<48x256xf32>
    %470 = arith.truncf %469 : vector<48x256xf32> to vector<48x256xbf16>
    %c816 = arith.constant 816 : index
    %c0_204 = arith.constant 0 : index
    %471 = vector.load %arg14[%c816, %c0_204] : memref<1200x256xbf16, #tpu.memory_space<vmem>>, vector<48x256xbf16>
    tpu.vector_store %arg14[%c816, %c0_204], %470 {strides = array<i32>} : memref<1200x256xbf16, #tpu.memory_space<vmem>>, vector<48x256xbf16>,
    %c239_i32_205 = arith.constant 239 : i32
    %472 = tpu.dynamic_rotate %286 by %c239_i32_205 dim 1 : vector<48x256xf32>, i32 -> vector<48x256xf32>
    %c15_i32_206 = arith.constant 15 : i32
    %473 = vector.broadcast %c15_i32_206 : i32 to vector<1x256xi32>
    %474 = arith.cmpi slt, %0, %473 : vector<1x256xi32>
    %c15_i32_207 = arith.constant 15 : i32
    %475 = vector.broadcast %c15_i32_207 : i32 to vector<1x256xi32>
    %476 = arith.cmpi slt, %1, %475 : vector<1x256xi32>
    %477 = arith.andi %474, %476 : vector<1x256xi1>
    %cst_208 = arith.constant 0.000000e+00 : f32
    %478 = vector.shape_cast %477 : vector<1x256xi1> to vector<1x256xi1>
    %479 = vector.broadcast %478 : vector<1x256xi1> to vector<48x256xi1>
    %480 = vector.broadcast %cst_208 : f32 to vector<48x256xf32>
    %481 = arith.select %479, %472, %480 : vector<48x256xi1>, vector<48x256xf32>
    %482 = arith.truncf %481 : vector<48x256xf32> to vector<48x256xbf16>
    %c864 = arith.constant 864 : index
    %c0_209 = arith.constant 0 : index
    %483 = vector.load %arg14[%c864, %c0_209] : memref<1200x256xbf16, #tpu.memory_space<vmem>>, vector<48x256xbf16>
    tpu.vector_store %arg14[%c864, %c0_209], %482 {strides = array<i32>} : memref<1200x256xbf16, #tpu.memory_space<vmem>>, vector<48x256xbf16>,
    %c238_i32_210 = arith.constant 238 : i32
    %484 = tpu.dynamic_rotate %286 by %c238_i32_210 dim 1 : vector<48x256xf32>, i32 -> vector<48x256xf32>
    %c15_i32_211 = arith.constant 15 : i32
    %485 = vector.broadcast %c15_i32_211 : i32 to vector<1x256xi32>
    %486 = arith.cmpi slt, %0, %485 : vector<1x256xi32>
    %c14_i32_212 = arith.constant 14 : i32
    %487 = vector.broadcast %c14_i32_212 : i32 to vector<1x256xi32>
    %488 = arith.cmpi slt, %1, %487 : vector<1x256xi32>
    %489 = arith.andi %486, %488 : vector<1x256xi1>
    %cst_213 = arith.constant 0.000000e+00 : f32
    %490 = vector.shape_cast %489 : vector<1x256xi1> to vector<1x256xi1>
    %491 = vector.broadcast %490 : vector<1x256xi1> to vector<48x256xi1>
    %492 = vector.broadcast %cst_213 : f32 to vector<48x256xf32>
    %493 = arith.select %491, %484, %492 : vector<48x256xi1>, vector<48x256xf32>
    %494 = arith.truncf %493 : vector<48x256xf32> to vector<48x256xbf16>
    %c912 = arith.constant 912 : index
    %c0_214 = arith.constant 0 : index
    %495 = vector.load %arg14[%c912, %c0_214] : memref<1200x256xbf16, #tpu.memory_space<vmem>>, vector<48x256xbf16>
    tpu.vector_store %arg14[%c912, %c0_214], %494 {strides = array<i32>} : memref<1200x256xbf16, #tpu.memory_space<vmem>>, vector<48x256xbf16>,
    %c226_i32_215 = arith.constant 226 : i32
    %496 = tpu.dynamic_rotate %286 by %c226_i32_215 dim 1 : vector<48x256xf32>, i32 -> vector<48x256xf32>
    %c14_i32_216 = arith.constant 14 : i32
    %497 = vector.broadcast %c14_i32_216 : i32 to vector<1x256xi32>
    %498 = arith.cmpi slt, %0, %497 : vector<1x256xi32>
    %c2_i32_217 = arith.constant 2 : i32
    %499 = vector.broadcast %c2_i32_217 : i32 to vector<1x256xi32>
    %500 = arith.cmpi sge, %1, %499 : vector<1x256xi32>
    %501 = arith.andi %498, %500 : vector<1x256xi1>
    %cst_218 = arith.constant 0.000000e+00 : f32
    %502 = vector.shape_cast %501 : vector<1x256xi1> to vector<1x256xi1>
    %503 = vector.broadcast %502 : vector<1x256xi1> to vector<48x256xi1>
    %504 = vector.broadcast %cst_218 : f32 to vector<48x256xf32>
    %505 = arith.select %503, %496, %504 : vector<48x256xi1>, vector<48x256xf32>
    %506 = arith.truncf %505 : vector<48x256xf32> to vector<48x256xbf16>
    %c960 = arith.constant 960 : index
    %c0_219 = arith.constant 0 : index
    %507 = vector.load %arg14[%c960, %c0_219] : memref<1200x256xbf16, #tpu.memory_space<vmem>>, vector<48x256xbf16>
    tpu.vector_store %arg14[%c960, %c0_219], %506 {strides = array<i32>} : memref<1200x256xbf16, #tpu.memory_space<vmem>>, vector<48x256xbf16>,
    %c225_i32_220 = arith.constant 225 : i32
    %508 = tpu.dynamic_rotate %286 by %c225_i32_220 dim 1 : vector<48x256xf32>, i32 -> vector<48x256xf32>
    %c14_i32_221 = arith.constant 14 : i32
    %509 = vector.broadcast %c14_i32_221 : i32 to vector<1x256xi32>
    %510 = arith.cmpi slt, %0, %509 : vector<1x256xi32>
    %c1_i32_222 = arith.constant 1 : i32
    %511 = vector.broadcast %c1_i32_222 : i32 to vector<1x256xi32>
    %512 = arith.cmpi sge, %1, %511 : vector<1x256xi32>
    %513 = arith.andi %510, %512 : vector<1x256xi1>
    %cst_223 = arith.constant 0.000000e+00 : f32
    %514 = vector.shape_cast %513 : vector<1x256xi1> to vector<1x256xi1>
    %515 = vector.broadcast %514 : vector<1x256xi1> to vector<48x256xi1>
    %516 = vector.broadcast %cst_223 : f32 to vector<48x256xf32>
    %517 = arith.select %515, %508, %516 : vector<48x256xi1>, vector<48x256xf32>
    %518 = arith.truncf %517 : vector<48x256xf32> to vector<48x256xbf16>
    %c1008 = arith.constant 1008 : index
    %c0_224 = arith.constant 0 : index
    %519 = vector.load %arg14[%c1008, %c0_224] : memref<1200x256xbf16, #tpu.memory_space<vmem>>, vector<48x256xbf16>
    tpu.vector_store %arg14[%c1008, %c0_224], %518 {strides = array<i32>} : memref<1200x256xbf16, #tpu.memory_space<vmem>>, vector<48x256xbf16>,
    %c224_i32_225 = arith.constant 224 : i32
    %520 = tpu.dynamic_rotate %286 by %c224_i32_225 dim 1 : vector<48x256xf32>, i32 -> vector<48x256xf32>
    %c14_i32_226 = arith.constant 14 : i32
    %521 = vector.broadcast %c14_i32_226 : i32 to vector<1x256xi32>
    %522 = arith.cmpi slt, %0, %521 : vector<1x256xi32>
    %cst_227 = arith.constant 0.000000e+00 : f32
    %523 = vector.shape_cast %522 : vector<1x256xi1> to vector<1x256xi1>
    %524 = vector.broadcast %523 : vector<1x256xi1> to vector<48x256xi1>
    %525 = vector.broadcast %cst_227 : f32 to vector<48x256xf32>
    %526 = arith.select %524, %520, %525 : vector<48x256xi1>, vector<48x256xf32>
    %527 = arith.truncf %526 : vector<48x256xf32> to vector<48x256xbf16>
    %c1056 = arith.constant 1056 : index
    %c0_228 = arith.constant 0 : index
    %528 = vector.load %arg14[%c1056, %c0_228] : memref<1200x256xbf16, #tpu.memory_space<vmem>>, vector<48x256xbf16>
    tpu.vector_store %arg14[%c1056, %c0_228], %527 {strides = array<i32>} : memref<1200x256xbf16, #tpu.memory_space<vmem>>, vector<48x256xbf16>,
    %c223_i32_229 = arith.constant 223 : i32
    %529 = tpu.dynamic_rotate %286 by %c223_i32_229 dim 1 : vector<48x256xf32>, i32 -> vector<48x256xf32>
    %c14_i32_230 = arith.constant 14 : i32
    %530 = vector.broadcast %c14_i32_230 : i32 to vector<1x256xi32>
    %531 = arith.cmpi slt, %0, %530 : vector<1x256xi32>
    %c15_i32_231 = arith.constant 15 : i32
    %532 = vector.broadcast %c15_i32_231 : i32 to vector<1x256xi32>
    %533 = arith.cmpi slt, %1, %532 : vector<1x256xi32>
    %534 = arith.andi %531, %533 : vector<1x256xi1>
    %cst_232 = arith.constant 0.000000e+00 : f32
    %535 = vector.shape_cast %534 : vector<1x256xi1> to vector<1x256xi1>
    %536 = vector.broadcast %535 : vector<1x256xi1> to vector<48x256xi1>
    %537 = vector.broadcast %cst_232 : f32 to vector<48x256xf32>
    %538 = arith.select %536, %529, %537 : vector<48x256xi1>, vector<48x256xf32>
    %539 = arith.truncf %538 : vector<48x256xf32> to vector<48x256xbf16>
    %c1104 = arith.constant 1104 : index
    %c0_233 = arith.constant 0 : index
    %540 = vector.load %arg14[%c1104, %c0_233] : memref<1200x256xbf16, #tpu.memory_space<vmem>>, vector<48x256xbf16>
    tpu.vector_store %arg14[%c1104, %c0_233], %539 {strides = array<i32>} : memref<1200x256xbf16, #tpu.memory_space<vmem>>, vector<48x256xbf16>,
    %c222_i32_234 = arith.constant 222 : i32
    %541 = tpu.dynamic_rotate %286 by %c222_i32_234 dim 1 : vector<48x256xf32>, i32 -> vector<48x256xf32>
    %c14_i32_235 = arith.constant 14 : i32
    %542 = vector.broadcast %c14_i32_235 : i32 to vector<1x256xi32>
    %543 = arith.cmpi slt, %0, %542 : vector<1x256xi32>
    %c14_i32_236 = arith.constant 14 : i32
    %544 = vector.broadcast %c14_i32_236 : i32 to vector<1x256xi32>
    %545 = arith.cmpi slt, %1, %544 : vector<1x256xi32>
    %546 = arith.andi %543, %545 : vector<1x256xi1>
    %cst_237 = arith.constant 0.000000e+00 : f32
    %547 = vector.shape_cast %546 : vector<1x256xi1> to vector<1x256xi1>
    %548 = vector.broadcast %547 : vector<1x256xi1> to vector<48x256xi1>
    %549 = vector.broadcast %cst_237 : f32 to vector<48x256xf32>
    %550 = arith.select %548, %541, %549 : vector<48x256xi1>, vector<48x256xf32>
    %551 = arith.truncf %550 : vector<48x256xf32> to vector<48x256xbf16>
    %c1152 = arith.constant 1152 : index
    %c0_238 = arith.constant 0 : index
    %552 = vector.load %arg14[%c1152, %c0_238] : memref<1200x256xbf16, #tpu.memory_space<vmem>>, vector<48x256xbf16>
    tpu.vector_store %arg14[%c1152, %c0_238], %551 {strides = array<i32>} : memref<1200x256xbf16, #tpu.memory_space<vmem>>, vector<48x256xbf16>,
    %c0_239 = arith.constant 0 : index
    %c0_240 = arith.constant 0 : index
    %553 = vector.load %arg7[%c0_239, %c0_240] : memref<48x1200xbf16, #tpu.memory_space<vmem>>, vector<48x1200xbf16>
    %c0_241 = arith.constant 0 : index
    %c0_242 = arith.constant 0 : index
    %554 = vector.load %arg14[%c0_241, %c0_242] : memref<1200x256xbf16, #tpu.memory_space<vmem>>, vector<1200x256xbf16>
    %cst_243 = arith.constant dense<0.000000e+00> : vector<48x256xf32>
    %555 = tpu.matmul %553, %554, %cst_243 {dimension_numbers = #tpu.dot_dimension_numbers<[1], [0], [0], [1], [0, 0, 1, 1], [], []>} : vector<48x1200xbf16>, vector<1200x256xbf16>, vector<48x256xf32> -> vector<48x256xf32>
    %c0_244 = arith.constant 0 : index
    %c0_245 = arith.constant 0 : index
    %556 = vector.load %arg8[%c0_244, %c0_245] : memref<48x1xf32, #tpu.memory_space<vmem>>, vector<48x1xf32>
    %557 = vector.broadcast %556 : vector<48x1xf32> to vector<48x256xf32>
    %558 = arith.addf %555, %557 : vector<48x256xf32>
    %cst_246 = arith.constant 0.000000e+00 : f32
    %559 = vector.broadcast %cst_246 : f32 to vector<48x256xf32>
    %560 = arith.maximumf %558, %559 : vector<48x256xf32>
    %c17_i32_247 = arith.constant 17 : i32
    %561 = tpu.dynamic_rotate %560 by %c17_i32_247 dim 1 : vector<48x256xf32>, i32 -> vector<48x256xf32>
    %c1_i32_248 = arith.constant 1 : i32
    %562 = vector.broadcast %c1_i32_248 : i32 to vector<1x256xi32>
    %563 = arith.cmpi sge, %0, %562 : vector<1x256xi32>
    %c1_i32_249 = arith.constant 1 : i32
    %564 = vector.broadcast %c1_i32_249 : i32 to vector<1x256xi32>
    %565 = arith.cmpi sge, %1, %564 : vector<1x256xi32>
    %566 = arith.andi %563, %565 : vector<1x256xi1>
    %cst_250 = arith.constant 0.000000e+00 : f32
    %567 = vector.shape_cast %566 : vector<1x256xi1> to vector<1x256xi1>
    %568 = vector.broadcast %567 : vector<1x256xi1> to vector<48x256xi1>
    %569 = vector.broadcast %cst_250 : f32 to vector<48x256xf32>
    %570 = arith.select %568, %561, %569 : vector<48x256xi1>, vector<48x256xf32>
    %571 = arith.truncf %570 : vector<48x256xf32> to vector<48x256xbf16>
    %c0_251 = arith.constant 0 : index
    %c0_252 = arith.constant 0 : index
    %572 = vector.load %arg14[%c0_251, %c0_252] : memref<1200x256xbf16, #tpu.memory_space<vmem>>, vector<48x256xbf16>
    tpu.vector_store %arg14[%c0_251, %c0_252], %571 {strides = array<i32>} : memref<1200x256xbf16, #tpu.memory_space<vmem>>, vector<48x256xbf16>,
    %c16_i32_253 = arith.constant 16 : i32
    %573 = tpu.dynamic_rotate %560 by %c16_i32_253 dim 1 : vector<48x256xf32>, i32 -> vector<48x256xf32>
    %c1_i32_254 = arith.constant 1 : i32
    %574 = vector.broadcast %c1_i32_254 : i32 to vector<1x256xi32>
    %575 = arith.cmpi sge, %0, %574 : vector<1x256xi32>
    %cst_255 = arith.constant 0.000000e+00 : f32
    %576 = vector.shape_cast %575 : vector<1x256xi1> to vector<1x256xi1>
    %577 = vector.broadcast %576 : vector<1x256xi1> to vector<48x256xi1>
    %578 = vector.broadcast %cst_255 : f32 to vector<48x256xf32>
    %579 = arith.select %577, %573, %578 : vector<48x256xi1>, vector<48x256xf32>
    %580 = arith.truncf %579 : vector<48x256xf32> to vector<48x256xbf16>
    %c48_256 = arith.constant 48 : index
    %c0_257 = arith.constant 0 : index
    %581 = vector.load %arg14[%c48_256, %c0_257] : memref<1200x256xbf16, #tpu.memory_space<vmem>>, vector<48x256xbf16>
    tpu.vector_store %arg14[%c48_256, %c0_257], %580 {strides = array<i32>} : memref<1200x256xbf16, #tpu.memory_space<vmem>>, vector<48x256xbf16>,
    %c15_i32_258 = arith.constant 15 : i32
    %582 = tpu.dynamic_rotate %560 by %c15_i32_258 dim 1 : vector<48x256xf32>, i32 -> vector<48x256xf32>
    %c1_i32_259 = arith.constant 1 : i32
    %583 = vector.broadcast %c1_i32_259 : i32 to vector<1x256xi32>
    %584 = arith.cmpi sge, %0, %583 : vector<1x256xi32>
    %c15_i32_260 = arith.constant 15 : i32
    %585 = vector.broadcast %c15_i32_260 : i32 to vector<1x256xi32>
    %586 = arith.cmpi slt, %1, %585 : vector<1x256xi32>
    %587 = arith.andi %584, %586 : vector<1x256xi1>
    %cst_261 = arith.constant 0.000000e+00 : f32
    %588 = vector.shape_cast %587 : vector<1x256xi1> to vector<1x256xi1>
    %589 = vector.broadcast %588 : vector<1x256xi1> to vector<48x256xi1>
    %590 = vector.broadcast %cst_261 : f32 to vector<48x256xf32>
    %591 = arith.select %589, %582, %590 : vector<48x256xi1>, vector<48x256xf32>
    %592 = arith.truncf %591 : vector<48x256xf32> to vector<48x256xbf16>
    %c96_262 = arith.constant 96 : index
    %c0_263 = arith.constant 0 : index
    %593 = vector.load %arg14[%c96_262, %c0_263] : memref<1200x256xbf16, #tpu.memory_space<vmem>>, vector<48x256xbf16>
    tpu.vector_store %arg14[%c96_262, %c0_263], %592 {strides = array<i32>} : memref<1200x256xbf16, #tpu.memory_space<vmem>>, vector<48x256xbf16>,
    %c1_i32_264 = arith.constant 1 : i32
    %594 = tpu.dynamic_rotate %560 by %c1_i32_264 dim 1 : vector<48x256xf32>, i32 -> vector<48x256xf32>
    %c1_i32_265 = arith.constant 1 : i32
    %595 = vector.broadcast %c1_i32_265 : i32 to vector<1x256xi32>
    %596 = arith.cmpi sge, %1, %595 : vector<1x256xi32>
    %cst_266 = arith.constant 0.000000e+00 : f32
    %597 = vector.shape_cast %596 : vector<1x256xi1> to vector<1x256xi1>
    %598 = vector.broadcast %597 : vector<1x256xi1> to vector<48x256xi1>
    %599 = vector.broadcast %cst_266 : f32 to vector<48x256xf32>
    %600 = arith.select %598, %594, %599 : vector<48x256xi1>, vector<48x256xf32>
    %601 = arith.truncf %600 : vector<48x256xf32> to vector<48x256xbf16>
    %c144_267 = arith.constant 144 : index
    %c0_268 = arith.constant 0 : index
    %602 = vector.load %arg14[%c144_267, %c0_268] : memref<1200x256xbf16, #tpu.memory_space<vmem>>, vector<48x256xbf16>
    tpu.vector_store %arg14[%c144_267, %c0_268], %601 {strides = array<i32>} : memref<1200x256xbf16, #tpu.memory_space<vmem>>, vector<48x256xbf16>,
    %603 = arith.truncf %560 : vector<48x256xf32> to vector<48x256xbf16>
    %c192_269 = arith.constant 192 : index
    %c0_270 = arith.constant 0 : index
    %604 = vector.load %arg14[%c192_269, %c0_270] : memref<1200x256xbf16, #tpu.memory_space<vmem>>, vector<48x256xbf16>
    tpu.vector_store %arg14[%c192_269, %c0_270], %603 {strides = array<i32>} : memref<1200x256xbf16, #tpu.memory_space<vmem>>, vector<48x256xbf16>,
    %c255_i32_271 = arith.constant 255 : i32
    %605 = tpu.dynamic_rotate %560 by %c255_i32_271 dim 1 : vector<48x256xf32>, i32 -> vector<48x256xf32>
    %c15_i32_272 = arith.constant 15 : i32
    %606 = vector.broadcast %c15_i32_272 : i32 to vector<1x256xi32>
    %607 = arith.cmpi slt, %1, %606 : vector<1x256xi32>
    %cst_273 = arith.constant 0.000000e+00 : f32
    %608 = vector.shape_cast %607 : vector<1x256xi1> to vector<1x256xi1>
    %609 = vector.broadcast %608 : vector<1x256xi1> to vector<48x256xi1>
    %610 = vector.broadcast %cst_273 : f32 to vector<48x256xf32>
    %611 = arith.select %609, %605, %610 : vector<48x256xi1>, vector<48x256xf32>
    %612 = arith.truncf %611 : vector<48x256xf32> to vector<48x256xbf16>
    %c240_274 = arith.constant 240 : index
    %c0_275 = arith.constant 0 : index
    %613 = vector.load %arg14[%c240_274, %c0_275] : memref<1200x256xbf16, #tpu.memory_space<vmem>>, vector<48x256xbf16>
    tpu.vector_store %arg14[%c240_274, %c0_275], %612 {strides = array<i32>} : memref<1200x256xbf16, #tpu.memory_space<vmem>>, vector<48x256xbf16>,
    %c241_i32_276 = arith.constant 241 : i32
    %614 = tpu.dynamic_rotate %560 by %c241_i32_276 dim 1 : vector<48x256xf32>, i32 -> vector<48x256xf32>
    %c15_i32_277 = arith.constant 15 : i32
    %615 = vector.broadcast %c15_i32_277 : i32 to vector<1x256xi32>
    %616 = arith.cmpi slt, %0, %615 : vector<1x256xi32>
    %c1_i32_278 = arith.constant 1 : i32
    %617 = vector.broadcast %c1_i32_278 : i32 to vector<1x256xi32>
    %618 = arith.cmpi sge, %1, %617 : vector<1x256xi32>
    %619 = arith.andi %616, %618 : vector<1x256xi1>
    %cst_279 = arith.constant 0.000000e+00 : f32
    %620 = vector.shape_cast %619 : vector<1x256xi1> to vector<1x256xi1>
    %621 = vector.broadcast %620 : vector<1x256xi1> to vector<48x256xi1>
    %622 = vector.broadcast %cst_279 : f32 to vector<48x256xf32>
    %623 = arith.select %621, %614, %622 : vector<48x256xi1>, vector<48x256xf32>
    %624 = arith.truncf %623 : vector<48x256xf32> to vector<48x256xbf16>
    %c288_280 = arith.constant 288 : index
    %c0_281 = arith.constant 0 : index
    %625 = vector.load %arg14[%c288_280, %c0_281] : memref<1200x256xbf16, #tpu.memory_space<vmem>>, vector<48x256xbf16>
    tpu.vector_store %arg14[%c288_280, %c0_281], %624 {strides = array<i32>} : memref<1200x256xbf16, #tpu.memory_space<vmem>>, vector<48x256xbf16>,
    %c240_i32_282 = arith.constant 240 : i32
    %626 = tpu.dynamic_rotate %560 by %c240_i32_282 dim 1 : vector<48x256xf32>, i32 -> vector<48x256xf32>
    %c15_i32_283 = arith.constant 15 : i32
    %627 = vector.broadcast %c15_i32_283 : i32 to vector<1x256xi32>
    %628 = arith.cmpi slt, %0, %627 : vector<1x256xi32>
    %cst_284 = arith.constant 0.000000e+00 : f32
    %629 = vector.shape_cast %628 : vector<1x256xi1> to vector<1x256xi1>
    %630 = vector.broadcast %629 : vector<1x256xi1> to vector<48x256xi1>
    %631 = vector.broadcast %cst_284 : f32 to vector<48x256xf32>
    %632 = arith.select %630, %626, %631 : vector<48x256xi1>, vector<48x256xf32>
    %633 = arith.truncf %632 : vector<48x256xf32> to vector<48x256xbf16>
    %c336_285 = arith.constant 336 : index
    %c0_286 = arith.constant 0 : index
    %634 = vector.load %arg14[%c336_285, %c0_286] : memref<1200x256xbf16, #tpu.memory_space<vmem>>, vector<48x256xbf16>
    tpu.vector_store %arg14[%c336_285, %c0_286], %633 {strides = array<i32>} : memref<1200x256xbf16, #tpu.memory_space<vmem>>, vector<48x256xbf16>,
    %c239_i32_287 = arith.constant 239 : i32
    %635 = tpu.dynamic_rotate %560 by %c239_i32_287 dim 1 : vector<48x256xf32>, i32 -> vector<48x256xf32>
    %c15_i32_288 = arith.constant 15 : i32
    %636 = vector.broadcast %c15_i32_288 : i32 to vector<1x256xi32>
    %637 = arith.cmpi slt, %0, %636 : vector<1x256xi32>
    %c15_i32_289 = arith.constant 15 : i32
    %638 = vector.broadcast %c15_i32_289 : i32 to vector<1x256xi32>
    %639 = arith.cmpi slt, %1, %638 : vector<1x256xi32>
    %640 = arith.andi %637, %639 : vector<1x256xi1>
    %cst_290 = arith.constant 0.000000e+00 : f32
    %641 = vector.shape_cast %640 : vector<1x256xi1> to vector<1x256xi1>
    %642 = vector.broadcast %641 : vector<1x256xi1> to vector<48x256xi1>
    %643 = vector.broadcast %cst_290 : f32 to vector<48x256xf32>
    %644 = arith.select %642, %635, %643 : vector<48x256xi1>, vector<48x256xf32>
    %645 = arith.truncf %644 : vector<48x256xf32> to vector<48x256xbf16>
    %c384_291 = arith.constant 384 : index
    %c0_292 = arith.constant 0 : index
    %646 = vector.load %arg14[%c384_291, %c0_292] : memref<1200x256xbf16, #tpu.memory_space<vmem>>, vector<48x256xbf16>
    tpu.vector_store %arg14[%c384_291, %c0_292], %645 {strides = array<i32>} : memref<1200x256xbf16, #tpu.memory_space<vmem>>, vector<48x256xbf16>,
    %c0_293 = arith.constant 0 : index
    %c0_294 = arith.constant 0 : index
    %647 = vector.load %arg9[%c0_293, %c0_294] : memref<24x432xbf16, #tpu.memory_space<vmem>>, vector<24x432xbf16>
    %c0_295 = arith.constant 0 : index
    %c0_296 = arith.constant 0 : index
    %648 = vector.load %arg14[%c0_295, %c0_296] : memref<1200x256xbf16, #tpu.memory_space<vmem>>, vector<432x256xbf16>
    %cst_297 = arith.constant dense<0.000000e+00> : vector<24x256xf32>
    %649 = tpu.matmul %647, %648, %cst_297 {dimension_numbers = #tpu.dot_dimension_numbers<[1], [0], [0], [1], [0, 0, 1, 1], [], []>} : vector<24x432xbf16>, vector<432x256xbf16>, vector<24x256xf32> -> vector<24x256xf32>
    %c0_298 = arith.constant 0 : index
    %c0_299 = arith.constant 0 : index
    %650 = vector.load %arg10[%c0_298, %c0_299] : memref<24x1xf32, #tpu.memory_space<vmem>>, vector<24x1xf32>
    %651 = vector.broadcast %650 : vector<24x1xf32> to vector<24x256xf32>
    %652 = arith.addf %649, %651 : vector<24x256xf32>
    %cst_300 = arith.constant 0.000000e+00 : f32
    %653 = vector.broadcast %cst_300 : f32 to vector<24x256xf32>
    %654 = arith.maximumf %652, %653 : vector<24x256xf32>
    %c17_i32_301 = arith.constant 17 : i32
    %655 = tpu.dynamic_rotate %654 by %c17_i32_301 dim 1 : vector<24x256xf32>, i32 -> vector<24x256xf32>
    %c1_i32_302 = arith.constant 1 : i32
    %656 = vector.broadcast %c1_i32_302 : i32 to vector<1x256xi32>
    %657 = arith.cmpi sge, %0, %656 : vector<1x256xi32>
    %c1_i32_303 = arith.constant 1 : i32
    %658 = vector.broadcast %c1_i32_303 : i32 to vector<1x256xi32>
    %659 = arith.cmpi sge, %1, %658 : vector<1x256xi32>
    %660 = arith.andi %657, %659 : vector<1x256xi1>
    %cst_304 = arith.constant 0.000000e+00 : f32
    %661 = vector.shape_cast %660 : vector<1x256xi1> to vector<1x256xi1>
    %662 = vector.broadcast %661 : vector<1x256xi1> to vector<24x256xi1>
    %663 = vector.broadcast %cst_304 : f32 to vector<24x256xf32>
    %664 = arith.select %662, %655, %663 : vector<24x256xi1>, vector<24x256xf32>
    %665 = arith.truncf %664 : vector<24x256xf32> to vector<24x256xbf16>
    %c0_305 = arith.constant 0 : index
    %c0_306 = arith.constant 0 : index
    %666 = vector.load %arg14[%c0_305, %c0_306] : memref<1200x256xbf16, #tpu.memory_space<vmem>>, vector<24x256xbf16>
    tpu.vector_store %arg14[%c0_305, %c0_306], %665 {strides = array<i32>} : memref<1200x256xbf16, #tpu.memory_space<vmem>>, vector<24x256xbf16>,
    %c16_i32_307 = arith.constant 16 : i32
    %667 = tpu.dynamic_rotate %654 by %c16_i32_307 dim 1 : vector<24x256xf32>, i32 -> vector<24x256xf32>
    %c1_i32_308 = arith.constant 1 : i32
    %668 = vector.broadcast %c1_i32_308 : i32 to vector<1x256xi32>
    %669 = arith.cmpi sge, %0, %668 : vector<1x256xi32>
    %cst_309 = arith.constant 0.000000e+00 : f32
    %670 = vector.shape_cast %669 : vector<1x256xi1> to vector<1x256xi1>
    %671 = vector.broadcast %670 : vector<1x256xi1> to vector<24x256xi1>
    %672 = vector.broadcast %cst_309 : f32 to vector<24x256xf32>
    %673 = arith.select %671, %667, %672 : vector<24x256xi1>, vector<24x256xf32>
    %674 = arith.truncf %673 : vector<24x256xf32> to vector<24x256xbf16>
    %c24 = arith.constant 24 : index
    %c0_310 = arith.constant 0 : index
    %675 = vector.load %arg14[%c24, %c0_310] : memref<1200x256xbf16, #tpu.memory_space<vmem>>, vector<24x256xbf16>
    tpu.vector_store %arg14[%c24, %c0_310], %674 {strides = array<i32>} : memref<1200x256xbf16, #tpu.memory_space<vmem>>, vector<24x256xbf16>,
    %c15_i32_311 = arith.constant 15 : i32
    %676 = tpu.dynamic_rotate %654 by %c15_i32_311 dim 1 : vector<24x256xf32>, i32 -> vector<24x256xf32>
    %c1_i32_312 = arith.constant 1 : i32
    %677 = vector.broadcast %c1_i32_312 : i32 to vector<1x256xi32>
    %678 = arith.cmpi sge, %0, %677 : vector<1x256xi32>
    %c15_i32_313 = arith.constant 15 : i32
    %679 = vector.broadcast %c15_i32_313 : i32 to vector<1x256xi32>
    %680 = arith.cmpi slt, %1, %679 : vector<1x256xi32>
    %681 = arith.andi %678, %680 : vector<1x256xi1>
    %cst_314 = arith.constant 0.000000e+00 : f32
    %682 = vector.shape_cast %681 : vector<1x256xi1> to vector<1x256xi1>
    %683 = vector.broadcast %682 : vector<1x256xi1> to vector<24x256xi1>
    %684 = vector.broadcast %cst_314 : f32 to vector<24x256xf32>
    %685 = arith.select %683, %676, %684 : vector<24x256xi1>, vector<24x256xf32>
    %686 = arith.truncf %685 : vector<24x256xf32> to vector<24x256xbf16>
    %c48_315 = arith.constant 48 : index
    %c0_316 = arith.constant 0 : index
    %687 = vector.load %arg14[%c48_315, %c0_316] : memref<1200x256xbf16, #tpu.memory_space<vmem>>, vector<24x256xbf16>
    tpu.vector_store %arg14[%c48_315, %c0_316], %686 {strides = array<i32>} : memref<1200x256xbf16, #tpu.memory_space<vmem>>, vector<24x256xbf16>,
    %c1_i32_317 = arith.constant 1 : i32
    %688 = tpu.dynamic_rotate %654 by %c1_i32_317 dim 1 : vector<24x256xf32>, i32 -> vector<24x256xf32>
    %c1_i32_318 = arith.constant 1 : i32
    %689 = vector.broadcast %c1_i32_318 : i32 to vector<1x256xi32>
    %690 = arith.cmpi sge, %1, %689 : vector<1x256xi32>
    %cst_319 = arith.constant 0.000000e+00 : f32
    %691 = vector.shape_cast %690 : vector<1x256xi1> to vector<1x256xi1>
    %692 = vector.broadcast %691 : vector<1x256xi1> to vector<24x256xi1>
    %693 = vector.broadcast %cst_319 : f32 to vector<24x256xf32>
    %694 = arith.select %692, %688, %693 : vector<24x256xi1>, vector<24x256xf32>
    %695 = arith.truncf %694 : vector<24x256xf32> to vector<24x256xbf16>
    %c72 = arith.constant 72 : index
    %c0_320 = arith.constant 0 : index
    %696 = vector.load %arg14[%c72, %c0_320] : memref<1200x256xbf16, #tpu.memory_space<vmem>>, vector<24x256xbf16>
    tpu.vector_store %arg14[%c72, %c0_320], %695 {strides = array<i32>} : memref<1200x256xbf16, #tpu.memory_space<vmem>>, vector<24x256xbf16>,
    %697 = arith.truncf %654 : vector<24x256xf32> to vector<24x256xbf16>
    %c96_321 = arith.constant 96 : index
    %c0_322 = arith.constant 0 : index
    %698 = vector.load %arg14[%c96_321, %c0_322] : memref<1200x256xbf16, #tpu.memory_space<vmem>>, vector<24x256xbf16>
    tpu.vector_store %arg14[%c96_321, %c0_322], %697 {strides = array<i32>} : memref<1200x256xbf16, #tpu.memory_space<vmem>>, vector<24x256xbf16>,
    %c255_i32_323 = arith.constant 255 : i32
    %699 = tpu.dynamic_rotate %654 by %c255_i32_323 dim 1 : vector<24x256xf32>, i32 -> vector<24x256xf32>
    %c15_i32_324 = arith.constant 15 : i32
    %700 = vector.broadcast %c15_i32_324 : i32 to vector<1x256xi32>
    %701 = arith.cmpi slt, %1, %700 : vector<1x256xi32>
    %cst_325 = arith.constant 0.000000e+00 : f32
    %702 = vector.shape_cast %701 : vector<1x256xi1> to vector<1x256xi1>
    %703 = vector.broadcast %702 : vector<1x256xi1> to vector<24x256xi1>
    %704 = vector.broadcast %cst_325 : f32 to vector<24x256xf32>
    %705 = arith.select %703, %699, %704 : vector<24x256xi1>, vector<24x256xf32>
    %706 = arith.truncf %705 : vector<24x256xf32> to vector<24x256xbf16>
    %c120 = arith.constant 120 : index
    %c0_326 = arith.constant 0 : index
    %707 = vector.load %arg14[%c120, %c0_326] : memref<1200x256xbf16, #tpu.memory_space<vmem>>, vector<24x256xbf16>
    tpu.vector_store %arg14[%c120, %c0_326], %706 {strides = array<i32>} : memref<1200x256xbf16, #tpu.memory_space<vmem>>, vector<24x256xbf16>,
    %c241_i32_327 = arith.constant 241 : i32
    %708 = tpu.dynamic_rotate %654 by %c241_i32_327 dim 1 : vector<24x256xf32>, i32 -> vector<24x256xf32>
    %c15_i32_328 = arith.constant 15 : i32
    %709 = vector.broadcast %c15_i32_328 : i32 to vector<1x256xi32>
    %710 = arith.cmpi slt, %0, %709 : vector<1x256xi32>
    %c1_i32_329 = arith.constant 1 : i32
    %711 = vector.broadcast %c1_i32_329 : i32 to vector<1x256xi32>
    %712 = arith.cmpi sge, %1, %711 : vector<1x256xi32>
    %713 = arith.andi %710, %712 : vector<1x256xi1>
    %cst_330 = arith.constant 0.000000e+00 : f32
    %714 = vector.shape_cast %713 : vector<1x256xi1> to vector<1x256xi1>
    %715 = vector.broadcast %714 : vector<1x256xi1> to vector<24x256xi1>
    %716 = vector.broadcast %cst_330 : f32 to vector<24x256xf32>
    %717 = arith.select %715, %708, %716 : vector<24x256xi1>, vector<24x256xf32>
    %718 = arith.truncf %717 : vector<24x256xf32> to vector<24x256xbf16>
    %c144_331 = arith.constant 144 : index
    %c0_332 = arith.constant 0 : index
    %719 = vector.load %arg14[%c144_331, %c0_332] : memref<1200x256xbf16, #tpu.memory_space<vmem>>, vector<24x256xbf16>
    tpu.vector_store %arg14[%c144_331, %c0_332], %718 {strides = array<i32>} : memref<1200x256xbf16, #tpu.memory_space<vmem>>, vector<24x256xbf16>,
    %c240_i32_333 = arith.constant 240 : i32
    %720 = tpu.dynamic_rotate %654 by %c240_i32_333 dim 1 : vector<24x256xf32>, i32 -> vector<24x256xf32>
    %c15_i32_334 = arith.constant 15 : i32
    %721 = vector.broadcast %c15_i32_334 : i32 to vector<1x256xi32>
    %722 = arith.cmpi slt, %0, %721 : vector<1x256xi32>
    %cst_335 = arith.constant 0.000000e+00 : f32
    %723 = vector.shape_cast %722 : vector<1x256xi1> to vector<1x256xi1>
    %724 = vector.broadcast %723 : vector<1x256xi1> to vector<24x256xi1>
    %725 = vector.broadcast %cst_335 : f32 to vector<24x256xf32>
    %726 = arith.select %724, %720, %725 : vector<24x256xi1>, vector<24x256xf32>
    %727 = arith.truncf %726 : vector<24x256xf32> to vector<24x256xbf16>
    %c168 = arith.constant 168 : index
    %c0_336 = arith.constant 0 : index
    %728 = vector.load %arg14[%c168, %c0_336] : memref<1200x256xbf16, #tpu.memory_space<vmem>>, vector<24x256xbf16>
    tpu.vector_store %arg14[%c168, %c0_336], %727 {strides = array<i32>} : memref<1200x256xbf16, #tpu.memory_space<vmem>>, vector<24x256xbf16>,
    %c239_i32_337 = arith.constant 239 : i32
    %729 = tpu.dynamic_rotate %654 by %c239_i32_337 dim 1 : vector<24x256xf32>, i32 -> vector<24x256xf32>
    %c15_i32_338 = arith.constant 15 : i32
    %730 = vector.broadcast %c15_i32_338 : i32 to vector<1x256xi32>
    %731 = arith.cmpi slt, %0, %730 : vector<1x256xi32>
    %c15_i32_339 = arith.constant 15 : i32
    %732 = vector.broadcast %c15_i32_339 : i32 to vector<1x256xi32>
    %733 = arith.cmpi slt, %1, %732 : vector<1x256xi32>
    %734 = arith.andi %731, %733 : vector<1x256xi1>
    %cst_340 = arith.constant 0.000000e+00 : f32
    %735 = vector.shape_cast %734 : vector<1x256xi1> to vector<1x256xi1>
    %736 = vector.broadcast %735 : vector<1x256xi1> to vector<24x256xi1>
    %737 = vector.broadcast %cst_340 : f32 to vector<24x256xf32>
    %738 = arith.select %736, %729, %737 : vector<24x256xi1>, vector<24x256xf32>
    %739 = arith.truncf %738 : vector<24x256xf32> to vector<24x256xbf16>
    %c192_341 = arith.constant 192 : index
    %c0_342 = arith.constant 0 : index
    %740 = vector.load %arg14[%c192_341, %c0_342] : memref<1200x256xbf16, #tpu.memory_space<vmem>>, vector<24x256xbf16>
    tpu.vector_store %arg14[%c192_341, %c0_342], %739 {strides = array<i32>} : memref<1200x256xbf16, #tpu.memory_space<vmem>>, vector<24x256xbf16>,
    %c0_343 = arith.constant 0 : index
    %c0_344 = arith.constant 0 : index
    %741 = vector.load %arg11[%c0_343, %c0_344] : memref<2x216xbf16, #tpu.memory_space<vmem>>, vector<2x216xbf16>
    %c0_345 = arith.constant 0 : index
    %c0_346 = arith.constant 0 : index
    %742 = vector.load %arg14[%c0_345, %c0_346] : memref<1200x256xbf16, #tpu.memory_space<vmem>>, vector<216x256xbf16>
    %cst_347 = arith.constant dense<0.000000e+00> : vector<2x256xf32>
    %743 = tpu.matmul %741, %742, %cst_347 {dimension_numbers = #tpu.dot_dimension_numbers<[1], [0], [0], [1], [0, 0, 1, 1], [], []>} : vector<2x216xbf16>, vector<216x256xbf16>, vector<2x256xf32> -> vector<2x256xf32>
    %c0_348 = arith.constant 0 : index
    %c0_349 = arith.constant 0 : index
    %744 = vector.load %arg12[%c0_348, %c0_349] : memref<2x1xf32, #tpu.memory_space<vmem>>, vector<2x1xf32>
    %745 = vector.broadcast %744 : vector<2x1xf32> to vector<2x256xf32>
    %746 = arith.addf %743, %745 : vector<2x256xf32>
    %cst_350 = arith.constant 1.000000e+00 : f32
    %747 = vector.broadcast %cst_350 : f32 to vector<2x256xf32>
    %748 = arith.addf %746, %747 : vector<2x256xf32>
    %749 = arith.mulf %748, %748 : vector<2x256xf32>
    %c0_351 = arith.constant 0 : index
    %c0_352 = arith.constant 0 : index
    %750 = vector.load %arg13[%c0_351, %c0_352] : memref<2x256xf32, #tpu.memory_space<vmem>>, vector<2x256xf32>
    tpu.vector_store %arg13[%c0_351, %c0_352], %749 {strides = array<i32>} : memref<2x256xf32, #tpu.memory_space<vmem>>, vector<2x256xf32>,
    return
  }
}

</mosaic_0001>

<bundles_post_ra>
// kernel: _device_forward.2
= control target key start
LH: loop header
LB: loop body
LE: loop exit
PB: predicated region body
PF: predicated region fallthrough
CT: control target
= control target key end

     0   :  { %9 = vsyncpa [#allocation3], 0  ;;  %s787_s0 = inlined_call_operand.hbm [shape: f32[16,16], index: 0, kind: input, shape index: {}]   ;;  %s788_s1 = inlined_call_operand.hbm [shape: f32[64,16], index: 1, kind: input, shape index: {}]   ;;  %s789_s2 = inlined_call_operand.vmem [shape: f32[64,16], index: 2, kind: output, shape index: {0}]   ;;  %s790_s3 = inlined_call_operand.vmem [shape: f32[64,16], index: 3, kind: output, shape index: {1}]  }
   0x1   :  { %s15_s14 = sshll.u32 %s787_s0, 4  ;;  %s16_s14 = int_to_ptr.hbm [resolvable:$true] %s15_s14 }
   0x2   :  { %10 = vsyncpa [#allocation5], 0  ;;  %s552_s15 = smov [#allocation2]   ;;  %s28_s19 = sshll.u32 %s788_s1, 4  ;;  %s29_s19 = int_to_ptr.hbm [resolvable:$true] %s28_s19 }
   0x3   :  { %s17_s16 = sshll.u32 %s552_s15, 4  ;;  %s553_s20 = smov 128   ;;  %s18_s16 = int_to_ptr.vmem [resolvable:$true] %s17_s16 }
   0x4   :  { %s554_s21 = smov 8   ;;  %s555_s22 = smov [#allocation4]  }
   0x5   :  { %23 = dma.hbm_to_vmem [thread:$0]  %s16_s14, 256, %s18_s16, [#allocation3], %s553_s20, %s553_s20, %s554_s21  }
   0x6   :  { %s30_s23 = sshll.u32 %s555_s22, 4  ;;  %s31_s23 = int_to_ptr.vmem [resolvable:$true] %s30_s23 }
   0x7   :  { %36 = dma.hbm_to_vmem [thread:$0]  %s29_s19, 1024, %s31_s23, [#allocation5], %s553_s20, %s553_s20, %s554_s21  }
   0x8   :  { %548 = dma.done.wait [#allocation3], 256  }
   0x9   :  { %549 = vsyncadd [#allocation3], 4294967040 }
   0xa   :  { %550 = dma.done.wait [#allocation5], 1024  }
   0xb   :  { %551 = vsyncadd [#allocation5], 4294966272  ;;  %vm50_vm0 = vcmask 130048   ;;  %v49_v0 = vld [vmem:[#allocation4 + $0x8] sm:$0xff]  ;;  %v293_v1 = vld [vmem:[#allocation4 + $0x38] sm:$0xff] }
   0xc   :  { %443 = vmatpush.xpose.msk.msra.mxu1 %vm50_vm0, %v49_v0  ;;  %455 = vmatpush.xpose.msk.msra.mxu3 %vm50_vm0, %v293_v1  ;;  %v48_v2 = vld [vmem:[#allocation4] sm:$0xff]  ;;  %v292_v3 = vld [vmem:[#allocation4 + $0x30] sm:$0xff]  ;;  %v214_v4 = vld [vmem:[#allocation4 + $0x28] sm:$0xff] }
   0xd   :  { %v135_v5 = vld [vmem:[#allocation4 + $0x18] sm:$0xff]  ;;  %451 = vmatpush.xpose.msk.msra.mxu2 %vm50_vm0, %v214_v4  ;;  %v213_v6 = vld [vmem:[#allocation4 + $0x20] sm:$0xff]  ;;  %v587_v7 = vld [vmem:[#allocation2] sm:$0xff] }
   0xe   :  { %v134_v8 = vld [vmem:[#allocation4 + $0x10] sm:$0xff]  ;;  %v598_v9 = vld [vmem:[#allocation2 + $0x8] sm:$0xff] }
  0x10   :  { %444 = vmatpush.xpose.msk.msra.mxu1 %vm50_vm0, %v48_v2  ;;  %456 = vmatpush.xpose.msk.msra.mxu3 %vm50_vm0, %v292_v3  ;;  %v383_v2 = vpack.c.bf16 %v598_v9, %v587_v7 }
  0x11   :  { %452 = vmatpush.xpose.msk.msra.mxu2 %vm50_vm0, %v213_v6 }
  0x12   :  { %403 = vmatpush.bf16.msra.mxu0 %v383_v2 }
  0x13   :  { %445 = vmatmul.msk.f32.vlgmr.msra.gmra.mxu1 %vm50_vm0, %v587_v7  ;;  %457 = vmatmul.msk.f32.vlgmr.msra.gmra.mxu3 %vm50_vm0, %v587_v7 }
  0x14   :  { %447 = vmatpush.xpose.msk.msrb.mxu1 %vm50_vm0, %v135_v5  ;;  %453 = vmatmul.msk.f32.vlgmr.msra.gmra.mxu2 %vm50_vm0, %v587_v7 }
  0x15   :  { %463 = vmatpush.bf16.msrb.mxu2 %v383_v2 }
  0x18   :  { %448 = vmatpush.xpose.msk.msrb.mxu1 %vm50_vm0, %v134_v8 }
  0x1b   :  { %446 = vmatmul.msk.f32.gmra.mxu1 %vm50_vm0, %v598_v9  ;;  %458 = vmatmul.msk.f32.gmra.mxu3 %vm50_vm0, %v598_v9 }
  0x1c   :  { %454 = vmatmul.msk.f32.gmra.mxu2 %vm50_vm0, %v598_v9 }
  0x23   :  { %449 = vmatmul.msk.f32.vlgmr.msrb.gmra.mxu1 %vm50_vm0, %v587_v7 }
  0x2b   :  { %450 = vmatmul.msk.f32.gmra.mxu1 %vm50_vm0, %v598_v9 }
  0x90   :  { %v80_v10 = vpop.f32.mrf.mxu1 }
  0x91   :  { %v86_v11 = vsel %vm50_vm0, %v80_v10, -inf }
  0x92   :  { %87 = vmax.xlane.f32.xlu0 %v86_v11 }
  0x96   :  { %v317_v12 = vpop.f32.mrf.mxu3 }
  0x97   :  { %v323_v13 = vsel %vm50_vm0, %v317_v12, -inf  ;;  %v238_v16 = vpop.f32.mrf.mxu2 }
  0x98   :  { %324 = vmax.xlane.f32.xlu2 %v323_v13  ;;  %v83_v14 = vpop.f32.mrf.mxu1  ;;  %v244_v19 = vsel %vm50_vm0, %v238_v16, -inf }
  0x99   :  { %v89_v15 = vsel %vm50_vm0, %v83_v14, -inf }
  0x9a   :  { %90 = vmax.xlane.f32.xlu0 %v89_v15 }
  0x9e   :  { %v320_v17 = vpop.f32.mrf.mxu3 }
  0x9f   :  { %v326_v18 = vsel %vm50_vm0, %v320_v17, -inf  ;;  %v241_v24 = vpop.f32.mrf.mxu2 }
  0xa0   :  { %327 = vmax.xlane.f32.xlu2 %v326_v18  ;;  %v159_v20 = vpop.f32.mrf.mxu1  ;;  %v247_v25 = vsel %vm50_vm0, %v241_v24, -inf }
  0xa1   :  { %v165_v21 = vsel %vm50_vm0, %v159_v20, -inf }
  0xa2   :  { %166 = vmax.xlane.f32.xlu1 %v165_v21  ;;  %245 = vmax.xlane.f32.xlu0 %v244_v19 }
  0xa8   :  { %v162_v22 = vpop.f32.mrf.mxu1 }
  0xa9   :  { %v168_v23 = vsel %vm50_vm0, %v162_v22, -inf }
  0xaa   :  { %169 = vmax.xlane.f32.xlu1 %v168_v23 }
  0xb2   :  { %248 = vmax.xlane.f32.xlu1 %v247_v25 }
 0x105   :  { %v88_v26 = vpop.xlane.xlu0 %87 }
 0x106   :  { %v92_v27 = vsub.f32 %v80_v10, %v88_v26 }
 0x108   :  { %v94_v28 = vmul.f32 1.442695, %v92_v27 }
 0x10a   :  { %468 = vpow2.f32 %v94_v28 }
 0x10b   :  { %v325_v29 = vpop.xlane.xlu2 %324 }
 0x10c   :  { %v329_v33 = vsub.f32 %v317_v12, %v325_v29 }
 0x10d   :  { %v91_v30 = vpop.xlane.xlu0 %90 }
 0x10e   :  { %v93_v31 = vsub.f32 %v83_v14, %v91_v30  ;;  %v331_v36 = vmul.f32 1.442695, %v329_v33 }
 0x110   :  { %v618_v32 = vpop.eup %468  ;;  %v96_v34 = vmul.f32 1.442695, %v93_v31 }
 0x111   :  { %v98_v35 = vsel %vm50_vm0, %v618_v32, 0.0 }
 0x112   :  { %470 = vpow2.f32 %v96_v34  ;;  %99 = vadd.xlane.f32.xlu2 %v98_v35 }
 0x113   :  { %v328_v37 = vpop.xlane.xlu2 %327  ;;  %472 = vpow2.f32 %v331_v36 }
 0x114   :  { %v330_v41 = vsub.f32 %v320_v17, %v328_v37 }
 0x115   :  { %v167_v38 = vpop.xlane.xlu1 %166  ;;  %v246_v45 = vpop.xlane.xlu0 %245 }
 0x116   :  { %v171_v39 = vsub.f32 %v159_v20, %v167_v38  ;;  %v333_v44 = vmul.f32 1.442695, %v330_v41  ;;  %v250_v50 = vsub.f32 %v238_v16, %v246_v45 }
 0x118   :  { %v622_v40 = vpop.eup %470  ;;  %v173_v42 = vmul.f32 1.442695, %v171_v39  ;;  %v252_v54 = vmul.f32 1.442695, %v250_v50 }
 0x119   :  { %v101_v43 = vsel %vm50_vm0, %v622_v40, 0.0  ;;  %v626_v47 = vpop.eup %472 }
 0x11a   :  { %474 = vpow2.f32 %v173_v42  ;;  %102 = vadd.xlane.f32.xlu0 %v101_v43  ;;  %v335_v53 = vsel %vm50_vm0, %v626_v47, 0.0 }
 0x11b   :  { %476 = vpow2.f32 %v333_v44 }
 0x11d   :  { %v170_v46 = vpop.xlane.xlu1 %169 }
 0x11e   :  { %v172_v48 = vsub.f32 %v162_v22, %v170_v46 }
 0x120   :  { %v628_v49 = vpop.eup %474  ;;  %v175_v51 = vmul.f32 1.442695, %v172_v48 }
 0x121   :  { %v177_v52 = vsel %vm50_vm0, %v628_v49, 0.0  ;;  %v634_v56 = vpop.eup %476 }
 0x122   :  { %478 = vpow2.f32 %v175_v51  ;;  %178 = vadd.xlane.f32.xlu1 %v177_v52  ;;  %336 = vadd.xlane.f32.xlu0 %v335_v53  ;;  %v338_v60 = vsel %vm50_vm0, %v634_v56, 0.0 }
 0x123   :  { %480 = vpow2.f32 %v252_v54 }
 0x125   :  { %v249_v55 = vpop.xlane.xlu1 %248 }
 0x126   :  { %v251_v57 = vsub.f32 %v241_v24, %v249_v55 }
 0x128   :  { %v636_v58 = vpop.eup %478  ;;  %v254_v59 = vmul.f32 1.442695, %v251_v57 }
 0x129   :  { %v180_v61 = vsel %vm50_vm0, %v636_v58, 0.0  ;;  %v642_v62 = vpop.eup %480 }
 0x12a   :  { %482 = vpow2.f32 %v254_v59  ;;  %339 = vadd.xlane.f32.xlu1 %v338_v60  ;;  %181 = vadd.xlane.f32.xlu2 %v180_v61  ;;  %v256_v1 = vsel %vm50_vm0, %v642_v62, 0.0 }
 0x130   :  { %v644_v63 = vpop.eup %482 }
 0x131   :  { %v259_v0 = vsel %vm50_vm0, %v644_v63, 0.0 }
 0x132   :  { %260 = vadd.xlane.f32.xlu0 %v259_v0  ;;  %257 = vadd.xlane.f32.xlu2 %v256_v1 }
 0x185   :  { %v100_v3 = vpop.xlane.xlu2 %99 }
 0x186   :  { %484 = vrcp.f32 %v100_v3  ;;  %v115_v11 = vand.u32 2147483648, %v100_v3  ;;  %vm109_vm2 = vweird.f32 %v100_v3  ;;  %v113_v13 = vand.u32 2147483647, %v100_v3 }
 0x188   :  { %v116_v17 = vor.u32 1.1754944e-38, %v115_v11  ;;  %vm114_vm4 = vcmp.eq.f32.partialorder %v113_v13, 8.507059e+37 }
 0x18c   :  { %v485_v4 = vpop.eup %484 }
 0x18d   :  { %v105_v5 = vmul.f32 %v485_v4, %v100_v3  ;;  %v103_v6 = vpop.xlane.xlu0 %102  ;;  %vm110_vm1 = vweird.f32 %v485_v4 }
 0x18e   :  { %486 = vrcp.f32 %v103_v6  ;;  %vm111_vm3 = vmor %vm109_vm2, %vm110_vm1  ;;  %v130_v23 = vand.u32 2147483648, %v103_v6  ;;  %vm124_vm6 = vweird.f32 %v103_v6  ;;  %v128_v25 = vand.u32 2147483647, %v103_v6 }
 0x18f   :  { %v106_v8 = vsub.f32 1.0, %v105_v5 }
 0x190   :  { %v131_v33 = vor.u32 1.1754944e-38, %v130_v23  ;;  %vm129_vm8 = vcmp.eq.f32.partialorder %v128_v25, 8.507059e+37 }
 0x191   :  { %v107_v10 = vmul.f32 %v485_v4, %v106_v8 }
 0x193   :  { %v108_v12 = vadd.f32 %v485_v4, %v107_v10 }
 0x194   :  { %v487_v14 = vpop.eup %486 }
 0x195   :  { %v120_v15 = vmul.f32 %v487_v14, %v103_v6  ;;  %v179_v16 = vpop.xlane.xlu1 %178  ;;  %v337_v7 = vpop.xlane.xlu0 %336  ;;  %v112_v9 = vsel %vm111_vm3, %v485_v4, %v108_v12  ;;  %vm125_vm5 = vweird.f32 %v487_v14 }
 0x196   :  { %488 = vrcp.f32 %v179_v16  ;;  %v117_v19 = vsel %vm114_vm4, %v116_v17, %v112_v9  ;;  %vm657_vm7 = vmor %vm124_vm6, %vm125_vm5  ;;  %v192_v37 = vand.u32 2147483647, %v179_v16  ;;  %v194_v38 = vand.u32 2147483648, %v179_v16 }
 0x197   :  { %v121_v18 = vsub.f32 1.0, %v120_v15  ;;  %490 = vrcp.f32 %v337_v7  ;;  %v118_v21 = vmul.f32 %v618_v32, %v117_v19  ;;  %v350_v42 = vand.u32 2147483647, %v337_v7 }
 0x198   :  { %v352_v45 = vand.u32 2147483648, %v337_v7  ;;  %vm188_vm11 = vweird.f32 %v179_v16  ;;  %vm678_vm13 = vcmp.eq.f32.partialorder %v192_v37, 8.507059e+37  ;;  %vm346_vm14 = vweird.f32 %v337_v7 }
 0x199   :  { %v122_v20 = vmul.f32 %v487_v14, %v121_v18  ;;  %371 = vst.msk [vmem:[%s789_s2] sm:$0xff] %vm50_vm0, %v118_v21  ;;  %v195_v57 = vor.u32 1.1754944e-38, %v194_v38  ;;  %vm692_vm1 = vcmp.eq.f32.partialorder %v350_v42, 8.507059e+37 }
 0x19a   :  { %v353_v1 = vor.u32 1.1754944e-38, %v352_v45 }
 0x19b   :  { %v123_v22 = vadd.f32 %v487_v14, %v122_v20 }
 0x19c   :  { %v489_v24 = vpop.eup %488 }
 0x19d   :  { %v491_v26 = vpop.eup %490  ;;  %v184_v28 = vmul.f32 %v489_v24, %v179_v16  ;;  %v661_v29 = vpop.xlane.xlu2 %181  ;;  %v127_v32 = vsel %vm657_vm7, %v487_v14, %v123_v22  ;;  %vm189_vm9 = vweird.f32 %v489_v24 }
 0x19e   :  { %v663_v30 = vpop.xlane.xlu1 %339  ;;  %v342_v31 = vmul.f32 %v491_v26, %v337_v7  ;;  %492 = vrcp.f32 %v661_v29  ;;  %v132_v39 = vsel %vm129_vm8, %v131_v33, %v127_v32  ;;  %vm347_vm10 = vweird.f32 %v491_v26  ;;  %vm674_vm12 = vmor %vm188_vm11, %vm189_vm9 }
 0x19f   :  { %v185_v34 = vsub.f32 1.0, %v184_v28  ;;  %494 = vrcp.f32 %v663_v30  ;;  %v133_v43 = vmul.f32 %v622_v40, %v132_v39  ;;  %vm688_vm15 = vmor %vm346_vm14, %vm347_vm10  ;;  %v207_v4 = vand.u32 2147483647, %v661_v29 }
 0x1a0   :  { %v343_v35 = vsub.f32 1.0, %v342_v31  ;;  %v209_v5 = vand.u32 2147483648, %v661_v29  ;;  %v365_v10 = vand.u32 2147483647, %v663_v30  ;;  %v367_v11 = vand.u32 2147483648, %v663_v30 }
 0x1a1   :  { %v186_v36 = vmul.f32 %v489_v24, %v185_v34  ;;  %372 = vst.msk [vmem:[%s789_s2 + $0x8] sm:$0xff] %vm50_vm0, %v133_v43  ;;  %v379_v50 = vpack.c.bf16 %v133_v43, %v118_v21  ;;  %vm203_vm4 = vweird.f32 %v661_v29  ;;  %vm361_vm6 = vweird.f32 %v663_v30 }
 0x1a2   :  { %v344_v41 = vmul.f32 %v491_v26, %v343_v35  ;;  %v210_v17 = vor.u32 1.1754944e-38, %v209_v5  ;;  %vm208_vm7 = vcmp.eq.f32.partialorder %v207_v4, 8.507059e+37  ;;  %v368_v19 = vor.u32 1.1754944e-38, %v367_v11 }
 0x1a3   :  { %v187_v44 = vadd.f32 %v489_v24, %v186_v36  ;;  %459 = vmatmul.msk.bf16.vlgmr.msra.gmra.mxu0 %vm50_vm0, %v379_v50  ;;  %vm366_vm9 = vcmp.eq.f32.partialorder %v365_v10, 8.507059e+37 }
 0x1a4   :  { %v493_v46 = vpop.eup %492  ;;  %v345_v48 = vadd.f32 %v491_v26, %v344_v41 }
 0x1a5   :  { %v495_v51 = vpop.eup %494  ;;  %v199_v40 = vmul.f32 %v493_v46, %v661_v29  ;;  %v683_v54 = vpop.xlane.xlu2 %257  ;;  %v191_v3 = vsel %vm674_vm12, %v489_v24, %v187_v44  ;;  %vm204_vm2 = vweird.f32 %v493_v46 }
 0x1a6   :  { %v685_v55 = vpop.xlane.xlu0 %260  ;;  %v357_v61 = vmul.f32 %v495_v51, %v663_v30  ;;  %496 = vrcp.f32 %v683_v54  ;;  %v349_v0 = vsel %vm688_vm15, %v491_v26, %v345_v48  ;;  %vm362_vm3 = vweird.f32 %v495_v51  ;;  %vm205_vm5 = vmor %vm203_vm4, %vm204_vm2 }
 0x1a7   :  { %v200_v2 = vsub.f32 1.0, %v199_v40  ;;  %498 = vrcp.f32 %v685_v55  ;;  %v196_v13 = vsel %vm678_vm13, %v195_v57, %v191_v3  ;;  %v354_v14 = vsel %vm692_vm1, %v353_v1, %v349_v0  ;;  %vm363_vm8 = vmor %vm361_vm6, %vm362_vm3 }
 0x1a8   :  { %v358_v6 = vsub.f32 1.0, %v357_v61  ;;  %v197_v16 = vmul.f32 %v628_v49, %v196_v13  ;;  %v355_v7 = vmul.f32 %v626_v47, %v354_v14  ;;  %v273_v26 = vand.u32 2147483648, %v683_v54 }
 0x1a9   :  { %v201_v8 = vmul.f32 %v493_v46, %v200_v2  ;;  %v271_v30 = vand.u32 2147483647, %v683_v54  ;;  %vm267_vm11 = vweird.f32 %v683_v54  ;;  %v288_v32 = vand.u32 2147483648, %v685_v55 }
 0x1aa   :  { %v359_v12 = vmul.f32 %v495_v51, %v358_v6  ;;  %373 = vst.msk [vmem:[%s789_s2 + $0x10] sm:$0xff] %vm50_vm0, %v197_v16  ;;  %v274_v36 = vor.u32 1.1754944e-38, %v273_v26  ;;  %vm282_vm15 = vweird.f32 %v685_v55 }
 0x1ab   :  { %v202_v15 = vadd.f32 %v493_v46, %v201_v8  ;;  %377 = vst.msk [vmem:[%s789_s2 + $0x30] sm:$0xff] %vm50_vm0, %v355_v7  ;;  %vm272_vm14 = vcmp.eq.f32.partialorder %v271_v30, 8.507059e+37  ;;  %v289_v39 = vor.u32 1.1754944e-38, %v288_v32 }
 0x1ac   :  { %v497_v9 = vpop.eup %496  ;;  %v360_v18 = vadd.f32 %v495_v51, %v359_v12 }
 0x1ad   :  { %v263_v20 = vmul.f32 %v497_v9, %v683_v54  ;;  %v206_v21 = vsel %vm205_vm5, %v493_v46, %v202_v15  ;;  %v499_v49 = vpop.eup %498  ;;  %vm268_vm10 = vweird.f32 %v497_v9 }
 0x1ae   :  { %v364_v22 = vsel %vm363_vm8, %v495_v51, %v360_v18  ;;  %v211_v47 = vsel %vm208_vm7, %v210_v17, %v206_v21  ;;  %v278_v25 = vmul.f32 %v499_v49, %v685_v55  ;;  %vm283_vm12 = vweird.f32 %v499_v49  ;;  %vm269_vm13 = vmor %vm267_vm11, %vm268_vm10 }
 0x1af   :  { %v369_v23 = vsel %vm366_vm9, %v368_v19, %v364_v22  ;;  %v264_v24 = vsub.f32 1.0, %v263_v20  ;;  %v212_v27 = vmul.f32 %v636_v58, %v211_v47  ;;  %vm284_vm1 = vmor %vm282_vm15, %vm283_vm12 }
 0x1b0   :  { %v370_v28 = vmul.f32 %v634_v56, %v369_v23  ;;  %v279_v31 = vsub.f32 1.0, %v278_v25  ;;  %v286_v56 = vand.u32 2147483647, %v685_v55 }
 0x1b1   :  { %v265_v29 = vmul.f32 %v497_v9, %v264_v24  ;;  %374 = vst.msk [vmem:[%s789_s2 + $0x18] sm:$0xff] %vm50_vm0, %v212_v27  ;;  %v380_v33 = vpack.c.bf16 %v212_v27, %v197_v16 }
 0x1b2   :  { %v382_v34 = vpack.c.bf16 %v370_v28, %v355_v7  ;;  %v280_v58 = vmul.f32 %v499_v49, %v279_v31  ;;  %378 = vst.msk [vmem:[%s789_s2 + $0x38] sm:$0xff] %vm50_vm0, %v370_v28  ;;  %vm287_vm2 = vcmp.eq.f32.partialorder %v286_v56, 8.507059e+37 }
 0x1b3   :  { %v266_v35 = vadd.f32 %v497_v9, %v265_v29  ;;  %460 = vmatmul.msk.bf16.gmra.mxu0 %vm50_vm0, %v380_v33 }
 0x1b4   :  { %462 = vmatmul.msk.bf16.vlgmr.msrb.gmra.mxu2 %vm50_vm0, %v382_v34  ;;  %v281_v38 = vadd.f32 %v499_v49, %v280_v58 }
 0x1b5   :  { %v270_v37 = vsel %vm269_vm13, %v497_v9, %v266_v35 }
 0x1b6   :  { %v275_v41 = vsel %vm272_vm14, %v274_v36, %v270_v37  ;;  %v285_v42 = vsel %vm284_vm1, %v499_v49, %v281_v38 }
 0x1b7   :  { %v276_v43 = vmul.f32 %v642_v62, %v275_v41  ;;  %v290_v44 = vsel %vm287_vm2, %v289_v39, %v285_v42 }
 0x1b8   :  { %v291_v45 = vmul.f32 %v644_v63, %v290_v44 }
 0x1b9   :  { %375 = vst.msk [vmem:[%s789_s2 + $0x20] sm:$0xff] %vm50_vm0, %v276_v43 }
 0x1ba   :  { %376 = vst.msk [vmem:[%s789_s2 + $0x28] sm:$0xff] %vm50_vm0, %v291_v45  ;;  %v381_v46 = vpack.c.bf16 %v291_v45, %v276_v43 }
 0x1c3   :  { %461 = vmatmul.msk.bf16.gmra.mxu0 %vm50_vm0, %v381_v46 }
 0x220   :  { %v405_v48 = vpop.f32.mrf.mxu0 }
 0x221   :  { %425 = vst.msk [vmem:[%s790_s3] sm:$0xff] %vm50_vm0, %v405_v48 }
 0x228   :  { %v407_v62 = vpop.f32.mrf.mxu0 }
 0x229   :  { %426 = vst.msk [vmem:[%s790_s3 + $0x8] sm:$0xff] %vm50_vm0, %v407_v62 }
 0x230   :  { %v410_v63 = vpop.f32.mrf.mxu0 }
 0x231   :  { %427 = vst.msk [vmem:[%s790_s3 + $0x10] sm:$0xff] %vm50_vm0, %v410_v63 }
 0x237   :  { %v420_v50 = vpop.f32.mrf.mxu2 }
 0x238   :  { %431 = vst.msk [vmem:[%s790_s3 + $0x30] sm:$0xff] %vm50_vm0, %v420_v50  ;;  %v412_v51 = vpop.f32.mrf.mxu0 }
 0x239   :  { %428 = vst.msk [vmem:[%s790_s3 + $0x18] sm:$0xff] %vm50_vm0, %v412_v51 }
 0x23f   :  { %v422_v52 = vpop.f32.mrf.mxu2 }
 0x240   :  { %432 = vst.msk [vmem:[%s790_s3 + $0x38] sm:$0xff] %vm50_vm0, %v422_v52  ;;  %v415_v53 = vpop.f32.mrf.mxu0 }
 0x241   :  { %429 = vst.msk [vmem:[%s790_s3 + $0x20] sm:$0xff] %vm50_vm0, %v415_v53 }
 0x248   :  { %v417_v40 = vpop.f32.mrf.mxu0 }
 0x249   :  { %430 = vst.msk [vmem:[%s790_s3 + $0x28] sm:$0xff] %vm50_vm0, %v417_v40 }
 0x24a   :  { %441 = vsyncpa [#allocation3], 1 }
 0x24b   :  { %442 = vsyncpa [#allocation5], 1 }

// kernel: _device_forward.3
= control target key start
LH: loop header
LB: loop body
LE: loop exit
PB: predicated region body
PF: predicated region fallthrough
CT: control target
= control target key end

     0   :  { %18 = vsyncpa [#allocation5], 0  ;;  %s9005_s28 = smov [#allocation4]   ;;  %s9006_s30 = smov 640   ;;  %s14385_s0 = inlined_call_operand.vmem [shape: f32[1,256], index: 0, kind: input, shape index: {}]   ;;  %s14386_s1 = inlined_call_operand.vmem [shape: f32[4,256], index: 1, kind: input, shape index: {}]   ;;  %s14387_s2 = inlined_call_operand.vmem [shape: f32[4,256], index: 2, kind: input, shape index: {}]   ;;  %s14388_s3 = inlined_call_operand.vmem [shape: f32[4,256], index: 3, kind: input, shape index: {}]   ;;  %s14389_s4 = inlined_call_operand.vmem [shape: s32[2,256], index: 4, kind: input, shape index: {}]   ;;  %s14390_s5 = inlined_call_operand.vmem [shape: bf16[48,400], index: 5, kind: input, shape index: {}]   ;;  %s14391_s6 = inlined_call_operand.vmem [shape: f32[48,1], index: 6, kind: input, shape index: {}]   ;;  %s14392_s7 = inlined_call_operand.hbm [shape: bf16[48,1200], index: 7, kind: input, shape index: {}]   ;;  %s14393_s8 = inlined_call_operand.vmem [shape: f32[48,1], index: 8, kind: input, shape index: {}]   ;;  %s14394_s9 = inlined_call_operand.vmem [shape: bf16[24,432], index: 9, kind: input, shape index: {}]   ;;  %s14395_s10 = inlined_call_operand.vmem [shape: f32[24,1], index: 10, kind: input, shape index: {}]   ;;  %s14396_s11 = inlined_call_operand.vmem [shape: bf16[2,216], index: 11, kind: input, shape index: {}]   ;;  %s14397_s12 = inlined_call_operand.vmem [shape: f32[2,1], index: 12, kind: input, shape index: {}]   ;;  %s14398_s13 = inlined_call_operand.vmem [shape: f32[2,256], index: 13, kind: output, shape index: {}]  }
   0x1   :  { %s37_s27 = sshll.u32 %s14392_s7, 4  ;;  %s39_s29 = sshll.u32 %s9005_s28, 4  ;;  %s38_s27 = int_to_ptr.hbm [resolvable:$true] %s37_s27  ;;  %s40_s29 = int_to_ptr.vmem [resolvable:$true] %s39_s29 }
   0x2   :  { %s9007_s14 = smov 40  }
   0x3   :  { %45 = dma.hbm_to_vmem [thread:$0]  %s38_s27, 3840, %s40_s29, [#allocation5], %s9006_s30, %s9006_s30, %s9007_s14  }
   0x4   :  { %9003 = dma.done.wait [#allocation5], 3840  }
   0x5   :  { %9004 = vsyncadd [#allocation5], 4294963456  ;;  %v65_v0 = vlaneseq  ;;  %v9008_v1 = vmov 0.0   ;;  %v64_v2 = vld [vmem:[%s14385_s0] sm:$0x3]  ;;  %s9009_s0 = smov 33  }
   0x6   :  { %106 = vst [vmem:[#allocation3 + $0x10] sm:$0xe0] %v9008_v1  ;;  %v71_v3 = vld [vmem:[%s14386_s1] sm:$0xff]  ;;  %s9010_s1 = smov 34   ;;  %s9013_s22 = smov 30   ;;  %v14452_v25 = vmov 0  }
   0x7   :  { %107 = vst [vmem:[#allocation3 + $0x18] sm:$0xe0] %v9008_v1  ;;  %vm67_vm0 = vcmp.lt.s32.totalorder %v65_v0, 256  ;;  %v82_v4 = vld [vmem:[%s14387_s2] sm:$0xff]  ;;  %s9011_s2 = smov 32   ;;  %s9014_s23 = smov 18   ;;  %7897 = vset.pattern.permute.xlu1 %v14452_v25  ;;  %7896 = vset.pattern.permute.xlu0 %v14452_v25 }
   0x8   :  { %69 = vst.msk [vmem:[#allocation3] ss:$8 sm:$0x3] %vm67_vm0, %v64_v2  ;;  %v95_v9 = vld [vmem:[%s14388_s3] sm:$0xff]  ;;  %s9012_s3 = smov 31   ;;  %s9015_s24 = smov 17   ;;  %7898 = vset.pattern.permute.xlu2 %v14452_v25 }
   0x9   :  { %73 = vst [vmem:[#allocation1] ss:$2 sm:$0xff] %v71_v3  ;;  %s9016_s25 = smov 16   ;;  %s9017_s26 = smov 15   ;;  %v9221_v28 = vand.u32 127, %v65_v0  ;;  %v14708_v36 = vmov 0 }
   0xa   :  { %s9018_s27 = smov 14   ;;  %s9019_s28 = smov 2   ;;  %v9205_v24 = vld [vmem:[%s14389_s4] ss:$2 sm:$0x3]  ;;  %v14711_v37 = vmov 0 }
   0xb   :  { %s14530_s29 = smov 1   ;;  %s14528_s30 = smov 127   ;;  %vm127_vm1 = vcmp.ge.s32.totalorder %v9205_v24, 2  ;;  %vm14401_vm2 = vcmp.lt.s32.totalorder %v9221_v28, 32  ;;  %vm14402_vm11 = vcmp.lt.s32.totalorder %v9221_v28, 33  ;;  %vm14403_vm12 = vcmp.lt.s32.totalorder %v9221_v28, 34 }
   0xc   :  { %s14524_s14 = smov 126   ;;  %s14526_s15 = smov 114   ;;  %v184_v27 = vsel %vm127_vm1, 1, %v14452_v25  ;;  %v9261_v48 = vld [vmem:[%s14389_s4 + $0x1] ss:$2 sm:$0x3] }
   0xd   :  { %s14399_s16 = smov 113   ;;  %s9025_s7 = smov 112   ;;  %v185_v29 = vperm.slane %v184_v27, 0  ;;  %v186_v30 = vperm.slane %v184_v27, 1  ;;  %vm14406_vm5 = vcmp.ge.s32.totalorder %v9261_v48, 2  ;;  %vm14405_vm6 = vcmp.ge.s32.totalorder %v9261_v48, 1 }
   0xe   :  { %s9026_s19 = smov 111   ;;  %s14512_s20 = smov 110   ;;  %vm129_vm7 = vmand %vm127_vm1, %vm14406_vm5  ;;  %vm14416_vm9 = vcmp.lt.s32.totalorder %v9261_v48, 15  ;;  %v14720_v2 = vmov 0 }
   0xf   :  { %s9029_s21 = smov 98   ;;  %vm9230_vm3 = vcmp.eq.s32.totalorder %v185_v29, 1  ;;  %vm9234_vm4 = vcmp.eq.s32.totalorder %v186_v30, 1  ;;  %s9030_s17 = smov 97   ;;  %vm157_vm8 = vmand %vm127_vm1, %vm14405_vm6  ;;  %v130_v50 = vsel %vm129_vm7, 1, %v14452_v25  ;;  %vm14404_vm7 = vcmp.lt.s32.totalorder %v9221_v28, 31 }
  0x10   :  { %v74_v5 = vld.sshfl [vmem:[#allocation1] sm:$0xff pattern:$0x75316420]  ;;  %v75_v6 = vld.sshfl [vmem:[#allocation1 + $0x8] sm:$0xff pattern:$0x75316420]  ;;  %vm211_vm10 = vmand %vm127_vm1, %vm14416_vm9 }
  0x11   :  { %v76_v7 = vrot.slane %v74_v5, 7  ;;  %84 = vst [vmem:[#allocation1] ss:$2 sm:$0xff] %v82_v4  ;;  %v77_v8 = vrot.slane %v75_v6, 7  ;;  %v14709_v36 = vsel %vm9230_vm3, 4294967295, %v14708_v36  ;;  %v14712_v37 = vsel %vm9234_vm4, 4294967295, %v14711_v37 }
  0x12   :  { %14710 = vst [vmem:[#allocation7_spill] sm:$0xff] %v14709_v36  ;;  %s14508_s4 = smov 96   ;;  %v158_v53 = vsel %vm157_vm8, 1, %v14452_v25  ;;  %v131_v55 = vperm.slane %v130_v50, 0  ;;  %v132_v56 = vperm.slane %v130_v50, 1  ;;  %s14506_s18 = smov 94  }
  0x13   :  { %80 = vst [vmem:[#allocation3] sm:$0x1e] %v76_v7  ;;  %v159_v57 = vperm.slane %v158_v53, 0  ;;  %v160_v58 = vperm.slane %v158_v53, 1  ;;  %v212_v0 = vsel %vm211_vm10, 1, %v14452_v25  ;;  %vm266_vm8 = vcmp.ge.s32.totalorder %v9205_v24, 1 }
  0x14   :  { %81 = vst [vmem:[#allocation3 + $0x8] sm:$0x1e] %v77_v8  ;;  %vm9298_vm13 = vcmp.eq.s32.totalorder %v131_v55, 1  ;;  %vm9302_vm14 = vcmp.eq.s32.totalorder %v132_v56, 1  ;;  %v14727_v50 = vmov 0 }
  0x15   :  { %14713 = vst [vmem:[#allocation8_spill] sm:$0xff] %v14712_v37  ;;  %vm9306_vm15 = vcmp.eq.s32.totalorder %v159_v57, 1  ;;  %vm9313_vm0 = vcmp.eq.s32.totalorder %v160_v58, 1 }
  0x16   :  { %v14721_v2 = vsel %vm9313_vm0, 4294967295, %v14720_v2 }
  0x18   :  { %v85_v10 = vld.sshfl [vmem:[#allocation1] sm:$0xff pattern:$0x75316420]  ;;  %v86_v11 = vld.sshfl [vmem:[#allocation1 + $0x8] sm:$0xff pattern:$0x75316420] }
  0x19   :  { %v87_v12 = vrot.slane %v85_v10, 3  ;;  %97 = vst [vmem:[#allocation1] ss:$2 sm:$0xff] %v95_v9  ;;  %v88_v13 = vrot.slane %v86_v11, 3  ;;  %v213_v11 = vperm.slane %v212_v0, 0 }
  0x1b   :  { %91 = vst [vmem:[#allocation3] sm:$0xe0] %v87_v12 }
  0x1c   :  { %93 = vst [vmem:[#allocation3 + $0x10] sm:$0x1] %v87_v12  ;;  %v214_v12 = vperm.slane %v212_v0, 1 }
  0x1d   :  { %92 = vst [vmem:[#allocation3 + $0x8] sm:$0xe0] %v88_v13 }
  0x1e   :  { %94 = vst [vmem:[#allocation3 + $0x18] sm:$0x1] %v88_v13 }
  0x20   :  { %v98_v14 = vld.sshfl [vmem:[#allocation1] sm:$0xff pattern:$0x75316420]  ;;  %v99_v15 = vld.sshfl [vmem:[#allocation1 + $0x8] sm:$0xff pattern:$0x75316420] }
  0x21   :  { %v100_v16 = vrot.slane %v98_v14, 7  ;;  %v101_v17 = vrot.slane %v99_v15, 7 }
  0x22   :  { %v9120_v18 = vld [vmem:[#allocation3] sm:$0xff] }
  0x23   :  { %104 = vst [vmem:[#allocation3 + $0x10] sm:$0x1e] %v100_v16 }
  0x24   :  { %105 = vst [vmem:[#allocation3 + $0x18] sm:$0x1e] %v101_v17  ;;  %v9132_v21 = vld [vmem:[#allocation3 + $0x8] sm:$0xff] }
  0x2a   :  { %v9122_v19 = vld [vmem:[#allocation3 + $0x10] sm:$0xff] }
  0x2b   :  { %v9126_v20 = vpack.i.bf16 %v9122_v19, %v9120_v18  ;;  %v9134_v22 = vld [vmem:[#allocation3 + $0x18] sm:$0xff] }
  0x2c   :  { %v9140_v23 = vpack.i.bf16 %v9134_v22, %v9132_v21 }
  0x2d   :  { %7667 = vrot.lane.b32.xlu1 %v9126_v20, %s9009_s0  ;;  %7657 = vrot.lane.b32.xlu0 %v9126_v20, %s9010_s1 }
  0x2e   :  { %7677 = vrot.lane.b32.xlu2 %v9126_v20, %s9011_s2 }
  0x35   :  { %7672 = vrot.lane.b32.xlu1 %v9140_v23, %s9009_s0  ;;  %7662 = vrot.lane.b32.xlu0 %v9140_v23, %s9010_s1 }
  0x36   :  { %7682 = vrot.lane.b32.xlu2 %v9140_v23, %s9011_s2 }
  0x3d   :  { %7692 = vrot.lane.b32.xlu1 %v9140_v23, %s9012_s3  ;;  %7687 = vrot.lane.b32.xlu0 %v9126_v20, %s9012_s3 }
  0x3e   :  { %7697 = vrot.lane.b32.xlu2 %v9126_v20, %s9013_s22 }
  0x45   :  { %7707 = vrot.lane.b32.xlu1 %v9126_v20, %s9014_s23  ;;  %7702 = vrot.lane.b32.xlu0 %v9140_v23, %s9013_s22 }
  0x46   :  { %7712 = vrot.lane.b32.xlu2 %v9140_v23, %s9014_s23 }
  0x4d   :  { %7722 = vrot.lane.b32.xlu1 %v9140_v23, %s9015_s24  ;;  %7717 = vrot.lane.b32.xlu0 %v9126_v20, %s9015_s24 }
  0x4e   :  { %7727 = vrot.lane.b32.xlu2 %v9126_v20, %s9016_s25 }
  0x55   :  { %7737 = vrot.lane.b32.xlu1 %v9126_v20, %s9017_s26  ;;  %7732 = vrot.lane.b32.xlu0 %v9140_v23, %s9016_s25 }
  0x56   :  { %7742 = vrot.lane.b32.xlu2 %v9140_v23, %s9017_s26 }
  0x5d   :  { %7752 = vrot.lane.b32.xlu1 %v9140_v23, %s9018_s27  ;;  %7747 = vrot.lane.b32.xlu0 %v9126_v20, %s9018_s27 }
  0x5e   :  { %7757 = vrot.lane.b32.xlu2 %v9126_v20, %s9019_s28 }
  0x65   :  { %7767 = vrot.lane.b32.xlu1 %v9126_v20, %s14530_s29  ;;  %7762 = vrot.lane.b32.xlu0 %v9140_v23, %s9019_s28 }
  0x66   :  { %7772 = vrot.lane.b32.xlu2 %v9140_v23, %s14530_s29  ;;  %s14943_s29 = smov 114  }
  0x6d   :  { %7782 = vrot.lane.b32.xlu1 %v9140_v23, %s14528_s30  ;;  %7777 = vrot.lane.b32.xlu0 %v9126_v20, %s14528_s30  ;;  %s14948_s30 = smov 126  }
  0x6e   :  { %7787 = vrot.lane.b32.xlu2 %v9126_v20, %s14524_s14 }
  0x75   :  { %7797 = vrot.lane.b32.xlu1 %v9126_v20, %s14526_s15  ;;  %7792 = vrot.lane.b32.xlu0 %v9140_v23, %s14524_s14  ;;  %s14955_s14 = smov 110  }
  0x76   :  { %7802 = vrot.lane.b32.xlu2 %v9140_v23, %s14526_s15 }
  0x7d   :  { %7812 = vrot.lane.b32.xlu1 %v9140_v23, %s14399_s16  ;;  %7807 = vrot.lane.b32.xlu0 %v9126_v20, %s14399_s16  ;;  %s14510_s16 = smov 95  }
  0x7e   :  { %7817 = vrot.lane.b32.xlu2 %v9126_v20, %s9025_s7 }
  0x85   :  { %7827 = vrot.lane.b32.xlu1 %v9126_v20, %s9026_s19  ;;  %7822 = vrot.lane.b32.xlu0 %v9140_v23, %s9025_s7 }
  0x86   :  { %7832 = vrot.lane.b32.xlu2 %v9140_v23, %s9026_s19 }
  0x88   :  { %v7678_v26 = vpop.permute.xlu2 %7677 }
  0x89   :  { %v7680_v31 = vunpack.i.h.bf16 %v7678_v26  ;;  %v7679_v32 = vunpack.i.l.bf16 %v7678_v26 }
  0x8d   :  { %7842 = vrot.lane.b32.xlu1 %v9140_v23, %s14512_s20  ;;  %7837 = vrot.lane.b32.xlu0 %v9126_v20, %s14512_s20 }
  0x8e   :  { %7847 = vrot.lane.b32.xlu2 %v9126_v20, %s9029_s21 }
  0x90   :  { %v7683_v33 = vpop.permute.xlu2 %7682 }
  0x91   :  { %v7685_v34 = vunpack.i.h.bf16 %v7683_v33  ;;  %v7684_v35 = vunpack.i.l.bf16 %v7683_v33 }
  0x93   :  { %v180_v38 = vsel %vm14401_vm2, %v7679_v32, %v7684_v35  ;;  %v181_v39 = vsel %vm14401_vm2, %v7680_v31, %v7685_v34  ;;  %v182_v40 = vsel %vm14401_vm2, %v7684_v35, %v7679_v32  ;;  %v183_v41 = vsel %vm14401_vm2, %v7685_v34, %v7680_v31 }
  0x94   :  { %v189_v42 = vsel %vm9230_vm3, %v182_v40, 0.0  ;;  %v190_v43 = vsel %vm9234_vm4, %v180_v38, 0.0  ;;  %v191_v44 = vsel %vm9230_vm3, %v183_v41, 0.0  ;;  %v192_v45 = vsel %vm9234_vm4, %v181_v39, 0.0 }
  0x95   :  { %7857 = vrot.lane.b32.xlu1 %v9126_v20, %s9030_s17  ;;  %7852 = vrot.lane.b32.xlu0 %v9140_v23, %s9029_s21  ;;  %v193_v46 = vpack.c.bf16 %v190_v43, %v189_v42  ;;  %v194_v47 = vpack.c.bf16 %v192_v45, %v191_v44  ;;  %vm14407_vm2 = vcmp.lt.s32.totalorder %v9261_v48, 14 }
  0x96   :  { %7862 = vrot.lane.b32.xlu2 %v9140_v23, %s9030_s17  ;;  %vm9334_vm10 = vmand %vm127_vm1, %vm14407_vm2 }
  0x97   :  { %195 = vst [vmem:[#allocation2 + $0x20] sm:$0xff] %v193_v46  ;;  %vm267_vm1 = vmand %vm266_vm8, %vm14406_vm5  ;;  %v240_v42 = vsel %vm9334_vm10, 1, %v14452_v25 }
  0x98   :  { %196 = vst [vmem:[#allocation2 + $0x28] sm:$0xff] %v194_v47  ;;  %v9266_v49 = vpop.permute.xlu2 %7697  ;;  %v268_v41 = vsel %vm267_vm1, 1, %v14452_v25  ;;  %v14724_v47 = vmov 0  ;;  %v241_v58 = vperm.slane %v240_v42, 0  ;;  %vm294_vm10 = vmand %vm266_vm8, %vm14405_vm6  ;;  %vm14408_vm1 = vcmp.lt.s32.totalorder %v9221_v28, 18 }
  0x99   :  { %v269_v57 = vperm.slane %v268_v41, 0  ;;  %v295_v17 = vsel %vm294_vm10, 1, %v14452_v25 }
  0x9a   :  { %vm9416_vm5 = vcmp.eq.s32.totalorder %v241_v58, 1 }
  0x9d   :  { %7872 = vrot.lane.b32.xlu1 %v9140_v23, %s14508_s4  ;;  %7867 = vrot.lane.b32.xlu0 %v9126_v20, %s14508_s4 }
  0x9e   :  { %7877 = vrot.lane.b32.xlu2 %v9126_v20, %s14510_s16 }
  0x9f   :  { %v7668_v51 = vpop.permute.xlu1 %7667  ;;  %v7658_v52 = vpop.permute.xlu0 %7657 }
  0xa0   :  { %v9286_v54 = vpop.permute.xlu2 %7712  ;;  %v7670_v61 = vunpack.i.h.bf16 %v7668_v51  ;;  %v7669_v62 = vunpack.i.l.bf16 %v7668_v51  ;;  %v7660_v9 = vunpack.i.h.bf16 %v7658_v52  ;;  %v7659_v10 = vunpack.i.l.bf16 %v7658_v52 }
  0xa5   :  { %7887 = vrot.lane.b32.xlu1 %v9126_v20, %s14506_s18  ;;  %7882 = vrot.lane.b32.xlu0 %v9140_v23, %s14510_s16 }
  0xa6   :  { %7892 = vrot.lane.b32.xlu2 %v9140_v23, %s14506_s18 }
  0xa7   :  { %v7673_v1 = vpop.permute.xlu1 %7672  ;;  %v7663_v3 = vpop.permute.xlu0 %7662 }
  0xa8   :  { %v7675_v4 = vunpack.i.h.bf16 %v7673_v1  ;;  %v7674_v5 = vunpack.i.l.bf16 %v7673_v1  ;;  %v7665_v6 = vunpack.i.h.bf16 %v7663_v3  ;;  %v7664_v7 = vunpack.i.l.bf16 %v7663_v3  ;;  %v9320_v8 = vpop.permute.xlu2 %7727 }
  0xaa   :  { %v152_v13 = vsel %vm14402_vm11, %v7669_v62, %v7674_v5  ;;  %v153_v14 = vsel %vm14402_vm11, %v7670_v61, %v7675_v4  ;;  %v154_v15 = vsel %vm14402_vm11, %v7674_v5, %v7669_v62  ;;  %v155_v16 = vsel %vm14402_vm11, %v7675_v4, %v7670_v61 }
  0xab   :  { %v163_v20 = vsel %vm9306_vm15, %v154_v15, 0.0  ;;  %v164_v23 = vsel %vm9313_vm0, %v152_v13, 0.0  ;;  %v165_v26 = vsel %vm9306_vm15, %v155_v16, 0.0  ;;  %v166_v27 = vsel %vm9313_vm0, %v153_v14, 0.0 }
  0xac   :  { %v167_v29 = vpack.c.bf16 %v164_v23, %v163_v20  ;;  %v168_v30 = vpack.c.bf16 %v166_v27, %v165_v26  ;;  %v123_v31 = vsel %vm14403_vm12, %v7659_v10, %v7664_v7  ;;  %v124_v32 = vsel %vm14403_vm12, %v7660_v9, %v7665_v6 }
  0xad   :  { %v125_v33 = vsel %vm14403_vm12, %v7664_v7, %v7659_v10  ;;  %v126_v34 = vsel %vm14403_vm12, %v7665_v6, %v7660_v9  ;;  %v136_v35 = vsel %vm9302_vm14, %v123_v31, 0.0  ;;  %v138_v38 = vsel %vm9302_vm14, %v124_v32, 0.0 }
  0xae   :  { %169 = vst [vmem:[#allocation2 + $0x10] sm:$0xff] %v167_v29  ;;  %v135_v39 = vsel %vm9298_vm13, %v125_v33, 0.0  ;;  %v137_v40 = vsel %vm9298_vm13, %v126_v34, 0.0  ;;  %vm9370_vm11 = vcmp.eq.s32.totalorder %v213_v11, 1  ;;  %vm9374_vm12 = vcmp.eq.s32.totalorder %v214_v12, 1 }
  0xaf   :  { %170 = vst [vmem:[#allocation2 + $0x18] sm:$0xff] %v168_v30  ;;  %v139_v43 = vpack.c.bf16 %v136_v35, %v135_v39  ;;  %v140_v44 = vpack.c.bf16 %v138_v38, %v137_v40  ;;  %v7693_v45 = vpop.permute.xlu1 %7692  ;;  %v7688_v46 = vpop.permute.xlu0 %7687  ;;  %v14725_v47 = vsel %vm9370_vm11, 4294967295, %v14724_v47  ;;  %v14728_v50 = vsel %vm9374_vm12, 4294967295, %v14727_v50 }
  0xb0   :  { %14726 = vst [vmem:[#allocation9_spill] sm:$0xff] %v14725_v47  ;;  %v7695_v51 = vunpack.i.h.bf16 %v7693_v45  ;;  %v7694_v52 = vunpack.i.l.bf16 %v7693_v45  ;;  %v7690_v53 = vunpack.i.h.bf16 %v7688_v46  ;;  %v7689_v55 = vunpack.i.l.bf16 %v7688_v46  ;;  %v9378_v56 = vpop.permute.xlu2 %7742 }
  0xb1   :  { %14729 = vst [vmem:[#allocation10_spill] sm:$0xff] %v14728_v50  ;;  %v242_v61 = vperm.slane %v240_v42, 1  ;;  %v270_v11 = vperm.slane %v268_v41, 1  ;;  %v9403_v12 = vsel %vm14405_vm6, 1, %v14452_v25  ;;  %v7700_v13 = vunpack.i.h.bf16 %v9266_v49  ;;  %vm347_vm6 = vmand %vm266_vm8, %vm14416_vm9 }
  0xb2   :  { %141 = vst [vmem:[#allocation2] sm:$0xff] %v139_v43  ;;  %v207_v62 = vsel %vm14404_vm7, %v7690_v53, %v7695_v51  ;;  %v209_v0 = vsel %vm14404_vm7, %v7695_v51, %v7690_v53  ;;  %v206_v1 = vsel %vm14404_vm7, %v7689_v55, %v7694_v52  ;;  %v208_v3 = vsel %vm14404_vm7, %v7694_v52, %v7689_v55 }
  0xb3   :  { %142 = vst [vmem:[#allocation2 + $0x8] sm:$0xff] %v140_v44  ;;  %v217_v4 = vsel %vm9370_vm11, %v208_v3, 0.0  ;;  %v218_v5 = vsel %vm9374_vm12, %v206_v1, 0.0  ;;  %v219_v6 = vsel %vm9370_vm11, %v209_v0, 0.0  ;;  %v220_v7 = vsel %vm9374_vm12, %v207_v62, 0.0 }
  0xb4   :  { %v221_v9 = vpack.c.bf16 %v218_v5, %v217_v4  ;;  %v222_v10 = vpack.c.bf16 %v220_v7, %v219_v6  ;;  %v7699_v14 = vunpack.i.l.bf16 %v9266_v49  ;;  %v7715_v15 = vunpack.i.h.bf16 %v9286_v54 }
  0xb5   :  { %v7714_v16 = vunpack.i.l.bf16 %v9286_v54  ;;  %vm9411_vm7 = vcmp.eq.s32.totalorder %v269_v57, 1  ;;  %v14730_v23 = vmov 0  ;;  %v14733_v27 = vmov 0 }
  0xb6   :  { %223 = vst [vmem:[#allocation2 + $0x30] sm:$0xff] %v221_v9  ;;  %v14731_v23 = vsel %vm9411_vm7, 4294967295, %v14730_v23  ;;  %v14734_v27 = vsel %vm9416_vm5, 4294967295, %v14733_v27  ;;  %vm9420_vm2 = vcmp.eq.s32.totalorder %v242_v61, 1  ;;  %v14736_v49 = vmov 0 }
  0xb7   :  { %224 = vst [vmem:[#allocation2 + $0x38] sm:$0xff] %v222_v10  ;;  %v7708_v20 = vpop.permute.xlu1 %7707  ;;  %v7703_v26 = vpop.permute.xlu0 %7702  ;;  %v14737_v49 = vsel %vm9420_vm2, 4294967295, %v14736_v49  ;;  %vm9424_vm10 = vcmp.eq.s32.totalorder %v270_v11, 1  ;;  %v14739_v30 = vmov 0  ;;  %v296_v33 = vperm.slane %v295_v17, 0 }
  0xb8   :  { %14732 = vst [vmem:[#allocation11_spill] sm:$0xff] %v14731_v23  ;;  %v7710_v54 = vunpack.i.h.bf16 %v7708_v20  ;;  %v7709_v29 = vunpack.i.l.bf16 %v7708_v20  ;;  %v14740_v30 = vsel %vm9424_vm10, 4294967295, %v14739_v30  ;;  %v7705_v31 = vunpack.i.h.bf16 %v7703_v26  ;;  %v9428_v32 = vpop.permute.xlu2 %7757 }
  0xb9   :  { %14735 = vst [vmem:[#allocation12_spill] sm:$0xff] %v14734_v27  ;;  %v297_v34 = vperm.slane %v295_v17, 1  ;;  %v321_v35 = vsel %vm266_vm8, 1, %v14452_v25  ;;  %v7704_v38 = vunpack.i.l.bf16 %v7703_v26  ;;  %v348_v0 = vsel %vm347_vm6, 1, %v14452_v25 }
  0xba   :  { %14738 = vst [vmem:[#allocation13_spill] sm:$0xff] %v14737_v49  ;;  %v263_v39 = vsel %vm14408_vm1, %v7710_v54, %v7715_v15  ;;  %v265_v40 = vsel %vm14408_vm1, %v7715_v15, %v7710_v54  ;;  %v262_v41 = vsel %vm14408_vm1, %v7709_v29, %v7714_v16  ;;  %v264_v42 = vsel %vm14408_vm1, %v7714_v16, %v7709_v29 }
  0xbb   :  { %14741 = vst [vmem:[#allocation14_spill] sm:$0xff] %v14740_v30  ;;  %v273_v43 = vsel %vm9411_vm7, %v264_v42, 0.0  ;;  %v274_v44 = vsel %vm9424_vm10, %v262_v41, 0.0  ;;  %v275_v45 = vsel %vm9411_vm7, %v265_v40, 0.0  ;;  %v276_v46 = vsel %vm9424_vm10, %v263_v39, 0.0 }
  0xbc   :  { %v277_v51 = vpack.c.bf16 %v274_v44, %v273_v43  ;;  %v278_v52 = vpack.c.bf16 %v276_v46, %v275_v45  ;;  %vm14742_vm1 = vcmp.lt.s32.totalorder %v9221_v28, 30  ;;  %v14746_v5 = vmov 0 }
  0xbd   :  { %v235_v53 = vsel %vm14742_vm1, %v7700_v13, %v7705_v31  ;;  %vm14743_vm12 = vmmov %vm14742_vm1  ;;  %v14749_v6 = vmov 0  ;;  %vm14415_vm6 = vcmp.lt.s32.totalorder %v9221_v28, 17  ;;  %v322_v16 = vperm.slane %v321_v35, 0 }
  0xbe   :  { %v237_v55 = vsel %vm14743_vm12, %v7705_v31, %v7700_v13  ;;  %vm14744_vm11 = vmmov %vm14742_vm1  ;;  %v248_v62 = vsel %vm9420_vm2, %v235_v53, 0.0  ;;  %279 = vst [vmem:[#allocation2 + $0x50] sm:$0xff] %v277_v51  ;;  %vm9474_vm12 = vcmp.eq.s32.totalorder %v297_v34, 1  ;;  %v323_v17 = vperm.slane %v321_v35, 1 }
  0xbf   :  { %v234_v57 = vsel %vm14744_vm11, %v7699_v14, %v7704_v38  ;;  %vm14745_vm7 = vmmov %vm14742_vm1  ;;  %v247_v61 = vsel %vm9416_vm5, %v237_v55, 0.0  ;;  %280 = vst [vmem:[#allocation2 + $0x58] sm:$0xff] %v278_v52  ;;  %vm9470_vm11 = vcmp.eq.s32.totalorder %v296_v33, 1  ;;  %v14750_v6 = vsel %vm9474_vm12, 4294967295, %v14749_v6  ;;  %v7723_v9 = vpop.permute.xlu1 %7722  ;;  %v7718_v10 = vpop.permute.xlu0 %7717 }
  0xc0   :  { %v236_v58 = vsel %vm14745_vm7, %v7704_v38, %v7699_v14  ;;  %v246_v3 = vsel %vm9420_vm2, %v234_v57, 0.0  ;;  %v250_v4 = vpack.c.bf16 %v248_v62, %v247_v61  ;;  %v14747_v5 = vsel %vm9470_vm11, 4294967295, %v14746_v5  ;;  %14751 = vst [vmem:[#allocation16_spill] sm:$0xff] %v14750_v6  ;;  %v9487_v34 = vpop.permute.xlu2 %7772 }
  0xc1   :  { %v245_v1 = vsel %vm9416_vm5, %v236_v58, 0.0  ;;  %14748 = vst [vmem:[#allocation15_spill] sm:$0xff] %v14747_v5  ;;  %v7725_v11 = vunpack.i.h.bf16 %v7723_v9  ;;  %v7724_v13 = vunpack.i.l.bf16 %v7723_v9  ;;  %v7720_v14 = vunpack.i.h.bf16 %v7718_v10 }
  0xc2   :  { %v249_v7 = vpack.c.bf16 %v246_v3, %v245_v1  ;;  %252 = vst [vmem:[#allocation2 + $0x48] sm:$0xff] %v250_v4  ;;  %v7719_v15 = vunpack.i.l.bf16 %v7718_v10  ;;  %v349_v20 = vperm.slane %v348_v0, 0  ;;  %v350_v26 = vperm.slane %v348_v0, 1 }
  0xc3   :  { %v291_v54 = vsel %vm14415_vm6, %v7720_v14, %v7725_v11  ;;  %v293_v29 = vsel %vm14415_vm6, %v7725_v11, %v7720_v14  ;;  %vm14752_vm7 = vcmp.lt.s32.totalorder %v9261_v48, 14  ;;  %v428_v43 = vperm.slane %v9403_v12, 0 }
  0xc4   :  { %251 = vst [vmem:[#allocation2 + $0x40] sm:$0xff] %v249_v7  ;;  %v290_v31 = vsel %vm14415_vm6, %v7719_v15, %v7724_v13  ;;  %v292_v33 = vsel %vm14415_vm6, %v7724_v13, %v7719_v15  ;;  %v302_v39 = vsel %vm9470_vm11, %v293_v29, 0.0  ;;  %v303_v40 = vsel %vm9474_vm12, %v291_v54, 0.0  ;;  %vm374_vm1 = vmand %vm266_vm8, %vm14752_vm7 }
  0xc5   :  { %v300_v35 = vsel %vm9470_vm11, %v292_v33, 0.0  ;;  %v301_v38 = vsel %vm9474_vm12, %v290_v31, 0.0  ;;  %v305_v42 = vpack.c.bf16 %v303_v40, %v302_v39  ;;  %v429_v44 = vperm.slane %v9403_v12, 1 }
  0xc6   :  { %v304_v41 = vpack.c.bf16 %v301_v38, %v300_v35  ;;  %vm9503_vm6 = vcmp.eq.s32.totalorder %v322_v16, 1  ;;  %v14753_v45 = vmov 0  ;;  %vm9507_vm9 = vcmp.eq.s32.totalorder %v323_v17, 1 }
  0xc7   :  { %v14754_v45 = vsel %vm9503_vm6, 4294967295, %v14753_v45  ;;  %v14756_v46 = vmov 0  ;;  %v7745_v51 = vunpack.i.h.bf16 %v9378_v56  ;;  %v7744_v52 = vunpack.i.l.bf16 %v9378_v56  ;;  %307 = vst [vmem:[#allocation2 + $0x68] sm:$0xff] %v305_v42  ;;  %v7738_v58 = vpop.permute.xlu1 %7737  ;;  %v7733_v61 = vpop.permute.xlu0 %7732 }
  0xc8   :  { %14755 = vst [vmem:[#allocation17_spill] sm:$0xff] %v14754_v45  ;;  %v14757_v46 = vsel %vm9507_vm9, 4294967295, %v14756_v46  ;;  %v375_v53 = vsel %vm374_vm1, 1, %v14452_v25  ;;  %vm9514_vm8 = vcmp.eq.s32.totalorder %v349_v20, 1  ;;  %v14759_v55 = vmov 0  ;;  %v9546_v29 = vpop.permute.xlu2 %7787 }
  0xc9   :  { %14758 = vst [vmem:[#allocation18_spill] sm:$0xff] %v14757_v46  ;;  %v14760_v55 = vsel %vm9514_vm8, 4294967295, %v14759_v55  ;;  %vm9518_vm7 = vcmp.eq.s32.totalorder %v350_v26, 1  ;;  %v14762_v12 = vmov 0  ;;  %v7730_v57 = vunpack.i.h.bf16 %v9320_v8 }
  0xca   :  { %306 = vst [vmem:[#allocation2 + $0x60] sm:$0xff] %v304_v41  ;;  %v14763_v12 = vsel %vm9518_vm7, 4294967295, %v14762_v12  ;;  %vm14419_vm12 = vcmp.lt.s32.totalorder %v9221_v28, 15  ;;  %v7729_v62 = vunpack.i.l.bf16 %v9320_v8  ;;  %v7740_v56 = vunpack.i.h.bf16 %v7738_v58 }
  0xcb   :  { %14761 = vst [vmem:[#allocation19_spill] sm:$0xff] %v14760_v55  ;;  %v7739_v0 = vunpack.i.l.bf16 %v7738_v58  ;;  %v7735_v1 = vunpack.i.h.bf16 %v7733_v61  ;;  %vm14420_vm1 = vcmp.lt.s32.totalorder %v9221_v28, 16  ;;  %v7734_v3 = vunpack.i.l.bf16 %v7733_v61 }
  0xcc   :  { %14764 = vst [vmem:[#allocation20_spill] sm:$0xff] %v14763_v12  ;;  %v376_v4 = vperm.slane %v375_v53, 0  ;;  %v377_v7 = vperm.slane %v375_v53, 1  ;;  %v344_v9 = vsel %vm14419_vm12, %v7740_v56, %v7745_v51  ;;  %v346_v10 = vsel %vm14419_vm12, %v7745_v51, %v7740_v56 }
  0xcd   :  { %v343_v11 = vsel %vm14419_vm12, %v7739_v0, %v7744_v52  ;;  %v345_v8 = vsel %vm14419_vm12, %v7744_v52, %v7739_v0  ;;  %v355_v15 = vsel %vm9514_vm8, %v346_v10, 0.0  ;;  %v356_v16 = vsel %vm9518_vm7, %v344_v9, 0.0 }
  0xce   :  { %v353_v13 = vsel %vm9514_vm8, %v345_v8, 0.0  ;;  %v354_v14 = vsel %vm9518_vm7, %v343_v11, 0.0  ;;  %v358_v20 = vpack.c.bf16 %v356_v16, %v355_v15  ;;  %v318_v26 = vsel %vm14420_vm1, %v7730_v57, %v7735_v1  ;;  %v9597_v15 = vld [vmem:[#allocation2 + $0x14] sm:$0xf0] }
  0xcf   :  { %v357_v17 = vpack.c.bf16 %v354_v14, %v353_v13  ;;  %v320_v54 = vsel %vm14420_vm1, %v7735_v1, %v7730_v57  ;;  %v317_v31 = vsel %vm14420_vm1, %v7729_v62, %v7734_v3  ;;  %v319_v33 = vsel %vm14420_vm1, %v7734_v3, %v7729_v62  ;;  %v7753_v52 = vpop.permute.xlu1 %7752  ;;  %v7748_v53 = vpop.permute.xlu0 %7747  ;;  %v9593_v13 = vld [vmem:[#allocation2 + $0x24] sm:$0xf0]  ;;  %v9595_v14 = vld [vmem:[#allocation2 + $0x10] sm:$0xf] }
  0xd0   :  { %v328_v35 = vsel %vm9503_vm6, %v320_v54, 0.0  ;;  %v329_v38 = vsel %vm9507_vm9, %v318_v26, 0.0  ;;  %v326_v39 = vsel %vm9503_vm6, %v319_v33, 0.0  ;;  %v327_v40 = vsel %vm9507_vm9, %v317_v31, 0.0  ;;  %360 = vst [vmem:[#allocation2 + $0x88] sm:$0xff] %v358_v20 }
  0xd1   :  { %359 = vst [vmem:[#allocation2 + $0x80] sm:$0xff] %v357_v17  ;;  %v331_v41 = vpack.c.bf16 %v329_v38, %v328_v35  ;;  %vm14765_vm12 = vcmp.ge.s32.totalorder %v9261_v48, 2  ;;  %v330_v51 = vpack.c.bf16 %v327_v40, %v326_v39  ;;  %vm14429_vm1 = vcmp.lt.s32.totalorder %v9221_v28, 14  ;;  %v9607_v38 = vld [vmem:[#allocation2 + $0x30] sm:$0xf] }
  0xd2   :  { %v401_v42 = vsel %vm14765_vm12, 1, %v14452_v25  ;;  %vm9564_vm8 = vcmp.eq.s32.totalorder %v376_v4, 1  ;;  %v14766_v57 = vmov 0  ;;  %vm9568_vm7 = vcmp.eq.s32.totalorder %v377_v7, 1  ;;  %v9609_v39 = vld [vmem:[#allocation2 + $0x34] sm:$0xf0] }
  0xd3   :  { %v14767_v57 = vsel %vm9564_vm8, 4294967295, %v14766_v57  ;;  %v14769_v58 = vmov 0  ;;  %vm9572_vm9 = vcmp.eq.s32.totalorder %v428_v43, 1  ;;  %v14772_v61 = vmov 0  ;;  %333 = vst [vmem:[#allocation2 + $0x78] sm:$0xff] %v331_v41 }
  0xd4   :  { %14768 = vst [vmem:[#allocation21_spill] sm:$0xff] %v14767_v57  ;;  %v14770_v58 = vsel %vm9568_vm7, 4294967295, %v14769_v58  ;;  %v14773_v61 = vsel %vm9572_vm9, 4294967295, %v14772_v61  ;;  %vm9576_vm6 = vcmp.eq.s32.totalorder %v429_v44, 1  ;;  %v14775_v62 = vmov 0 }
  0xd5   :  { %14771 = vst [vmem:[#allocation22_spill] sm:$0xff] %v14770_v58  ;;  %v14776_v62 = vsel %vm9576_vm6, 4294967295, %v14775_v62  ;;  %v7755_v56 = vunpack.i.h.bf16 %v7753_v52  ;;  %v7754_v0 = vunpack.i.l.bf16 %v7753_v52  ;;  %v7750_v1 = vunpack.i.h.bf16 %v7748_v53  ;;  %v9583_v43 = vld [vmem:[#allocation2 + $0x20] sm:$0xf]  ;;  %v9613_v41 = vld [vmem:[#allocation2 + $0x50] sm:$0xf] }
  0xd6   :  { %14774 = vst [vmem:[#allocation23_spill] sm:$0xff] %v14773_v61  ;;  %v7749_v3 = vunpack.i.l.bf16 %v7748_v53  ;;  %vm14778_vm12 = vcmp.lt.s32.totalorder %v9261_v48, 15  ;;  %v402_v7 = vperm.slane %v401_v42, 0  ;;  %v403_v9 = vperm.slane %v401_v42, 1  ;;  %v9615_v42 = vld [vmem:[#allocation2 + $0x54] sm:$0xf0] }
  0xd7   :  { %14777 = vst [vmem:[#allocation24_spill] sm:$0xff] %v14776_v62  ;;  %v457_v4 = vsel %vm14778_vm12, 1, %v14452_v25  ;;  %v371_v44 = vsel %vm14429_vm1, %v7750_v1, %v7755_v56  ;;  %v373_v10 = vsel %vm14429_vm1, %v7755_v56, %v7750_v1  ;;  %v7760_v40 = vunpack.i.h.bf16 %v9428_v32  ;;  %v6077_v1 = vld [vmem:[#allocation2 + $0x60] sm:$0xf] }
  0xd8   :  { %332 = vst [vmem:[#allocation2 + $0x70] sm:$0xff] %v330_v51  ;;  %v370_v11 = vsel %vm14429_vm1, %v7749_v3, %v7754_v0  ;;  %v372_v8 = vsel %vm14429_vm1, %v7754_v0, %v7749_v3  ;;  %v382_v20 = vsel %vm9564_vm8, %v373_v10, 0.0  ;;  %v383_v26 = vsel %vm9568_vm7, %v371_v44, 0.0  ;;  %v7326_v3 = vld [vmem:[#allocation2 + $0x64] sm:$0xf0]  ;;  %v7768_v44 = vpop.permute.xlu1 %7767  ;;  %v7763_v10 = vpop.permute.xlu0 %7762 }
  0xd9   :  { %v380_v16 = vsel %vm9564_vm8, %v372_v8, 0.0  ;;  %v381_v17 = vsel %vm9568_vm7, %v370_v11, 0.0  ;;  %v458_v54 = vperm.slane %v457_v4, 0  ;;  %v459_v31 = vperm.slane %v457_v4, 1  ;;  %v9625_v4 = vpop.permute.xlu2 %7802 }
  0xda   :  { %v384_v33 = vpack.c.bf16 %v381_v17, %v380_v16  ;;  %v385_v35 = vpack.c.bf16 %v383_v26, %v382_v20  ;;  %v7759_v53 = vunpack.i.l.bf16 %v9428_v32  ;;  %v7775_v56 = vunpack.i.h.bf16 %v9487_v34  ;;  %v7328_v8 = vld [vmem:[#allocation2 + $0x74] sm:$0xf0] }
  0xdb   :  { %v7774_v0 = vunpack.i.l.bf16 %v9487_v34  ;;  %vm9627_vm12 = vcmp.eq.s32.totalorder %v402_v7, 1  ;;  %v14779_v11 = vmov 0  ;;  %vm9631_vm7 = vcmp.eq.s32.totalorder %v403_v9, 1 }
  0xdc   :  { %386 = vst [vmem:[#allocation2 + $0x90] sm:$0xff] %v384_v33  ;;  %v14780_v11 = vsel %vm9627_vm12, 4294967295, %v14779_v11  ;;  %v14782_v32 = vmov 0  ;;  %vm9638_vm1 = vcmp.eq.s32.totalorder %v458_v54, 1  ;;  %v14785_v16 = vmov 0 }
  0xdd   :  { %387 = vst [vmem:[#allocation2 + $0x98] sm:$0xff] %v385_v35  ;;  %v14783_v32 = vsel %vm9631_vm7, 4294967295, %v14782_v32  ;;  %v14786_v16 = vsel %vm9638_vm1, 4294967295, %v14785_v16  ;;  %vm9642_vm11 = vcmp.eq.s32.totalorder %v459_v31, 1  ;;  %v14788_v17 = vmov 0 }
  0xde   :  { %14781 = vst [vmem:[#allocation25_spill] sm:$0xff] %v14780_v11  ;;  %v14789_v17 = vsel %vm9642_vm11, 4294967295, %v14788_v17  ;;  %v7770_v7 = vunpack.i.h.bf16 %v7768_v44  ;;  %v7769_v20 = vunpack.i.l.bf16 %v7768_v44  ;;  %v7765_v9 = vunpack.i.h.bf16 %v7763_v10 }
  0xdf   :  { %14784 = vst [vmem:[#allocation26_spill] sm:$0xff] %v14783_v32  ;;  %v6085_v26 = vld [vmem:[#allocation2 + $0x70] sm:$0xf]  ;;  %vm14454_vm10 = vcmp.lt.s32.totalorder %v9205_v24, 15  ;;  %v7764_v33 = vunpack.i.l.bf16 %v7763_v10  ;;  %v6078_v52 = vor.u32 %v7326_v3, %v6077_v1  ;;  %v6070_v51 = vor.u32 %v9615_v42, %v9613_v41 }
  0xe0   :  { %14787 = vst [vmem:[#allocation27_spill] sm:$0xff] %v14786_v16  ;;  %v6086_v35 = vor.u32 %v7328_v8, %v6085_v26  ;;  %vm14791_vm8 = vcmp.lt.s32.totalorder %v9221_v28, 1 }
  0xe1   :  { %14790 = vst [vmem:[#allocation28_spill] sm:$0xff] %v14789_v17  ;;  %v424_v54 = vsel %vm14791_vm8, %v7770_v7, %v7775_v56  ;;  %vm14792_vm5 = vmmov %vm14791_vm8 }
  0xe2   :  { %v426_v31 = vsel %vm14792_vm5, %v7775_v56, %v7770_v7  ;;  %vm14793_vm2 = vmmov %vm14792_vm5  ;;  %v435_v42 = vsel %vm9576_vm6, %v424_v54, 0.0  ;;  %1181 = vmatpush.bf16.msra.mxu0 %v6086_v35  ;;  %vm14795_vm5 = vcmp.ge.s32.totalorder %v9261_v48, 2  ;;  %v7322_v7 = vld [vmem:[#allocation2 + $0x44] sm:$0xf0] }
  0xe3   :  { %v423_v34 = vsel %vm14793_vm2, %v7769_v20, %v7774_v0  ;;  %vm14794_vm4 = vmmov %vm14793_vm2  ;;  %v434_v41 = vsel %vm9572_vm9, %v426_v31, 0.0 }
  0xe4   :  { %v425_v44 = vsel %vm14794_vm4, %v7774_v0, %v7769_v20  ;;  %v433_v1 = vsel %vm9576_vm6, %v423_v34, 0.0  ;;  %vm510_vm2 = vmand %vm14454_vm10, %vm14795_vm5  ;;  %v437_v0 = vpack.c.bf16 %v435_v42, %v434_v41  ;;  %vm14796_vm4 = vcmp.lt.s32.totalorder %v9221_v28, 2  ;;  %v6061_v34 = vld [vmem:[#allocation2 + $0x40] sm:$0xf]  ;;  %v7778_v41 = vpop.permute.xlu0 %7777 }
  0xe5   :  { %v432_v10 = vsel %vm9572_vm9, %v425_v44, 0.0  ;;  %v398_v3 = vsel %vm14796_vm4, %v7760_v40, %v7765_v9  ;;  %vm14797_vm8 = vmmov %vm14796_vm4  ;;  %v511_v44 = vsel %vm510_vm2, 1, %v14452_v25  ;;  %v6062_v42 = vor.u32 %v7322_v7, %v6061_v34 }
  0xe6   :  { %v436_v56 = vpack.c.bf16 %v433_v1, %v432_v10  ;;  %v400_v8 = vsel %vm14797_vm8, %v7765_v9, %v7760_v40  ;;  %vm14798_vm9 = vmmov %vm14796_vm4  ;;  %v409_v54 = vsel %vm9631_vm7, %v398_v3, 0.0  ;;  %439 = vst [vmem:[#allocation2 + $0xb8] sm:$0xff] %v437_v0  ;;  %1182 = vmatpush.bf16.msra.mxu0 %v6078_v52  ;;  %v7783_v1 = vpop.permute.xlu1 %7782  ;;  %v7805_v0 = vunpack.i.h.bf16 %v9625_v4 }
  0xe7   :  { %v397_v20 = vsel %vm14798_vm9, %v7759_v53, %v7764_v33  ;;  %vm14799_vm6 = vmmov %vm14796_vm4  ;;  %v408_v35 = vsel %vm9627_vm12, %v400_v8, 0.0  ;;  %v7784_v3 = vunpack.i.l.bf16 %v7783_v1  ;;  %v7780_v8 = vunpack.i.h.bf16 %v7778_v41 }
  0xe8   :  { %v399_v26 = vsel %vm14799_vm6, %v7764_v33, %v7759_v53  ;;  %438 = vst [vmem:[#allocation2 + $0xb0] sm:$0xff] %v436_v56  ;;  %v407_v40 = vsel %vm9631_vm7, %v397_v20, 0.0  ;;  %v411_v9 = vpack.c.bf16 %v409_v54, %v408_v35  ;;  %v7790_v53 = vunpack.i.h.bf16 %v9546_v29 }
  0xe9   :  { %v406_v31 = vsel %vm9627_vm12, %v399_v26, 0.0  ;;  %v7785_v56 = vunpack.i.h.bf16 %v7783_v1  ;;  %v7779_v20 = vunpack.i.l.bf16 %v7778_v41  ;;  %v9689_v26 = vpop.permute.xlu2 %7817  ;;  %v512_v52 = vperm.slane %v511_v44, 0 }
  0xea   :  { %v410_v10 = vpack.c.bf16 %v407_v40, %v406_v31  ;;  %413 = vst [vmem:[#allocation2 + $0xa8] sm:$0xff] %v411_v9  ;;  %v513_v35 = vperm.slane %v511_v44, 1  ;;  %vm14800_vm6 = vcmp.ge.s32.totalorder %v9261_v48, 1  ;;  %vm14801_vm2 = vcmp.lt.s32.totalorder %v9261_v48, 14  ;;  %1183 = vmatpush.bf16.msra.mxu0 %v6070_v51 }
  0xeb   :  { %vm537_vm5 = vmand %vm14454_vm10, %vm14800_vm6  ;;  %v483_v34 = vsel %vm14801_vm2, 1, %v14452_v25  ;;  %vm14802_vm4 = vcmp.lt.s32.totalorder %v9221_v28, 127  ;;  %vm14806_vm12 = vcmp.lt.s32.totalorder %v9261_v48, 15  ;;  %v14809_v51 = vmov 0 }
  0xec   :  { %412 = vst [vmem:[#allocation2 + $0xa0] sm:$0xff] %v410_v10  ;;  %v454_v7 = vsel %vm14802_vm4, %v7780_v8, %v7785_v56  ;;  %vm14803_vm8 = vmmov %vm14802_vm4 }
  0xed   :  { %v456_v54 = vsel %vm14803_vm8, %v7785_v56, %v7780_v8  ;;  %vm14804_vm9 = vmmov %vm14802_vm4  ;;  %v464_v10 = vsel %vm9638_vm1, %v454_v7, 0.0  ;;  %v9723_v8 = vsel %vm14454_vm10, 1, %v14452_v25  ;;  %v485_v7 = vperm.slane %v483_v34, 1 }
  0xee   :  { %v453_v31 = vsel %vm14804_vm9, %v7779_v20, %v7784_v3  ;;  %vm14805_vm7 = vmmov %vm14802_vm4  ;;  %v465_v1 = vsel %vm9642_vm11, %v456_v54, 0.0  ;;  %1184 = vmatpush.bf16.msra.mxu0 %v6062_v42  ;;  %vm14455_vm9 = vcmp.lt.s32.totalorder %v9221_v28, 126  ;;  %vm14818_vm4 = vcmp.lt.s32.totalorder %v9221_v28, 114 }
  0xef   :  { %v455_v40 = vsel %vm14805_vm7, %v7784_v3, %v7779_v20  ;;  %vm590_vm6 = vmand %vm14454_vm10, %vm14806_vm12  ;;  %v462_v9 = vsel %vm9638_vm1, %v453_v31, 0.0  ;;  %v467_v56 = vpack.c.bf16 %v465_v1, %v464_v10  ;;  %v538_v3 = vsel %vm537_vm5, 1, %v14452_v25  ;;  %v7793_v1 = vpop.permute.xlu0 %7792 }
  0xf0   :  { %v463_v44 = vsel %vm9642_vm11, %v455_v40, 0.0  ;;  %v7804_v20 = vunpack.i.l.bf16 %v9625_v4  ;;  %v9727_v31 = vsel %vm590_vm6, 1, %v14452_v25  ;;  %v484_v40 = vperm.slane %v483_v34, 0  ;;  %vm14819_vm8 = vmmov %vm14818_vm4 }
  0xf1   :  { %v466_v41 = vpack.c.bf16 %v463_v44, %v462_v9  ;;  %vm9729_vm7 = vcmp.eq.s32.totalorder %v512_v52, 1  ;;  %vm9733_vm12 = vcmp.eq.s32.totalorder %v513_v35, 1  ;;  %v440_v9 = vpack.c.bf16 %v9132_v21, %v9120_v18  ;;  %469 = vst [vmem:[#allocation2 + $0xd8] sm:$0xff] %v467_v56  ;;  %v7798_v44 = vpop.permute.xlu1 %7797  ;;  %vm14820_vm6 = vmmov %vm14818_vm4 }
  0xf2   :  { %v14810_v51 = vsel %vm9733_vm12, 4294967295, %v14809_v51  ;;  %v441_v4 = vpack.c.bf16 %v9134_v22, %v9122_v19  ;;  %v539_v10 = vperm.slane %v538_v3, 0  ;;  %v540_v34 = vperm.slane %v538_v3, 1  ;;  %vm14821_vm10 = vmmov %vm14818_vm4 }
  0xf3   :  { %468 = vst [vmem:[#allocation2 + $0xd0] sm:$0xff] %v466_v41  ;;  %v565_v52 = vperm.slane %v9723_v8, 0  ;;  %v7800_v35 = vunpack.i.h.bf16 %v7798_v44  ;;  %v7799_v41 = vunpack.i.l.bf16 %v7798_v44  ;;  %v592_v25 = vperm.slane %v9727_v31, 0 }
  0xf4   :  { %14811 = vst [vmem:[#allocation29_spill] sm:$0xff] %v14810_v51  ;;  %v7795_v33 = vunpack.i.h.bf16 %v7793_v1  ;;  %v593_v18 = vperm.slane %v9727_v31, 1  ;;  %v7794_v21 = vunpack.i.l.bf16 %v7793_v1  ;;  %vm9745_vm5 = vcmp.eq.s32.totalorder %v484_v40, 1  ;;  %v9761_v40 = vpop.permute.xlu2 %7832 }
  0xf5   :  { %442 = vst [vmem:[#allocation2 + $0xc0] sm:$0xff] %v440_v9  ;;  %v14812_v19 = vmov 0  ;;  %vm9749_vm2 = vcmp.eq.s32.totalorder %v485_v7, 1  ;;  %v14815_v22 = vmov 0  ;;  %v506_v42 = vsel %vm14818_vm4, %v7800_v35, %v7805_v0 }
  0xf6   :  { %v14813_v19 = vsel %vm9745_vm5, 4294967295, %v14812_v19  ;;  %v14816_v22 = vsel %vm9749_vm2, 4294967295, %v14815_v22  ;;  %443 = vst [vmem:[#allocation2 + $0xc8] sm:$0xff] %v441_v4  ;;  %v508_v56 = vsel %vm14819_vm8, %v7805_v0, %v7800_v35  ;;  %v505_v3 = vsel %vm14820_vm6, %v7799_v41, %v7804_v20 }
  0xf7   :  { %14814 = vst [vmem:[#allocation30_spill] sm:$0xff] %v14813_v19  ;;  %v507_v31 = vsel %vm14821_vm10, %v7804_v20, %v7799_v41  ;;  %v516_v7 = vsel %vm9729_vm7, %v505_v3, 0.0  ;;  %v518_v4 = vsel %vm9729_vm7, %v506_v42, 0.0  ;;  %v519_v0 = vsel %vm9733_vm12, %v508_v56, 0.0 }
  0xf8   :  { %14817 = vst [vmem:[#allocation31_spill] sm:$0xff] %v14816_v22  ;;  %v517_v9 = vsel %vm9733_vm12, %v507_v31, 0.0  ;;  %v14822_v44 = vor.u32 %v9609_v39, %v9607_v38  ;;  %v521_v20 = vpack.c.bf16 %v519_v0, %v518_v4  ;;  %v480_v35 = vsel %vm14455_vm9, %v7790_v53, %v7795_v33  ;;  %v7314_v4 = vld [vmem:[#allocation2 + $0x4] sm:$0xf0] }
  0xf9   :  { %v520_v1 = vpack.c.bf16 %v517_v9, %v516_v7  ;;  %v482_v41 = vsel %vm14455_vm9, %v7795_v33, %v7790_v53  ;;  %v14823_v42 = vunpack.i.l.bf16 %v9546_v29  ;;  %v490_v3 = vsel %vm9745_vm5, %v480_v35, 0.0  ;;  %v9794_v7 = vld [vmem:[#allocation2] sm:$0xf]  ;;  %v7813_v35 = vpop.permute.xlu1 %7812 }
  0xfa   :  { %1185 = vmatpush.bf16.msra.mxu0 %v14822_v44  ;;  %v491_v31 = vsel %vm9749_vm2, %v482_v41, 0.0  ;;  %v566_v53 = vperm.slane %v9723_v8, 1  ;;  %vm14825_vm10 = vcmp.lt.s32.totalorder %v9261_v48, 14  ;;  %vm14826_vm4 = vcmp.lt.s32.totalorder %v9205_v24, 15  ;;  %523 = vst [vmem:[#allocation2 + $0xf8] sm:$0xff] %v521_v20  ;;  %v7808_v41 = vpop.permute.xlu0 %7807 }
  0xfb   :  { %v479_v56 = vsel %vm14455_vm9, %v14823_v42, %v7794_v21  ;;  %v14824_v38 = vmov %v14823_v42  ;;  %522 = vst [vmem:[#allocation2 + $0xf0] sm:$0xff] %v520_v1  ;;  %v493_v9 = vpack.c.bf16 %v491_v31, %v490_v3  ;;  %vm9805_vm8 = vmand %vm14826_vm4, %vm14825_vm10  ;;  %vm9809_vm6 = vcmp.eq.s32.totalorder %v539_v10, 1 }
  0xfc   :  { %v481_v39 = vsel %vm14455_vm9, %v7794_v21, %v14824_v38  ;;  %v488_v33 = vsel %vm9745_vm5, %v479_v56, 0.0  ;;  %v14829_v0 = vmov 0  ;;  %vm9813_vm9 = vcmp.eq.s32.totalorder %v540_v34, 1 }
  0xfd   :  { %v489_v29 = vsel %vm9749_vm2, %v481_v39, 0.0  ;;  %v14830_v0 = vsel %vm9809_vm6, 4294967295, %v14829_v0  ;;  %v14832_v8 = vmov 0  ;;  %v14835_v1 = vor.u32 %v9593_v13, %v9583_v43  ;;  %495 = vst [vmem:[#allocation2 + $0xe8] sm:$0xff] %v493_v9 }
  0xfe   :  { %14831 = vst [vmem:[#allocation32_spill] sm:$0xff] %v14830_v0  ;;  %v14833_v8 = vsel %vm9813_vm9, 4294967295, %v14832_v8  ;;  %v492_v44 = vpack.c.bf16 %v489_v29, %v488_v33  ;;  %v7815_v42 = vunpack.i.h.bf16 %v7813_v35  ;;  %v7814_v20 = vunpack.i.l.bf16 %v7813_v35  ;;  %v9851_v29 = vld [vmem:[#allocation2 + $0x90] sm:$0xf]  ;;  %v9866_v35 = vld [vmem:[#allocation2 + $0xb4] sm:$0xf0] }
  0xff   :  { %14834 = vst [vmem:[#allocation33_spill] sm:$0xff] %v14833_v8  ;;  %1186 = vmatpush.bf16.msra.mxu0 %v14835_v1  ;;  %v7810_v10 = vunpack.i.h.bf16 %v7808_v41  ;;  %v7809_v56 = vunpack.i.l.bf16 %v7808_v41  ;;  %vm9821_vm4 = vcmp.eq.s32.totalorder %v592_v25, 1  ;;  %v14836_v38 = vmov 0 }
 0x100   :  { %v14837_v38 = vsel %vm9821_vm4, 4294967295, %v14836_v38  ;;  %vm9825_vm11 = vcmp.eq.s32.totalorder %v593_v18, 1  ;;  %v14839_v34 = vmov 0  ;;  %494 = vst [vmem:[#allocation2 + $0xe0] sm:$0xff] %v492_v44  ;;  %v6030_v43 = vor.u32 %v7314_v4, %v9794_v7 }
 0x101   :  { %14838 = vst [vmem:[#allocation34_spill] sm:$0xff] %v14837_v38  ;;  %v14840_v34 = vsel %vm9825_vm11, 4294967295, %v14839_v34  ;;  %v14842_v13 = vmov 0   ;;  %vm9833_vm10 = vcmp.eq.s32.totalorder %v565_v52, 1  ;;  %v14843_v3 = vmov 0 }
 0x102   :  { %14841 = vst [vmem:[#allocation35_spill] sm:$0xff] %v14840_v34  ;;  %v618_v39 = vsel %vm9805_vm8, 1, %v14842_v13  ;;  %v14844_v3 = vsel %vm9833_vm10, 4294967295, %v14843_v3  ;;  %vm9837_vm1 = vcmp.eq.s32.totalorder %v566_v53, 1  ;;  %v14846_v25 = vmov 0 }
 0x103   :  { %14845 = vst [vmem:[#allocation36_spill] sm:$0xff] %v14844_v3  ;;  %v14847_v25 = vsel %vm9837_vm1, 4294967295, %v14846_v25  ;;  %vm14849_vm2 = vcmp.lt.s32.totalorder %v9221_v28, 113  ;;  %v9849_v52 = vld [vmem:[#allocation2 + $0xb0] sm:$0xf]  ;;  %v14853_v1 = vor.u32 %v9597_v15, %v9595_v14 }
 0x104   :  { %14848 = vst [vmem:[#allocation37_spill] sm:$0xff] %v14847_v25  ;;  %v534_v18 = vsel %vm14849_vm2, %v7810_v10, %v7815_v42  ;;  %vm14850_vm5 = vmmov %vm14849_vm2  ;;  %v9853_v53 = vld [vmem:[#allocation2 + $0x94] sm:$0xf0]  ;;  %v6149_v14 = vld [vmem:[#allocation2 + $0xf0] sm:$0xf] }
 0x105   :  { %v536_v31 = vsel %vm14850_vm5, %v7815_v42, %v7810_v10  ;;  %vm14851_vm3 = vmmov %vm14849_vm2  ;;  %v545_v21 = vsel %vm9809_vm6, %v534_v18, 0.0  ;;  %1187 = vmatpush.bf16.msra.mxu0 %v14853_v1  ;;  %v619_v10 = vperm.slane %v618_v39, 0  ;;  %v7820_v18 = vunpack.i.h.bf16 %v9689_v26  ;;  %v7343_v15 = vld [vmem:[#allocation2 + $0xf4] sm:$0xf]  ;;  %v7828_v1 = vpop.permute.xlu1 %7827  ;;  %v7342_v0 = vld [vmem:[#allocation2 + $0xe4] sm:$0xf0] }
 0x106   :  { %v533_v7 = vsel %vm14851_vm3, %v7809_v56, %v7814_v20  ;;  %vm14852_vm0 = vmmov %vm14849_vm2  ;;  %v546_v44 = vsel %vm9813_vm9, %v536_v31, 0.0  ;;  %v7819_v31 = vunpack.i.l.bf16 %v9689_v26  ;;  %vm14487_vm3 = vcmp.lt.s32.totalorder %v9221_v28, 111  ;;  %v6143_v17 = vld [vmem:[#allocation2 + $0xe8] sm:$0xf0]  ;;  %v6119_v3 = vld [vmem:[#allocation2 + $0xb8] sm:$0xf0] }
 0x107   :  { %v535_v33 = vsel %vm14852_vm0, %v7814_v20, %v7809_v56  ;;  %v543_v9 = vsel %vm9809_vm6, %v533_v7, 0.0  ;;  %v548_v42 = vpack.c.bf16 %v546_v44, %v545_v21  ;;  %v9868_v20 = vpop.permute.xlu2 %7847  ;;  %v620_v56 = vperm.slane %v618_v39, 1  ;;  %v9870_v7 = vld [vmem:[#allocation2 + $0xd0] sm:$0xf]  ;;  %v7344_v39 = vld [vmem:[#allocation2 + $0xf4] sm:$0xf0] }
 0x108   :  { %v544_v4 = vsel %vm9813_vm9, %v535_v33, 0.0  ;;  %v9872_v33 = vld [vmem:[#allocation2 + $0xd4] sm:$0xf0]  ;;  %vm14486_vm0 = vcmp.lt.s32.totalorder %v9205_v24, 14  ;;  %v6151_v21 = vld [vmem:[#allocation2 + $0xf8] sm:$0xf0]  ;;  %v7830_v22 = vunpack.i.h.bf16 %v7828_v1  ;;  %v7829_v19 = vunpack.i.l.bf16 %v7828_v1 }
 0x109   :  { %v547_v41 = vpack.c.bf16 %v544_v4, %v543_v9  ;;  %v7835_v9 = vunpack.i.h.bf16 %v9761_v40  ;;  %v7834_v4 = vunpack.i.l.bf16 %v9761_v40  ;;  %vm14854_vm2 = vcmp.ge.s32.totalorder %v9261_v48, 1  ;;  %550 = vst [vmem:[#allocation2 + $0x108] sm:$0xff] %v548_v42  ;;  %1188 = vmatpush.bf16.msra.mxu0 %v6030_v43  ;;  %v6141_v62 = vld [vmem:[#allocation2 + $0xe0] sm:$0xf]  ;;  %v7341_v32 = vld [vmem:[#allocation2 + $0xe4] sm:$0xf] }
 0x10a   :  { %vm9885_vm8 = vmand %vm14486_vm0, %vm14854_vm2  ;;  %v6150_v40 = vor.u32 %v7344_v39, %v6149_v14  ;;  %v6154_v8 = vor.u32 %v7343_v15, %v6151_v21  ;;  %vm9894_vm2 = vcmp.eq.s32.totalorder %v619_v10, 1  ;;  %v14857_v44 = vmov 0 }
 0x10b   :  { %549 = vst [vmem:[#allocation2 + $0x100] sm:$0xff] %v547_v41  ;;  %v7823_v41 = vpop.permute.xlu0 %7822  ;;  %v14858_v44 = vsel %vm9894_vm2, 4294967295, %v14857_v44  ;;  %vm9898_vm0 = vcmp.eq.s32.totalorder %v620_v56, 1  ;;  %v14860_v43 = vmov 0  ;;  %v6134_v42 = vor.u32 %v9872_v33, %v9870_v7  ;;  %v6125_v33 = vld [vmem:[#allocation2 + $0xc0] sm:$0xf] }
 0x10c   :  { %v7825_v61 = vunpack.i.h.bf16 %v7823_v41  ;;  %14859 = vst [vmem:[#allocation38_spill] sm:$0xff] %v14858_v44  ;;  %v14861_v43 = vsel %vm9898_vm0, 4294967295, %v14860_v43  ;;  %v7824_v14 = vunpack.i.l.bf16 %v7823_v41  ;;  %1205 = vmatpush.bf16.msra.mxu1 %v6150_v40  ;;  %v6142_v15 = vor.u32 %v7342_v0, %v6141_v62  ;;  %v6135_v62 = vld [vmem:[#allocation2 + $0xd8] sm:$0xf0]  ;;  %v7338_v40 = vld [vmem:[#allocation2 + $0xc4] sm:$0xf0] }
 0x10d   :  { %14862 = vst [vmem:[#allocation39_spill] sm:$0xff] %v14861_v43  ;;  %1301 = vmatpush.bf16.msrb.mxu0 %v6154_v8  ;;  %v6146_v39 = vor.u32 %v7341_v32, %v6143_v17  ;;  %v9907_v21 = vsel %vm9885_vm8, 1, %v14842_v13  ;;  %v587_v10 = vsel %vm14487_vm3, %v7830_v22, %v7835_v9  ;;  %v589_v56 = vsel %vm14487_vm3, %v7835_v9, %v7830_v22  ;;  %v7339_v8 = vld [vmem:[#allocation2 + $0xd4] sm:$0xf] }
 0x10e   :  { %v586_v1 = vsel %vm14487_vm3, %v7829_v19, %v7834_v4  ;;  %v588_v7 = vsel %vm14487_vm3, %v7834_v4, %v7829_v19  ;;  %v598_v0 = vsel %vm9821_vm4, %v587_v10, 0.0  ;;  %v599_v22 = vsel %vm9825_vm11, %v589_v56, 0.0  ;;  %v7337_v10 = vld [vmem:[#allocation2 + $0xc4] sm:$0xf]  ;;  %v6127_v56 = vld [vmem:[#allocation2 + $0xc8] sm:$0xf0] }
 0x10f   :  { %v596_v32 = vsel %vm9821_vm4, %v586_v1, 0.0  ;;  %v597_v17 = vsel %vm9825_vm11, %v588_v7, 0.0  ;;  %vm14863_vm8 = vcmp.ge.s32.totalorder %v9261_v48, 2  ;;  %vm14864_vm5 = vcmp.lt.s32.totalorder %v9205_v24, 14  ;;  %v7335_v19 = vld [vmem:[#allocation2 + $0xb4] sm:$0xf] }
 0x110   :  { %vm9929_vm3 = vmand %vm14864_vm5, %vm14863_vm8  ;;  %v600_v9 = vpack.c.bf16 %v597_v17, %v596_v32  ;;  %v601_v4 = vpack.c.bf16 %v599_v22, %v598_v0  ;;  %vm14867_vm9 = vcmp.lt.s32.totalorder %v9221_v28, 112  ;;  %1206 = vmatpush.bf16.msra.mxu1 %v6142_v15  ;;  %v9949_v0 = vpop.permute.xlu2 %7862  ;;  %v7843_v22 = vpop.permute.xlu1 %7842  ;;  %v6138_v15 = vor.u32 %v7339_v8, %v6135_v62 }
 0x111   :  { %v561_v26 = vsel %vm14867_vm9, %v7820_v18, %v7825_v61  ;;  %vm14868_vm6 = vmmov %vm14867_vm9  ;;  %1302 = vmatpush.bf16.msrb.mxu0 %v6146_v39  ;;  %v6126_v39 = vor.u32 %v7338_v40, %v6125_v33  ;;  %v674_v8 = vperm.slane %v9907_v21, 0  ;;  %v675_v62 = vperm.slane %v9907_v21, 1 }
 0x112   :  { %v563_v41 = vsel %vm14868_vm6, %v7825_v61, %v7820_v18  ;;  %vm14869_vm11 = vmmov %vm14868_vm6  ;;  %v571_v16 = vsel %vm9833_vm10, %v561_v26, 0.0  ;;  %602 = vst [vmem:[#allocation2 + $0x120] sm:$0xff] %v600_v9  ;;  %v6130_v9 = vor.u32 %v7337_v10, %v6127_v56  ;;  %vm14871_vm9 = vcmp.lt.s32.totalorder %v9221_v28, 110 }
 0x113   :  { %v560_v1 = vsel %vm14869_vm11, %v7819_v31, %v7824_v14  ;;  %vm14870_vm4 = vmmov %vm14868_vm6  ;;  %v572_v32 = vsel %vm9837_vm1, %v563_v41, 0.0  ;;  %603 = vst [vmem:[#allocation2 + $0x128] sm:$0xff] %v601_v4  ;;  %v7838_v26 = vpop.permute.xlu0 %7837  ;;  %v9955_v41 = vld [vmem:[#allocation2 + $0x94] sm:$0xf] }
 0x114   :  { %v562_v7 = vsel %vm14870_vm4, %v7824_v14, %v7819_v31  ;;  %v569_v61 = vsel %vm9833_vm10, %v560_v1, 0.0  ;;  %v574_v17 = vpack.c.bf16 %v572_v32, %v571_v16  ;;  %v646_v31 = vsel %vm9929_vm3, 1, %v14842_v13  ;;  %v9957_v1 = vld [vmem:[#allocation2 + $0x98] sm:$0xf0]  ;;  %1207 = vmatpush.bf16.msra.mxu1 %v6134_v42  ;;  %vm14872_vm6 = vmmov %vm14871_vm9  ;;  %v6109_v42 = vld [vmem:[#allocation2 + $0xa0] sm:$0xf] }
 0x115   :  { %v570_v18 = vsel %vm9837_vm1, %v562_v7, 0.0  ;;  %v7845_v16 = vunpack.i.h.bf16 %v7843_v22  ;;  %v7844_v7 = vunpack.i.l.bf16 %v7843_v22  ;;  %v7840_v32 = vunpack.i.h.bf16 %v7838_v26  ;;  %1303 = vmatpush.bf16.msrb.mxu0 %v6138_v15  ;;  %vm14873_vm4 = vmmov %vm14872_vm6 }
 0x116   :  { %v573_v14 = vpack.c.bf16 %v570_v18, %v569_v61  ;;  %576 = vst [vmem:[#allocation2 + $0x118] sm:$0xff] %v574_v17  ;;  %v7839_v25 = vunpack.i.l.bf16 %v7838_v26  ;;  %v647_v33 = vperm.slane %v646_v31, 0  ;;  %v648_v4 = vperm.slane %v646_v31, 1  ;;  %vm14874_vm3 = vmmov %vm14873_vm4  ;;  %v7334_v18 = vld [vmem:[#allocation2 + $0xa4] sm:$0xf0] }
 0x117   :  { %v614_v40 = vsel %vm14871_vm9, %v7840_v32, %v7845_v16  ;;  %v616_v10 = vsel %vm14872_vm6, %v7845_v16, %v7840_v32  ;;  %v7333_v17 = vld [vmem:[#allocation2 + $0xa4] sm:$0xf]  ;;  %v6111_v26 = vld [vmem:[#allocation2 + $0xa8] sm:$0xf0]  ;;  %v7850_v15 = vunpack.i.h.bf16 %v9868_v20  ;;  %v7849_v32 = vunpack.i.l.bf16 %v9868_v20  ;;  %vm14875_vm8 = vmmov %vm14864_vm5 }
 0x118   :  { %575 = vst [vmem:[#allocation2 + $0x110] sm:$0xff] %v573_v14  ;;  %v613_v56 = vsel %vm14873_vm4, %v7839_v25, %v7844_v7  ;;  %v615_v61 = vsel %vm14874_vm3, %v7844_v7, %v7839_v25  ;;  %v625_v14 = vsel %vm9894_vm2, %v614_v40, 0.0  ;;  %v626_v22 = vsel %vm9898_vm0, %v616_v10, 0.0  ;;  %1208 = vmatpush.bf16.msra.mxu1 %v6126_v39  ;;  %vm14877_vm6 = vmmov %vm14864_vm5  ;;  %v7858_v39 = vpop.permute.xlu1 %7857 }
 0x119   :  { %v623_v21 = vsel %vm9894_vm2, %v613_v56, 0.0  ;;  %v624_v31 = vsel %vm9898_vm0, %v615_v61, 0.0  ;;  %v628_v25 = vpack.c.bf16 %v626_v22, %v625_v14  ;;  %v6106_v7 = vor.u32 %v9955_v41, %v9957_v1  ;;  %1304 = vmatpush.bf16.msrb.mxu0 %v6130_v9  ;;  %v10015_v14 = vpop.permute.xlu2 %7877 }
 0x11a   :  { %v627_v16 = vpack.c.bf16 %v624_v31, %v623_v21  ;;  %v7865_v56 = vunpack.i.h.bf16 %v9949_v0  ;;  %v6122_v40 = vor.u32 %v7335_v19, %v6119_v3  ;;  %v7864_v10 = vunpack.i.l.bf16 %v9949_v0 }
 0x11b   :  { %v6110_v61 = vor.u32 %v7334_v18, %v6109_v42  ;;  %v6114_v43 = vor.u32 %v7333_v17, %v6111_v26  ;;  %v699_v21 = vsel %vm14875_vm8, 1, %v14842_v13  ;;  %vm14876_vm9 = vcmp.lt.s32.totalorder %v9261_v48, 14  ;;  %630 = vst [vmem:[#allocation2 + $0x138] sm:$0xff] %v628_v25  ;;  %v7853_v9 = vpop.permute.xlu0 %7852 }
 0x11c   :  { %629 = vst [vmem:[#allocation2 + $0x130] sm:$0xff] %v627_v16  ;;  %vm9991_vm4 = vmand %vm14877_vm6, %vm14876_vm9  ;;  %vm9995_vm3 = vcmp.eq.s32.totalorder %v674_v8, 1  ;;  %v14880_v3 = vmov 0  ;;  %vm9999_vm5 = vcmp.eq.s32.totalorder %v675_v62, 1  ;;  %v14883_v0 = vmov 0 }
 0x11d   :  { %v14881_v3 = vsel %vm9995_vm3, 4294967295, %v14880_v3  ;;  %v14884_v0 = vsel %vm9999_vm5, 4294967295, %v14883_v0  ;;  %vm10003_vm8 = vcmp.eq.s32.totalorder %v647_v33, 1  ;;  %v14886_v19 = vmov 0  ;;  %1305 = vmatpush.bf16.msrb.mxu0 %v6122_v40 }
 0x11e   :  { %14882 = vst [vmem:[#allocation40_spill] sm:$0xff] %v14881_v3  ;;  %v14887_v19 = vsel %vm10003_vm8, 4294967295, %v14886_v19  ;;  %vm10007_vm11 = vcmp.eq.s32.totalorder %v648_v4, 1  ;;  %v14889_v42 = vmov 0  ;;  %v7860_v18 = vunpack.i.h.bf16 %v7858_v39 }
 0x11f   :  { %14885 = vst [vmem:[#allocation41_spill] sm:$0xff] %v14884_v0  ;;  %v14890_v42 = vsel %vm10007_vm11, 4294967295, %v14889_v42  ;;  %v7859_v17 = vunpack.i.l.bf16 %v7858_v39  ;;  %v7855_v31 = vunpack.i.h.bf16 %v7853_v9  ;;  %v7854_v8 = vunpack.i.l.bf16 %v7853_v9 }
 0x120   :  { %14888 = vst [vmem:[#allocation42_spill] sm:$0xff] %v14887_v19  ;;  %v14892_v62 = vor.u32 %v9866_v35, %v9849_v52  ;;  %v700_v33 = vperm.slane %v699_v21, 0  ;;  %v701_v22 = vperm.slane %v699_v21, 1  ;;  %v10020_v4 = vsel %vm9991_vm4, 1, %v14842_v13 }
 0x121   :  { %14891 = vst [vmem:[#allocation43_spill] sm:$0xff] %v14890_v42  ;;  %vm14893_vm6 = vcmp.lt.s32.totalorder %v9221_v28, 97  ;;  %vm14897_vm4 = vcmp.lt.s32.totalorder %v9221_v28, 98  ;;  %1306 = vmatpush.bf16.msrb.mxu0 %v6114_v43 }
 0x122   :  { %1209 = vmatpush.bf16.msra.mxu1 %v14892_v62  ;;  %v669_v26 = vsel %vm14893_vm6, %v7860_v18, %v7865_v56  ;;  %vm14894_vm9 = vmmov %vm14893_vm6  ;;  %v641_v9 = vsel %vm14897_vm4, %v7850_v15, %v7855_v31  ;;  %v7303_v62 = vld [vmem:[%s14390_s5 + $0xc] sm:$0xf0] }
 0x123   :  { %v671_v16 = vsel %vm14894_vm9, %v7865_v56, %v7860_v18  ;;  %vm14895_vm0 = vmmov %vm14893_vm6  ;;  %v680_v21 = vsel %vm9995_vm3, %v669_v26, 0.0  ;;  %v6093_v18 = vld [vmem:[#allocation2 + $0x80] sm:$0xf]  ;;  %vm10060_vm6 = vcmp.eq.s32.totalorder %v700_v33, 1  ;;  %v754_v33 = vperm.slane %v10020_v4, 0 }
 0x124   :  { %v668_v52 = vsel %vm14895_vm0, %v7859_v17, %v7864_v10  ;;  %vm14896_vm2 = vmmov %vm14895_vm0  ;;  %v681_v20 = vsel %vm9999_vm5, %v671_v16, 0.0 }
 0x125   :  { %v670_v35 = vsel %vm14896_vm2, %v7864_v10, %v7859_v17  ;;  %v678_v25 = vsel %vm9995_vm3, %v668_v52, 0.0  ;;  %v683_v56 = vpack.c.bf16 %v681_v20, %v680_v21  ;;  %vm14898_vm0 = vmmov %vm14897_vm4  ;;  %v5981_v17 = vld [vmem:[%s14390_s5] sm:$0xf]  ;;  %v653_v52 = vsel %vm10003_vm8, %v641_v9, 0.0  ;;  %v7873_v20 = vpop.permute.xlu1 %7872  ;;  %1307 = vmatpush.bf16.msrb.mxu0 %v6106_v7 }
 0x126   :  { %v679_v40 = vsel %vm9999_vm5, %v670_v35, 0.0  ;;  %v643_v10 = vsel %vm14898_vm0, %v7855_v31, %v7850_v15  ;;  %vm14899_vm2 = vmmov %vm14898_vm0  ;;  %1210 = vmatpush.bf16.msra.mxu1 %v6110_v61  ;;  %v7330_v31 = vld [vmem:[#allocation2 + $0x84] sm:$0xf0]  ;;  %v7329_v35 = vld [vmem:[#allocation2 + $0x84] sm:$0xf]  ;;  %vm14904_vm4 = vcmp.lt.s32.totalorder %v9261_v48, 15  ;;  %v7875_v48 = vunpack.i.h.bf16 %v7873_v20 }
 0x127   :  { %v682_v39 = vpack.c.bf16 %v679_v40, %v678_v25  ;;  %v640_v26 = vsel %vm14899_vm2, %v7849_v32, %v7854_v8  ;;  %vm14900_vm9 = vmmov %vm14898_vm0  ;;  %v654_v15 = vsel %vm10007_vm11, %v643_v10, 0.0  ;;  %vm14905_vm0 = vcmp.lt.s32.totalorder %v9205_v24, 14  ;;  %685 = vst [vmem:[#allocation2 + $0x158] sm:$0xff] %v683_v56 }
 0x128   :  { %v642_v16 = vsel %vm14900_vm9, %v7854_v8, %v7849_v32  ;;  %v651_v25 = vsel %vm10003_vm8, %v640_v26, 0.0  ;;  %v656_v21 = vpack.c.bf16 %v654_v15, %v653_v52  ;;  %v14901_v32 = vmov 0  ;;  %v6095_v8 = vld [vmem:[#allocation2 + $0x88] sm:$0xf0]  ;;  %vm10068_vm2 = vmand %vm14905_vm0, %vm14904_vm4 }
 0x129   :  { %684 = vst [vmem:[#allocation2 + $0x150] sm:$0xff] %v682_v39  ;;  %v652_v40 = vsel %vm10007_vm11, %v642_v16, 0.0  ;;  %v14902_v32 = vsel %vm10060_vm6, 4294967295, %v14901_v32  ;;  %v7868_v39 = vpop.permute.xlu0 %7867  ;;  %vm10072_vm9 = vcmp.eq.s32.totalorder %v701_v22, 1  ;;  %v14908_v9 = vmov 0 }
 0x12a   :  { %14903 = vst [vmem:[#allocation44_spill] sm:$0xff] %v14902_v32  ;;  %v655_v61 = vpack.c.bf16 %v652_v40, %v651_v25  ;;  %v14909_v9 = vsel %vm10072_vm9, 4294967295, %v14908_v9  ;;  %v10077_v10 = vor.u32 %v7303_v62, %v5981_v17  ;;  %v7874_v26 = vunpack.i.l.bf16 %v7873_v20  ;;  %v7301_v62 = vld [vmem:[%s14390_s5 + $0x4] sm:$0xf]  ;;  %v5983_v15 = vld [vmem:[%s14390_s5 + $0x10] sm:$0xf0] }
 0x12b   :  { %14910 = vst [vmem:[#allocation45_spill] sm:$0xff] %v14909_v9  ;;  %v7870_v24 = vunpack.i.h.bf16 %v7868_v39  ;;  %v7869_v16 = vunpack.i.l.bf16 %v7868_v39  ;;  %v14911_v56 = vor.u32 %v9853_v53, %v9851_v29  ;;  %v6094_v22 = vor.u32 %v7330_v31, %v6093_v18 }
 0x12c   :  { %658 = vst [vmem:[#allocation2 + $0x148] sm:$0xff] %v656_v21  ;;  %v6098_v52 = vor.u32 %v7329_v35, %v6095_v8  ;;  %v726_v17 = vsel %vm10068_vm2, 1, %v14842_v13  ;;  %vm14912_vm4 = vcmp.lt.s32.totalorder %v9221_v28, 96  ;;  %1189 = vmatmul.bf16.vlgmr.msra.gmra.mxu0 %v10077_v10  ;;  %v7893_v35 = vpop.permute.xlu2 %7892  ;;  %v755_v21 = vperm.slane %v10020_v4, 1 }
 0x12d   :  { %657 = vst [vmem:[#allocation2 + $0x140] sm:$0xff] %v655_v61  ;;  %1211 = vmatpush.bf16.msra.mxu1 %v14911_v56  ;;  %v696_v29 = vsel %vm14912_vm4, %v7870_v24, %v7875_v48  ;;  %vm14913_vm0 = vmmov %vm14912_vm4  ;;  %v10112_v8 = vor.u32 %v7301_v62, %v5983_v15  ;;  %v727_v43 = vperm.slane %v726_v17, 0  ;;  %v728_v61 = vperm.slane %v726_v17, 1 }
 0x12e   :  { %v698_v53 = vsel %vm14913_vm0, %v7875_v48, %v7870_v24  ;;  %vm14914_vm1 = vmmov %vm14913_vm0  ;;  %v706_v18 = vsel %vm10060_vm6, %v696_v29, 0.0  ;;  %1308 = vmatpush.bf16.msrb.mxu0 %v6098_v52  ;;  %v7895_v20 = vunpack.i.h.bf16 %v7893_v35  ;;  %v7894_v39 = vunpack.i.l.bf16 %v7893_v35  ;;  %v7888_v24 = vpop.permute.xlu1 %7887 }
 0x12f   :  { %v695_v41 = vsel %vm14914_vm1, %v7869_v16, %v7874_v26  ;;  %vm14915_vm10 = vmmov %vm14913_vm0  ;;  %v707_v31 = vsel %vm10072_vm9, %v698_v53, 0.0  ;;  %v7880_v48 = vunpack.i.h.bf16 %v10015_v14  ;;  %v7890_v56 = vunpack.i.h.bf16 %v7888_v24 }
 0x130   :  { %v697_v13 = vsel %vm14915_vm10, %v7874_v26, %v7869_v16  ;;  %v704_v1 = vsel %vm10060_vm6, %v695_v41, 0.0  ;;  %v709_v40 = vpack.c.bf16 %v707_v31, %v706_v18  ;;  %v7879_v26 = vunpack.i.l.bf16 %v10015_v14 }
 0x131   :  { %v705_v7 = vsel %vm10072_vm9, %v697_v13, 0.0  ;;  %1212 = vmatpush.bf16.msra.mxu1 %v6094_v22  ;;  %vm10117_vm10 = vcmp.eq.s32.totalorder %v754_v33, 1  ;;  %v14916_v16 = vmov 0  ;;  %v7883_v4 = vpop.permute.xlu0 %7882  ;;  %v7889_v22 = vunpack.i.l.bf16 %v7888_v24 }
 0x132   :  { %v708_v25 = vpack.c.bf16 %v705_v7, %v704_v1  ;;  %711 = vst [vmem:[#allocation2 + $0x168] sm:$0xff] %v709_v40  ;;  %v14917_v16 = vsel %vm10117_vm10, 4294967295, %v14916_v16  ;;  %vm10121_vm2 = vcmp.eq.s32.totalorder %v755_v21, 1  ;;  %v14919_v52 = vmov 0  ;;  %v5997_v21 = vld [vmem:[%s14390_s5 + $0x20] sm:$0xf] }
 0x133   :  { %14918 = vst [vmem:[#allocation46_spill] sm:$0xff] %v14917_v16  ;;  %v14920_v52 = vsel %vm10121_vm2, 4294967295, %v14919_v52  ;;  %v7885_v17 = vunpack.i.h.bf16 %v7883_v4  ;;  %v7884_v14 = vunpack.i.l.bf16 %v7883_v4  ;;  %vm10127_vm0 = vcmp.eq.s32.totalorder %v727_v43, 1  ;;  %v7307_v43 = vld [vmem:[%s14390_s5 + $0x2c] sm:$0xf0] }
 0x134   :  { %710 = vst [vmem:[#allocation2 + $0x160] sm:$0xff] %v708_v25  ;;  %1213 = vmatmul.bf16.vlgmr.msra.gmra.mxu1 %v10112_v8  ;;  %v14922_v62 = vmov 0  ;;  %vm10131_vm1 = vcmp.eq.s32.totalorder %v728_v61, 1  ;;  %v14925_v33 = vmov 0  ;;  %vm14928_vm9 = vcmp.lt.s32.totalorder %v9221_v28, 94 }
 0x135   :  { %14921 = vst [vmem:[#allocation47_spill] sm:$0xff] %v14920_v52  ;;  %v14923_v62 = vsel %vm10127_vm0, 4294967295, %v14922_v62  ;;  %v14926_v33 = vsel %vm10131_vm1, 4294967295, %v14925_v33  ;;  %v749_v15 = vsel %vm14928_vm9, %v7890_v56, %v7895_v20  ;;  %vm14929_vm6 = vmmov %vm14928_vm9  ;;  %v6157_v16 = vld [vmem:[#allocation2 + $0x100] sm:$0xf] }
 0x136   :  { %14924 = vst [vmem:[#allocation48_spill] sm:$0xff] %v14923_v62  ;;  %v751_v29 = vsel %vm14929_vm6, %v7895_v20, %v7890_v56  ;;  %vm14930_vm11 = vmmov %vm14929_vm6  ;;  %v760_v7 = vsel %vm10117_vm10, %v749_v15, 0.0  ;;  %v7327_v15 = vld [vmem:[#allocation2 + $0x74] sm:$0xf] }
 0x137   :  { %14927 = vst [vmem:[#allocation49_spill] sm:$0xff] %v14926_v33  ;;  %v748_v53 = vsel %vm14930_vm11, %v7889_v22, %v7894_v39  ;;  %vm14931_vm4 = vmmov %vm14929_vm6  ;;  %v761_v18 = vsel %vm10121_vm2, %v751_v29, 0.0  ;;  %vm14932_vm6 = vcmp.lt.s32.totalorder %v9221_v28, 95  ;;  %v6087_v29 = vld [vmem:[#allocation2 + $0x78] sm:$0xf0] }
 0x138   :  { %v750_v41 = vsel %vm14931_vm4, %v7894_v39, %v7889_v22  ;;  %v758_v13 = vsel %vm10117_vm10, %v748_v53, 0.0  ;;  %v763_v35 = vpack.c.bf16 %v761_v18, %v760_v7  ;;  %v722_v25 = vsel %vm14932_vm6, %v7880_v48, %v7885_v17  ;;  %vm14933_vm11 = vmmov %vm14932_vm6 }
 0x139   :  { %v759_v1 = vsel %vm10121_vm2, %v750_v41, 0.0  ;;  %v724_v40 = vsel %vm14933_vm11, %v7885_v17, %v7880_v48  ;;  %vm14934_vm9 = vmmov %vm14932_vm6  ;;  %v733_v39 = vsel %vm10127_vm0, %v722_v25, 0.0  ;;  %v10173_v17 = vor.u32 %v7307_v43, %v5997_v21 }
 0x13a   :  { %v762_v31 = vpack.c.bf16 %v759_v1, %v758_v13  ;;  %v721_v61 = vsel %vm14934_vm9, %v7879_v26, %v7884_v14  ;;  %vm14935_vm4 = vmmov %vm14932_vm6  ;;  %v734_v48 = vsel %vm10131_vm1, %v724_v40, 0.0  ;;  %765 = vst [vmem:[#allocation2 + $0x188] sm:$0xff] %v763_v35  ;;  %v7302_v13 = vld [vmem:[%s14390_s5 + $0xc] sm:$0xf]  ;;  %v5991_v1 = vld [vmem:[%s14390_s5 + $0x18] sm:$0xf0]  ;;  %v6090_v21 = vor.u32 %v7327_v15, %v6087_v29 }
 0x13b   :  { %v723_v20 = vsel %vm14935_vm4, %v7884_v14, %v7879_v26  ;;  %v731_v24 = vsel %vm10127_vm0, %v721_v61, 0.0  ;;  %v736_v56 = vpack.c.bf16 %v734_v48, %v733_v39  ;;  %v7305_v26 = vld [vmem:[%s14390_s5 + $0x24] sm:$0xf]  ;;  %v5999_v14 = vld [vmem:[%s14390_s5 + $0x30] sm:$0xf0]  ;;  %v10190_v43 = vor.u32 %v7302_v13, %v5991_v1  ;;  %v829_v29 = vld [vmem:[%s14391_s6 + $0x8] sm:$0xff] }
 0x13c   :  { %764 = vst [vmem:[#allocation2 + $0x180] sm:$0xff] %v762_v31  ;;  %v732_v4 = vsel %vm10131_vm1, %v723_v20, 0.0  ;;  %1194 = vmatmul.bf16.gmra.mxu0 %v10173_v17  ;;  %v10182_v53 = vor.u32 %v7305_v26, %v5999_v14  ;;  %v7325_v61 = vld [vmem:[#allocation2 + $0x64] sm:$0xf]  ;;  %vm1171_vm6 = vcmask 130048   ;;  %841 = vperm.xlu1 %7897, %v829_v29   ;;  %vm14975_vm11 = vcmp.lt.s32.totalorder %v9221_v28, 114 }
 0x13d   :  { %v735_v22 = vpack.c.bf16 %v732_v4, %v731_v24  ;;  %738 = vst [vmem:[#allocation2 + $0x178] sm:$0xff] %v736_v56  ;;  %v6205_v48 = vld [vmem:[#allocation2 + $0x160] sm:$0xf]  ;;  %v6079_v24 = vld [vmem:[#allocation2 + $0x68] sm:$0xf0]  ;;  %vm14976_vm9 = vmmov %vm14975_vm11 }
 0x13e   :  { %v7358_v4 = vld [vmem:[#allocation2 + $0x164] sm:$0xf0]  ;;  %v7357_v56 = vld [vmem:[#allocation2 + $0x164] sm:$0xf]  ;;  %v6013_v26 = vld [vmem:[%s14390_s5 + $0x40] sm:$0xf]  ;;  %v6082_v15 = vor.u32 %v7325_v61, %v6079_v24 }
 0x13f   :  { %737 = vst [vmem:[#allocation2 + $0x170] sm:$0xff] %v735_v22  ;;  %v6207_v22 = vld [vmem:[#allocation2 + $0x168] sm:$0xf0]  ;;  %v7311_v14 = vld [vmem:[%s14390_s5 + $0x4c] sm:$0xf0]  ;;  %v6206_v13 = vor.u32 %v7358_v4, %v6205_v48  ;;  %vm14977_vm4 = vmmov %vm14976_vm9 }
 0x140   :  { %v6210_v1 = vor.u32 %v7357_v56, %v6207_v22  ;;  %v7354_v48 = vld [vmem:[#allocation2 + $0x144] sm:$0xf0]  ;;  %v7309_v4 = vld [vmem:[%s14390_s5 + $0x44] sm:$0xf]  ;;  %v6015_v56 = vld [vmem:[%s14390_s5 + $0x50] sm:$0xf0] }
 0x141   :  { %v7362_v7 = vld [vmem:[#allocation2 + $0x184] sm:$0xf0]  ;;  %v6189_v22 = vld [vmem:[#allocation2 + $0x140] sm:$0xf]  ;;  %v7319_v29 = vld [vmem:[#allocation2 + $0x34] sm:$0xf] }
 0x143   :  { %v6221_v41 = vld [vmem:[#allocation2 + $0x180] sm:$0xf]  ;;  %v7361_v9 = vld [vmem:[#allocation2 + $0x184] sm:$0xf] }
 0x144   :  { %v7360_v18 = vld [vmem:[#allocation2 + $0x174] sm:$0xf0]  ;;  %v6222_v31 = vor.u32 %v7362_v7, %v6221_v41  ;;  %v6215_v35 = vld [vmem:[#allocation2 + $0x178] sm:$0xf0]  ;;  %1218 = vmatmul.bf16.gmra.mxu1 %v10182_v53  ;;  %v6197_v7 = vld [vmem:[#allocation2 + $0x150] sm:$0xf] }
 0x145   :  { %v828_v41 = vld [vmem:[%s14391_s6] sm:$0xff] }
 0x146   :  { %v6213_v25 = vld [vmem:[#allocation2 + $0x170] sm:$0xf]  ;;  %v7359_v40 = vld [vmem:[#allocation2 + $0x174] sm:$0xf]  ;;  %1260 = vmatpush.bf16.msra.mxu3 %v6222_v31  ;;  %v6071_v31 = vld [vmem:[#allocation2 + $0x58] sm:$0xf0]  ;;  %836 = vperm.xlu0 %7896, %v828_v41  }
 0x147   :  { %v6214_v20 = vor.u32 %v7360_v18, %v6213_v25  ;;  %v6218_v39 = vor.u32 %v7359_v40, %v6215_v35  ;;  %v7323_v18 = vld [vmem:[#allocation2 + $0x54] sm:$0xf]  ;;  %v7356_v35 = vld [vmem:[#allocation2 + $0x154] sm:$0xf0]  ;;  %v6199_v40 = vld [vmem:[#allocation2 + $0x158] sm:$0xf0] }
 0x148   :  { %v7355_v25 = vld [vmem:[#allocation2 + $0x154] sm:$0xf]  ;;  %v6074_v61 = vor.u32 %v7323_v18, %v6071_v31  ;;  %v6198_v24 = vor.u32 %v7356_v35, %v6197_v7  ;;  %v6055_v41 = vld [vmem:[#allocation2 + $0x38] sm:$0xf0]  ;;  %v6181_v18 = vld [vmem:[#allocation2 + $0x130] sm:$0xf] }
 0x149   :  { %1229 = vmatpush.bf16.msra.mxu2 %v6214_v20  ;;  %1325 = vmatpush.bf16.msrb.mxu1 %v6218_v39  ;;  %v7321_v20 = vld [vmem:[#allocation2 + $0x44] sm:$0xf]  ;;  %v6063_v39 = vld [vmem:[#allocation2 + $0x48] sm:$0xf0]  ;;  %v6202_v52 = vor.u32 %v7355_v25, %v6199_v40  ;;  %v6007_v35 = vld [vmem:[%s14390_s5 + $0x38] sm:$0xf0] }
 0x14a   :  { %1277 = vmatpush.bf16.msrb.mxu3 %v6090_v21  ;;  %v10207_v21 = vor.u32 %v7311_v14, %v6013_v26  ;;  %v7353_v26 = vld [vmem:[#allocation2 + $0x144] sm:$0xf]  ;;  %v6191_v14 = vld [vmem:[#allocation2 + $0x148] sm:$0xf0]  ;;  %v7352_v25 = vld [vmem:[#allocation2 + $0x134] sm:$0xf0] }
 0x14b   :  { %6227 = vmatmul.msk.bf16.vlgmr.msra.gmra.mxu3 %vm1171_vm6, %v10190_v43  ;;  %v6194_v7 = vor.u32 %v7353_v26, %v6191_v14  ;;  %v7306_v31 = vld [vmem:[%s14390_s5 + $0x2c] sm:$0xf]  ;;  %v7351_v40 = vld [vmem:[#allocation2 + $0x134] sm:$0xf]  ;;  %v6175_v14 = vld [vmem:[#allocation2 + $0x128] sm:$0xf0] }
 0x14c   :  { %1199 = vmatmul.bf16.gmra.mxu0 %v10207_v21  ;;  %v7349_v26 = vld [vmem:[#allocation2 + $0x124] sm:$0xf] }
 0x14d   :  { %1230 = vmatpush.bf16.msra.mxu2 %v6206_v13  ;;  %1326 = vmatpush.bf16.msrb.mxu1 %v6210_v1  ;;  %v10216_v13 = vor.u32 %v7309_v4, %v6015_v56  ;;  %v6190_v1 = vor.u32 %v7354_v48, %v6189_v22  ;;  %v6173_v48 = vld [vmem:[#allocation2 + $0x120] sm:$0xf]  ;;  %v7317_v4 = vld [vmem:[#allocation2 + $0x24] sm:$0xf]  ;;  %v6047_v56 = vld [vmem:[#allocation2 + $0x28] sm:$0xf0] }
 0x14e   :  { %1278 = vmatpush.bf16.msrb.mxu3 %v6082_v15  ;;  %v6066_v15 = vor.u32 %v7321_v20, %v6063_v39  ;;  %v10224_v20 = vor.u32 %v7306_v31, %v6007_v35  ;;  %v6182_v39 = vor.u32 %v7352_v25, %v6181_v18  ;;  %v7350_v22 = vld [vmem:[#allocation2 + $0x124] sm:$0xf0]  ;;  %v6165_v18 = vld [vmem:[#allocation2 + $0x110] sm:$0xf]  ;;  %v7315_v31 = vld [vmem:[#allocation2 + $0x14] sm:$0xf] }
 0x14f   :  { %v6039_v35 = vld [vmem:[#allocation2 + $0x18] sm:$0xf0]  ;;  %v7348_v25 = vld [vmem:[#allocation2 + $0x114] sm:$0xf0] }
 0x151   :  { %1231 = vmatpush.bf16.msra.mxu2 %v6198_v24  ;;  %1327 = vmatpush.bf16.msrb.mxu1 %v6202_v52  ;;  %v6183_v52 = vld [vmem:[#allocation2 + $0x138] sm:$0xf0] }
 0x152   :  { %1279 = vmatpush.bf16.msrb.mxu3 %v6074_v61  ;;  %v6058_v61 = vor.u32 %v7319_v29, %v6055_v41  ;;  %v6186_v24 = vor.u32 %v7351_v40, %v6183_v52  ;;  %v831_v29 = vld [vmem:[%s14391_s6 + $0x18] sm:$0xff]  ;;  %v833_v41 = vld [vmem:[%s14391_s6 + $0x28] sm:$0xff]  ;;  %v6167_v52 = vld [vmem:[#allocation2 + $0x118] sm:$0xf0] }
 0x153   :  { %851 = vperm.xlu1 %7897, %v831_v29   ;;  %861 = vperm.xlu0 %7896, %v833_v41   ;;  %v7347_v40 = vld [vmem:[#allocation2 + $0x114] sm:$0xf]  ;;  %v7304_v29 = vld [vmem:[%s14390_s5 + $0x14] sm:$0xf0] }
 0x154   :  { %1223 = vmatmul.bf16.gmra.mxu1 %v10216_v13 }
 0x155   :  { %1232 = vmatpush.bf16.msra.mxu2 %v6190_v1  ;;  %1328 = vmatpush.bf16.msrb.mxu1 %v6194_v7  ;;  %v6174_v1 = vor.u32 %v7350_v22, %v6173_v48  ;;  %v6178_v7 = vor.u32 %v7349_v26, %v6175_v14  ;;  %v6223_v48 = vld [vmem:[#allocation2 + $0x188] sm:$0xf0]  ;;  %v7346_v22 = vld [vmem:[#allocation2 + $0x104] sm:$0xf0]  ;;  %v7345_v26 = vld [vmem:[#allocation2 + $0x104] sm:$0xf] }
 0x156   :  { %1280 = vmatpush.bf16.msrb.mxu3 %v6066_v15  ;;  %v6050_v15 = vor.u32 %v7317_v4, %v6047_v56  ;;  %v6166_v4 = vor.u32 %v7348_v25, %v6165_v18  ;;  %v6170_v56 = vor.u32 %v7347_v40, %v6167_v52  ;;  %v6159_v14 = vld [vmem:[#allocation2 + $0x108] sm:$0xf0] }
 0x157   :  { %v6162_v18 = vor.u32 %v7345_v26, %v6159_v14  ;;  %v830_v52 = vld [vmem:[%s14391_s6 + $0x10] sm:$0xff] }
 0x158   :  { %846 = vperm.xlu2 %7898, %v830_v52  }
 0x159   :  { %1233 = vmatpush.bf16.msra.mxu2 %v6182_v39  ;;  %1329 = vmatpush.bf16.msrb.mxu1 %v6186_v24  ;;  %v7313_v39 = vld [vmem:[#allocation2 + $0x4] sm:$0xf]  ;;  %v6031_v24 = vld [vmem:[#allocation2 + $0x8] sm:$0xf0] }
 0x15a   :  { %1281 = vmatpush.bf16.msrb.mxu3 %v6058_v61  ;;  %v6042_v61 = vor.u32 %v7315_v31, %v6039_v35  ;;  %v6034_v41 = vor.u32 %v7313_v39, %v6031_v24  ;;  %v7310_v31 = vld [vmem:[%s14390_s5 + $0x4c] sm:$0xf] }
 0x15b   :  { %6228 = vmatmul.msk.bf16.gmra.mxu3 %vm1171_vm6, %v10224_v20 }
 0x15c   :  { %1309 = vmatmul.bf16.vlgmr.msrb.gmra.mxu0 %v10112_v8  ;;  %v6023_v8 = vld [vmem:[%s14390_s5 + $0x58] sm:$0xf0] }
 0x15d   :  { %1234 = vmatpush.bf16.msra.mxu2 %v6174_v1  ;;  %1330 = vmatpush.bf16.msrb.mxu1 %v6178_v7  ;;  %v6226_v1 = vor.u32 %v7361_v9, %v6223_v48  ;;  %v6158_v7 = vor.u32 %v7346_v22, %v6157_v16  ;;  %v6026_v25 = vor.u32 %v7310_v31, %v6023_v8  ;;  %v6005_v9 = vld [vmem:[%s14390_s5 + $0x28] sm:$0xf]  ;;  %v7308_v16 = vld [vmem:[%s14390_s5 + $0x34] sm:$0xf0] }
 0x15e   :  { %1282 = vmatpush.bf16.msrb.mxu3 %v6050_v15  ;;  %v5989_v15 = vld [vmem:[%s14390_s5 + $0x8] sm:$0xf]  ;;  %v6006_v40 = vor.u32 %v7308_v16, %v6005_v9 }
 0x15f   :  { %v5990_v35 = vor.u32 %v7304_v29, %v5989_v15 }
 0x161   :  { %1235 = vmatpush.bf16.msra.mxu2 %v6166_v4  ;;  %1331 = vmatpush.bf16.msrb.mxu1 %v6170_v56 }
 0x162   :  { %1283 = vmatpush.bf16.msrb.mxu3 %v6042_v61  ;;  %v7312_v61 = vld [vmem:[%s14390_s5 + $0x54] sm:$0xf0] }
 0x165   :  { %1236 = vmatpush.bf16.msra.mxu2 %v6158_v7  ;;  %1332 = vmatpush.bf16.msrb.mxu1 %v6162_v18 }
 0x166   :  { %1284 = vmatpush.bf16.msrb.mxu3 %v6034_v41 }
 0x168   :  { %1237 = vmatmul.bf16.vlgmr.msra.gmra.mxu2 %v5990_v35  ;;  %1333 = vmatmul.bf16.vlgmr.msrb.gmra.mxu1 %v5990_v35 }
 0x169   :  { %1356 = vmatpush.bf16.msrb.mxu2 %v6226_v1 }
 0x16b   :  { %6229 = vmatmul.msk.bf16.gmra.mxu3 %vm1171_vm6, %v6026_v25 }
 0x16c   :  { %1314 = vmatmul.bf16.gmra.mxu0 %v10182_v53  ;;  %v6021_v53 = vld [vmem:[%s14390_s5 + $0x48] sm:$0xf]  ;;  %s14939_s5 = smov 1  }
 0x16d   :  { %v6022_v39 = vor.u32 %v7312_v61, %v6021_v53 }
 0x178   :  { %1242 = vmatmul.bf16.gmra.mxu2 %v6006_v40  ;;  %1338 = vmatmul.bf16.gmra.mxu1 %v6006_v40 }
 0x17b   :  { %1285 = vmatmul.bf16.vlgmr.msrb.gmra.mxu3 %v10077_v10  ;;  %v832_v10 = vld [vmem:[%s14391_s6 + $0x20] sm:$0xff]  ;;  %s14941_s6 = smov 127  }
 0x17c   :  { %1319 = vmatmul.bf16.gmra.mxu0 %v10216_v13  ;;  %856 = vperm.xlu2 %7898, %v832_v10  }
 0x188   :  { %1247 = vmatmul.bf16.gmra.mxu2 %v6022_v39  ;;  %1343 = vmatmul.bf16.gmra.mxu1 %v6022_v39 }
 0x18b   :  { %1290 = vmatmul.bf16.gmra.mxu3 %v10173_v17 }
 0x198   :  { %6230 = vmatmul.msk.bf16.vlgmr.msrb.gmra.mxu2 %vm1171_vm6, %v10190_v43 }
 0x19b   :  { %1295 = vmatmul.bf16.gmra.mxu3 %v10207_v21 }
 0x1a8   :  { %6231 = vmatmul.msk.bf16.gmra.mxu2 %vm1171_vm6, %v10224_v20 }
 0x1a9   :  { %v1190_v13 = vpop.f32.mrf.mxu0 }
 0x1ae   :  { %v10280_v17 = vpop.permute.xlu1 %841 }
 0x1b1   :  { %v1214_v24 = vpop.f32.mrf.mxu1  ;;  %v1192_v4 = vpop.f32.mrf.mxu0 }
 0x1b2   :  { %v1193_v29 = vadd.f32 %v1192_v4, %v10280_v17  ;;  %v10285_v8 = vpop.permute.xlu2 %846 }
 0x1b8   :  { %6232 = vmatmul.msk.bf16.gmra.mxu2 %vm1171_vm6, %v6026_v25  ;;  %v10277_v48 = vpop.permute.xlu0 %836  ;;  %vm14978_vm6 = vmmov %vm14977_vm4 }
 0x1b9   :  { %v1216_v22 = vpop.f32.mrf.mxu1  ;;  %v1191_v26 = vadd.f32 %v1190_v13, %v10277_v48  ;;  %v1195_v43 = vpop.f32.mrf.mxu0 }
 0x1ba   :  { %v1217_v1 = vadd.f32 %v1216_v22, %v1193_v29  ;;  %v1196_v52 = vadd.f32 %v1195_v43, %v10285_v8 }
 0x1bb   :  { %v1215_v15 = vadd.f32 %v1214_v24, %v1191_v26 }
 0x1c1   :  { %v1219_v20 = vpop.f32.mrf.mxu1  ;;  %v1197_v35 = vpop.f32.mrf.mxu0 }
 0x1c2   :  { %v1220_v13 = vadd.f32 %v1219_v20, %v1196_v52 }
 0x1c5   :  { %v10298_v39 = vpop.permute.xlu1 %851 }
 0x1c6   :  { %v1198_v24 = vadd.f32 %v1197_v35, %v10298_v39 }
 0x1c9   :  { %v1221_v53 = vpop.f32.mrf.mxu1  ;;  %v1200_v4 = vpop.f32.mrf.mxu0 }
 0x1ca   :  { %v1222_v26 = vadd.f32 %v1221_v53, %v1198_v24 }
 0x1ce   :  { %v1262_v56 = vpop.f32.mrf.mxu3 }
 0x1d6   :  { %v1264_v21 = vpop.f32.mrf.mxu3  ;;  %v10317_v20 = vpop.permute.xlu2 %856 }
 0x1d7   :  { %v1201_v35 = vadd.f32 %v1200_v4, %v10317_v20 }
 0x1de   :  { %v1267_v9 = vpop.f32.mrf.mxu3 }
 0x1e6   :  { %v1269_v22 = vpop.f32.mrf.mxu3 }
 0x1eb   :  { %v1238_v14 = vpop.f32.mrf.mxu2 }
 0x1ec   :  { %v1239_v41 = vadd.f32 %v1238_v14, %v1215_v15 }
 0x1ee   :  { %v10283_v18 = vadd.f32 %v1262_v56, %v1239_v41  ;;  %v1272_v52 = vpop.f32.mrf.mxu3 }
 0x1f0   :  { %v14542_v16 = vmax.f32 %v10283_v18, 0.0 }
 0x1f3   :  { %v1240_v7 = vpop.f32.mrf.mxu2 }
 0x1f4   :  { %v1241_v31 = vadd.f32 %v1240_v7, %v1217_v1  ;;  %v10321_v7 = vpop.permute.xlu0 %861 }
 0x1f6   :  { %v10287_v25 = vadd.f32 %v1264_v21, %v1241_v31  ;;  %v1224_v21 = vpop.f32.mrf.mxu1  ;;  %v1202_v31 = vpop.f32.mrf.mxu0 }
 0x1f8   :  { %v14538_v40 = vmax.f32 %v10287_v25, 0.0 }
 0x1fa   :  { %v10296_v61 = vpack.i.bf16 %v14538_v40, %v14542_v16 }
 0x1fb   :  { %v1243_v10 = vpop.f32.mrf.mxu2 }
 0x1fc   :  { %14936 = vst [vmem:[#allocation50_spill] sm:$0xff] %v10296_v61  ;;  %7970 = vrot.lane.b32.xlu0 %v10296_v61, %s9026_s19  ;;  %7965 = vrot.lane.b32.xlu2 %v10296_v61, %s9030_s17  ;;  %v1244_v56 = vadd.f32 %v1243_v10, %v1220_v13  ;;  %v1203_v10 = vadd.f32 %v1202_v31, %v10321_v7 }
 0x1fd   :  { %7900 = vrot.lane.b32.xlu1 %v10296_v61, %s9010_s1  ;;  %v1225_v13 = vadd.f32 %v1224_v21, %v1201_v35 }
 0x1fe   :  { %v10307_v43 = vadd.f32 %v1267_v9, %v1244_v56  ;;  %v1226_v24 = vpop.f32.mrf.mxu1 }
 0x1ff   :  { %v1227_v56 = vadd.f32 %v1226_v24, %v1203_v10 }
 0x200   :  { %v14543_v41 = vmax.f32 %v10307_v43, 0.0 }
 0x203   :  { %v1245_v14 = vpop.f32.mrf.mxu2 }
 0x204   :  { %v1246_v15 = vadd.f32 %v1245_v14, %v1222_v26  ;;  %7985 = vrot.lane.b32.xlu0 %v10296_v61, %s9025_s7  ;;  %7980 = vrot.lane.b32.xlu2 %v10296_v61, %s9029_s21 }
 0x205   :  { %7905 = vrot.lane.b32.xlu1 %v10296_v61, %s9009_s0 }
 0x206   :  { %v10315_v29 = vadd.f32 %v1269_v22, %v1246_v15  ;;  %v1274_v15 = vpop.f32.mrf.mxu3 }
 0x208   :  { %v14541_v1 = vmax.f32 %v10315_v29, 0.0 }
 0x20a   :  { %v10328_v9 = vpack.i.bf16 %v14541_v1, %v14543_v41 }
 0x20b   :  { %v1248_v53 = vpop.f32.mrf.mxu2 }
 0x20c   :  { %14937 = vst [vmem:[#allocation51_spill] sm:$0xff] %v10328_v9  ;;  %8055 = vrot.lane.b32.xlu0 %v10328_v9, %s9026_s19  ;;  %7990 = vrot.lane.b32.xlu2 %v10328_v9, %s9010_s1  ;;  %v1249_v4 = vadd.f32 %v1248_v53, %v1225_v13  ;;  %v1310_v53 = vpop.f32.mrf.mxu0  ;;  %v1334_v13 = vpop.f32.mrf.mxu1 }
 0x20d   :  { %7910 = vrot.lane.b32.xlu1 %v10296_v61, %s9011_s2 }
 0x20e   :  { %v10337_v26 = vadd.f32 %v1272_v52, %v1249_v4  ;;  %v1286_v52 = vpop.f32.mrf.mxu3 }
 0x210   :  { %v14540_v21 = vmax.f32 %v10337_v26, 0.0 }
 0x213   :  { %v1250_v22 = vpop.f32.mrf.mxu2 }
 0x214   :  { %v1251_v14 = vadd.f32 %v1250_v22, %v1227_v56  ;;  %8070 = vrot.lane.b32.xlu0 %v10328_v9, %s9025_s7  ;;  %7995 = vrot.lane.b32.xlu2 %v10328_v9, %s9009_s0  ;;  %v1312_v4 = vpop.f32.mrf.mxu0  ;;  %v1336_v22 = vpop.f32.mrf.mxu1 }
 0x215   :  { %7915 = vrot.lane.b32.xlu1 %v10296_v61, %s9012_s3 }
 0x216   :  { %v10345_v40 = vadd.f32 %v1274_v15, %v1251_v14  ;;  %v1288_v10 = vpop.f32.mrf.mxu3 }
 0x218   :  { %v14539_v31 = vmax.f32 %v10345_v40, 0.0 }
 0x21a   :  { %v10353_v35 = vpack.i.bf16 %v14539_v31, %v14540_v21  ;;  %v1289_v31 = vadd.f32 %v1288_v10, %v10280_v17  ;;  %v1287_v21 = vadd.f32 %v1286_v52, %v10277_v48 }
 0x21b   :  { %v1358_v24 = vpop.f32.mrf.mxu2 }
 0x21c   :  { %14938 = vst [vmem:[#allocation52_spill] sm:$0xff] %v10353_v35  ;;  %8080 = vrot.lane.b32.xlu0 %v10353_v35, %s9010_s1  ;;  %8000 = vrot.lane.b32.xlu2 %v10328_v9, %s9011_s2  ;;  %v1315_v15 = vpop.f32.mrf.mxu0  ;;  %v1313_v1 = vadd.f32 %v1312_v4, %v1289_v31  ;;  %v1311_v41 = vadd.f32 %v1310_v53, %v1287_v21  ;;  %v1339_v32 = vpop.f32.mrf.mxu1 }
 0x21d   :  { %7920 = vrot.lane.b32.xlu1 %v10296_v61, %s9013_s22 }
 0x21e   :  { %v1291_v56 = vpop.f32.mrf.mxu3  ;;  %v1337_v10 = vadd.f32 %v1336_v22, %v1313_v1  ;;  %v1335_v31 = vadd.f32 %v1334_v13, %v1311_v41 }
 0x21f   :  { %v1292_v62 = vadd.f32 %v1291_v56, %v10285_v8 }
 0x220   :  { %v1359_v44 = vadd.f32 %v1358_v24, %v1335_v31 }
 0x221   :  { %v1316_v4 = vadd.f32 %v1315_v15, %v1292_v62 }
 0x222   :  { %v1374_v13 = vmax.f32 %v1359_v44, 0.0 }
 0x223   :  { %v1360_v14 = vpop.f32.mrf.mxu2  ;;  %v1340_v1 = vadd.f32 %v1339_v32, %v1316_v4 }
 0x224   :  { %8085 = vrot.lane.b32.xlu0 %v10353_v35, %s9009_s0  ;;  %8005 = vrot.lane.b32.xlu2 %v10328_v9, %s9012_s3  ;;  %v1317_v48 = vpop.f32.mrf.mxu0  ;;  %v1361_v52 = vadd.f32 %v1360_v14, %v1337_v10  ;;  %v1341_v41 = vpop.f32.mrf.mxu1 }
 0x225   :  { %7925 = vrot.lane.b32.xlu1 %v10296_v61, %s9014_s23 }
 0x226   :  { %v1293_v16 = vpop.f32.mrf.mxu3  ;;  %v1376_v53 = vmax.f32 %v1361_v52, 0.0 }
 0x227   :  { %v1294_v21 = vadd.f32 %v1293_v16, %v10298_v39 }
 0x228   :  { %v10417_v14 = vpack.i.bf16 %v1376_v53, %v1374_v13 }
 0x229   :  { %v1318_v62 = vadd.f32 %v1317_v48, %v1294_v21  ;;  %v14944_v21 = vmax.f32 %v10307_v43, 0.0 }
 0x22b   :  { %v1363_v17 = vpop.f32.mrf.mxu2  ;;  %v1342_v44 = vadd.f32 %v1341_v41, %v1318_v62 }
 0x22c   :  { %8090 = vrot.lane.b32.xlu0 %v10353_v35, %s9011_s2  ;;  %8010 = vrot.lane.b32.xlu2 %v10328_v9, %s9013_s22  ;;  %v1364_v24 = vadd.f32 %v1363_v17, %v1340_v1  ;;  %v1320_v15 = vpop.f32.mrf.mxu0  ;;  %v1344_v10 = vpop.f32.mrf.mxu1 }
 0x22d   :  { %7930 = vrot.lane.b32.xlu1 %v10296_v61, %s9015_s24 }
 0x22e   :  { %v1296_v56 = vpop.f32.mrf.mxu3  ;;  %v1378_v39 = vmax.f32 %v1364_v24, 0.0 }
 0x22f   :  { %v1297_v32 = vadd.f32 %v1296_v56, %v10317_v20 }
 0x230   :  { %v2107_v1 = vpack.c.bf16 %v1378_v39, %v14944_v21 }
 0x231   :  { %v1321_v31 = vadd.f32 %v1320_v15, %v1297_v32 }
 0x232   :  { %2113 = vst [vmem:[#allocation2 + $0x250] sm:$0xff] %v2107_v1  ;;  %v14953_v1 = vmax.f32 %v10337_v26, 0.0 }
 0x233   :  { %v1365_v22 = vpop.f32.mrf.mxu2  ;;  %v1345_v24 = vadd.f32 %v1344_v10, %v1321_v31 }
 0x234   :  { %8095 = vrot.lane.b32.xlu0 %v10353_v35, %s9012_s3  ;;  %8015 = vrot.lane.b32.xlu2 %v10328_v9, %s9014_s23  ;;  %v1366_v48 = vadd.f32 %v1365_v22, %v1342_v44  ;;  %v1322_v34 = vpop.f32.mrf.mxu0  ;;  %v1346_v44 = vpop.f32.mrf.mxu1 }
 0x235   :  { %7935 = vrot.lane.b32.xlu1 %v10296_v61, %s9016_s25 }
 0x236   :  { %v1298_v17 = vpop.f32.mrf.mxu3  ;;  %v1380_v20 = vmax.f32 %v1366_v48, 0.0 }
 0x237   :  { %v1299_v4 = vadd.f32 %v1298_v17, %v10321_v7  ;;  %v14946_v7 = vmax.f32 %v10283_v18, 0.0 }
 0x238   :  { %v10445_v32 = vpack.i.bf16 %v1380_v20, %v1378_v39 }
 0x239   :  { %v2105_v62 = vpack.c.bf16 %v1374_v13, %v14946_v7  ;;  %v1323_v15 = vadd.f32 %v1322_v34, %v1299_v4  ;;  %v14950_v34 = vmax.f32 %v10315_v29, 0.0 }
 0x23b   :  { %v1368_v52 = vpop.f32.mrf.mxu2  ;;  %2111 = vst [vmem:[#allocation2 + $0x240] sm:$0xff] %v2105_v62  ;;  %v2108_v10 = vpack.c.bf16 %v1380_v20, %v14950_v34  ;;  %v1347_v39 = vadd.f32 %v1346_v44, %v1323_v15  ;;  %v14957_v15 = vmax.f32 %v10345_v40, 0.0 }
 0x23c   :  { %8100 = vrot.lane.b32.xlu0 %v10353_v35, %s9013_s22  ;;  %8020 = vrot.lane.b32.xlu2 %v10328_v9, %s9015_s24  ;;  %v1369_v43 = vadd.f32 %v1368_v52, %v1345_v24  ;;  %v14952_v52 = vmax.f32 %v10287_v25, 0.0 }
 0x23d   :  { %7940 = vrot.lane.b32.xlu1 %v10296_v61, %s9017_s26  ;;  %2114 = vst [vmem:[#allocation2 + $0x258] sm:$0xff] %v2108_v10 }
 0x23e   :  { %v1382_v31 = vmax.f32 %v1369_v43, 0.0  ;;  %v2106_v4 = vpack.c.bf16 %v1376_v53, %v14952_v52 }
 0x240   :  { %2112 = vst [vmem:[#allocation2 + $0x248] sm:$0xff] %v2106_v4  ;;  %v2109_v29 = vpack.c.bf16 %v1382_v31, %v14953_v1 }
 0x242   :  { %2115 = vst [vmem:[#allocation2 + $0x260] sm:$0xff] %v2109_v29 }
 0x243   :  { %v1370_v17 = vpop.f32.mrf.mxu2 }
 0x244   :  { %8105 = vrot.lane.b32.xlu0 %v10353_v35, %s9014_s23  ;;  %8025 = vrot.lane.b32.xlu2 %v10328_v9, %s9016_s25  ;;  %v1371_v21 = vadd.f32 %v1370_v17, %v1347_v39 }
 0x245   :  { %7945 = vrot.lane.b32.xlu1 %v10296_v61, %s9018_s27 }
 0x246   :  { %v1384_v20 = vmax.f32 %v1371_v21, 0.0 }
 0x248   :  { %v10477_v53 = vpack.i.bf16 %v1384_v20, %v1382_v31  ;;  %v2110_v43 = vpack.c.bf16 %v1384_v20, %v14957_v15 }
 0x24a   :  { %2116 = vst [vmem:[#allocation2 + $0x268] sm:$0xff] %v2110_v43 }
 0x24c   :  { %8110 = vrot.lane.b32.xlu0 %v10353_v35, %s9015_s24  ;;  %8030 = vrot.lane.b32.xlu2 %v10328_v9, %s9017_s26 }
 0x24d   :  { %7950 = vrot.lane.b32.xlu1 %v10296_v61, %s9019_s28 }
 0x254   :  { %8115 = vrot.lane.b32.xlu0 %v10353_v35, %s9016_s25  ;;  %8035 = vrot.lane.b32.xlu2 %v10328_v9, %s9018_s27 }
 0x255   :  { %7955 = vrot.lane.b32.xlu1 %v10296_v61, %s14939_s5 }
 0x256   :  { %v10405_v33 = vpop.permute.xlu2 %7965 }
 0x257   :  { %14940 = vst [vmem:[#allocation53_spill] sm:$0xff] %v10405_v33 }
 0x25c   :  { %8120 = vrot.lane.b32.xlu0 %v10353_v35, %s9017_s26  ;;  %8040 = vrot.lane.b32.xlu2 %v10328_v9, %s9019_s28 }
 0x25d   :  { %7960 = vrot.lane.b32.xlu1 %v10296_v61, %s14941_s6 }
 0x25e   :  { %v10415_v8 = vpop.permute.xlu2 %7980 }
 0x25f   :  { %14942 = vst [vmem:[#allocation54_spill] sm:$0xff] %v10415_v8 }
 0x264   :  { %8125 = vrot.lane.b32.xlu0 %v10353_v35, %s9018_s27  ;;  %8045 = vrot.lane.b32.xlu2 %v10328_v9, %s14939_s5 }
 0x265   :  { %7975 = vrot.lane.b32.xlu1 %v10296_v61, %s14943_s29 }
 0x266   :  { %v10425_v16 = vpop.permute.xlu2 %7990 }
 0x26c   :  { %8130 = vrot.lane.b32.xlu0 %v10353_v35, %s9019_s28  ;;  %8050 = vrot.lane.b32.xlu2 %v10328_v9, %s14941_s6 }
 0x26d   :  { %8060 = vrot.lane.b32.xlu1 %v10328_v9, %s14943_s29 }
 0x26e   :  { %v10437_v56 = vpop.permute.xlu0 %7970  ;;  %v10439_v41 = vpop.permute.xlu2 %7995 }
 0x26f   :  { %14945 = vst [vmem:[#allocation55_spill] sm:$0xff] %v10437_v56  ;;  %v10443_v22 = vpop.permute.xlu1 %7900  ;;  %v10677_v56 = vld [vmem:[#allocation2 + $0x260] sm:$0xf] }
 0x270   :  { %14947 = vst [vmem:[#allocation56_spill] sm:$0xff] %v10443_v22  ;;  %v10645_v22 = vld [vmem:[#allocation2 + $0x254] sm:$0xf0] }
 0x271   :  { %14967 = vst [vmem:[#allocation70_spill] sm:$0xff] %v10645_v22 }
 0x272   :  { %14972 = vst [vmem:[#allocation75_spill] sm:$0xff] %v10677_v56 }
 0x274   :  { %8135 = vrot.lane.b32.xlu0 %v10353_v35, %s14939_s5  ;;  %8065 = vrot.lane.b32.xlu2 %v10328_v9, %s9029_s21 }
 0x275   :  { %8075 = vrot.lane.b32.xlu1 %v10328_v9, %s14948_s30  ;;  %v10647_v9 = vld [vmem:[#allocation2 + $0x244] sm:$0xf0] }
 0x276   :  { %v10453_v18 = vpop.permute.xlu0 %7985  ;;  %v10455_v13 = vpop.permute.xlu2 %8000  ;;  %14968 = vst [vmem:[#allocation71_spill] sm:$0xff] %v10647_v9 }
 0x277   :  { %14949 = vst [vmem:[#allocation57_spill] sm:$0xff] %v10453_v18  ;;  %v10459_v48 = vpop.permute.xlu1 %7905  ;;  %v10657_v18 = vld [vmem:[#allocation2 + $0x264] sm:$0xf0] }
 0x278   :  { %14951 = vst [vmem:[#allocation58_spill] sm:$0xff] %v10459_v48  ;;  %v10661_v48 = vld [vmem:[#allocation2 + $0x240] sm:$0xf] }
 0x279   :  { %14969 = vst [vmem:[#allocation72_spill] sm:$0xff] %v10657_v18 }
 0x27a   :  { %14971 = vst [vmem:[#allocation74_spill] sm:$0xff] %v10661_v48 }
 0x27c   :  { %8140 = vrot.lane.b32.xlu0 %v10353_v35, %s14941_s6  ;;  %8150 = vrot.lane.b32.xlu2 %v10353_v35, %s9029_s21 }
 0x27d   :  { %8145 = vrot.lane.b32.xlu1 %v10353_v35, %s14943_s29 }
 0x27e   :  { %v10471_v7 = vpop.permute.xlu0 %8055  ;;  %v10473_v62 = vpop.permute.xlu2 %8005 }
 0x27f   :  { %14954 = vst [vmem:[#allocation59_spill] sm:$0xff] %v10471_v7  ;;  %v10475_v25 = vpop.permute.xlu1 %7910  ;;  %v10659_v7 = vld [vmem:[#allocation2 + $0x250] sm:$0xf] }
 0x280   :  { %14970 = vst [vmem:[#allocation73_spill] sm:$0xff] %v10659_v7 }
 0x284   :  { %8155 = vrot.lane.b32.xlu0 %v10353_v35, %s9025_s7  ;;  %8165 = vrot.lane.b32.xlu2 %v10353_v35, %s14955_s14 }
 0x285   :  { %8160 = vrot.lane.b32.xlu1 %v10353_v35, %s14948_s30 }
 0x286   :  { %v10485_v26 = vpop.permute.xlu0 %8070  ;;  %v10487_v24 = vpop.permute.xlu2 %8010 }
 0x287   :  { %14956 = vst [vmem:[#allocation60_spill] sm:$0xff] %v10485_v26  ;;  %v10491_v44 = vpop.permute.xlu1 %7915 }
 0x28c   :  { %8245 = vrot.lane.b32.xlu2 %v10417_v14, %s14943_s29  ;;  %8235 = vrot.lane.b32.xlu0 %v10417_v14, %s9030_s17 }
 0x28d   :  { %8170 = vrot.lane.b32.xlu1 %v10417_v14, %s9010_s1 }
 0x28e   :  { %v10499_v17 = vpop.permute.xlu0 %8080  ;;  %v10501_v34 = vpop.permute.xlu2 %8015 }
 0x28f   :  { %v10503_v10 = vpop.permute.xlu1 %7920 }
 0x294   :  { %8255 = vrot.lane.b32.xlu2 %v10445_v32, %s9010_s1  ;;  %8250 = vrot.lane.b32.xlu0 %v10417_v14, %s9029_s21 }
 0x295   :  { %8175 = vrot.lane.b32.xlu1 %v10417_v14, %s9009_s0 }
 0x296   :  { %v10511_v40 = vpop.permute.xlu0 %8085  ;;  %v10513_v39 = vpop.permute.xlu2 %8020 }
 0x297   :  { %v10515_v31 = vpop.permute.xlu1 %7925 }
 0x298   :  { %14958 = vst [vmem:[#allocation61_spill] sm:$0xff] %v10515_v31 }
 0x29c   :  { %8260 = vrot.lane.b32.xlu2 %v10445_v32, %s9009_s0  ;;  %8325 = vrot.lane.b32.xlu0 %v10445_v32, %s9029_s21 }
 0x29d   :  { %8180 = vrot.lane.b32.xlu1 %v10417_v14, %s9011_s2 }
 0x29e   :  { %v10523_v52 = vpop.permute.xlu0 %8090  ;;  %v10525_v4 = vpop.permute.xlu2 %8025 }
 0x29f   :  { %v10527_v21 = vpop.permute.xlu1 %7930 }
 0x2a4   :  { %8265 = vrot.lane.b32.xlu2 %v10445_v32, %s9011_s2  ;;  %8350 = vrot.lane.b32.xlu0 %v10477_v53, %s9010_s1  ;;  %s15203_s1 = smov 95  }
 0x2a5   :  { %8185 = vrot.lane.b32.xlu1 %v10417_v14, %s9012_s3 }
 0x2a6   :  { %v10535_v1 = vpop.permute.xlu0 %8095  ;;  %v10537_v29 = vpop.permute.xlu2 %8030 }
 0x2a7   :  { %v10539_v20 = vpop.permute.xlu1 %7935 }
 0x2ac   :  { %8270 = vrot.lane.b32.xlu2 %v10445_v32, %s9012_s3  ;;  %8355 = vrot.lane.b32.xlu0 %v10477_v53, %s9009_s0  ;;  %s15102_s0 = smov 113  }
 0x2ad   :  { %8190 = vrot.lane.b32.xlu1 %v10417_v14, %s9013_s22 }
 0x2ae   :  { %v10547_v15 = vpop.permute.xlu0 %8100  ;;  %v10549_v43 = vpop.permute.xlu2 %8035 }
 0x2af   :  { %v10551_v38 = vpop.permute.xlu1 %7940 }
 0x2b4   :  { %8275 = vrot.lane.b32.xlu2 %v10445_v32, %s9013_s22  ;;  %8360 = vrot.lane.b32.xlu0 %v10477_v53, %s9011_s2  ;;  %s15249_s2 = smov 96  }
 0x2b5   :  { %8195 = vrot.lane.b32.xlu1 %v10417_v14, %s9014_s23 }
 0x2b6   :  { %v10559_v11 = vpop.permute.xlu0 %8105  ;;  %v10561_v58 = vpop.permute.xlu2 %8040 }
 0x2b7   :  { %v10563_v57 = vpop.permute.xlu1 %7945 }
 0x2bc   :  { %8280 = vrot.lane.b32.xlu2 %v10445_v32, %s9014_s23  ;;  %8365 = vrot.lane.b32.xlu0 %v10477_v53, %s9012_s3  ;;  %s15343_s3 = smov 94  }
 0x2bd   :  { %8200 = vrot.lane.b32.xlu1 %v10417_v14, %s9015_s24 }
 0x2be   :  { %v10571_v55 = vpop.permute.xlu0 %8110  ;;  %v10573_v12 = vpop.permute.xlu2 %8045 }
 0x2bf   :  { %v10575_v46 = vpop.permute.xlu1 %7950 }
 0x2c4   :  { %8285 = vrot.lane.b32.xlu2 %v10445_v32, %s9015_s24  ;;  %8370 = vrot.lane.b32.xlu0 %v10477_v53, %s9013_s22 }
 0x2c5   :  { %8205 = vrot.lane.b32.xlu1 %v10417_v14, %s9016_s25 }
 0x2c6   :  { %v10583_v45 = vpop.permute.xlu0 %8115  ;;  %v10585_v6 = vpop.permute.xlu2 %8050 }
 0x2c7   :  { %14959 = vst [vmem:[#allocation62_spill] sm:$0xff] %v10585_v6  ;;  %v10587_v5 = vpop.permute.xlu1 %7955 }
 0x2c8   :  { %14960 = vst [vmem:[#allocation63_spill] sm:$0xff] %v10587_v5  ;;  %v15054_v5 = vld [vmem:[#allocation58_spill] sm:$0xff] }
 0x2cc   :  { %8290 = vrot.lane.b32.xlu2 %v10445_v32, %s9016_s25  ;;  %8375 = vrot.lane.b32.xlu0 %v10477_v53, %s9014_s23 }
 0x2cd   :  { %8210 = vrot.lane.b32.xlu1 %v10417_v14, %s9017_s26 }
 0x2ce   :  { %v10595_v61 = vpop.permute.xlu0 %8120  ;;  %v10597_v35 = vpop.permute.xlu2 %8065 }
 0x2cf   :  { %14961 = vst [vmem:[#allocation64_spill] sm:$0xff] %v10595_v61  ;;  %v10599_v30 = vpop.permute.xlu1 %7960 }
 0x2d0   :  { %14962 = vst [vmem:[#allocation65_spill] sm:$0xff] %v10599_v30 }
 0x2d4   :  { %8295 = vrot.lane.b32.xlu2 %v10445_v32, %s9017_s26  ;;  %8380 = vrot.lane.b32.xlu0 %v10477_v53, %s9015_s24 }
 0x2d5   :  { %8215 = vrot.lane.b32.xlu1 %v10417_v14, %s9018_s27 }
 0x2d6   :  { %v10607_v23 = vpop.permute.xlu0 %8125  ;;  %v10609_v27 = vpop.permute.xlu2 %8150 }
 0x2d7   :  { %14963 = vst [vmem:[#allocation66_spill] sm:$0xff] %v10607_v23  ;;  %v10611_v49 = vpop.permute.xlu1 %7975 }
 0x2d8   :  { %14964 = vst [vmem:[#allocation67_spill] sm:$0xff] %v10609_v27  ;;  %v7978_v19 = vunpack.i.h.bf16 %v10611_v49  ;;  %v7977_v3 = vunpack.i.l.bf16 %v10611_v49 }
 0x2dc   :  { %8300 = vrot.lane.b32.xlu2 %v10445_v32, %s9018_s27  ;;  %8385 = vrot.lane.b32.xlu0 %v10477_v53, %s9016_s25 }
 0x2dd   :  { %8220 = vrot.lane.b32.xlu1 %v10417_v14, %s9019_s28 }
 0x2de   :  { %v10631_v33 = vpop.permute.xlu0 %8130  ;;  %v10633_v0 = vpop.permute.xlu2 %8165 }
 0x2df   :  { %14965 = vst [vmem:[#allocation68_spill] sm:$0xff] %v10631_v33  ;;  %v10639_v36 = vpop.permute.xlu1 %8060 }
 0x2e0   :  { %14966 = vst [vmem:[#allocation69_spill] sm:$0xff] %v10633_v0 }
 0x2e4   :  { %8305 = vrot.lane.b32.xlu2 %v10445_v32, %s9019_s28  ;;  %8390 = vrot.lane.b32.xlu0 %v10477_v53, %s9017_s26 }
 0x2e5   :  { %8225 = vrot.lane.b32.xlu1 %v10417_v14, %s14939_s5 }
 0x2e6   :  { %v10690_v9 = vpop.permute.xlu0 %8135  ;;  %v8246_v42 = vpop.permute.xlu2 %8245 }
 0x2e7   :  { %14973 = vst [vmem:[#allocation76_spill] sm:$0xff] %v10690_v9  ;;  %v10694_v7 = vpop.permute.xlu1 %8075  ;;  %v8248_v22 = vunpack.i.h.bf16 %v8246_v42  ;;  %v8247_v26 = vunpack.i.l.bf16 %v8246_v42 }
 0x2e8   :  { %14974 = vst [vmem:[#allocation77_spill] sm:$0xff] %v10694_v7 }
 0x2e9   :  { %v2262_v48 = vsel %vm14975_vm11, %v7978_v19, %v8248_v22  ;;  %v2268_v56 = vsel %vm14976_vm9, %v8248_v22, %v7978_v19  ;;  %v2261_v49 = vsel %vm14977_vm4, %v7977_v3, %v8247_v26  ;;  %v2267_v42 = vsel %vm14978_vm6, %v8247_v26, %v7977_v3 }
 0x2ea   :  { %v2275_v50 = vsel %vm9729_vm7, %v2262_v48, 0.0  ;;  %v2276_v37 = vsel %vm9733_vm12, %v2268_v56, 0.0  ;;  %v2273_v47 = vsel %vm9729_vm7, %v2261_v49, 0.0  ;;  %v2274_v8 = vsel %vm9733_vm12, %v2267_v42, 0.0 }
 0x2eb   :  { %v2286_v18 = vpack.c.bf16 %v2276_v37, %v2275_v50  ;;  %v2285_v31 = vpack.c.bf16 %v2274_v8, %v2273_v47  ;;  %vm14982_vm11 = vcmp.lt.s32.totalorder %v9221_v28, 34  ;;  %vm15075_vm12 = vcmp.lt.s32.totalorder %v9221_v28, 98 }
 0x2ec   :  { %8310 = vrot.lane.b32.xlu2 %v10445_v32, %s14939_s5  ;;  %8395 = vrot.lane.b32.xlu0 %v10477_v53, %s9018_s27  ;;  %vm14984_vm9 = vmmov %vm14982_vm11 }
 0x2ed   :  { %2292 = vst [vmem:[#allocation2 + $0x2d8] sm:$0xff] %v2286_v18  ;;  %8230 = vrot.lane.b32.xlu1 %v10417_v14, %s14941_s6  ;;  %vm14986_vm4 = vmmov %vm14984_vm9 }
 0x2ee   :  { %2291 = vst [vmem:[#allocation2 + $0x2d0] sm:$0xff] %v2285_v31  ;;  %v10736_v48 = vpop.permute.xlu0 %8140  ;;  %v8256_v42 = vpop.permute.xlu2 %8255  ;;  %v14981_v31 = vunpack.i.h.bf16 %v10425_v16  ;;  %vm14988_vm6 = vmmov %vm14986_vm4 }
 0x2ef   :  { %14979 = vst [vmem:[#allocation78_spill] sm:$0xff] %v10736_v48  ;;  %v10740_v18 = vpop.permute.xlu1 %8145  ;;  %v8258_v26 = vunpack.i.h.bf16 %v8256_v42  ;;  %v8257_v49 = vunpack.i.l.bf16 %v8256_v42  ;;  %v14985_v42 = vunpack.i.l.bf16 %v10425_v16  ;;  %v15010_v48 = vld [vmem:[#allocation8_spill] sm:$0xff] }
 0x2f0   :  { %14980 = vst [vmem:[#allocation79_spill] sm:$0xff] %v10740_v18  ;;  %v14983_v37 = vmov %v14981_v31 }
 0x2f1   :  { %v1412_v56 = vsel %vm14982_vm11, %v14981_v31, %v8258_v26  ;;  %v1418_v47 = vsel %vm14984_vm9, %v8258_v26, %v14983_v37  ;;  %v1411_v50 = vsel %vm14986_vm4, %v14985_v42, %v8257_v49  ;;  %v14987_v8 = vmov %v14985_v42 }
 0x2f2   :  { %v1417_v22 = vsel %vm14988_vm6, %v8257_v49, %v14987_v8  ;;  %v1427_v3 = vsel %vm9298_vm13, %v1418_v47, 0.0  ;;  %v1428_v31 = vsel %vm9302_vm14, %v1412_v56, 0.0  ;;  %v1426_v26 = vsel %vm9302_vm14, %v1411_v50, 0.0 }
 0x2f3   :  { %v1425_v19 = vsel %vm9298_vm13, %v1417_v22, 0.0  ;;  %v1436_v16 = vpack.c.bf16 %v1428_v31, %v1427_v3  ;;  %vm14991_vm11 = vcmp.lt.s32.totalorder %v9221_v28, 33 }
 0x2f4   :  { %v1435_v51 = vpack.c.bf16 %v1426_v26, %v1425_v19  ;;  %8320 = vrot.lane.b32.xlu2 %v10445_v32, %s14943_s29  ;;  %8400 = vrot.lane.b32.xlu0 %v10477_v53, %s9019_s28  ;;  %vm14993_vm9 = vmmov %vm14991_vm11 }
 0x2f5   :  { %1442 = vst [vmem:[#allocation2 + $0x18] sm:$0xff] %v1436_v16  ;;  %8240 = vrot.lane.b32.xlu1 %v10417_v14, %s9026_s19  ;;  %vm14995_vm4 = vmmov %vm14993_vm9 }
 0x2f6   :  { %1441 = vst [vmem:[#allocation2 + $0x10] sm:$0xff] %v1435_v51  ;;  %v10790_v22 = vpop.permute.xlu0 %8155  ;;  %v8261_v50 = vpop.permute.xlu2 %8260  ;;  %v14990_v51 = vunpack.i.h.bf16 %v10439_v41  ;;  %vm14997_vm6 = vmmov %vm14995_vm4 }
 0x2f7   :  { %14989 = vst [vmem:[#allocation80_spill] sm:$0xff] %v10790_v22  ;;  %v10794_v16 = vpop.permute.xlu1 %8160  ;;  %v8263_v49 = vunpack.i.h.bf16 %v8261_v50  ;;  %v8262_v42 = vunpack.i.l.bf16 %v8261_v50  ;;  %v14994_v50 = vunpack.i.l.bf16 %v10439_v41  ;;  %v14999_v22 = vld [vmem:[#allocation51_spill] sm:$0xff] }
 0x2f8   :  { %v14992_v19 = vmov %v14990_v51 }
 0x2f9   :  { %v1472_v47 = vsel %vm14991_vm11, %v14990_v51, %v8263_v49  ;;  %v1478_v8 = vsel %vm14993_vm9, %v8263_v49, %v14992_v19  ;;  %v1471_v31 = vsel %vm14995_vm4, %v14994_v50, %v8262_v42  ;;  %v14996_v26 = vmov %v14994_v50 }
 0x2fa   :  { %v1477_v56 = vsel %vm14997_vm6, %v8262_v42, %v14996_v26  ;;  %v1487_v37 = vsel %vm9306_vm15, %v1478_v8, 0.0  ;;  %vm14998_vm11 = vnez %v14721_v2  ;;  %vm15001_vm9 = vcmp.lt.s32.totalorder %v9221_v28, 32 }
 0x2fb   :  { %v1488_v51 = vsel %vm14998_vm11, %v1472_v47, 0.0  ;;  %v1485_v3 = vsel %vm9306_vm15, %v1477_v56, 0.0  ;;  %v1486_v49 = vsel %vm14998_vm11, %v1471_v31, 0.0  ;;  %vm15003_vm4 = vmmov %vm15001_vm9  ;;  %v15004_v8 = vunpack.i.l.bf16 %v10455_v13 }
 0x2fc   :  { %v1496_v41 = vpack.c.bf16 %v1488_v51, %v1487_v37  ;;  %v1495_v6 = vpack.c.bf16 %v1486_v49, %v1485_v3  ;;  %8340 = vrot.lane.b32.xlu2 %v14999_v22, %s14955_s14  ;;  %8405 = vrot.lane.b32.xlu0 %v10477_v53, %s14939_s5  ;;  %v15000_v49 = vunpack.i.h.bf16 %v10455_v13  ;;  %vm15005_vm6 = vmmov %vm15003_vm4 }
 0x2fd   :  { %8315 = vrot.lane.b32.xlu1 %v10445_v32, %s9026_s19  ;;  %v15006_v37 = vmov %v15004_v8  ;;  %vm15007_vm2 = vmmov %vm15003_vm4 }
 0x2fe   :  { %1502 = vst [vmem:[#allocation2 + $0x48] sm:$0xff] %v1496_v41  ;;  %v8266_v56 = vpop.permute.xlu2 %8265  ;;  %v8236_v50 = vpop.permute.xlu0 %8235 }
 0x2ff   :  { %1501 = vst [vmem:[#allocation2 + $0x40] sm:$0xff] %v1495_v6  ;;  %v8268_v26 = vunpack.i.h.bf16 %v8266_v56  ;;  %v8267_v19 = vunpack.i.l.bf16 %v8266_v56  ;;  %v8238_v3 = vunpack.i.h.bf16 %v8236_v50  ;;  %v8171_v41 = vpop.permute.xlu1 %8170  ;;  %v8237_v31 = vunpack.i.l.bf16 %v8236_v50 }
 0x300   :  { %v8173_v0 = vunpack.i.h.bf16 %v8171_v41  ;;  %v8172_v51 = vunpack.i.l.bf16 %v8171_v41  ;;  %v15002_v6 = vmov %v15000_v49  ;;  %v15008_v41 = vld [vmem:[#allocation7_spill] sm:$0xff] }
 0x301   :  { %v1532_v47 = vsel %vm15001_vm9, %v15000_v49, %v8268_v26  ;;  %v1538_v42 = vsel %vm15003_vm4, %v8268_v26, %v15002_v6  ;;  %v1531_v56 = vsel %vm15005_vm6, %v15004_v8, %v8267_v19  ;;  %v1537_v50 = vsel %vm15007_vm2, %v8267_v19, %v15006_v37  ;;  %v15012_v8 = vld [vmem:[#allocation53_spill] sm:$0xff] }
 0x302   :  { %vm15009_vm10 = vnez %v15008_v41  ;;  %vm15011_vm9 = vnez %v15010_v48  ;;  %v15013_v18 = vunpack.i.h.bf16 %v15012_v8  ;;  %vm15014_vm4 = vcmp.lt.s32.totalorder %v9221_v28, 97 }
 0x303   :  { %v1547_v27 = vsel %vm15009_vm10, %v1538_v42, 0.0  ;;  %v1548_v49 = vsel %vm15011_vm9, %v1532_v47, 0.0  ;;  %v1545_v9 = vsel %vm15009_vm10, %v1537_v50, 0.0  ;;  %v1546_v26 = vsel %vm15011_vm9, %v1531_v56, 0.0  ;;  %vm15016_vm2 = vmmov %vm15014_vm4 }
 0x304   :  { %v1556_v6 = vpack.c.bf16 %v1548_v49, %v1547_v27  ;;  %v1555_v33 = vpack.c.bf16 %v1546_v26, %v1545_v9  ;;  %v2622_v13 = vsel %vm15014_vm4, %v15013_v18, %v8238_v3  ;;  %v15015_v19 = vmov %v15013_v18  ;;  %vm15020_vm6 = vmmov %vm15016_vm2  ;;  %8345 = vrot.lane.b32.xlu2 %v10445_v32, %s14948_s30 }
 0x305   :  { %v2628_v42 = vsel %vm15016_vm2, %v8238_v3, %v15015_v19  ;;  %v2635_v47 = vsel %vm9995_vm3, %v2622_v13, 0.0  ;;  %v15019_v56 = vunpack.i.l.bf16 %v15012_v8  ;;  %vm15022_vm4 = vmmov %vm15016_vm2  ;;  %8415 = vrot.lane.b32.xlu0 %v10477_v53, %s9029_s21  ;;  %v15023_v13 = vld [vmem:[#allocation56_spill] sm:$0xff]  ;;  %vm15025_vm2 = vcmp.lt.s32.totalorder %v9221_v28, 34  ;;  %8330 = vrot.lane.b32.xlu1 %v10445_v32, %s9025_s7 }
 0x306   :  { %v2636_v50 = vsel %vm9999_vm5, %v2628_v42, 0.0  ;;  %1562 = vst [vmem:[#allocation2 + $0x78] sm:$0xff] %v1556_v6  ;;  %v15024_v19 = vunpack.i.h.bf16 %v15023_v13 }
 0x307   :  { %v2621_v27 = vsel %vm15020_vm6, %v15019_v56, %v8237_v31  ;;  %v15021_v9 = vmov %v15019_v56  ;;  %v2646_v3 = vpack.c.bf16 %v2636_v50, %v2635_v47  ;;  %1561 = vst [vmem:[#allocation2 + $0x70] sm:$0xff] %v1555_v33  ;;  %vm15027_vm6 = vmmov %vm15025_vm2  ;;  %v15028_v50 = vunpack.i.l.bf16 %v15023_v13 }
 0x308   :  { %v2627_v18 = vsel %vm15022_vm4, %v8237_v31, %v15021_v9  ;;  %v2633_v49 = vsel %vm9995_vm3, %v2621_v27, 0.0  ;;  %v1410_v8 = vsel %vm15025_vm2, %v15024_v19, %v8173_v0  ;;  %v15026_v42 = vmov %v15024_v19  ;;  %vm15029_vm4 = vmmov %vm15025_vm2  ;;  %v8271_v27 = vpop.permute.xlu2 %8270  ;;  %v8251_v9 = vpop.permute.xlu0 %8250 }
 0x309   :  { %v2634_v26 = vsel %vm9999_vm5, %v2627_v18, 0.0  ;;  %v1416_v6 = vsel %vm15027_vm6, %v8173_v0, %v15026_v42  ;;  %v1424_v47 = vsel %vm9302_vm14, %v1410_v8, 0.0  ;;  %v1409_v56 = vsel %vm15029_vm4, %v15028_v50, %v8172_v51  ;;  %2652 = vst [vmem:[#allocation2 + $0x3f8] sm:$0xff] %v2646_v3  ;;  %v8176_v19 = vpop.permute.xlu1 %8175 }
 0x30a   :  { %v2645_v31 = vpack.c.bf16 %v2634_v26, %v2633_v49  ;;  %v1423_v33 = vsel %vm9298_vm13, %v1416_v6, 0.0  ;;  %v15030_v18 = vmov %v15028_v50  ;;  %v1422_v0 = vsel %vm9302_vm14, %v1409_v56, 0.0 }
 0x30b   :  { %v1415_v49 = vsel %vm15025_vm2, %v8172_v51, %v15030_v18  ;;  %v8273_v26 = vunpack.i.h.bf16 %v8271_v27  ;;  %v1434_v8 = vpack.c.bf16 %v1424_v47, %v1423_v33  ;;  %v8272_v50 = vunpack.i.l.bf16 %v8271_v27  ;;  %v15037_v33 = vld [vmem:[#allocation10_spill] sm:$0xff] }
 0x30c   :  { %2651 = vst [vmem:[#allocation2 + $0x3f0] sm:$0xff] %v2645_v31  ;;  %v1421_v42 = vsel %vm9298_vm13, %v1415_v49, 0.0  ;;  %v8253_v3 = vunpack.i.h.bf16 %v8251_v9  ;;  %v15031_v6 = vunpack.i.h.bf16 %v10473_v62  ;;  %vm15032_vm6 = vcmp.lt.s32.totalorder %v9221_v28, 31  ;;  %v15035_v31 = vld [vmem:[#allocation9_spill] sm:$0xff]  ;;  %8410 = vrot.lane.b32.xlu2 %v10477_v53, %s14943_s29 }
 0x30d   :  { %v1433_v30 = vpack.c.bf16 %v1422_v0, %v1421_v42  ;;  %vm15034_vm4 = vmmov %vm15032_vm6  ;;  %v8252_v18 = vunpack.i.l.bf16 %v8251_v9  ;;  %1440 = vst [vmem:[#allocation2 + $0x8] sm:$0xff] %v1434_v8  ;;  %vm15036_vm2 = vnez %v15035_v31  ;;  %vm15038_vm5 = vnez %v15037_v33  ;;  %8430 = vrot.lane.b32.xlu0 %v10477_v53, %s14955_s14  ;;  %8335 = vrot.lane.b32.xlu1 %v10417_v14, %s9025_s7 }
 0x30e   :  { %v1592_v13 = vsel %vm15032_vm6, %v15031_v6, %v8273_v26  ;;  %v15033_v51 = vmov %v15031_v6  ;;  %v15039_v49 = vunpack.i.l.bf16 %v10473_v62  ;;  %vm15040_vm3 = vmmov %vm15034_vm4  ;;  %v15199_v31 = vunpack.i.l.bf16 %v10527_v21 }
 0x30f   :  { %v1598_v56 = vsel %vm15034_vm4, %v8273_v26, %v15033_v51  ;;  %v1608_v27 = vsel %vm15038_vm5, %v1592_v13, 0.0  ;;  %vm15042_vm6 = vmmov %vm15040_vm3  ;;  %1439 = vst [vmem:[#allocation2] sm:$0xff] %v1433_v30  ;;  %v15043_v51 = vld [vmem:[#allocation54_spill] sm:$0xff]  ;;  %vm15045_vm4 = vcmp.lt.s32.totalorder %v9221_v28, 98 }
 0x310   :  { %v1607_v47 = vsel %vm15036_vm2, %v1598_v56, 0.0  ;;  %v1591_v0 = vsel %vm15040_vm3, %v15039_v49, %v8272_v50  ;;  %v15041_v42 = vmov %v15039_v49  ;;  %v15044_v13 = vunpack.i.h.bf16 %v15043_v51  ;;  %vm15047_vm3 = vmmov %vm15045_vm4  ;;  %v8326_v23 = vpop.permute.xlu0 %8325 }
 0x311   :  { %v1597_v6 = vsel %vm15042_vm6, %v8272_v50, %v15041_v42  ;;  %v1616_v26 = vpack.c.bf16 %v1608_v27, %v1607_v47  ;;  %v1606_v8 = vsel %vm15038_vm5, %v1591_v0, 0.0  ;;  %v15048_v50 = vld [vmem:[#allocation42_spill] sm:$0xff]  ;;  %v15049_v47 = vunpack.i.l.bf16 %v15043_v51  ;;  %vm15050_vm6 = vmmov %vm15047_vm3  ;;  %v15051_v42 = vld [vmem:[#allocation43_spill] sm:$0xff] }
 0x312   :  { %v1605_v9 = vsel %vm15036_vm2, %v1597_v6, 0.0  ;;  %v2562_v56 = vsel %vm15045_vm4, %v15044_v13, %v8253_v3  ;;  %v15046_v49 = vmov %v15044_v13  ;;  %v7408_v0 = vld [vmem:[#allocation2 + $0x74] sm:$0xf0]  ;;  %vm15052_vm4 = vnez %v15051_v42 }
 0x313   :  { %v1615_v37 = vpack.c.bf16 %v1606_v8, %v1605_v9  ;;  %v2568_v62 = vsel %vm15047_vm3, %v8253_v3, %v15046_v49  ;;  %v2575_v30 = vsel %vm10003_vm8, %v2562_v56, 0.0  ;;  %v2561_v27 = vsel %vm15050_vm6, %v15049_v47, %v8252_v18  ;;  %1622 = vst [vmem:[#allocation2 + $0xa8] sm:$0xff] %v1616_v26  ;;  %v6411_v56 = vld [vmem:[#allocation2 + $0x70] sm:$0xf] }
 0x314   :  { %v2576_v6 = vsel %vm15052_vm4, %v2568_v62, 0.0  ;;  %v15053_v3 = vmov %v15049_v47  ;;  %v2573_v8 = vsel %vm10003_vm8, %v2561_v27, 0.0  ;;  %v8178_v13 = vunpack.i.h.bf16 %v8176_v19  ;;  %v8276_v62 = vpop.permute.xlu2 %8275  ;;  %8425 = vrot.lane.b32.xlu2 %v10477_v53, %s14948_s30 }
 0x315   :  { %v2567_v9 = vsel %vm15047_vm3, %v8252_v18, %v15053_v3  ;;  %1621 = vst [vmem:[#allocation2 + $0xa0] sm:$0xff] %v1615_v37  ;;  %v2586_v49 = vpack.c.bf16 %v2576_v6, %v2575_v30  ;;  %v8177_v47 = vunpack.i.l.bf16 %v8176_v19  ;;  %v6412_v51 = vor.u32 %v7408_v0, %v6411_v56  ;;  %v8181_v30 = vpop.permute.xlu1 %8180  ;;  %8435 = vrot.lane.b32.xlu0 %v10445_v32, %s14955_s14 }
 0x316   :  { %v2574_v26 = vsel %vm15052_vm4, %v2567_v9, 0.0  ;;  %v15055_v18 = vunpack.i.h.bf16 %v15054_v5  ;;  %vm15056_vm6 = vcmp.lt.s32.totalorder %v9221_v28, 33  ;;  %v8278_v37 = vunpack.i.h.bf16 %v8276_v62  ;;  %8420 = vrot.lane.b32.xlu1 %v10477_v53, %s9025_s7 }
 0x317   :  { %v2585_v7 = vpack.c.bf16 %v2574_v26, %v2573_v8  ;;  %vm15058_vm3 = vmmov %vm15056_vm6  ;;  %2592 = vst [vmem:[#allocation2 + $0x3c8] sm:$0xff] %v2586_v49  ;;  %v15059_v6 = vunpack.i.l.bf16 %v15054_v5  ;;  %3960 = vmatpush.bf16.msra.mxu3 %v6412_v51  ;;  %v15063_v26 = vunpack.i.h.bf16 %v10487_v24  ;;  %v15067_v51 = vld [vmem:[#allocation13_spill] sm:$0xff] }
 0x318   :  { %v1470_v27 = vsel %vm15056_vm6, %v15055_v18, %v8178_v13  ;;  %v15057_v3 = vmov %v15055_v18  ;;  %vm15060_vm1 = vmmov %vm15058_vm3 }
 0x319   :  { %v1476_v61 = vsel %vm15058_vm3, %v8178_v13, %v15057_v3  ;;  %v1484_v0 = vsel %vm14998_vm11, %v1470_v27, 0.0  ;;  %v1469_v9 = vsel %vm15060_vm1, %v15059_v6, %v8177_v47  ;;  %v15061_v8 = vmov %v15059_v6  ;;  %vm15062_vm6 = vmmov %vm15060_vm1  ;;  %2591 = vst [vmem:[#allocation2 + $0x3c0] sm:$0xff] %v2585_v7 }
 0x31a   :  { %v1483_v19 = vsel %vm9306_vm15, %v1476_v61, 0.0  ;;  %v1475_v56 = vsel %vm15062_vm6, %v8177_v47, %v15061_v8  ;;  %v1482_v61 = vsel %vm14998_vm11, %v1469_v9, 0.0  ;;  %vm15064_vm3 = vcmp.lt.s32.totalorder %v9221_v28, 30 }
 0x31b   :  { %v1494_v13 = vpack.c.bf16 %v1484_v0, %v1483_v19  ;;  %v1481_v49 = vsel %vm9306_vm15, %v1475_v56, 0.0  ;;  %v1652_v18 = vsel %vm15064_vm3, %v15063_v26, %v8278_v37  ;;  %v15065_v5 = vmov %v15063_v26  ;;  %vm15066_vm1 = vmmov %vm15064_vm3  ;;  %v15069_v19 = vld [vmem:[#allocation12_spill] sm:$0xff] }
 0x31c   :  { %v1493_v27 = vpack.c.bf16 %v1482_v61, %v1481_v49  ;;  %v1658_v47 = vsel %vm15066_vm1, %v8278_v37, %v15065_v5  ;;  %vm15068_vm6 = vnez %v15067_v51  ;;  %v8277_v3 = vunpack.i.l.bf16 %v8276_v62  ;;  %vm15072_vm3 = vmmov %vm15066_vm1  ;;  %8445 = vrot.lane.b32.xlu2 %v10417_v14, %s14948_s30 }
 0x31d   :  { %v1668_v7 = vsel %vm15068_vm6, %v1652_v18, 0.0  ;;  %1500 = vst [vmem:[#allocation2 + $0x38] sm:$0xff] %v1494_v13  ;;  %vm15070_vm0 = vnez %v15069_v19  ;;  %v8328_v6 = vunpack.i.h.bf16 %v8326_v23  ;;  %v8327_v9 = vunpack.i.l.bf16 %v8326_v23 }
 0x31e   :  { %v1667_v0 = vsel %vm15070_vm0, %v1658_v47, 0.0  ;;  %v8183_v8 = vunpack.i.h.bf16 %v8181_v30  ;;  %1499 = vst [vmem:[#allocation2 + $0x30] sm:$0xff] %v1493_v27  ;;  %v15071_v49 = vunpack.i.l.bf16 %v10487_v24  ;;  %v8182_v62 = vunpack.i.l.bf16 %v8181_v30 }
 0x31f   :  { %v1676_v56 = vpack.c.bf16 %v1668_v7, %v1667_v0  ;;  %v15074_v18 = vunpack.i.h.bf16 %v10597_v35 }
 0x320   :  { %v1651_v61 = vsel %vm15072_vm3, %v15071_v49, %v8277_v3  ;;  %v15073_v37 = vmov %v15071_v49  ;;  %vm15077_vm3 = vmmov %vm15075_vm12  ;;  %v8351_v49 = vpop.permute.xlu0 %8350 }
 0x321   :  { %v1657_v26 = vsel %vm15066_vm1, %v8277_v3, %v15073_v37  ;;  %v1666_v13 = vsel %vm15068_vm6, %v1651_v61, 0.0  ;;  %v2564_v27 = vsel %vm15075_vm12, %v15074_v18, %v8328_v6  ;;  %v15076_v24 = vmov %v15074_v18  ;;  %1682 = vst [vmem:[#allocation2 + $0xd8] sm:$0xff] %v1676_v56  ;;  %vm15079_vm12 = vmmov %vm15077_vm3  ;;  %v11058_v18 = vpop.permute.xlu1 %8185 }
 0x322   :  { %v1665_v23 = vsel %vm15070_vm0, %v1657_v26, 0.0  ;;  %v2570_v5 = vsel %vm15077_vm3, %v8328_v6, %v15076_v24  ;;  %v2579_v47 = vsel %vm10003_vm8, %v2564_v27, 0.0  ;;  %v15078_v3 = vunpack.i.l.bf16 %v10597_v35  ;;  %v8281_v6 = vpop.permute.xlu2 %8280  ;;  %vm15081_vm1 = vmmov %vm15077_vm3 }
 0x323   :  { %v1675_v30 = vpack.c.bf16 %v1666_v13, %v1665_v23  ;;  %v2580_v7 = vsel %vm15052_vm4, %v2570_v5, 0.0  ;;  %v15082_v23 = vunpack.i.h.bf16 %v10475_v25  ;;  %vm15083_vm3 = vcmp.lt.s32.totalorder %v9221_v28, 32 }
 0x324   :  { %v2563_v0 = vsel %vm15079_vm12, %v15078_v3, %v8327_v9  ;;  %v2588_v61 = vpack.c.bf16 %v2580_v7, %v2579_v47  ;;  %v15080_v37 = vmov %v15078_v3  ;;  %vm15085_vm12 = vmmov %vm15083_vm3  ;;  %v15086_v5 = vunpack.i.l.bf16 %v10475_v25 }
 0x325   :  { %v2569_v56 = vsel %vm15081_vm1, %v8327_v9, %v15080_v37  ;;  %v2577_v26 = vsel %vm10003_vm8, %v2563_v0, 0.0  ;;  %v1530_v13 = vsel %vm15083_vm3, %v15082_v23, %v8183_v8  ;;  %1681 = vst [vmem:[#allocation2 + $0xd0] sm:$0xff] %v1675_v30  ;;  %v15084_v24 = vmov %v15082_v23  ;;  %vm15087_vm1 = vmmov %vm15083_vm3 }
 0x326   :  { %v2578_v27 = vsel %vm15052_vm4, %v2569_v56, 0.0  ;;  %v1536_v35 = vsel %vm15085_vm12, %v8183_v8, %v15084_v24  ;;  %v1544_v9 = vsel %vm15011_vm9, %v1530_v13, 0.0  ;;  %v1529_v47 = vsel %vm15087_vm1, %v15086_v5, %v8182_v62  ;;  %2594 = vst [vmem:[#allocation2 + $0x3d8] sm:$0xff] %v2588_v61  ;;  %vm15089_vm3 = vmmov %vm15087_vm1 }
 0x327   :  { %v2587_v7 = vpack.c.bf16 %v2578_v27, %v2577_v26  ;;  %v1543_v30 = vsel %vm15009_vm10, %v1536_v35, 0.0  ;;  %v15088_v3 = vmov %v15086_v5  ;;  %v1542_v8 = vsel %vm15011_vm9, %v1529_v47, 0.0 }
 0x328   :  { %v1535_v0 = vsel %vm15089_vm3, %v8182_v62, %v15088_v3  ;;  %v1554_v37 = vpack.c.bf16 %v1544_v9, %v1543_v30  ;;  %v8283_v23 = vunpack.i.h.bf16 %v8281_v6  ;;  %v8282_v13 = vunpack.i.l.bf16 %v8281_v6  ;;  %v15100_v3 = vld [vmem:[#allocation14_spill] sm:$0xff] }
 0x329   :  { %v1541_v56 = vsel %vm15009_vm10, %v1535_v0, 0.0  ;;  %2593 = vst [vmem:[#allocation2 + $0x3d0] sm:$0xff] %v2587_v7  ;;  %v8353_v26 = vunpack.i.h.bf16 %v8351_v49  ;;  %v8352_v27 = vunpack.i.l.bf16 %v8351_v49  ;;  %v8188_v24 = vunpack.i.h.bf16 %v11058_v18  ;;  %v15098_v7 = vld [vmem:[#allocation11_spill] sm:$0xff] }
 0x32a   :  { %v1553_v61 = vpack.c.bf16 %v1542_v8, %v1541_v56  ;;  %1560 = vst [vmem:[#allocation2 + $0x68] sm:$0xff] %v1554_v37  ;;  %v15090_v25 = vunpack.i.h.bf16 %v10501_v34  ;;  %vm15091_vm12 = vcmp.lt.s32.totalorder %v9221_v28, 18  ;;  %v15094_v5 = vunpack.i.l.bf16 %v10501_v34  ;;  %v15103_v34 = vld [vmem:[#allocation52_spill] sm:$0xff] }
 0x32b   :  { %vm15093_vm1 = vmmov %vm15091_vm12  ;;  %vm15099_vm8 = vnez %v15098_v7  ;;  %8450 = vrot.lane.b32.xlu0 %v15103_v34, %s15102_s0  ;;  %v8187_v59 = vunpack.i.l.bf16 %v11058_v18 }
 0x32c   :  { %v1712_v62 = vsel %vm15091_vm12, %v15090_v25, %v8283_v23  ;;  %v15092_v35 = vmov %v15090_v25  ;;  %vm15095_vm3 = vmmov %vm15093_vm1  ;;  %v15096_v49 = vmov %v15094_v5  ;;  %1559 = vst [vmem:[#allocation2 + $0x60] sm:$0xff] %v1553_v61  ;;  %vm15101_vm12 = vnez %v15100_v3 }
 0x32d   :  { %v1718_v9 = vsel %vm15093_vm1, %v8283_v23, %v15092_v35  ;;  %v1711_v6 = vsel %vm15095_vm3, %v15094_v5, %v8282_v13  ;;  %vm15097_vm4 = vmmov %vm15093_vm1  ;;  %v1728_v0 = vsel %vm15101_vm12, %v1712_v62, 0.0  ;;  %v15108_v35 = vld [vmem:[#allocation50_spill] sm:$0xff]  ;;  %v8356_v5 = vpop.permute.xlu0 %8355 }
 0x32e   :  { %v1717_v47 = vsel %vm15097_vm4, %v8282_v13, %v15096_v49  ;;  %v1727_v30 = vsel %vm15099_vm8, %v1718_v9, 0.0  ;;  %v1726_v37 = vsel %vm15101_vm12, %v1711_v6, 0.0  ;;  %v15104_v13 = vunpack.i.h.bf16 %v10499_v17  ;;  %8440 = vrot.lane.b32.xlu1 %v15108_v35, %s14948_s30  ;;  %v8286_v9 = vpop.permute.xlu2 %8285  ;;  %8460 = vrot.lane.b32.xlu2 %v15108_v35, %s14955_s14 }
 0x32f   :  { %v1725_v8 = vsel %vm15099_vm8, %v1717_v47, 0.0  ;;  %v1736_v56 = vpack.c.bf16 %v1728_v0, %v1727_v30  ;;  %vm15105_vm4 = vcmp.lt.s32.totalorder %v9221_v28, 34  ;;  %v15109_v47 = vunpack.i.l.bf16 %v10499_v17 }
 0x330   :  { %v1735_v23 = vpack.c.bf16 %v1726_v37, %v1725_v8  ;;  %v1414_v61 = vsel %vm15105_vm4, %v15104_v13, %v8353_v26  ;;  %v15106_v25 = vmov %v15104_v13  ;;  %vm15107_vm1 = vmmov %vm15105_vm4  ;;  %v11133_v8 = vpop.permute.xlu1 %8190  ;;  %v8357_v18 = vunpack.i.l.bf16 %v8356_v5 }
 0x331   :  { %v1420_v62 = vsel %vm15107_vm1, %v8353_v26, %v15106_v25  ;;  %v1432_v49 = vsel %vm9302_vm14, %v1414_v61, 0.0  ;;  %vm15110_vm3 = vmmov %vm15107_vm1  ;;  %v15111_v0 = vmov %v15109_v47  ;;  %1742 = vst [vmem:[#allocation2 + $0x108] sm:$0xff] %v1736_v56  ;;  %v15113_v25 = vunpack.i.h.bf16 %v10491_v44 }
 0x332   :  { %v1431_v6 = vsel %vm9298_vm13, %v1420_v62, 0.0  ;;  %v1413_v30 = vsel %vm15110_vm3, %v15109_v47, %v8352_v27  ;;  %vm15112_vm4 = vmmov %vm15107_vm1  ;;  %vm15114_vm1 = vcmp.lt.s32.totalorder %v9221_v28, 31  ;;  %1741 = vst [vmem:[#allocation2 + $0x100] sm:$0xff] %v1735_v23 }
 0x333   :  { %v1419_v26 = vsel %vm15112_vm4, %v8352_v27, %v15111_v0  ;;  %v1438_v37 = vpack.c.bf16 %v1432_v49, %v1431_v6  ;;  %v1430_v61 = vsel %vm9302_vm14, %v1413_v30, 0.0  ;;  %v1590_v62 = vsel %vm15114_vm1, %v15113_v25, %v8188_v24  ;;  %vm15116_vm3 = vmmov %vm15114_vm1  ;;  %8465 = vrot.lane.b32.xlu0 %v10417_v14, %s14955_s14 }
 0x334   :  { %v1429_v13 = vsel %vm9298_vm13, %v1419_v26, 0.0  ;;  %v15115_v47 = vmov %v15113_v25  ;;  %v1604_v56 = vsel %vm15038_vm5, %v1590_v62, 0.0  ;;  %v8288_v6 = vunpack.i.h.bf16 %v8286_v9  ;;  %vm15118_vm13 = vmmov %vm15114_vm1 }
 0x335   :  { %v1437_v17 = vpack.c.bf16 %v1430_v61, %v1429_v13  ;;  %v1596_v27 = vsel %vm15116_vm3, %v8188_v24, %v15115_v47  ;;  %1444 = vst [vmem:[#allocation2 + $0x28] sm:$0xff] %v1438_v37  ;;  %v8287_v49 = vunpack.i.l.bf16 %v8286_v9  ;;  %v8358_v30 = vunpack.i.h.bf16 %v8356_v5  ;;  %vm15120_vm14 = vmmov %vm15114_vm1  ;;  %v15125_v47 = vld [vmem:[#allocation15_spill] sm:$0xff] }
 0x336   :  { %v1603_v60 = vsel %vm15036_vm2, %v1596_v27, 0.0  ;;  %v15117_v0 = vunpack.i.l.bf16 %v10491_v44  ;;  %v15121_v61 = vunpack.i.h.bf16 %v10513_v39  ;;  %vm15122_vm4 = vcmp.lt.s32.totalorder %v9221_v28, 17  ;;  %v15127_v27 = vld [vmem:[#allocation16_spill] sm:$0xff]  ;;  %8455 = vrot.lane.b32.xlu1 %v10477_v53, %s15102_s0  ;;  %8475 = vrot.lane.b32.xlu2 %v14999_v22, %s15102_s0 }
 0x337   :  { %1443 = vst [vmem:[#allocation2 + $0x20] sm:$0xff] %v1437_v17  ;;  %v1614_v23 = vpack.c.bf16 %v1604_v56, %v1603_v60  ;;  %vm15124_vm1 = vmmov %vm15122_vm4  ;;  %vm15126_vm3 = vnez %v15125_v47  ;;  %v6245_v47 = vld [vmem:[#allocation4 + $0x30] sm:$0xf0] }
 0x338   :  { %v1589_v26 = vsel %vm15118_vm13, %v15117_v0, %v8187_v59  ;;  %v15119_v24 = vmov %v15117_v0  ;;  %v1772_v25 = vsel %vm15122_vm4, %v15121_v61, %v8288_v6  ;;  %v15123_v62 = vmov %v15121_v61  ;;  %vm15132_vm4 = vmmov %vm15124_vm1  ;;  %v11196_v61 = vpop.permute.xlu0 %8360 }
 0x339   :  { %v1595_v13 = vsel %vm15120_vm14, %v8187_v59, %v15119_v24  ;;  %v1602_v9 = vsel %vm15038_vm5, %v1589_v26, 0.0  ;;  %v1778_v44 = vsel %vm15124_vm1, %v8288_v6, %v15123_v62  ;;  %1620 = vst [vmem:[#allocation2 + $0x98] sm:$0xff] %v1614_v23  ;;  %vm15128_vm13 = vnez %v15127_v27  ;;  %vm15130_vm14 = vmmov %vm15124_vm1  ;;  %v12330_v27 = vld [vmem:[#allocation2 + $0x3f4] sm:$0xf0] }
 0x33a   :  { %v1601_v37 = vsel %vm15036_vm2, %v1595_v13, 0.0  ;;  %v1787_v5 = vsel %vm15126_vm3, %v1778_v44, 0.0  ;;  %v1788_v56 = vsel %vm15128_vm13, %v1772_v25, 0.0  ;;  %v15129_v59 = vunpack.i.l.bf16 %v10513_v39 }
 0x33b   :  { %v1613_v17 = vpack.c.bf16 %v1602_v9, %v1601_v37  ;;  %v1796_v6 = vpack.c.bf16 %v1788_v56, %v1787_v5  ;;  %v15133_v24 = vunpack.i.h.bf16 %v10511_v40  ;;  %vm15134_vm1 = vcmp.lt.s32.totalorder %v9221_v28, 33  ;;  %v7406_v37 = vld [vmem:[#allocation2 + $0x64] sm:$0xf0]  ;;  %v8291_v9 = vpop.permute.xlu2 %8290  ;;  %v6403_v56 = vld [vmem:[#allocation2 + $0x60] sm:$0xf]  ;;  %8480 = vrot.lane.b32.xlu0 %v10445_v32, %s15102_s0 }
 0x33c   :  { %v1771_v60 = vsel %vm15130_vm14, %v15129_v59, %v8287_v49  ;;  %v15131_v23 = vmov %v15129_v59  ;;  %vm15136_vm14 = vmmov %vm15134_vm1  ;;  %v15137_v44 = vunpack.i.l.bf16 %v10511_v40  ;;  %v11210_v59 = vpop.permute.xlu1 %8195  ;;  %v15140_v40 = vunpack.i.h.bf16 %v10503_v10 }
 0x33d   :  { %v1777_v0 = vsel %vm15132_vm4, %v8287_v49, %v15131_v23  ;;  %v1786_v26 = vsel %vm15128_vm13, %v1771_v60, 0.0  ;;  %v1474_v13 = vsel %vm15134_vm1, %v15133_v24, %v8358_v30  ;;  %1619 = vst [vmem:[#allocation2 + $0x90] sm:$0xff] %v1613_v17  ;;  %v15135_v49 = vmov %v15133_v24  ;;  %vm15138_vm4 = vmmov %vm15134_vm1 }
 0x33e   :  { %v1785_v39 = vsel %vm15126_vm3, %v1777_v0, 0.0  ;;  %v1480_v25 = vsel %vm15136_vm14, %v8358_v30, %v15135_v49  ;;  %v1492_v62 = vsel %vm14998_vm11, %v1474_v13, 0.0  ;;  %v1473_v5 = vsel %vm15138_vm4, %v15137_v44, %v8357_v18  ;;  %1802 = vst [vmem:[#allocation2 + $0x138] sm:$0xff] %v1796_v6  ;;  %8470 = vrot.lane.b32.xlu1 %v10477_v53, %s14941_s6  ;;  %8490 = vrot.lane.b32.xlu2 %v10477_v53, %s9026_s19 }
 0x33f   :  { %v1795_v17 = vpack.c.bf16 %v1786_v26, %v1785_v39  ;;  %v1491_v60 = vsel %vm9306_vm15, %v1480_v25, 0.0  ;;  %v15139_v23 = vmov %v15137_v44  ;;  %v1490_v0 = vsel %vm14998_vm11, %v1473_v5, 0.0 }
 0x340   :  { %v1479_v30 = vsel %vm15134_vm1, %v8357_v18, %v15139_v23  ;;  %v1498_v24 = vpack.c.bf16 %v1492_v62, %v1491_v60  ;;  %v8193_v49 = vunpack.i.h.bf16 %v11133_v8  ;;  %v8192_v6 = vunpack.i.l.bf16 %v11133_v8 }
 0x341   :  { %v1489_v13 = vsel %vm9306_vm15, %v1479_v30, 0.0  ;;  %1801 = vst [vmem:[#allocation2 + $0x130] sm:$0xff] %v1795_v17  ;;  %v6404_v39 = vor.u32 %v7406_v37, %v6403_v56  ;;  %v8293_v25 = vunpack.i.h.bf16 %v8291_v9  ;;  %v8292_v44 = vunpack.i.l.bf16 %v8291_v9 }
 0x342   :  { %v1497_v26 = vpack.c.bf16 %v1490_v0, %v1489_v13  ;;  %1504 = vst [vmem:[#allocation2 + $0x58] sm:$0xff] %v1498_v24  ;;  %vm15141_vm14 = vcmp.lt.s32.totalorder %v9221_v28, 30  ;;  %v15142_v18 = vmov %v15140_v40  ;;  %v15144_v62 = vunpack.i.l.bf16 %v10503_v10 }
 0x343   :  { %v1650_v2 = vsel %vm15141_vm14, %v15140_v40, %v8193_v49  ;;  %vm15143_vm11 = vmmov %vm15141_vm14  ;;  %3961 = vmatpush.bf16.msra.mxu3 %v6404_v39  ;;  %v15148_v10 = vunpack.i.h.bf16 %v10525_v4  ;;  %vm15149_vm1 = vcmp.lt.s32.totalorder %v9221_v28, 16  ;;  %v15156_v40 = vunpack.i.l.bf16 %v10525_v4  ;;  %8495 = vrot.lane.b32.xlu0 %v10445_v32, %s14941_s6 }
 0x344   :  { %v1656_v63 = vsel %vm15143_vm11, %v8193_v49, %v15142_v18  ;;  %vm15145_vm15 = vmmov %vm15143_vm11  ;;  %v15146_v37 = vmov %v15144_v62  ;;  %1503 = vst [vmem:[#allocation2 + $0x50] sm:$0xff] %v1497_v26  ;;  %v1664_v56 = vsel %vm15068_vm6, %v1650_v2, 0.0  ;;  %v15152_v49 = vld [vmem:[#allocation17_spill] sm:$0xff]  ;;  %v15154_v26 = vld [vmem:[#allocation18_spill] sm:$0xff] }
 0x345   :  { %v1649_v8 = vsel %vm15145_vm15, %v15144_v62, %v8192_v6  ;;  %vm15147_vm4 = vmmov %vm15143_vm11  ;;  %v1663_v5 = vsel %vm15070_vm0, %v1656_v63, 0.0  ;;  %v1832_v0 = vsel %vm15149_vm1, %v15148_v10, %v8293_v25  ;;  %v15150_v24 = vmov %v15148_v10  ;;  %v11274_v62 = vpop.permute.xlu0 %8365 }
 0x346   :  { %v1655_v9 = vsel %vm15147_vm4, %v8192_v6, %v15146_v37  ;;  %v1662_v60 = vsel %vm15068_vm6, %v1649_v8, 0.0  ;;  %v1674_v23 = vpack.c.bf16 %v1664_v56, %v1663_v5  ;;  %vm15151_vm14 = vmmov %vm15149_vm1  ;;  %vm15153_vm11 = vnez %v15152_v49  ;;  %8485 = vrot.lane.b32.xlu1 %v15103_v34, %s9026_s19  ;;  %8505 = vrot.lane.b32.xlu2 %v10417_v14, %s15102_s0 }
 0x347   :  { %v1661_v17 = vsel %vm15070_vm0, %v1655_v9, 0.0  ;;  %v1838_v13 = vsel %vm15151_vm14, %v8293_v25, %v15150_v24  ;;  %vm15155_vm15 = vnez %v15154_v26  ;;  %vm15157_vm4 = vmmov %vm15149_vm1  ;;  %v15158_v18 = vmov %v15156_v40  ;;  %v8296_v25 = vpop.permute.xlu2 %8295 }
 0x348   :  { %v1673_v30 = vpack.c.bf16 %v1662_v60, %v1661_v17  ;;  %v1847_v6 = vsel %vm15153_vm11, %v1838_v13, 0.0  ;;  %v1848_v39 = vsel %vm15155_vm15, %v1832_v0, 0.0  ;;  %v1831_v2 = vsel %vm15157_vm4, %v15156_v40, %v8292_v44  ;;  %1680 = vst [vmem:[#allocation2 + $0xc8] sm:$0xff] %v1674_v23 }
 0x349   :  { %v1837_v63 = vsel %vm15149_vm1, %v8292_v44, %v15158_v18  ;;  %v1856_v8 = vpack.c.bf16 %v1848_v39, %v1847_v6  ;;  %v1846_v4 = vsel %vm15155_vm15, %v1831_v2, 0.0  ;;  %v8363_v9 = vunpack.i.h.bf16 %v11196_v61  ;;  %v11281_v44 = vpop.permute.xlu1 %8200 }
 0x34a   :  { %v1845_v37 = vsel %vm15153_vm11, %v1837_v63, 0.0  ;;  %1679 = vst [vmem:[#allocation2 + $0xc0] sm:$0xff] %v1673_v30  ;;  %v8362_v56 = vunpack.i.l.bf16 %v11196_v61  ;;  %v8198_v17 = vunpack.i.h.bf16 %v11210_v59  ;;  %v8197_v60 = vunpack.i.l.bf16 %v11210_v59 }
 0x34b   :  { %v1855_v5 = vpack.c.bf16 %v1846_v4, %v1845_v37  ;;  %1862 = vst [vmem:[#allocation2 + $0x168] sm:$0xff] %v1856_v8  ;;  %v15159_v23 = vunpack.i.h.bf16 %v10523_v52  ;;  %vm15160_vm14 = vcmp.lt.s32.totalorder %v9221_v28, 32  ;;  %v8298_v13 = vunpack.i.h.bf16 %v8296_v25  ;;  %v15167_v8 = vld [vmem:[#allocation61_spill] sm:$0xff]  ;;  %8510 = vrot.lane.b32.xlu0 %v15103_v34, %s15203_s1 }
 0x34c   :  { %vm15162_vm4 = vmmov %vm15160_vm14  ;;  %v8297_v30 = vunpack.i.l.bf16 %v8296_v25  ;;  %v15163_v6 = vunpack.i.l.bf16 %v10523_v52  ;;  %v15168_v37 = vunpack.i.h.bf16 %v15167_v8  ;;  %v15172_v41 = vunpack.i.l.bf16 %v15167_v8 }
 0x34d   :  { %v1534_v10 = vsel %vm15160_vm14, %v15159_v23, %v8363_v9  ;;  %v15161_v0 = vmov %v15159_v23  ;;  %1861 = vst [vmem:[#allocation2 + $0x160] sm:$0xff] %v1855_v5  ;;  %vm15164_vm1 = vmmov %vm15162_vm4  ;;  %v11354_v8 = vpop.permute.xlu0 %8370 }
 0x34e   :  { %v1540_v24 = vsel %vm15162_vm4, %v8363_v9, %v15161_v0  ;;  %v1552_v59 = vsel %vm15011_vm9, %v1534_v10, 0.0  ;;  %v1533_v39 = vsel %vm15164_vm1, %v15163_v6, %v8362_v56  ;;  %v15165_v40 = vmov %v15163_v6  ;;  %vm15166_vm14 = vmmov %vm15164_vm1  ;;  %8500 = vrot.lane.b32.xlu1 %v15108_v35, %s15102_s0  ;;  %8520 = vrot.lane.b32.xlu2 %v14999_v22, %s15203_s1 }
 0x34f   :  { %v1551_v61 = vsel %vm15009_vm10, %v1540_v24, 0.0  ;;  %v1539_v2 = vsel %vm15166_vm14, %v8362_v56, %v15165_v40  ;;  %v1550_v25 = vsel %vm15011_vm9, %v1533_v39, 0.0  ;;  %vm15169_vm4 = vcmp.lt.s32.totalorder %v9221_v28, 18 }
 0x350   :  { %v1558_v18 = vpack.c.bf16 %v1552_v59, %v1551_v61  ;;  %v1549_v63 = vsel %vm15009_vm10, %v1539_v2, 0.0  ;;  %v1710_v4 = vsel %vm15169_vm4, %v15168_v37, %v8198_v17  ;;  %v15170_v5 = vmov %v15168_v37  ;;  %vm15171_vm1 = vmmov %vm15169_vm4  ;;  %v11336_v59 = vld [vmem:[#allocation2 + $0x40] sm:$0xf]  ;;  %v15180_v2 = vld [vmem:[#allocation20_spill] sm:$0xff] }
 0x351   :  { %v1557_v9 = vpack.c.bf16 %v1550_v25, %v1549_v63  ;;  %v1716_v52 = vsel %vm15171_vm1, %v8198_v17, %v15170_v5  ;;  %v1724_v56 = vsel %vm15101_vm12, %v1710_v4, 0.0  ;;  %vm15173_vm10 = vmmov %vm15171_vm1  ;;  %v15174_v10 = vmov %v15172_v41  ;;  %v7402_v63 = vld [vmem:[#allocation2 + $0x44] sm:$0xf0]  ;;  %v11352_v25 = vpop.permute.xlu2 %8300  ;;  %v15182_v4 = vld [vmem:[#allocation19_spill] sm:$0xff] }
 0x352   :  { %v1709_v48 = vsel %vm15173_vm10, %v15172_v41, %v8197_v60  ;;  %1564 = vst [vmem:[#allocation2 + $0x88] sm:$0xff] %v1558_v18  ;;  %v1723_v23 = vsel %vm15099_vm8, %v1716_v52, 0.0  ;;  %vm15175_vm9 = vmmov %vm15171_vm1  ;;  %v15176_v24 = vunpack.i.h.bf16 %v10537_v29  ;;  %vm15177_vm14 = vcmp.lt.s32.totalorder %v9221_v28, 15  ;;  %v6395_v41 = vld [vmem:[#allocation2 + $0x50] sm:$0xf] }
 0x353   :  { %v1715_v0 = vsel %vm15175_vm9, %v8197_v60, %v15174_v10  ;;  %v1722_v17 = vsel %vm15101_vm12, %v1709_v48, 0.0  ;;  %1563 = vst [vmem:[#allocation2 + $0x80] sm:$0xff] %v1557_v9  ;;  %v1734_v6 = vpack.c.bf16 %v1724_v56, %v1723_v23  ;;  %vm15179_vm4 = vmmov %vm15177_vm14  ;;  %vm15181_vm1 = vnez %v15180_v2  ;;  %v7404_v48 = vld [vmem:[#allocation2 + $0x54] sm:$0xf0]  ;;  %v11366_v23 = vpop.permute.xlu1 %8205  ;;  %8525 = vrot.lane.b32.xlu0 %v10445_v32, %s15203_s1 }
 0x354   :  { %v1892_v61 = vsel %vm15177_vm14, %v15176_v24, %v8298_v13  ;;  %v1721_v39 = vsel %vm15099_vm8, %v1715_v0, 0.0  ;;  %v15178_v60 = vmov %v15176_v24  ;;  %vm15183_vm10 = vnez %v15182_v4  ;;  %vm15185_vm9 = vmmov %vm15179_vm4  ;;  %v12328_v4 = vld [vmem:[#allocation2 + $0x3f0] sm:$0xf] }
 0x355   :  { %v1898_v40 = vsel %vm15179_vm4, %v8298_v13, %v15178_v60  ;;  %v1908_v18 = vsel %vm15181_vm1, %v1892_v61, 0.0  ;;  %v1733_v37 = vpack.c.bf16 %v1722_v17, %v1721_v39  ;;  %v15184_v13 = vunpack.i.l.bf16 %v10537_v29  ;;  %vm15187_vm14 = vmmov %vm15179_vm4  ;;  %1740 = vst [vmem:[#allocation2 + $0xf8] sm:$0xff] %v1734_v6 }
 0x356   :  { %v1907_v9 = vsel %vm15183_vm10, %v1898_v40, 0.0  ;;  %v8368_v24 = vunpack.i.h.bf16 %v11274_v62  ;;  %v8367_v29 = vunpack.i.l.bf16 %v11274_v62  ;;  %v8202_v39 = vunpack.i.l.bf16 %v11281_v44  ;;  %8515 = vrot.lane.b32.xlu1 %v10477_v53, %s15203_s1  ;;  %8535 = vrot.lane.b32.xlu2 %v10417_v14, %s15203_s1 }
 0x357   :  { %v1891_v5 = vsel %vm15185_vm9, %v15184_v13, %v8297_v30  ;;  %v15186_v52 = vmov %v15184_v13  ;;  %v1916_v10 = vpack.c.bf16 %v1908_v18, %v1907_v9  ;;  %1739 = vst [vmem:[#allocation2 + $0xf0] sm:$0xff] %v1733_v37  ;;  %v15188_v6 = vunpack.i.h.bf16 %v10535_v1 }
 0x358   :  { %v1897_v56 = vsel %vm15187_vm14, %v8297_v30, %v15186_v52  ;;  %v1906_v17 = vsel %vm15181_vm1, %v1891_v5, 0.0  ;;  %v8203_v30 = vunpack.i.h.bf16 %v11281_v44  ;;  %vm15189_vm4 = vcmp.lt.s32.totalorder %v9221_v28, 31 }
 0x359   :  { %v1905_v0 = vsel %vm15183_vm10, %v1897_v56, 0.0  ;;  %1922 = vst [vmem:[#allocation2 + $0x198] sm:$0xff] %v1916_v10  ;;  %v1594_v60 = vsel %vm15189_vm4, %v15188_v6, %v8368_v24  ;;  %v15190_v40 = vmov %v15188_v6  ;;  %vm15191_vm9 = vmmov %vm15189_vm4  ;;  %v6396_v9 = vor.u32 %v7404_v48, %v6395_v41 }
 0x35a   :  { %v1915_v61 = vpack.c.bf16 %v1906_v17, %v1905_v0  ;;  %v1600_v18 = vsel %vm15191_vm9, %v8368_v24, %v15190_v40  ;;  %v6388_v37 = vor.u32 %v7402_v63, %v11336_v59  ;;  %v1612_v44 = vsel %vm15038_vm5, %v1594_v60, 0.0  ;;  %vm15193_vm14 = vmmov %vm15189_vm4  ;;  %v11430_v40 = vpop.permute.xlu2 %8305 }
 0x35b   :  { %v1611_v62 = vsel %vm15036_vm2, %v1600_v18, 0.0  ;;  %v15192_v13 = vunpack.i.l.bf16 %v10535_v1  ;;  %v15195_v48 = vunpack.i.h.bf16 %v10527_v21  ;;  %vm15196_vm9 = vcmp.lt.s32.totalorder %v9221_v28, 17  ;;  %3962 = vmatpush.bf16.msra.mxu3 %v6396_v9  ;;  %v11432_v18 = vpop.permute.xlu0 %8375  ;;  %8540 = vrot.lane.b32.xlu0 %v15103_v34, %s15249_s2 }
 0x35c   :  { %1921 = vst [vmem:[#allocation2 + $0x190] sm:$0xff] %v1915_v61  ;;  %v1618_v41 = vpack.c.bf16 %v1612_v44, %v1611_v62  ;;  %v8303_v60 = vunpack.i.h.bf16 %v11352_v25  ;;  %v8302_v9 = vunpack.i.l.bf16 %v11352_v25  ;;  %v8373_v62 = vunpack.i.h.bf16 %v11354_v8  ;;  %v11438_v44 = vpop.permute.xlu1 %8210  ;;  %v15208_v25 = vld [vmem:[#allocation21_spill] sm:$0xff] }
 0x35d   :  { %v1593_v5 = vsel %vm15193_vm14, %v15192_v13, %v8367_v29  ;;  %v15194_v52 = vmov %v15192_v13  ;;  %v1770_v10 = vsel %vm15196_vm9, %v15195_v48, %v8203_v30  ;;  %v15197_v17 = vmov %v15195_v48  ;;  %vm15198_vm14 = vmmov %vm15196_vm9  ;;  %v15210_v48 = vld [vmem:[#allocation22_spill] sm:$0xff] }
 0x35e   :  { %v1599_v56 = vsel %vm15189_vm4, %v8367_v29, %v15194_v52  ;;  %v1610_v63 = vsel %vm15038_vm5, %v1593_v5, 0.0  ;;  %v1776_v1 = vsel %vm15198_vm14, %v8203_v30, %v15197_v17  ;;  %v1784_v24 = vsel %vm15128_vm13, %v1770_v10, 0.0  ;;  %1624 = vst [vmem:[#allocation2 + $0xb8] sm:$0xff] %v1618_v41  ;;  %8530 = vrot.lane.b32.xlu1 %v15108_v35, %s15203_s1  ;;  %8550 = vrot.lane.b32.xlu2 %v14999_v22, %s15249_s2 }
 0x35f   :  { %v1609_v59 = vsel %vm15036_vm2, %v1599_v56, 0.0  ;;  %vm15200_vm2 = vmmov %vm15196_vm9  ;;  %v1783_v61 = vsel %vm15126_vm3, %v1776_v1, 0.0  ;;  %v15201_v29 = vmov %v15199_v31  ;;  %3963 = vmatpush.bf16.msra.mxu3 %v6388_v37  ;;  %v15204_v5 = vunpack.i.h.bf16 %v10549_v43 }
 0x360   :  { %v1617_v0 = vpack.c.bf16 %v1610_v63, %v1609_v59  ;;  %v1769_v33 = vsel %vm15200_vm2, %v15199_v31, %v8202_v39  ;;  %vm15202_vm5 = vmmov %vm15200_vm2  ;;  %v1794_v21 = vpack.c.bf16 %v1784_v24, %v1783_v61  ;;  %vm15205_vm4 = vcmp.lt.s32.totalorder %v9221_v28, 14  ;;  %v6379_v24 = vld [vmem:[#allocation2 + $0x30] sm:$0xf] }
 0x361   :  { %v1775_v30 = vsel %vm15202_vm5, %v8202_v39, %v15201_v29  ;;  %v1782_v6 = vsel %vm15128_vm13, %v1769_v33, 0.0  ;;  %v1952_v52 = vsel %vm15205_vm4, %v15204_v5, %v8303_v60  ;;  %v15206_v56 = vmov %v15204_v5  ;;  %vm15207_vm9 = vmmov %vm15205_vm4  ;;  %v7424_v5 = vld [vmem:[#allocation2 + $0xf4] sm:$0xf0] }
 0x362   :  { %1623 = vst [vmem:[#allocation2 + $0xb0] sm:$0xff] %v1617_v0  ;;  %v1781_v39 = vsel %vm15126_vm3, %v1775_v30, 0.0  ;;  %v1958_v41 = vsel %vm15207_vm9, %v8303_v60, %v15206_v56  ;;  %v8372_v59 = vunpack.i.l.bf16 %v11354_v8  ;;  %vm15209_vm14 = vnez %v15208_v25  ;;  %vm15213_vm5 = vmmov %vm15205_vm4  ;;  %v7400_v30 = vld [vmem:[#allocation2 + $0x34] sm:$0xf0]  ;;  %v6531_v25 = vld [vmem:[#allocation2 + $0x160] sm:$0xf] }
 0x363   :  { %v1793_v13 = vpack.c.bf16 %v1782_v6, %v1781_v39  ;;  %1800 = vst [vmem:[#allocation2 + $0x128] sm:$0xff] %v1794_v21  ;;  %v1967_v63 = vsel %vm15209_vm14, %v1958_v41, 0.0  ;;  %vm15211_vm2 = vnez %v15210_v48  ;;  %v15212_v37 = vunpack.i.l.bf16 %v10549_v43  ;;  %8555 = vrot.lane.b32.xlu0 %v10445_v32, %s15249_s2 }
 0x364   :  { %v1968_v10 = vsel %vm15211_vm2, %v1952_v52, 0.0  ;;  %v15215_v61 = vunpack.i.h.bf16 %v10547_v15  ;;  %vm15216_vm9 = vcmp.lt.s32.totalorder %v9221_v28, 30  ;;  %v15219_v39 = vunpack.i.l.bf16 %v10547_v15 }
 0x365   :  { %v1951_v0 = vsel %vm15213_vm5, %v15212_v37, %v8302_v9  ;;  %v15214_v17 = vmov %v15212_v37  ;;  %1799 = vst [vmem:[#allocation2 + $0x120] sm:$0xff] %v1793_v13  ;;  %v1976_v8 = vpack.c.bf16 %v1968_v10, %v1967_v63  ;;  %vm15218_vm5 = vmmov %vm15216_vm9  ;;  %v6475_v13 = vld [vmem:[#allocation2 + $0xf0] sm:$0xf]  ;;  %v8208_v63 = vunpack.i.h.bf16 %v11366_v23 }
 0x366   :  { %v1957_v1 = vsel %vm15205_vm4, %v8302_v9, %v15214_v17  ;;  %v1966_v33 = vsel %vm15211_vm2, %v1951_v0, 0.0  ;;  %v1654_v29 = vsel %vm15216_vm9, %v15215_v61, %v8373_v62  ;;  %v15217_v43 = vmov %v15215_v61  ;;  %vm15220_vm4 = vmmov %vm15218_vm5  ;;  %v6363_v61 = vld [vmem:[#allocation2 + $0x10] sm:$0xf]  ;;  %8545 = vrot.lane.b32.xlu1 %v10477_v53, %s15249_s2  ;;  %8565 = vrot.lane.b32.xlu2 %v10417_v14, %s15249_s2 }
 0x367   :  { %v1965_v31 = vsel %vm15209_vm14, %v1957_v1, 0.0  ;;  %v1660_v60 = vsel %vm15218_vm5, %v8373_v62, %v15217_v43  ;;  %v1672_v21 = vsel %vm15068_vm6, %v1654_v29, 0.0  ;;  %v1653_v9 = vsel %vm15220_vm4, %v15219_v39, %v8372_v59  ;;  %1982 = vst [vmem:[#allocation2 + $0x1c8] sm:$0xff] %v1976_v8  ;;  %vm15222_vm9 = vmmov %vm15220_vm4  ;;  %v6371_v1 = vld [vmem:[#allocation2 + $0x20] sm:$0xf] }
 0x368   :  { %v1975_v6 = vpack.c.bf16 %v1966_v33, %v1965_v31  ;;  %v1671_v52 = vsel %vm15070_vm0, %v1660_v60, 0.0  ;;  %v15221_v56 = vmov %v15219_v39  ;;  %v1670_v62 = vsel %vm15068_vm6, %v1653_v9, 0.0  ;;  %v7398_v8 = vld [vmem:[#allocation2 + $0x24] sm:$0xf0]  ;;  %v7396_v39 = vld [vmem:[#allocation2 + $0x14] sm:$0xf0]  ;;  %v11521_v9 = vpop.permute.xlu1 %8215 }
 0x369   :  { %v1659_v41 = vsel %vm15222_vm9, %v8372_v59, %v15221_v56  ;;  %v1678_v10 = vpack.c.bf16 %v1672_v21, %v1671_v52  ;;  %v8207_v0 = vunpack.i.l.bf16 %v11366_v23  ;;  %v6380_v17 = vor.u32 %v7400_v30, %v6379_v24  ;;  %v11503_v23 = vpop.permute.xlu2 %8310  ;;  %v11505_v24 = vpop.permute.xlu0 %8380 }
 0x36a   :  { %1981 = vst [vmem:[#allocation2 + $0x1c0] sm:$0xff] %v1975_v6  ;;  %v1669_v37 = vsel %vm15070_vm0, %v1659_v41, 0.0  ;;  %v15223_v59 = vunpack.i.h.bf16 %v10539_v20  ;;  %vm15224_vm6 = vcmp.lt.s32.totalorder %v9221_v28, 16  ;;  %v6476_v33 = vor.u32 %v7424_v5, %v6475_v13 }
 0x36b   :  { %v1677_v15 = vpack.c.bf16 %v1670_v62, %v1669_v37  ;;  %vm15226_vm5 = vmmov %vm15224_vm6  ;;  %1684 = vst [vmem:[#allocation2 + $0xe8] sm:$0xff] %v1678_v10  ;;  %v15227_v6 = vunpack.i.l.bf16 %v10539_v20  ;;  %3964 = vmatpush.bf16.msra.mxu3 %v6380_v17  ;;  %v6372_v20 = vor.u32 %v7398_v8, %v6371_v1  ;;  %v8308_v41 = vunpack.i.h.bf16 %v11430_v40  ;;  %8570 = vrot.lane.b32.xlu0 %v15103_v34, %s9030_s17 }
 0x36c   :  { %v1830_v51 = vsel %vm15224_vm6, %v15223_v59, %v8208_v63  ;;  %v15225_v31 = vmov %v15223_v59  ;;  %vm15228_vm0 = vmmov %vm15226_vm5  ;;  %3984 = vmatpush.bf16.msra.mxu0 %v6476_v33  ;;  %v8307_v62 = vunpack.i.l.bf16 %v11430_v40  ;;  %v8377_v10 = vunpack.i.l.bf16 %v11432_v18 }
 0x36d   :  { %v1836_v19 = vsel %vm15226_vm5, %v8208_v63, %v15225_v31  ;;  %v1844_v30 = vsel %vm15155_vm15, %v1830_v51, 0.0  ;;  %v1829_v43 = vsel %vm15228_vm0, %v15227_v6, %v8207_v0  ;;  %v15229_v60 = vmov %v15227_v6  ;;  %vm15230_vm4 = vmmov %vm15228_vm0  ;;  %1683 = vst [vmem:[#allocation2 + $0xe0] sm:$0xff] %v1677_v15  ;;  %v15237_v51 = vld [vmem:[#allocation25_spill] sm:$0xff] }
 0x36e   :  { %v1843_v29 = vsel %vm15153_vm11, %v1836_v19, 0.0  ;;  %v1835_v21 = vsel %vm15230_vm4, %v8207_v0, %v15229_v60  ;;  %v1842_v52 = vsel %vm15155_vm15, %v1829_v43, 0.0  ;;  %v8378_v63 = vunpack.i.h.bf16 %v11432_v18  ;;  %v15239_v19 = vld [vmem:[#allocation26_spill] sm:$0xff]  ;;  %8560 = vrot.lane.b32.xlu1 %v15108_v35, %s15249_s2  ;;  %8580 = vrot.lane.b32.xlu2 %v14999_v22, %s9030_s17 }
 0x36f   :  { %v1854_v13 = vpack.c.bf16 %v1844_v30, %v1843_v29  ;;  %v1841_v5 = vsel %vm15153_vm11, %v1835_v21, 0.0  ;;  %v8213_v37 = vunpack.i.h.bf16 %v11438_v44  ;;  %v8212_v0 = vunpack.i.l.bf16 %v11438_v44  ;;  %3965 = vmatpush.bf16.msra.mxu3 %v6372_v20 }
 0x370   :  { %v1853_v56 = vpack.c.bf16 %v1842_v52, %v1841_v5  ;;  %v6364_v17 = vor.u32 %v7396_v39, %v6363_v61  ;;  %v15231_v15 = vunpack.i.h.bf16 %v10561_v58  ;;  %vm15232_vm9 = vcmp.lt.s32.totalorder %v9221_v28, 2 }
 0x371   :  { %1860 = vst [vmem:[#allocation2 + $0x158] sm:$0xff] %v1854_v13  ;;  %vm15234_vm6 = vmmov %vm15232_vm9  ;;  %v15235_v59 = vunpack.i.l.bf16 %v10561_v58  ;;  %v8313_v44 = vunpack.i.h.bf16 %v11503_v23  ;;  %vm15238_vm0 = vnez %v15237_v51  ;;  %vm15240_vm4 = vnez %v15239_v19  ;;  %v15388_v19 = vld [vmem:[#allocation34_spill] sm:$0xff] }
 0x372   :  { %1859 = vst [vmem:[#allocation2 + $0x150] sm:$0xff] %v1853_v56  ;;  %v2012_v1 = vsel %vm15232_vm9, %v15231_v15, %v8308_v41  ;;  %v15233_v8 = vmov %v15231_v15  ;;  %vm15236_vm5 = vmmov %vm15234_vm6  ;;  %v15243_v60 = vunpack.i.h.bf16 %v10559_v11  ;;  %v15247_v20 = vunpack.i.l.bf16 %v10559_v11 }
 0x373   :  { %v2018_v40 = vsel %vm15234_vm6, %v8308_v41, %v15233_v8  ;;  %v2011_v18 = vsel %vm15236_vm5, %v15235_v59, %v8307_v62  ;;  %v2028_v33 = vsel %vm15240_vm4, %v2012_v1, 0.0  ;;  %v15241_v61 = vmov %v15235_v59  ;;  %vm15242_vm9 = vmmov %vm15236_vm5  ;;  %v11578_v41 = vpop.permute.xlu2 %8320  ;;  %3966 = vmatpush.bf16.msra.mxu3 %v6364_v17  ;;  %8585 = vrot.lane.b32.xlu0 %v10445_v32, %s9030_s17 }
 0x374   :  { %v2027_v31 = vsel %vm15238_vm0, %v2018_v40, 0.0  ;;  %v2017_v29 = vsel %vm15242_vm9, %v8307_v62, %v15241_v61  ;;  %v2026_v30 = vsel %vm15240_vm4, %v2011_v18, 0.0  ;;  %vm15244_vm6 = vcmp.lt.s32.totalorder %v9221_v28, 18  ;;  %v11580_v62 = vpop.permute.xlu0 %8385  ;;  %v6355_v18 = vld [vmem:[#allocation2] sm:$0xf] }
 0x375   :  { %v2036_v6 = vpack.c.bf16 %v2028_v33, %v2027_v31  ;;  %v2025_v43 = vsel %vm15238_vm0, %v2017_v29, 0.0  ;;  %v1714_v21 = vsel %vm15244_vm6, %v15243_v60, %v8378_v63  ;;  %v15245_v39 = vmov %v15243_v60  ;;  %vm15246_vm5 = vmmov %vm15244_vm6  ;;  %v7394_v31 = vld [vmem:[#allocation2 + $0x4] sm:$0xf0]  ;;  %v11592_v33 = vpop.permute.xlu1 %8220 }
 0x376   :  { %v1720_v58 = vsel %vm15246_vm5, %v8378_v63, %v15245_v39  ;;  %v2035_v13 = vpack.c.bf16 %v2026_v30, %v2025_v43  ;;  %v1732_v52 = vsel %vm15101_vm12, %v1714_v21, 0.0  ;;  %vm15248_vm9 = vmmov %vm15246_vm5  ;;  %v15250_v15 = vmov %v15247_v20  ;;  %8575 = vrot.lane.b32.xlu1 %v10477_v53, %s9030_s17  ;;  %8595 = vrot.lane.b32.xlu2 %v10477_v53, %s15343_s3 }
 0x377   :  { %v1731_v5 = vsel %vm15099_vm8, %v1720_v58, 0.0  ;;  %v1713_v56 = vsel %vm15248_vm9, %v15247_v20, %v8377_v10  ;;  %2042 = vst [vmem:[#allocation2 + $0x1f8] sm:$0xff] %v2036_v6  ;;  %vm15251_vm6 = vmmov %vm15246_vm5  ;;  %v15252_v40 = vunpack.i.h.bf16 %v10551_v38  ;;  %vm15253_vm5 = vcmp.lt.s32.totalorder %v9221_v28, 15 }
 0x378   :  { %v1738_v63 = vpack.c.bf16 %v1732_v52, %v1731_v5  ;;  %v1719_v1 = vsel %vm15251_vm6, %v8377_v10, %v15250_v15  ;;  %v1730_v8 = vsel %vm15101_vm12, %v1713_v56, 0.0  ;;  %2041 = vst [vmem:[#allocation2 + $0x1f0] sm:$0xff] %v2035_v13  ;;  %vm15255_vm9 = vmmov %vm15253_vm5  ;;  %v15256_v29 = vunpack.i.l.bf16 %v10551_v38  ;;  %v15264_v52 = vld [vmem:[#allocation24_spill] sm:$0xff] }
 0x379   :  { %v1890_v59 = vsel %vm15253_vm5, %v15252_v40, %v8213_v37  ;;  %v1729_v11 = vsel %vm15099_vm8, %v1719_v1, 0.0  ;;  %v15254_v61 = vmov %v15252_v40  ;;  %vm15257_vm12 = vmmov %vm15253_vm5  ;;  %v6356_v39 = vor.u32 %v7394_v31, %v6355_v18 }
 0x37a   :  { %v1896_v3 = vsel %vm15255_vm9, %v8213_v37, %v15254_v61  ;;  %v1904_v10 = vsel %vm15181_vm1, %v1890_v59, 0.0  ;;  %v1889_v17 = vsel %vm15257_vm12, %v15256_v29, %v8212_v0  ;;  %1744 = vst [vmem:[#allocation2 + $0x118] sm:$0xff] %v1738_v63  ;;  %v1737_v30 = vpack.c.bf16 %v1730_v8, %v1729_v11  ;;  %vm15259_vm8 = vmmov %vm15253_vm5  ;;  %v15266_v63 = vld [vmem:[#allocation23_spill] sm:$0xff] }
 0x37b   :  { %v1903_v7 = vsel %vm15183_vm10, %v1896_v3, 0.0  ;;  %v15258_v6 = vmov %v15256_v29  ;;  %v1902_v43 = vsel %vm15181_vm1, %v1889_v17, 0.0  ;;  %v15260_v58 = vunpack.i.h.bf16 %v10573_v12  ;;  %3967 = vmatpush.bf16.msra.mxu3 %v6356_v39  ;;  %v7368_v17 = vld [vmem:[#allocation4 + $0x24] sm:$0xf0]  ;;  %v6459_v39 = vld [vmem:[#allocation2 + $0xd0] sm:$0xf]  ;;  %8600 = vrot.lane.b32.xlu0 %v14999_v22, %s15343_s3 }
 0x37c   :  { %v1895_v37 = vsel %vm15259_vm8, %v8212_v0, %v15258_v6  ;;  %v1914_v60 = vpack.c.bf16 %v1904_v10, %v1903_v7  ;;  %vm15261_vm6 = vcmp.lt.s32.totalorder %v9221_v28, 1  ;;  %1743 = vst [vmem:[#allocation2 + $0x110] sm:$0xff] %v1737_v30  ;;  %vm15265_vm9 = vnez %v15264_v52  ;;  %v11659_v30 = vpop.permute.xlu2 %8340  ;;  %v11661_v7 = vpop.permute.xlu0 %8390 }
 0x37d   :  { %v1901_v21 = vsel %vm15183_vm10, %v1895_v37, 0.0  ;;  %v2072_v13 = vsel %vm15261_vm6, %v15260_v58, %v8313_v44  ;;  %v15262_v38 = vmov %v15260_v58  ;;  %vm15263_vm5 = vmmov %vm15261_vm6  ;;  %v8312_v56 = vunpack.i.l.bf16 %v11503_v23  ;;  %v11671_v58 = vpop.permute.xlu1 %8225 }
 0x37e   :  { %v1913_v5 = vpack.c.bf16 %v1902_v43, %v1901_v21  ;;  %v2078_v0 = vsel %vm15263_vm5, %v8313_v44, %v15262_v38  ;;  %v2088_v20 = vsel %vm15265_vm9, %v2072_v13, 0.0  ;;  %1920 = vst [vmem:[#allocation2 + $0x188] sm:$0xff] %v1914_v60  ;;  %vm15267_vm12 = vnez %v15266_v63  ;;  %vm15269_vm8 = vmmov %vm15263_vm5  ;;  %8590 = vrot.lane.b32.xlu1 %v15103_v34, %s15343_s3  ;;  %8610 = vrot.lane.b32.xlu2 %v15108_v35, %s15343_s3 }
 0x37f   :  { %v2087_v15 = vsel %vm15267_vm12, %v2078_v0, 0.0  ;;  %v8383_v1 = vunpack.i.h.bf16 %v11505_v24  ;;  %v8382_v8 = vunpack.i.l.bf16 %v11505_v24  ;;  %v8218_v40 = vunpack.i.h.bf16 %v11521_v9  ;;  %vm15271_vm6 = vmmov %vm15263_vm5 }
 0x380   :  { %1919 = vst [vmem:[#allocation2 + $0x180] sm:$0xff] %v1913_v5  ;;  %v2096_v59 = vpack.c.bf16 %v2088_v20, %v2087_v15  ;;  %v15268_v44 = vunpack.i.l.bf16 %v10573_v12  ;;  %v8217_v11 = vunpack.i.l.bf16 %v11521_v9  ;;  %v15272_v3 = vunpack.i.h.bf16 %v10571_v55  ;;  %v6235_v9 = vld [vmem:[#allocation4] sm:$0xf]  ;;  %v6467_v15 = vld [vmem:[#allocation2 + $0xe0] sm:$0xf] }
 0x381   :  { %vm15273_vm5 = vcmp.lt.s32.totalorder %v9221_v28, 17  ;;  %v15276_v60 = vunpack.i.l.bf16 %v10571_v55  ;;  %v15279_v20 = vunpack.i.h.bf16 %v10563_v57 }
 0x382   :  { %v2071_v18 = vsel %vm15269_vm8, %v15268_v44, %v8312_v56  ;;  %v15270_v23 = vmov %v15268_v44  ;;  %v1774_v10 = vsel %vm15273_vm5, %v15272_v3, %v8383_v1  ;;  %v15274_v12 = vmov %v15272_v3  ;;  %vm15275_vm8 = vmmov %vm15273_vm5  ;;  %2102 = vst [vmem:[#allocation2 + $0x228] sm:$0xff] %v2096_v59 }
 0x383   :  { %v2077_v31 = vsel %vm15271_vm6, %v8312_v56, %v15270_v23  ;;  %v2086_v61 = vsel %vm15265_vm9, %v2071_v18, 0.0  ;;  %v1780_v29 = vsel %vm15275_vm8, %v8383_v1, %v15274_v12  ;;  %v1792_v43 = vsel %vm15128_vm13, %v1774_v10, 0.0  ;;  %vm15277_vm6 = vmmov %vm15273_vm5  ;;  %v7422_v1 = vld [vmem:[#allocation2 + $0xe4] sm:$0xf0]  ;;  %8615 = vrot.lane.b32.xlu0 %v10417_v14, %s15343_s3 }
 0x384   :  { %v2085_v24 = vsel %vm15267_vm12, %v2077_v31, 0.0  ;;  %v1791_v37 = vsel %vm15126_vm3, %v1780_v29, 0.0  ;;  %v1773_v21 = vsel %vm15277_vm6, %v15276_v60, %v8382_v8  ;;  %v15278_v5 = vmov %v15276_v60  ;;  %v7420_v31 = vld [vmem:[#allocation2 + $0xd4] sm:$0xf0] }
 0x385   :  { %v2095_v6 = vpack.c.bf16 %v2086_v61, %v2085_v24  ;;  %v1798_v13 = vpack.c.bf16 %v1792_v43, %v1791_v37  ;;  %v1779_v38 = vsel %vm15273_vm5, %v8382_v8, %v15278_v5  ;;  %v1790_v0 = vsel %vm15128_vm13, %v1773_v21, 0.0 }
 0x386   :  { %vm15280_vm8 = vcmp.lt.s32.totalorder %v9221_v28, 14  ;;  %v1789_v55 = vsel %vm15126_vm3, %v1779_v38, 0.0  ;;  %v15281_v59 = vmov %v15279_v20  ;;  %v15283_v18 = vunpack.i.l.bf16 %v10563_v57  ;;  %8605 = vrot.lane.b32.xlu1 %v10445_v32, %s15343_s3  ;;  %v3020_v32 = vld [vmem:[%s14393_s8 + $0x18] sm:$0xff] }
 0x387   :  { %v1950_v56 = vsel %vm15280_vm8, %v15279_v20, %v8218_v40  ;;  %2101 = vst [vmem:[#allocation2 + $0x220] sm:$0xff] %v2095_v6  ;;  %vm15282_vm6 = vmmov %vm15280_vm8  ;;  %v1797_v24 = vpack.c.bf16 %v1790_v0, %v1789_v55  ;;  %v11707_v6 = vor.u32 %v7368_v17, %v6235_v9  ;;  %v6468_v37 = vor.u32 %v7422_v1, %v6467_v15  ;;  %v11734_v15 = vpop.permute.xlu0 %8395  ;;  %v15295_v55 = vld [vmem:[#allocation29_spill] sm:$0xff] }
 0x388   :  { %v1956_v8 = vsel %vm15282_vm6, %v8218_v40, %v15281_v59  ;;  %v1964_v44 = vsel %vm15211_vm2, %v1950_v56, 0.0  ;;  %vm15284_vm5 = vmmov %vm15282_vm6  ;;  %1804 = vst [vmem:[#allocation2 + $0x148] sm:$0xff] %v1798_v13  ;;  %v15285_v3 = vmov %v15283_v18  ;;  %v6460_v60 = vor.u32 %v7420_v31, %v6459_v39  ;;  %v11732_v56 = vpop.permute.xlu2 %8345  ;;  %3040 = vperm.xlu2 %7898, %v3020_v32  }
 0x389   :  { %v1949_v23 = vsel %vm15284_vm5, %v15283_v18, %v8217_v11  ;;  %v1963_v61 = vsel %vm15209_vm14, %v1956_v8, 0.0  ;;  %vm15286_vm8 = vmmov %vm15284_vm5  ;;  %1803 = vst [vmem:[#allocation2 + $0x140] sm:$0xff] %v1797_v24  ;;  %v8323_v21 = vunpack.i.h.bf16 %v11578_v41  ;;  %v8322_v57 = vunpack.i.l.bf16 %v11578_v41  ;;  %3968 = vmatmul.bf16.vlgmr.msra.gmra.mxu3 %v11707_v6  ;;  %3985 = vmatpush.bf16.msra.mxu0 %v6468_v37 }
 0x38a   :  { %v1955_v10 = vsel %vm15286_vm8, %v8217_v11, %v15285_v3  ;;  %v1962_v40 = vsel %vm15211_vm2, %v1949_v23, 0.0  ;;  %v1974_v12 = vpack.c.bf16 %v1964_v44, %v1963_v61  ;;  %v8388_v11 = vunpack.i.h.bf16 %v11580_v62 }
 0x38b   :  { %v1961_v29 = vsel %vm15209_vm14, %v1955_v10, 0.0  ;;  %v8387_v13 = vunpack.i.l.bf16 %v11580_v62  ;;  %v8223_v5 = vunpack.i.h.bf16 %v11592_v33  ;;  %v8222_v9 = vunpack.i.l.bf16 %v11592_v33  ;;  %v6451_v10 = vld [vmem:[#allocation2 + $0xc0] sm:$0xf] }
 0x38c   :  { %v1973_v43 = vpack.c.bf16 %v1962_v40, %v1961_v29  ;;  %1980 = vst [vmem:[#allocation2 + $0x1b8] sm:$0xff] %v1974_v12  ;;  %v15287_v17 = vunpack.i.h.bf16 %v10639_v36  ;;  %vm15288_vm6 = vcmp.lt.s32.totalorder %v9221_v28, 114  ;;  %v15291_v0 = vunpack.i.l.bf16 %v10639_v36  ;;  %v11748_v36 = vpop.permute.xlu1 %8230  ;;  %v7418_v40 = vld [vmem:[#allocation2 + $0xc4] sm:$0xf0] }
 0x38d   :  { %vm15290_vm5 = vmmov %vm15288_vm6  ;;  %v15297_v31 = vunpack.i.h.bf16 %v10583_v45  ;;  %3986 = vmatpush.bf16.msra.mxu0 %v6460_v60  ;;  %v15301_v37 = vunpack.i.l.bf16 %v10583_v45  ;;  %v6603_v45 = vld [vmem:[#allocation2 + $0x1f0] sm:$0xf] }
 0x38e   :  { %1979 = vst [vmem:[#allocation2 + $0x1b0] sm:$0xff] %v1973_v43  ;;  %v2264_v39 = vsel %vm15288_vm6, %v15287_v17, %v8323_v21  ;;  %v15289_v41 = vmov %v15287_v17  ;;  %vm15292_vm8 = vmmov %vm15290_vm5  ;;  %v15293_v20 = vmov %v15291_v0  ;;  %vm15296_vm6 = vnez %v15295_v55  ;;  %v6443_v17 = vld [vmem:[#allocation2 + $0xb0] sm:$0xf] }
 0x38f   :  { %v2270_v38 = vsel %vm15290_vm5, %v8323_v21, %v15289_v41  ;;  %v2263_v62 = vsel %vm15292_vm8, %v15291_v0, %v8322_v57  ;;  %vm15294_vm13 = vmmov %vm15290_vm5  ;;  %v2279_v1 = vsel %vm9729_vm7, %v2264_v39, 0.0  ;;  %v15299_v61 = vmov %v15297_v31  ;;  %v7416_v39 = vld [vmem:[#allocation2 + $0xb4] sm:$0xf0] }
 0x390   :  { %v2269_v33 = vsel %vm15294_vm13, %v8322_v57, %v15293_v20  ;;  %v2280_v59 = vsel %vm15296_vm6, %v2270_v38, 0.0  ;;  %v2277_v8 = vsel %vm9729_vm7, %v2263_v62, 0.0  ;;  %vm15298_vm13 = vcmp.lt.s32.totalorder %v9221_v28, 16 }
 0x391   :  { %v2278_v44 = vsel %vm15296_vm6, %v2269_v33, 0.0  ;;  %v2288_v18 = vpack.c.bf16 %v2280_v59, %v2279_v1  ;;  %v1834_v24 = vsel %vm15298_vm13, %v15297_v31, %v8388_v11  ;;  %vm15300_vm5 = vmmov %vm15298_vm13  ;;  %v15303_v21 = vmov %v15301_v37  ;;  %v7414_v31 = vld [vmem:[#allocation2 + $0xa4] sm:$0xf0] }
 0x392   :  { %v2287_v23 = vpack.c.bf16 %v2278_v44, %v2277_v8  ;;  %v1840_v3 = vsel %vm15300_vm5, %v8388_v11, %v15299_v61  ;;  %v1852_v29 = vsel %vm15155_vm15, %v1834_v24, 0.0  ;;  %vm15302_vm8 = vmmov %vm15300_vm5  ;;  %v7456_v11 = vld [vmem:[#allocation2 + $0x1f4] sm:$0xf0]  ;;  %v15305_v0 = vunpack.i.h.bf16 %v10575_v46  ;;  %v6275_v44 = vld [vmem:[#allocation4 + $0x50] sm:$0xf] }
 0x393   :  { %v1851_v12 = vsel %vm15153_vm11, %v1840_v3, 0.0  ;;  %v1833_v43 = vsel %vm15302_vm8, %v15301_v37, %v8387_v13  ;;  %vm15304_vm13 = vmmov %vm15300_vm5  ;;  %2294 = vst [vmem:[#allocation2 + $0x2e8] sm:$0xff] %v2288_v18  ;;  %vm15306_vm5 = vcmp.lt.s32.totalorder %v9221_v28, 2  ;;  %v15309_v59 = vunpack.i.l.bf16 %v10575_v46  ;;  %v6435_v18 = vld [vmem:[#allocation2 + $0xa0] sm:$0xf] }
 0x394   :  { %v1839_v57 = vsel %vm15304_vm13, %v8387_v13, %v15303_v21  ;;  %v1858_v60 = vpack.c.bf16 %v1852_v29, %v1851_v12  ;;  %v1850_v38 = vsel %vm15155_vm15, %v1833_v43, 0.0  ;;  %v2010_v62 = vsel %vm15306_vm5, %v15305_v0, %v8223_v5  ;;  %2293 = vst [vmem:[#allocation2 + $0x2e0] sm:$0xff] %v2287_v23  ;;  %vm15308_vm8 = vmmov %vm15306_vm5  ;;  %v7378_v12 = vld [vmem:[#allocation4 + $0x74] sm:$0xf0] }
 0x395   :  { %v1849_v41 = vsel %vm15153_vm11, %v1839_v57, 0.0  ;;  %v15307_v13 = vmov %v15305_v0  ;;  %v2024_v1 = vsel %vm15240_vm4, %v2010_v62, 0.0  ;;  %vm15310_vm13 = vmmov %vm15306_vm5  ;;  %v15311_v24 = vmov %v15309_v59  ;;  %v11801_v57 = vld [vmem:[#allocation2 + $0x90] sm:$0xf] }
 0x396   :  { %v1857_v20 = vpack.c.bf16 %v1850_v38, %v1849_v41  ;;  %v2016_v33 = vsel %vm15308_vm8, %v8223_v5, %v15307_v13  ;;  %v2009_v8 = vsel %vm15310_vm13, %v15309_v59, %v8222_v9  ;;  %1864 = vst [vmem:[#allocation2 + $0x178] sm:$0xff] %v1858_v60  ;;  %v2015_v5 = vsel %vm15306_vm5, %v8222_v9, %v15311_v24  ;;  %v11803_v60 = vld [vmem:[#allocation2 + $0x94] sm:$0xf0]  ;;  %v11809_v38 = vpop.permute.xlu0 %8400 }
 0x397   :  { %v2023_v23 = vsel %vm15238_vm0, %v2016_v33, 0.0  ;;  %v2022_v61 = vsel %vm15240_vm4, %v2009_v8, 0.0  ;;  %v6452_v3 = vor.u32 %v7418_v40, %v6451_v10  ;;  %v8163_v29 = vunpack.i.h.bf16 %v10794_v16  ;;  %v11807_v40 = vpop.permute.xlu2 %8410 }
 0x398   :  { %1863 = vst [vmem:[#allocation2 + $0x170] sm:$0xff] %v1857_v20  ;;  %v2034_v37 = vpack.c.bf16 %v2024_v1, %v2023_v23  ;;  %v2021_v43 = vsel %vm15238_vm0, %v2015_v5, 0.0  ;;  %v6604_v21 = vor.u32 %v7456_v11, %v6603_v45  ;;  %v8162_v46 = vunpack.i.l.bf16 %v10794_v16  ;;  %v3021_v16 = vld [vmem:[%s14393_s8 + $0x20] sm:$0xff] }
 0x399   :  { %v2033_v9 = vpack.c.bf16 %v2022_v61, %v2021_v43  ;;  %3987 = vmatpush.bf16.msra.mxu0 %v6452_v3  ;;  %v6444_v41 = vor.u32 %v7416_v39, %v6443_v17  ;;  %v8393_v10 = vunpack.i.h.bf16 %v11661_v7  ;;  %v8392_v0 = vunpack.i.l.bf16 %v11661_v7  ;;  %v11818_v17 = vpop.permute.xlu1 %8240  ;;  %v15313_v39 = vld [vmem:[#allocation64_spill] sm:$0xff]  ;;  %v15322_v3 = vld [vmem:[#allocation63_spill] sm:$0xff]  ;;  %3045 = vperm.xlu2 %7898, %v3021_v16  }
 0x39a   :  { %2040 = vst [vmem:[#allocation2 + $0x1e8] sm:$0xff] %v2034_v37  ;;  %4032 = vmatpush.bf16.msra.mxu2 %v6604_v21  ;;  %v8228_v11 = vunpack.i.h.bf16 %v11671_v58  ;;  %v8227_v62 = vunpack.i.l.bf16 %v11671_v58  ;;  %v11814_v45 = vor.u32 %v7378_v12, %v6275_v44  ;;  %v15314_v20 = vunpack.i.h.bf16 %v15313_v39 }
 0x39b   :  { %2039 = vst [vmem:[#allocation2 + $0x1e0] sm:$0xff] %v2033_v9  ;;  %vm15315_vm8 = vcmp.lt.s32.totalorder %v9221_v28, 15  ;;  %v6436_v1 = vor.u32 %v7414_v31, %v6435_v18  ;;  %v6428_v58 = vor.u32 %v11803_v60, %v11801_v57  ;;  %v15318_v44 = vunpack.i.l.bf16 %v15313_v39 }
 0x39c   :  { %15312 = vst [vmem:[#allocation51_spill] sm:$0xff] %v11814_v45  ;;  %v1894_v13 = vsel %vm15315_vm8, %v15314_v20, %v8393_v10  ;;  %v15316_v33 = vmov %v15314_v20  ;;  %vm15317_vm13 = vmmov %vm15315_vm8  ;;  %v15323_v12 = vunpack.i.h.bf16 %v15322_v3  ;;  %v15327_v9 = vunpack.i.l.bf16 %v15322_v3  ;;  %3973 = vmatmul.bf16.gmra.mxu3 %v11814_v45  ;;  %v15338_v3 = vld [vmem:[#allocation31_spill] sm:$0xff] }
 0x39d   :  { %v1900_v7 = vsel %vm15317_vm13, %v8393_v10, %v15316_v33  ;;  %v1912_v8 = vsel %vm15181_vm1, %v1894_v13, 0.0  ;;  %vm15319_vm5 = vmmov %vm15315_vm8  ;;  %v15320_v24 = vmov %v15318_v44  ;;  %3988 = vmatpush.bf16.msra.mxu0 %v6444_v41  ;;  %vm15324_vm13 = vcmp.lt.s32.totalorder %v9221_v28, 1 }
 0x39e   :  { %v1911_v59 = vsel %vm15183_vm10, %v1900_v7, 0.0  ;;  %v1893_v23 = vsel %vm15319_vm5, %v15318_v44, %v8392_v0  ;;  %vm15321_vm8 = vmmov %vm15319_vm5  ;;  %v2070_v37 = vsel %vm15324_vm13, %v15323_v12, %v8228_v11  ;;  %v15325_v21 = vmov %v15323_v12  ;;  %v15331_v44 = vld [vmem:[#allocation77_spill] sm:$0xff] }
 0x39f   :  { %v1899_v5 = vsel %vm15321_vm8, %v8392_v0, %v15320_v24  ;;  %v1918_v18 = vpack.c.bf16 %v1912_v8, %v1911_v59  ;;  %v1910_v61 = vsel %vm15181_vm1, %v1893_v23, 0.0  ;;  %vm15326_vm5 = vmmov %vm15324_vm13  ;;  %v2084_v60 = vsel %vm15265_vm9, %v2070_v37, 0.0 }
 0x3a0   :  { %v1909_v31 = vsel %vm15183_vm10, %v1899_v5, 0.0  ;;  %v2076_v57 = vsel %vm15326_vm5, %v8228_v11, %v15325_v21  ;;  %vm15328_vm8 = vmmov %vm15326_vm5  ;;  %v15329_v0 = vmov %v15327_v9  ;;  %v8348_v20 = vunpack.i.h.bf16 %v11732_v56 }
 0x3a1   :  { %v1917_v43 = vpack.c.bf16 %v1910_v61, %v1909_v31  ;;  %v2069_v41 = vsel %vm15328_vm8, %v15327_v9, %v8227_v62  ;;  %1924 = vst [vmem:[#allocation2 + $0x1a8] sm:$0xff] %v1918_v18  ;;  %v2083_v10 = vsel %vm15267_vm12, %v2076_v57, 0.0  ;;  %vm15330_vm13 = vmmov %vm15326_vm5  ;;  %v8347_v7 = vunpack.i.l.bf16 %v11732_v56  ;;  %3989 = vmatpush.bf16.msra.mxu0 %v6436_v1  ;;  %v11887_v31 = vpop.permute.xlu2 %8425  ;;  %v11889_v61 = vpop.permute.xlu0 %8405  ;;  %v15336_v56 = vld [vmem:[#allocation30_spill] sm:$0xff]  ;;  %v6419_v57 = vld [vmem:[#allocation2 + $0x80] sm:$0xf] }
 0x3a2   :  { %v2075_v39 = vsel %vm15330_vm13, %v8227_v62, %v15329_v0  ;;  %v2082_v11 = vsel %vm15265_vm9, %v2069_v41, 0.0  ;;  %v2094_v13 = vpack.c.bf16 %v2084_v60, %v2083_v10  ;;  %v8398_v59 = vunpack.i.h.bf16 %v11734_v15  ;;  %v11905_v60 = vpop.permute.xlu1 %8315  ;;  %v15344_v0 = vld [vmem:[#allocation66_spill] sm:$0xff] }
 0x3a3   :  { %1923 = vst [vmem:[#allocation2 + $0x1a0] sm:$0xff] %v1917_v43  ;;  %v2081_v33 = vsel %vm15267_vm12, %v2075_v39, 0.0  ;;  %v15332_v62 = vunpack.i.h.bf16 %v15331_v44  ;;  %vm15333_vm5 = vcmp.lt.s32.totalorder %v9221_v28, 126  ;;  %v8397_v18 = vunpack.i.l.bf16 %v11734_v15 }
 0x3a4   :  { %v2093_v8 = vpack.c.bf16 %v2082_v11, %v2081_v33  ;;  %vm15335_vm8 = vmmov %vm15333_vm5  ;;  %2100 = vst [vmem:[#allocation2 + $0x218] sm:$0xff] %v2094_v13  ;;  %vm15337_vm13 = vnez %v15336_v56  ;;  %vm15339_vm15 = vnez %v15338_v3  ;;  %v15340_v37 = vunpack.i.l.bf16 %v15331_v44 }
 0x3a5   :  { %v2204_v23 = vsel %vm15333_vm5, %v15332_v62, %v8348_v20  ;;  %v15334_v24 = vmov %v15332_v62  ;;  %v15345_v39 = vunpack.i.h.bf16 %v15344_v0  ;;  %v6539_v62 = vld [vmem:[#allocation2 + $0x170] sm:$0xf]  ;;  %3990 = vmatpush.bf16.msra.mxu0 %v6428_v58  ;;  %v8232_v58 = vunpack.i.l.bf16 %v11748_v36 }
 0x3a6   :  { %v2210_v5 = vsel %vm15335_vm8, %v8348_v20, %v15334_v24  ;;  %v2219_v1 = vsel %vm15337_vm13, %v2204_v23, 0.0  ;;  %v2203_v43 = vsel %vm15333_vm5, %v15340_v37, %v8347_v7  ;;  %v15341_v21 = vmov %v15340_v37  ;;  %vm15342_vm8 = vmmov %vm15333_vm5  ;;  %2099 = vst [vmem:[#allocation2 + $0x210] sm:$0xff] %v2093_v8  ;;  %v7410_v20 = vld [vmem:[#allocation2 + $0x84] sm:$0xf0]  ;;  %v7440_v23 = vld [vmem:[#allocation2 + $0x174] sm:$0xf0] }
 0x3a7   :  { %v2220_v12 = vsel %vm15339_vm15, %v2210_v5, 0.0  ;;  %v2209_v15 = vsel %vm15342_vm8, %v8347_v7, %v15341_v21  ;;  %v2217_v41 = vsel %vm15337_vm13, %v2203_v43, 0.0  ;;  %vm15346_vm5 = vcmp.lt.s32.totalorder %v9221_v28, 14  ;;  %v7363_v37 = vld [vmem:[#allocation4 + $0x4] sm:$0xf] }
 0x3a8   :  { %v2228_v9 = vpack.c.bf16 %v2220_v12, %v2219_v1  ;;  %v2218_v10 = vsel %vm15339_vm15, %v2209_v15, 0.0  ;;  %v1954_v11 = vsel %vm15346_vm5, %v15345_v39, %v8398_v59  ;;  %v15347_v33 = vmov %v15345_v39  ;;  %vm15348_vm8 = vmmov %vm15346_vm5  ;;  %v6595_v21 = vld [vmem:[#allocation2 + $0x1e0] sm:$0xf]  ;;  %v7454_v15 = vld [vmem:[#allocation2 + $0x1e4] sm:$0xf0] }
 0x3a9   :  { %v2227_v13 = vpack.c.bf16 %v2218_v10, %v2217_v41  ;;  %v1960_v53 = vsel %vm15348_vm8, %v8398_v59, %v15347_v33  ;;  %v1972_v7 = vsel %vm15211_vm2, %v1954_v11, 0.0  ;;  %v15349_v8 = vunpack.i.l.bf16 %v15344_v0  ;;  %vm15350_vm11 = vmmov %vm15346_vm5  ;;  %v15352_v41 = vld [vmem:[#allocation65_spill] sm:$0xff]  ;;  %v6237_v11 = vld [vmem:[#allocation4 + $0x28] sm:$0xf0] }
 0x3aa   :  { %2234 = vst [vmem:[#allocation2 + $0x2b8] sm:$0xff] %v2228_v9  ;;  %v1971_v59 = vsel %vm15209_vm14, %v1960_v53, 0.0  ;;  %v8233_v12 = vunpack.i.h.bf16 %v11748_v36  ;;  %v6420_v43 = vor.u32 %v7410_v20, %v6419_v57  ;;  %v15353_v10 = vunpack.i.h.bf16 %v15352_v41  ;;  %v15357_v36 = vld [vmem:[#allocation27_spill] sm:$0xff]  ;;  %v15359_v20 = vld [vmem:[#allocation28_spill] sm:$0xff] }
 0x3ab   :  { %v1953_v44 = vsel %vm15350_vm11, %v15349_v8, %v8397_v18  ;;  %v15351_v24 = vmov %v15349_v8  ;;  %2233 = vst [vmem:[#allocation2 + $0x2b0] sm:$0xff] %v2227_v13  ;;  %v1978_v22 = vpack.c.bf16 %v1972_v7, %v1971_v59  ;;  %vm15354_vm11 = vcmp.lt.s32.totalorder %v9221_v28, 127  ;;  %v7438_v13 = vld [vmem:[#allocation2 + $0x164] sm:$0xf0] }
 0x3ac   :  { %v1959_v5 = vsel %vm15346_vm5, %v8397_v18, %v15351_v24  ;;  %v1970_v1 = vsel %vm15211_vm2, %v1953_v44, 0.0  ;;  %v2142_v48 = vsel %vm15354_vm11, %v15353_v10, %v8233_v12  ;;  %v15355_v18 = vmov %v15353_v10  ;;  %vm15356_vm2 = vmmov %vm15354_vm11  ;;  %3991 = vmatpush.bf16.msra.mxu0 %v6420_v43  ;;  %v11974_v10 = vpop.permute.xlu1 %8330 }
 0x3ad   :  { %v1969_v34 = vsel %vm15209_vm14, %v1959_v5, 0.0  ;;  %v2148_v0 = vsel %vm15356_vm2, %v8233_v12, %v15355_v18  ;;  %v6540_v39 = vor.u32 %v7440_v23, %v6539_v62  ;;  %1984 = vst [vmem:[#allocation2 + $0x1d8] sm:$0xff] %v1978_v22  ;;  %vm15358_vm14 = vnez %v15357_v36  ;;  %vm15362_vm5 = vmmov %vm15356_vm2  ;;  %v6315_v62 = vld [vmem:[#allocation4 + $0xa0] sm:$0xf]  ;;  %v11965_v12 = vpop.permute.xlu0 %8415 }
 0x3ae   :  { %v1977_v9 = vpack.c.bf16 %v1970_v1, %v1969_v34  ;;  %v2155_v57 = vsel %vm15358_vm14, %v2142_v48, 0.0  ;;  %vm15360_vm8 = vnez %v15359_v20  ;;  %v15361_v53 = vunpack.i.l.bf16 %v15352_v41  ;;  %vm15364_vm11 = vmmov %vm15356_vm2  ;;  %v7388_v1 = vld [vmem:[#allocation4 + $0xc4] sm:$0xf0]  ;;  %v15365_v48 = vld [vmem:[#allocation79_spill] sm:$0xff] }
 0x3af   :  { %v2156_v33 = vsel %vm15360_vm8, %v2148_v0, 0.0  ;;  %4008 = vmatpush.bf16.msra.mxu1 %v6540_v39  ;;  %v6596_v5 = vor.u32 %v7454_v15, %v6595_v21  ;;  %v11967_v34 = vor.u32 %v7363_v37, %v6237_v11  ;;  %v6532_v41 = vor.u32 %v7438_v13, %v6531_v25 }
 0x3b0   :  { %v2141_v7 = vsel %vm15362_vm5, %v15361_v53, %v8232_v58  ;;  %v15363_v8 = vmov %v15361_v53  ;;  %1983 = vst [vmem:[#allocation2 + $0x1d0] sm:$0xff] %v1977_v9  ;;  %v2166_v23 = vpack.c.bf16 %v2156_v33, %v2155_v57  ;;  %v11972_v9 = vpop.permute.xlu2 %8445  ;;  %v8412_v43 = vunpack.i.l.bf16 %v11807_v40 }
 0x3b1   :  { %v2147_v44 = vsel %vm15364_vm11, %v8232_v58, %v15363_v8  ;;  %v2153_v59 = vsel %vm15358_vm14, %v2141_v7, 0.0  ;;  %v8413_v58 = vunpack.i.h.bf16 %v11807_v40  ;;  %4033 = vmatpush.bf16.msra.mxu2 %v6596_v5  ;;  %v8403_v21 = vunpack.i.h.bf16 %v11809_v38  ;;  %3992 = vmatmul.bf16.vlgmr.msra.gmra.mxu0 %v11967_v34 }
 0x3b2   :  { %v2154_v24 = vsel %vm15360_vm8, %v2147_v44, 0.0  ;;  %2172 = vst [vmem:[#allocation2 + $0x278] sm:$0xff] %v2166_v23  ;;  %v8402_v15 = vunpack.i.l.bf16 %v11809_v38  ;;  %v8243_v37 = vunpack.i.h.bf16 %v11818_v17  ;;  %v15366_v18 = vunpack.i.h.bf16 %v15365_v48  ;;  %v15374_v44 = vld [vmem:[#allocation68_spill] sm:$0xff] }
 0x3b3   :  { %v2165_v22 = vpack.c.bf16 %v2154_v24, %v2153_v59  ;;  %vm15367_vm2 = vcmp.lt.s32.totalorder %v9221_v28, 114  ;;  %v8242_v40 = vunpack.i.l.bf16 %v11818_v17  ;;  %v11990_v11 = vor.u32 %v7388_v1, %v6315_v62  ;;  %4009 = vmatpush.bf16.msra.mxu1 %v6532_v41  ;;  %v6523_v1 = vld [vmem:[#allocation2 + $0x150] sm:$0xf] }
 0x3b4   :  { %v2266_v35 = vsel %vm15367_vm2, %v15366_v18, %v8413_v58  ;;  %v15368_v0 = vmov %v15366_v18  ;;  %vm15369_vm5 = vmmov %vm15367_vm2  ;;  %v15371_v13 = vunpack.i.l.bf16 %v15365_v48  ;;  %v15375_v62 = vunpack.i.h.bf16 %v15374_v44  ;;  %v15383_v48 = vld [vmem:[#allocation55_spill] sm:$0xff] }
 0x3b5   :  { %2171 = vst [vmem:[#allocation2 + $0x270] sm:$0xff] %v2165_v22  ;;  %v2272_v39 = vsel %vm15369_vm5, %v8413_v58, %v15368_v0  ;;  %v2283_v38 = vsel %vm9729_vm7, %v2266_v35, 0.0  ;;  %vm15372_vm11 = vmmov %vm15367_vm2  ;;  %vm15376_vm5 = vcmp.lt.s32.totalorder %v9221_v28, 2  ;;  %v15379_v55 = vunpack.i.l.bf16 %v15374_v44  ;;  %v7436_v22 = vld [vmem:[#allocation2 + $0x154] sm:$0xf0]  ;;  %3978 = vmatmul.bf16.gmra.mxu3 %v11990_v11 }
 0x3b6   :  { %15370 = vst [vmem:[#allocation7_spill] sm:$0xff] %v11990_v11  ;;  %v2284_v25 = vsel %vm15296_vm6, %v2272_v39, 0.0  ;;  %v2265_v57 = vsel %vm15372_vm11, %v15371_v13, %v8412_v43  ;;  %v15373_v33 = vmov %v15371_v13  ;;  %v2014_v23 = vsel %vm15376_vm5, %v15375_v62, %v8403_v21  ;;  %vm15378_vm11 = vmmov %vm15376_vm5  ;;  %v6515_v0 = vld [vmem:[#allocation2 + $0x140] sm:$0xf]  ;;  %v12355_v11 = vld [vmem:[#allocation2 + $0x210] sm:$0xf] }
 0x3b7   :  { %v2271_v53 = vsel %vm15367_vm2, %v8412_v43, %v15373_v33  ;;  %v2290_v17 = vpack.c.bf16 %v2284_v25, %v2283_v38  ;;  %v2281_v7 = vsel %vm9729_vm7, %v2265_v57, 0.0  ;;  %v15377_v24 = vmov %v15375_v62  ;;  %vm15380_vm7 = vmmov %vm15376_vm5  ;;  %v7434_v57 = vld [vmem:[#allocation2 + $0x144] sm:$0xf0]  ;;  %v12050_v33 = vpop.permute.xlu0 %8430  ;;  %v3017_v62 = vld [vmem:[%s14393_s8] sm:$0xff] }
 0x3b8   :  { %v2282_v8 = vsel %vm15296_vm6, %v2271_v53, 0.0  ;;  %v2020_v14 = vsel %vm15378_vm11, %v8403_v21, %v15377_v24  ;;  %v2032_v54 = vsel %vm15240_vm4, %v2014_v23, 0.0  ;;  %v2013_v5 = vsel %vm15380_vm7, %v15379_v55, %v8402_v15  ;;  %vm15382_vm6 = vmmov %vm15376_vm5  ;;  %v12065_v23 = vpop.permute.xlu2 %8460  ;;  %3025 = vperm.xlu0 %7896, %v3017_v62  }
 0x3b9   :  { %v2289_v59 = vpack.c.bf16 %v2282_v8, %v2281_v7  ;;  %2296 = vst [vmem:[#allocation2 + $0x2f8] sm:$0xff] %v2290_v17  ;;  %v2031_v41 = vsel %vm15238_vm0, %v2020_v14, 0.0  ;;  %v15381_v58 = vmov %v15379_v55  ;;  %v2030_v21 = vsel %vm15240_vm4, %v2013_v5, 0.0  ;;  %v15390_v17 = vld [vmem:[#allocation35_spill] sm:$0xff] }
 0x3ba   :  { %v2019_v43 = vsel %vm15382_vm6, %v8402_v15, %v15381_v58  ;;  %v15384_v18 = vunpack.i.h.bf16 %v15383_v48  ;;  %vm15385_vm2 = vcmp.lt.s32.totalorder %v9221_v28, 111  ;;  %v2038_v39 = vpack.c.bf16 %v2032_v54, %v2031_v41  ;;  %v3019_v58 = vld [vmem:[%s14393_s8 + $0x10] sm:$0xff] }
 0x3bb   :  { %2295 = vst [vmem:[#allocation2 + $0x2f0] sm:$0xff] %v2289_v59  ;;  %v2029_v38 = vsel %vm15238_vm0, %v2019_v43, 0.0  ;;  %vm15387_vm5 = vmmov %vm15385_vm2  ;;  %vm15389_vm4 = vnez %v15388_v19  ;;  %vm15391_vm11 = vnez %v15390_v17  ;;  %v15392_v8 = vunpack.i.l.bf16 %v15383_v48  ;;  %v12067_v59 = vpop.permute.xlu1 %8335  ;;  %3035 = vperm.xlu1 %7897, %v3019_v58   ;;  %v12960_v17 = vld [vmem:[#allocation2 + $0x8] sm:$0xf0] }
 0x3bc   :  { %v2442_v35 = vsel %vm15385_vm2, %v15384_v18, %v8243_v37  ;;  %v15386_v25 = vmov %v15384_v18  ;;  %v2037_v53 = vpack.c.bf16 %v2030_v21, %v2029_v38  ;;  %vm15393_vm7 = vmmov %vm15385_vm2  ;;  %2044 = vst [vmem:[#allocation2 + $0x208] sm:$0xff] %v2038_v39  ;;  %v6524_v55 = vor.u32 %v7436_v22, %v6523_v1 }
 0x3bd   :  { %v2448_v15 = vsel %vm15387_vm5, %v8243_v37, %v15386_v25  ;;  %v2455_v13 = vsel %vm15389_vm4, %v2442_v35, 0.0  ;;  %v2441_v51 = vsel %vm15393_vm7, %v15392_v8, %v8242_v40  ;;  %v15394_v44 = vmov %v15392_v8  ;;  %vm15395_vm0 = vmmov %vm15385_vm2  ;;  %v7452_v8 = vld [vmem:[#allocation2 + $0x1d4] sm:$0xf0] }
 0x3be   :  { %v2456_v7 = vsel %vm15391_vm11, %v2448_v15, 0.0  ;;  %v2447_v37 = vsel %vm15395_vm0, %v8242_v40, %v15394_v44  ;;  %v2453_v14 = vsel %vm15389_vm4, %v2441_v51, 0.0  ;;  %2043 = vst [vmem:[#allocation2 + $0x200] sm:$0xff] %v2037_v53  ;;  %v6516_v5 = vor.u32 %v7434_v57, %v6515_v0  ;;  %4010 = vmatpush.bf16.msra.mxu1 %v6524_v55  ;;  %v6507_v53 = vld [vmem:[#allocation2 + $0x130] sm:$0xf] }
 0x3bf   :  { %v2466_v24 = vpack.c.bf16 %v2456_v7, %v2455_v13  ;;  %v2454_v54 = vsel %vm15391_vm11, %v2447_v37, 0.0  ;;  %v8428_v32 = vunpack.i.h.bf16 %v11887_v31  ;;  %v8427_v41 = vunpack.i.l.bf16 %v11887_v31  ;;  %v7432_v7 = vld [vmem:[#allocation2 + $0x134] sm:$0xf0] }
 0x3c0   :  { %v2465_v40 = vpack.c.bf16 %v2454_v54, %v2453_v14  ;;  %v8408_v43 = vunpack.i.h.bf16 %v11889_v61  ;;  %v8407_v21 = vunpack.i.l.bf16 %v11889_v61  ;;  %v8318_v48 = vunpack.i.h.bf16 %v11905_v60  ;;  %v6587_v54 = vld [vmem:[#allocation2 + $0x1d0] sm:$0xf]  ;;  %v7472_v55 = vld [vmem:[#allocation2 + $0x274] sm:$0xf0] }
 0x3c1   :  { %2472 = vst [vmem:[#allocation2 + $0x368] sm:$0xff] %v2466_v24  ;;  %v8317_v1 = vunpack.i.l.bf16 %v11905_v60  ;;  %vm15396_vm6 = vcmp.lt.s32.totalorder %v9221_v28, 126  ;;  %vm15402_vm0 = vcmp.lt.s32.totalorder %v9221_v28, 1 }
 0x3c2   :  { %2471 = vst [vmem:[#allocation2 + $0x360] sm:$0xff] %v2465_v40  ;;  %v2206_v31 = vsel %vm15396_vm6, %v8163_v29, %v8428_v32  ;;  %vm15397_vm2 = vmmov %vm15396_vm6  ;;  %4011 = vmatpush.bf16.msra.mxu1 %v6516_v5  ;;  %v7373_v40 = vld [vmem:[#allocation4 + $0x54] sm:$0xf]  ;;  %v6277_v5 = vld [vmem:[#allocation4 + $0x78] sm:$0xf0] }
 0x3c3   :  { %v2212_v22 = vsel %vm15397_vm2, %v8428_v32, %v8163_v29  ;;  %vm15398_vm5 = vmmov %vm15397_vm2  ;;  %v2223_v18 = vsel %vm15337_vm13, %v2206_v31, 0.0 }
 0x3c4   :  { %v2205_v61 = vsel %vm15398_vm5, %v8162_v46, %v8427_v41  ;;  %vm15399_vm7 = vmmov %vm15397_vm2  ;;  %v2224_v35 = vsel %vm15339_vm15, %v2212_v22, 0.0 }
 0x3c5   :  { %v2211_v60 = vsel %vm15399_vm7, %v8427_v41, %v8162_v46  ;;  %v2221_v0 = vsel %vm15337_vm13, %v2205_v61, 0.0  ;;  %v2230_v39 = vpack.c.bf16 %v2224_v35, %v2223_v18  ;;  %v15400_v46 = vld [vmem:[#allocation76_spill] sm:$0xff]  ;;  %vm15404_vm6 = vmmov %vm15402_vm0  ;;  %vm15411_vm7 = vcmp.lt.s32.totalorder %v9221_v28, 111  ;;  %v6667_v61 = vld [vmem:[#allocation2 + $0x270] sm:$0xf] }
 0x3c6   :  { %v2222_v29 = vsel %vm15339_vm15, %v2211_v60, 0.0  ;;  %v15401_v25 = vunpack.i.h.bf16 %v15400_v46  ;;  %v15405_v37 = vunpack.i.l.bf16 %v15400_v46  ;;  %vm15406_vm2 = vmmov %vm15402_vm0  ;;  %v6499_v60 = vld [vmem:[#allocation2 + $0x120] sm:$0xf]  ;;  %v12139_v35 = vld [vmem:[#allocation2 + $0x1c4] sm:$0xf0] }
 0x3c7   :  { %v2229_v38 = vpack.c.bf16 %v2222_v29, %v2221_v0  ;;  %vm15408_vm5 = vmmov %vm15402_vm0  ;;  %2236 = vst [vmem:[#allocation2 + $0x2c8] sm:$0xff] %v2230_v39  ;;  %v12137_v18 = vld [vmem:[#allocation2 + $0x1c0] sm:$0xf]  ;;  %v12144_v29 = vpop.permute.xlu2 %8475  ;;  %v12146_v39 = vpop.permute.xlu0 %8435 }
 0x3c8   :  { %v2074_v15 = vsel %vm15402_vm0, %v15401_v25, %v8408_v43  ;;  %v15403_v13 = vmov %v15401_v25  ;;  %v2073_v62 = vsel %vm15406_vm2, %v15405_v37, %v8407_v21  ;;  %v15407_v24 = vmov %v15405_v37  ;;  %v3022_v0 = vld [vmem:[%s14393_s8 + $0x28] sm:$0xff]  ;;  %vm15413_vm0 = vmmov %vm15411_vm7  ;;  %v12162_v37 = vpop.permute.xlu1 %8420  ;;  %v12326_v2 = vld [vmem:[#allocation2 + $0x364] sm:$0xf0] }
 0x3c9   :  { %v2080_v57 = vsel %vm15404_vm6, %v8408_v43, %v15403_v13  ;;  %v2092_v44 = vsel %vm15265_vm9, %v2074_v15, 0.0  ;;  %v2079_v14 = vsel %vm15408_vm5, %v8407_v21, %v15407_v24  ;;  %v2090_v58 = vsel %vm15265_vm9, %v2073_v62, 0.0  ;;  %v15409_v43 = vld [vmem:[#allocation59_spill] sm:$0xff]  ;;  %v7430_v21 = vld [vmem:[#allocation2 + $0x124] sm:$0xf0]  ;;  %2235 = vst [vmem:[#allocation2 + $0x2c0] sm:$0xff] %v2229_v38  ;;  %vm15415_vm6 = vmmov %vm15413_vm0  ;;  %3050 = vperm.xlu0 %7896, %v3022_v0  }
 0x3ca   :  { %v2091_v51 = vsel %vm15267_vm12, %v2080_v57, 0.0  ;;  %v2089_v41 = vsel %vm15267_vm12, %v2079_v14, 0.0  ;;  %v15410_v31 = vunpack.i.h.bf16 %v15409_v43  ;;  %v15414_v16 = vunpack.i.l.bf16 %v15409_v43  ;;  %vm15417_vm2 = vmmov %vm15413_vm0  ;;  %v15418_v43 = vld [vmem:[#allocation78_spill] sm:$0xff] }
 0x3cb   :  { %v2098_v32 = vpack.c.bf16 %v2092_v44, %v2091_v51  ;;  %v2097_v46 = vpack.c.bf16 %v2090_v58, %v2089_v41  ;;  %v12158_v51 = vld [vmem:[#allocation2 + $0x110] sm:$0xf]  ;;  %v12160_v44 = vld [vmem:[#allocation2 + $0x114] sm:$0xf0]  ;;  %v6508_v14 = vor.u32 %v7432_v7, %v6507_v53  ;;  %v8333_v0 = vunpack.i.h.bf16 %v11974_v10 }
 0x3cc   :  { %v2444_v22 = vsel %vm15411_vm7, %v15410_v31, %v8318_v48  ;;  %v15412_v25 = vmov %v15410_v31  ;;  %v2443_v57 = vsel %vm15415_vm6, %v15414_v16, %v8317_v1  ;;  %v12172_v41 = vld [vmem:[#allocation2 + $0x1b0] sm:$0xf]  ;;  %vm15423_vm5 = vcmp.lt.s32.totalorder %v9221_v28, 98 }
 0x3cd   :  { %v2450_v15 = vsel %vm15413_vm0, %v8318_v48, %v15412_v25  ;;  %v2459_v13 = vsel %vm15389_vm4, %v2444_v22, 0.0  ;;  %2104 = vst [vmem:[#allocation2 + $0x238] sm:$0xff] %v2098_v32  ;;  %v15416_v48 = vmov %v15414_v16  ;;  %v2457_v24 = vsel %vm15389_vm4, %v2443_v57, 0.0  ;;  %v12176_v25 = vld [vmem:[#allocation2 + $0x1b4] sm:$0xf0]  ;;  %v15419_v16 = vld [vmem:[#allocation80_spill] sm:$0xff]  ;;  %4012 = vmatpush.bf16.msra.mxu1 %v6508_v14  ;;  %vm15425_vm7 = vmmov %vm15423_vm5 }
 0x3ce   :  { %v2460_v38 = vsel %vm15391_vm11, %v2450_v15, 0.0  ;;  %v2449_v62 = vsel %vm15417_vm2, %v8317_v1, %v15416_v48  ;;  %2103 = vst [vmem:[#allocation2 + $0x230] sm:$0xff] %v2097_v46  ;;  %v6588_v32 = vor.u32 %v7452_v8, %v6587_v54  ;;  %v6668_v22 = vor.u32 %v7472_v55, %v6667_v61  ;;  %v3018_v1 = vld [vmem:[%s14393_s8 + $0x8] sm:$0xff]  ;;  %vm15427_vm0 = vmmov %vm15423_vm5  ;;  %v15449_v53 = vld [vmem:[#allocation73_spill] sm:$0xff] }
 0x3cf   :  { %v2468_v58 = vpack.c.bf16 %v2460_v38, %v2459_v13  ;;  %v2458_v31 = vsel %vm15391_vm11, %v2449_v62, 0.0  ;;  %v12183_v46 = vor.u32 %v7373_v40, %v6277_v5  ;;  %v6500_v8 = vor.u32 %v7430_v21, %v6499_v60  ;;  %3030 = vperm.xlu1 %7897, %v3018_v1   ;;  %v15421_v60 = vld [vmem:[#allocation67_spill] sm:$0xff]  ;;  %vm15429_vm6 = vmmov %vm15427_vm0  ;;  %v7488_v38 = vld [vmem:[#allocation2 + $0x2f4] sm:$0xf0]  ;;  %v12226_v1 = vpop.permute.xlu0 %8450 }
 0x3d0   :  { %v2467_v7 = vpack.c.bf16 %v2458_v31, %v2457_v24  ;;  %4034 = vmatpush.bf16.msra.mxu2 %v6588_v32  ;;  %4056 = vmatpush.bf16.msrb.mxu3 %v6668_v22  ;;  %v6580_v54 = vor.u32 %v12139_v35, %v12137_v18  ;;  %v8418_v55 = vunpack.i.h.bf16 %v11965_v12  ;;  %v8417_v61 = vunpack.i.l.bf16 %v11965_v12  ;;  %v6483_v48 = vld [vmem:[#allocation2 + $0x100] sm:$0xf]  ;;  %v7426_v62 = vld [vmem:[#allocation2 + $0x104] sm:$0xf0]  ;;  %v6731_v31 = vld [vmem:[#allocation2 + $0x2f0] sm:$0xf] }
 0x3d1   :  { %15420 = vst [vmem:[#allocation8_spill] sm:$0xff] %v12183_v46  ;;  %3997 = vmatmul.bf16.gmra.mxu0 %v12183_v46  ;;  %v8332_v13 = vunpack.i.l.bf16 %v11974_v10  ;;  %v6492_v40 = vor.u32 %v12160_v44, %v12158_v51  ;;  %v6572_v5 = vor.u32 %v12176_v25, %v12172_v41  ;;  %v15422_v21 = vunpack.i.h.bf16 %v15421_v60  ;;  %4013 = vmatpush.bf16.msra.mxu1 %v6500_v8  ;;  %v12220_v32 = vld [vmem:[#allocation2 + $0x1a0] sm:$0xf]  ;;  %v12222_v22 = vld [vmem:[#allocation2 + $0x1a4] sm:$0xf0]  ;;  %v12224_v25 = vpop.permute.xlu2 %8490 }
 0x3d2   :  { %2474 = vst [vmem:[#allocation2 + $0x378] sm:$0xff] %v2468_v58  ;;  %v15426_v57 = vunpack.i.l.bf16 %v15421_v60  ;;  %vm15430_vm2 = vnez %v15048_v50  ;;  %v15432_v8 = vld [vmem:[#allocation72_spill] sm:$0xff]  ;;  %v6732_v15 = vor.u32 %v7488_v38, %v6731_v31  ;;  %v8433_v31 = vunpack.i.h.bf16 %v12050_v33  ;;  %v12359_v46 = vld [vmem:[#allocation2 + $0x2b0] sm:$0xf] }
 0x3d3   :  { %2473 = vst [vmem:[#allocation2 + $0x370] sm:$0xff] %v2467_v7  ;;  %v2566_v18 = vsel %vm15423_vm5, %v15422_v21, %v8418_v55  ;;  %v15424_v12 = vmov %v15422_v21  ;;  %vm15431_vm5 = vnez %v15051_v42  ;;  %v15435_v42 = vld [vmem:[#allocation60_spill] sm:$0xff]  ;;  %v6484_v7 = vor.u32 %v7426_v62, %v6483_v48  ;;  %v15451_v62 = vld [vmem:[#allocation69_spill] sm:$0xff] }
 0x3d4   :  { %v2572_v35 = vsel %vm15425_vm7, %v8418_v55, %v15424_v12  ;;  %v2565_v10 = vsel %vm15427_vm0, %v15426_v57, %v8417_v61  ;;  %v15428_v51 = vmov %v15426_v57  ;;  %v2583_v24 = vsel %vm15430_vm2, %v2566_v18, 0.0  ;;  %4035 = vmatpush.bf16.msra.mxu2 %v6580_v54  ;;  %v15433_v55 = vld [vmem:[#allocation75_spill] sm:$0xff]  ;;  %v6243_v57 = vld [vmem:[#allocation4 + $0x8] sm:$0xf]  ;;  %4080 = vmatpush.bf16.msrb.mxu0 %v6732_v15 }
 0x3d5   :  { %v2571_v44 = vsel %vm15429_vm6, %v8417_v61, %v15428_v51  ;;  %v2584_v14 = vsel %vm15431_vm5, %v2572_v35, 0.0  ;;  %v2581_v41 = vsel %vm15430_vm2, %v2565_v10, 0.0  ;;  %v15434_v61 = vor.u32 %v15432_v8, %v15433_v55  ;;  %v12236_v12 = vld [vmem:[#allocation2 + $0x2e0] sm:$0xf]  ;;  %v12238_v35 = vld [vmem:[#allocation2 + $0x2e4] sm:$0xf0]  ;;  %v12240_v10 = vpop.permute.xlu1 %8440  ;;  %4014 = vmatpush.bf16.msra.mxu1 %v6492_v40 }
 0x3d6   :  { %v2582_v58 = vsel %vm15431_vm5, %v2571_v44, 0.0  ;;  %v2590_v50 = vpack.c.bf16 %v2584_v14, %v2583_v24  ;;  %v15436_v21 = vunpack.i.h.bf16 %v15435_v42  ;;  %vm15437_vm7 = vcmp.lt.s32.totalorder %v9221_v28, 112  ;;  %v15440_v44 = vld [vmem:[#allocation36_spill] sm:$0xff]  ;;  %v7369_v55 = vld [vmem:[#allocation4 + $0x2c] sm:$0xf0] }
 0x3d7   :  { %4057 = vmatpush.bf16.msrb.mxu3 %v15434_v61  ;;  %v2589_v60 = vpack.c.bf16 %v2582_v58, %v2581_v41  ;;  %vm15439_vm0 = vmmov %vm15437_vm7  ;;  %vm15441_vm6 = vnez %v15440_v44  ;;  %v15442_v14 = vunpack.i.l.bf16 %v15435_v42  ;;  %v12256_v61 = vld [vmem:[#allocation2 + $0x190] sm:$0xf]  ;;  %v6724_v38 = vor.u32 %v12238_v35, %v12236_v12 }
 0x3d8   :  { %v2384_v18 = vsel %vm15437_vm7, %v15436_v21, %v8333_v0  ;;  %v15438_v54 = vmov %v15436_v21  ;;  %vm15443_vm2 = vmmov %vm15439_vm0  ;;  %2596 = vst [vmem:[#allocation2 + $0x3e8] sm:$0xff] %v2590_v50  ;;  %v15446_v21 = vld [vmem:[#allocation37_spill] sm:$0xff]  ;;  %4036 = vmatpush.bf16.msra.mxu2 %v6572_v5  ;;  %v15448_v50 = vld [vmem:[#allocation70_spill] sm:$0xff]  ;;  %v8338_v40 = vunpack.i.h.bf16 %v12067_v59  ;;  %v8337_v5 = vunpack.i.l.bf16 %v12067_v59 }
 0x3d9   :  { %v2390_v51 = vsel %vm15439_vm0, %v8333_v0, %v15438_v54  ;;  %v2399_v24 = vsel %vm15441_vm6, %v2384_v18, 0.0  ;;  %v2383_v41 = vsel %vm15443_vm2, %v15442_v14, %v8332_v13  ;;  %v15444_v58 = vmov %v15442_v14  ;;  %vm15445_vm5 = vmmov %vm15439_vm0  ;;  %v12264_v14 = vld [vmem:[#allocation2 + $0x194] sm:$0xf0]  ;;  %2595 = vst [vmem:[#allocation2 + $0x3e0] sm:$0xff] %v2589_v60  ;;  %4015 = vmatpush.bf16.msra.mxu1 %v6484_v7  ;;  %v12310_v7 = vld [vmem:[#allocation2 + $0x220] sm:$0xf]  ;;  %4081 = vmatpush.bf16.msrb.mxu0 %v6724_v38 }
 0x3da   :  { %v2389_v8 = vsel %vm15445_vm5, %v8332_v13, %v15444_v58  ;;  %vm15447_vm7 = vnez %v15446_v21  ;;  %v2397_v18 = vsel %vm15441_vm6, %v2383_v41, 0.0  ;;  %v6564_v41 = vor.u32 %v12222_v22, %v12220_v32  ;;  %v15467_v42 = vld [vmem:[#allocation57_spill] sm:$0xff]  ;;  %v7504_v49 = vld [vmem:[#allocation2 + $0x374] sm:$0xf0]  ;;  %v6787_v38 = vld [vmem:[#allocation2 + $0x360] sm:$0xf] }
 0x3db   :  { %v2400_v0 = vsel %vm15447_vm7, %v2390_v51, 0.0  ;;  %v2398_v54 = vsel %vm15447_vm7, %v2389_v8, 0.0  ;;  %v15450_v51 = vor.u32 %v15448_v50, %v15449_v53  ;;  %v8432_v8 = vunpack.i.l.bf16 %v12050_v33  ;;  %v7383_v50 = vld [vmem:[#allocation4 + $0xa4] sm:$0xf]  ;;  %v6795_v26 = vld [vmem:[#allocation2 + $0x370] sm:$0xf] }
 0x3dc   :  { %v2408_v13 = vpack.c.bf16 %v2400_v0, %v2399_v24  ;;  %v2407_v58 = vpack.c.bf16 %v2398_v54, %v2397_v18  ;;  %v12278_v48 = vor.u32 %v7369_v55, %v6243_v57  ;;  %v6556_v53 = vor.u32 %v12264_v14, %v12256_v61  ;;  %v7464_v57 = vld [vmem:[#allocation2 + $0x234] sm:$0xf0]  ;;  %v6715_v24 = vld [vmem:[#allocation2 + $0x2d0] sm:$0xf]  ;;  %v15462_v18 = vld [vmem:[#allocation39_spill] sm:$0xff]  ;;  %4037 = vmatpush.bf16.msra.mxu2 %v6564_v41 }
 0x3dd   :  { %4058 = vmatpush.bf16.msrb.mxu3 %v15450_v51  ;;  %v15452_v32 = vunpack.i.h.bf16 %v15451_v62  ;;  %vm15453_vm0 = vcmp.lt.s32.totalorder %v9221_v28, 110  ;;  %v15456_v15 = vunpack.i.l.bf16 %v15451_v62  ;;  %v7484_v55 = vld [vmem:[#allocation2 + $0x2d4] sm:$0xf0]  ;;  %vm15463_vm9 = vnez %v15462_v18  ;;  %v6317_v51 = vld [vmem:[#allocation4 + $0xc8] sm:$0xf0]  ;;  %v12332_v41 = vpop.permute.xlu1 %8455 }
 0x3de   :  { %2414 = vst [vmem:[#allocation2 + $0x348] sm:$0xff] %v2408_v13  ;;  %vm15455_vm2 = vmmov %vm15453_vm0  ;;  %v15460_v61 = vld [vmem:[#allocation38_spill] sm:$0xff]  ;;  %v12312_v62 = vld [vmem:[#allocation2 + $0x224] sm:$0xf0]  ;;  %v15468_v63 = vunpack.i.h.bf16 %v15467_v42  ;;  %4016 = vmatmul.bf16.vlgmr.msra.gmra.mxu1 %v12278_v48  ;;  %v6796_v45 = vor.u32 %v7504_v49, %v6795_v26  ;;  %v8457_v56 = vunpack.i.l.bf16 %v12332_v41 }
 0x3df   :  { %2413 = vst [vmem:[#allocation2 + $0x340] sm:$0xff] %v2407_v58  ;;  %v2506_v22 = vsel %vm15453_vm0, %v15452_v32, %v8433_v31  ;;  %v15454_v60 = vmov %v15452_v32  ;;  %vm15457_vm5 = vmmov %vm15453_vm0  ;;  %v15458_v12 = vmov %v15456_v15  ;;  %v6635_v58 = vld [vmem:[#allocation2 + $0x230] sm:$0xf]  ;;  %v12314_v32 = vpop.permute.xlu2 %8505  ;;  %v12372_v49 = vld [vmem:[#allocation2 + $0x3e4] sm:$0xf0] }
 0x3e0   :  { %v2512_v33 = vsel %vm15455_vm2, %v8433_v31, %v15454_v60  ;;  %v2505_v59 = vsel %vm15457_vm5, %v15456_v15, %v8432_v8  ;;  %vm15459_vm12 = vmmov %vm15453_vm0  ;;  %vm15461_vm0 = vnez %v15460_v61  ;;  %v12306_v31 = vld [vmem:[#allocation2 + $0x180] sm:$0xf]  ;;  %v15465_v15 = vld [vmem:[#allocation74_spill] sm:$0xff]  ;;  %4038 = vmatpush.bf16.msra.mxu2 %v6556_v53  ;;  %4104 = vmatpush.bf16.msrb.mxu1 %v6796_v45  ;;  %v6788_v53 = vor.u32 %v12326_v2, %v6787_v38 }
 0x3e1   :  { %v2511_v35 = vsel %vm15459_vm12, %v8432_v8, %v15458_v12  ;;  %v2523_v0 = vsel %vm15461_vm0, %v2506_v22, 0.0  ;;  %v2524_v54 = vsel %vm15463_vm9, %v2512_v33, 0.0  ;;  %v2521_v14 = vsel %vm15461_vm0, %v2505_v59, 0.0  ;;  %v12308_v8 = vld [vmem:[#allocation2 + $0x184] sm:$0xf0]  ;;  %v12316_v22 = vpop.permute.xlu0 %8465  ;;  %v15464_v33 = vld [vmem:[#allocation71_spill] sm:$0xff] }
 0x3e2   :  { %v2522_v13 = vsel %vm15463_vm9, %v2511_v35, 0.0  ;;  %v15466_v59 = vor.u32 %v15464_v33, %v15465_v15  ;;  %v2530_v12 = vpack.c.bf16 %v2524_v54, %v2523_v0  ;;  %vm15469_vm12 = vcmp.lt.s32.totalorder %v9221_v28, 112 }
 0x3e3   :  { %v2529_v35 = vpack.c.bf16 %v2522_v13, %v2521_v14  ;;  %v2382_v52 = vsel %vm15469_vm12, %v15468_v63, %v8338_v40  ;;  %v15470_v33 = vmov %v15468_v63  ;;  %vm15471_vm2 = vmmov %vm15469_vm12  ;;  %v15472_v63 = vunpack.i.l.bf16 %v15467_v42  ;;  %v7364_v42 = vld [vmem:[#allocation4 + $0xc] sm:$0xf] }
 0x3e4   :  { %4059 = vmatpush.bf16.msrb.mxu3 %v15466_v59  ;;  %v2388_v0 = vsel %vm15471_vm2, %v8338_v40, %v15470_v33  ;;  %v2395_v54 = vsel %vm15441_vm6, %v2382_v52, 0.0  ;;  %vm15473_vm5 = vmmov %vm15471_vm2  ;;  %v7482_v59 = vld [vmem:[#allocation2 + $0x2c4] sm:$0xf0]  ;;  %2536 = vst [vmem:[#allocation2 + $0x3b8] sm:$0xff] %v2530_v12  ;;  %v6636_v33 = vor.u32 %v7464_v57, %v6635_v58  ;;  %v6548_v57 = vor.u32 %v12308_v8, %v12306_v31 }
 0x3e5   :  { %v2381_v14 = vsel %vm15473_vm5, %v15472_v63, %v8337_v5  ;;  %v15474_v13 = vmov %v15472_v63  ;;  %vm15475_vm12 = vmmov %vm15471_vm2  ;;  %v2396_v60 = vsel %vm15447_vm7, %v2388_v0, 0.0  ;;  %v6707_v63 = vld [vmem:[#allocation2 + $0x2c0] sm:$0xf]  ;;  %2535 = vst [vmem:[#allocation2 + $0x3b0] sm:$0xff] %v2529_v35  ;;  %v12357_v0 = vld [vmem:[#allocation2 + $0x214] sm:$0xf0]  ;;  %v6628_v58 = vor.u32 %v12312_v62, %v12310_v7  ;;  %4105 = vmatpush.bf16.msrb.mxu1 %v6788_v53 }
 0x3e6   :  { %v2387_v15 = vsel %vm15475_vm12, %v8337_v5, %v15474_v13  ;;  %v2393_v40 = vsel %vm15441_vm6, %v2381_v14, 0.0  ;;  %v2406_v5 = vpack.c.bf16 %v2396_v60, %v2395_v54  ;;  %v6716_v13 = vor.u32 %v7484_v55, %v6715_v24  ;;  %v12368_v60 = vld [vmem:[#allocation2 + $0x2b4] sm:$0xf0]  ;;  %v12370_v24 = vld [vmem:[#allocation2 + $0x3e0] sm:$0xf]  ;;  %4039 = vmatpush.bf16.msra.mxu2 %v6548_v57 }
 0x3e7   :  { %v2394_v52 = vsel %vm15447_vm7, %v2387_v15, 0.0  ;;  %v8448_v14 = vunpack.i.h.bf16 %v11972_v9  ;;  %v12362_v15 = vor.u32 %v7383_v50, %v6317_v51  ;;  %v6708_v26 = vor.u32 %v7482_v59, %v6707_v63  ;;  %v12407_v59 = vpop.permute.xlu1 %8470 }
 0x3e8   :  { %v2405_v12 = vpack.c.bf16 %v2394_v52, %v2393_v40  ;;  %4060 = vmatpush.bf16.msrb.mxu3 %v6636_v33  ;;  %2412 = vst [vmem:[#allocation2 + $0x338] sm:$0xff] %v2406_v5  ;;  %4082 = vmatpush.bf16.msrb.mxu0 %v6716_v13  ;;  %v6860_v55 = vor.u32 %v12330_v27, %v12328_v4  ;;  %v8438_v50 = vunpack.i.h.bf16 %v12146_v39  ;;  %v8437_v51 = vunpack.i.l.bf16 %v12146_v39  ;;  %v12390_v4 = vpop.permute.xlu2 %8520  ;;  %v7458_v5 = vld [vmem:[#allocation2 + $0x204] sm:$0xf0] }
 0x3e9   :  { %4002 = vmatmul.bf16.gmra.mxu0 %v12362_v15  ;;  %v8423_v31 = vunpack.i.h.bf16 %v12162_v37  ;;  %v8422_v8 = vunpack.i.l.bf16 %v12162_v37  ;;  %v12382_v7 = vor.u32 %v7364_v42, %v6245_v47  ;;  %v6620_v45 = vor.u32 %v12357_v0, %v12355_v11  ;;  %v12405_v54 = vpop.permute.xlu0 %8480  ;;  %v6611_v42 = vld [vmem:[#allocation2 + $0x200] sm:$0xf] }
 0x3ea   :  { %2411 = vst [vmem:[#allocation2 + $0x330] sm:$0xff] %v2405_v12  ;;  %v6700_v2 = vor.u32 %v12368_v60, %v12359_v46  ;;  %v6852_v27 = vor.u32 %v12372_v49, %v12370_v24  ;;  %v8447_v62 = vunpack.i.l.bf16 %v11972_v9  ;;  %v15476_v39 = vunpack.i.h.bf16 %v11659_v30  ;;  %4128 = vmatpush.bf16.msrb.mxu2 %v6860_v55  ;;  %v6843_v60 = vld [vmem:[#allocation2 + $0x3d0] sm:$0xf]  ;;  %v7516_v24 = vld [vmem:[#allocation2 + $0x3d4] sm:$0xf0] }
 0x3eb   :  { %vm15477_vm2 = vcmp.lt.s32.totalorder %v9221_v28, 110  ;;  %v15480_v46 = vunpack.i.l.bf16 %v11659_v30  ;;  %v15483_v0 = vunpack.i.h.bf16 %v15419_v16  ;;  %v15487_v55 = vunpack.i.l.bf16 %v15419_v16  ;;  %4040 = vmatmul.bf16.vlgmr.msra.gmra.mxu2 %v12382_v7 }
 0x3ec   :  { %4061 = vmatpush.bf16.msrb.mxu3 %v6628_v58  ;;  %v2504_v47 = vsel %vm15477_vm2, %v15476_v39, %v8438_v50  ;;  %v15478_v37 = vmov %v15476_v39  ;;  %vm15479_vm5 = vmmov %vm15477_vm2  ;;  %4083 = vmatpush.bf16.msrb.mxu0 %v6708_v26  ;;  %v7379_v39 = vld [vmem:[#allocation4 + $0x7c] sm:$0xf0]  ;;  %v8467_v9 = vunpack.i.l.bf16 %v12316_v22 }
 0x3ed   :  { %v2510_v11 = vsel %vm15479_vm5, %v8438_v50, %v15478_v37  ;;  %vm15481_vm12 = vmmov %vm15477_vm2  ;;  %v2519_v38 = vsel %vm15461_vm0, %v2504_v47, 0.0  ;;  %v15482_v52 = vmov %v15480_v46  ;;  %vm15484_vm5 = vcmp.lt.s32.totalorder %v9221_v28, 112 }
 0x3ee   :  { %v2503_v35 = vsel %vm15481_vm12, %v15480_v46, %v8437_v51  ;;  %v2520_v40 = vsel %vm15463_vm9, %v2510_v11, 0.0  ;;  %v2509_v33 = vsel %vm15477_vm2, %v8437_v51, %v15482_v52  ;;  %v2386_v57 = vsel %vm15484_vm5, %v15483_v0, %v8423_v31  ;;  %vm15486_vm12 = vmmov %vm15484_vm5  ;;  %v6283_v51 = vld [vmem:[#allocation4 + $0x58] sm:$0xf]  ;;  %4129 = vmatpush.bf16.msrb.mxu2 %v6852_v27 }
 0x3ef   :  { %v2517_v63 = vsel %vm15461_vm0, %v2503_v35, 0.0  ;;  %v2528_v12 = vpack.c.bf16 %v2520_v40, %v2519_v38  ;;  %v2518_v13 = vsel %vm15463_vm9, %v2509_v33, 0.0  ;;  %v15485_v30 = vmov %v15483_v0  ;;  %vm15488_vm2 = vmmov %vm15484_vm5  ;;  %v6251_v35 = vld [vmem:[#allocation4 + $0x10] sm:$0xf]  ;;  %v7370_v38 = vld [vmem:[#allocation4 + $0x34] sm:$0xf0] }
 0x3f0   :  { %v2392_v58 = vsel %vm15486_vm12, %v8423_v31, %v15485_v30  ;;  %v2527_v49 = vpack.c.bf16 %v2518_v13, %v2517_v63  ;;  %v2403_v26 = vsel %vm15441_vm6, %v2386_v57, 0.0  ;;  %v2385_v50 = vsel %vm15488_vm2, %v15487_v55, %v8422_v8  ;;  %vm15490_vm5 = vmmov %vm15488_vm2  ;;  %4062 = vmatpush.bf16.msrb.mxu3 %v6620_v45  ;;  %4084 = vmatpush.bf16.msrb.mxu0 %v6700_v2  ;;  %v6835_v30 = vld [vmem:[#allocation2 + $0x3c0] sm:$0xf] }
 0x3f1   :  { %v2404_v53 = vsel %vm15447_vm7, %v2392_v58, 0.0  ;;  %v8463_v31 = vunpack.i.h.bf16 %v12065_v23  ;;  %2534 = vst [vmem:[#allocation2 + $0x3a8] sm:$0xff] %v2528_v12  ;;  %v15489_v37 = vmov %v15487_v55  ;;  %v2401_v46 = vsel %vm15441_vm6, %v2385_v50, 0.0  ;;  %v7514_v58 = vld [vmem:[#allocation2 + $0x3c4] sm:$0xf0] }
 0x3f2   :  { %v2410_v47 = vpack.c.bf16 %v2404_v53, %v2403_v26  ;;  %v2391_v11 = vsel %vm15490_vm5, %v8422_v8, %v15489_v37  ;;  %v8462_v40 = vunpack.i.l.bf16 %v12065_v23  ;;  %v8478_v52 = vunpack.i.h.bf16 %v12144_v29  ;;  %2533 = vst [vmem:[#allocation2 + $0x3a0] sm:$0xff] %v2527_v49  ;;  %v7374_v49 = vld [vmem:[#allocation4 + $0x5c] sm:$0xf]  ;;  %v12457_v26 = vpop.permute.xlu2 %8535 }
 0x3f3   :  { %v8477_v33 = vunpack.i.l.bf16 %v12144_v29  ;;  %v2402_v63 = vsel %vm15447_vm7, %v2391_v11, 0.0  ;;  %v6612_v8 = vor.u32 %v7458_v5, %v6611_v42  ;;  %v8443_v12 = vunpack.i.h.bf16 %v12240_v10  ;;  %v7512_v5 = vld [vmem:[#allocation2 + $0x3b4] sm:$0xf0] }
 0x3f4   :  { %2416 = vst [vmem:[#allocation2 + $0x358] sm:$0xff] %v2410_v47  ;;  %v2409_v16 = vpack.c.bf16 %v2402_v63, %v2401_v46  ;;  %v8442_v45 = vunpack.i.l.bf16 %v12240_v10  ;;  %v6844_v13 = vor.u32 %v7516_v24, %v6843_v60  ;;  %v8453_v23 = vunpack.i.h.bf16 %v12226_v1  ;;  %v6285_v60 = vld [vmem:[#allocation4 + $0x80] sm:$0xf0]  ;;  %v12472_v24 = vpop.permute.xlu0 %8495 }
 0x3f5   :  { %v12453_v0 = vor.u32 %v7379_v39, %v6283_v51  ;;  %v12455_v57 = vor.u32 %v7370_v38, %v6251_v35  ;;  %4063 = vmatpush.bf16.msrb.mxu3 %v6612_v8  ;;  %v8452_v2 = vunpack.i.l.bf16 %v12226_v1  ;;  %vm15491_vm12 = vcmp.lt.s32.totalorder %v9221_v28, 126  ;;  %v12474_v1 = vpop.permute.xlu1 %8485  ;;  %v6827_v51 = vld [vmem:[#allocation2 + $0x3b0] sm:$0xf]  ;;  %v7498_v8 = vld [vmem:[#allocation2 + $0x344] sm:$0xf0] }
 0x3f6   :  { %2415 = vst [vmem:[#allocation2 + $0x350] sm:$0xff] %v2409_v16  ;;  %v2202_v10 = vsel %vm15491_vm12, %v8443_v12, %v8448_v14  ;;  %vm15492_vm2 = vmmov %vm15491_vm12  ;;  %4130 = vmatpush.bf16.msrb.mxu2 %v6844_v13  ;;  %v6836_v37 = vor.u32 %v7514_v58, %v6835_v30  ;;  %v8468_v11 = vunpack.i.h.bf16 %v12316_v22  ;;  %v6828_v35 = vor.u32 %v7512_v5, %v6827_v51  ;;  %v6771_v16 = vld [vmem:[#allocation2 + $0x340] sm:$0xf]  ;;  %v6291_v5 = vld [vmem:[#allocation4 + $0x60] sm:$0xf] }
 0x3f7   :  { %v2208_v27 = vsel %vm15492_vm2, %v8448_v14, %v8443_v12  ;;  %vm15493_vm5 = vmmov %vm15492_vm2  ;;  %v2215_v53 = vsel %vm15337_vm13, %v2202_v10, 0.0  ;;  %4021 = vmatmul.bf16.gmra.mxu1 %v12453_v0  ;;  %v12498_v63 = vor.u32 %v7374_v49, %v6285_v60  ;;  %v15504_v51 = vld [vmem:[#allocation33_spill] sm:$0xff] }
 0x3f8   :  { %v2201_v42 = vsel %vm15493_vm5, %v8442_v45, %v8447_v62  ;;  %v2216_v55 = vsel %vm15339_vm15, %v2208_v27, 0.0  ;;  %vm15494_vm12 = vmmov %vm15492_vm2  ;;  %4064 = vmatmul.bf16.vlgmr.msrb.gmra.mxu3 %v12455_v57  ;;  %v7510_v10 = vld [vmem:[#allocation2 + $0x3a4] sm:$0xf0]  ;;  %v6323_v27 = vld [vmem:[#allocation4 + $0xa8] sm:$0xf] }
 0x3f9   :  { %v2207_v14 = vsel %vm15494_vm12, %v8447_v62, %v8442_v45  ;;  %v2213_v50 = vsel %vm15337_vm13, %v2201_v42, 0.0  ;;  %v2226_v39 = vpack.c.bf16 %v2216_v55, %v2215_v53  ;;  %v8458_v62 = vunpack.i.h.bf16 %v12332_v41  ;;  %v7389_v42 = vld [vmem:[#allocation4 + $0xcc] sm:$0xf0]  ;;  %v15501_v53 = vld [vmem:[#allocation32_spill] sm:$0xff] }
 0x3fa   :  { %v2214_v47 = vsel %vm15339_vm15, %v2207_v14, 0.0  ;;  %vm15495_vm13 = vcmp.lt.s32.totalorder %v9221_v28, 110  ;;  %4131 = vmatpush.bf16.msrb.mxu2 %v6836_v37  ;;  %vm15499_vm12 = vcmp.lt.s32.totalorder %v9221_v28, 113  ;;  %v6819_v18 = vld [vmem:[#allocation2 + $0x3a0] sm:$0xf] }
 0x3fb   :  { %v2225_v46 = vpack.c.bf16 %v2214_v47, %v2213_v50  ;;  %2232 = vst [vmem:[#allocation2 + $0x2a8] sm:$0xff] %v2226_v39  ;;  %v2502_v3 = vsel %vm15495_vm13, %v8463_v31, %v8468_v11  ;;  %vm15496_vm15 = vmmov %vm15495_vm13  ;;  %v7500_v13 = vld [vmem:[#allocation2 + $0x354] sm:$0xf0]  ;;  %v2326_v49 = vsel %vm15499_vm12, %v8453_v23, %v8458_v62  ;;  %v12520_v50 = vpop.permute.xlu2 %8550  ;;  %4045 = vmatmul.bf16.gmra.mxu2 %v12498_v63 }
 0x3fc   :  { %v2508_v38 = vsel %vm15496_vm15, %v8468_v11, %v8463_v31  ;;  %v2515_v22 = vsel %vm15461_vm0, %v2502_v3, 0.0  ;;  %vm15497_vm2 = vmmov %vm15495_vm13  ;;  %vm15502_vm15 = vnez %v15501_v53  ;;  %v7380_v11 = vld [vmem:[#allocation4 + $0x84] sm:$0xf0] }
 0x3fd   :  { %2231 = vst [vmem:[#allocation2 + $0x2a0] sm:$0xff] %v2225_v46  ;;  %v2516_v12 = vsel %vm15463_vm9, %v2508_v38, 0.0  ;;  %v2501_v41 = vsel %vm15497_vm2, %v8462_v40, %v8467_v9  ;;  %vm15498_vm5 = vmmov %vm15497_vm2  ;;  %v2343_v55 = vsel %vm15502_vm15, %v2326_v49, 0.0  ;;  %v6779_v14 = vld [vmem:[#allocation2 + $0x350] sm:$0xf]  ;;  %v12528_v46 = vpop.permute.xlu0 %8510 }
 0x3fe   :  { %v2507_v45 = vsel %vm15498_vm5, %v8467_v9, %v8462_v40  ;;  %v2526_v31 = vpack.c.bf16 %v2516_v12, %v2515_v22  ;;  %v2513_v30 = vsel %vm15461_vm0, %v2501_v41, 0.0  ;;  %vm15500_vm13 = vmmov %vm15499_vm12  ;;  %v6780_v37 = vor.u32 %v7500_v13, %v6779_v14  ;;  %v12530_v9 = vpop.permute.xlu1 %8500  ;;  %4132 = vmatpush.bf16.msrb.mxu2 %v6828_v35 }
 0x3ff   :  { %v2514_v58 = vsel %vm15463_vm9, %v2507_v45, 0.0  ;;  %v2332_v40 = vsel %vm15500_vm13, %v8458_v62, %v8453_v23  ;;  %vm15503_vm2 = vmmov %vm15499_vm12  ;;  %vm15505_vm9 = vnez %v15504_v51  ;;  %v8493_v62 = vunpack.i.h.bf16 %v12224_v25 }
 0x400   :  { %v2525_v60 = vpack.c.bf16 %v2514_v58, %v2513_v30  ;;  %v2325_v61 = vsel %vm15503_vm2, %v8452_v2, %v8457_v56  ;;  %2532 = vst [vmem:[#allocation2 + $0x398] sm:$0xff] %v2526_v31  ;;  %v2344_v39 = vsel %vm15505_vm9, %v2332_v40, 0.0  ;;  %vm15506_vm0 = vmmov %vm15503_vm2  ;;  %v6772_v22 = vor.u32 %v7498_v8, %v6771_v16  ;;  %4106 = vmatpush.bf16.msrb.mxu1 %v6780_v37  ;;  %v6763_v40 = vld [vmem:[#allocation2 + $0x330] sm:$0xf] }
 0x401   :  { %v2331_v47 = vsel %vm15506_vm0, %v8457_v56, %v8452_v2  ;;  %v2341_v23 = vsel %vm15502_vm15, %v2325_v61, 0.0  ;;  %v2350_v3 = vpack.c.bf16 %v2344_v39, %v2343_v55  ;;  %v6820_v2 = vor.u32 %v7510_v10, %v6819_v18  ;;  %vm15507_vm5 = vmmov %vm15506_vm0  ;;  %v7496_v55 = vld [vmem:[#allocation2 + $0x334] sm:$0xf0]  ;;  %v7384_v61 = vld [vmem:[#allocation4 + $0xac] sm:$0xf] }
 0x402   :  { %2531 = vst [vmem:[#allocation2 + $0x390] sm:$0xff] %v2525_v60  ;;  %v2342_v38 = vsel %vm15505_vm9, %v2331_v47, 0.0  ;;  %v8483_v56 = vunpack.i.h.bf16 %v12405_v54  ;;  %v8482_v41 = vunpack.i.l.bf16 %v12405_v54  ;;  %v8473_v45 = vunpack.i.h.bf16 %v12407_v59  ;;  %vm15508_vm12 = vmmov %vm15506_vm0  ;;  %v7478_v8 = vld [vmem:[#allocation2 + $0x2a4] sm:$0xf0] }
 0x403   :  { %v2349_v12 = vpack.c.bf16 %v2342_v38, %v2341_v23  ;;  %2356 = vst [vmem:[#allocation2 + $0x328] sm:$0xff] %v2350_v3  ;;  %v8472_v13 = vunpack.i.l.bf16 %v12407_v59  ;;  %v12540_v31 = vor.u32 %v7389_v42, %v6323_v27  ;;  %v12542_v30 = vor.u32 %v7380_v11, %v6291_v5  ;;  %vm15509_vm13 = vmmov %vm15506_vm0  ;;  %4133 = vmatpush.bf16.msrb.mxu2 %v6820_v2  ;;  %v6325_v3 = vld [vmem:[#allocation4 + $0xd0] sm:$0xf0] }
 0x404   :  { %v2324_v35 = vsel %vm15507_vm5, %v8478_v52, %v8483_v56  ;;  %v2330_v54 = vsel %vm15508_vm12, %v8483_v56, %v8478_v52  ;;  %v2323_v59 = vsel %vm15509_vm13, %v8477_v33, %v8482_v41  ;;  %vm15510_vm2 = vmmov %vm15506_vm0  ;;  %v6691_v27 = vld [vmem:[#allocation2 + $0x2a0] sm:$0xf]  ;;  %v8492_v42 = vunpack.i.l.bf16 %v12224_v25  ;;  %4107 = vmatpush.bf16.msrb.mxu1 %v6772_v22 }
 0x405   :  { %2355 = vst [vmem:[#allocation2 + $0x320] sm:$0xff] %v2349_v12  ;;  %v2329_v16 = vsel %vm15510_vm2, %v8482_v41, %v8477_v33  ;;  %v2339_v58 = vsel %vm15502_vm15, %v2324_v35, 0.0  ;;  %v2340_v49 = vsel %vm15505_vm9, %v2330_v54, 0.0  ;;  %v2337_v52 = vsel %vm15502_vm15, %v2323_v59, 0.0 }
 0x406   :  { %v2338_v10 = vsel %vm15505_vm9, %v2329_v16, 0.0  ;;  %v2348_v29 = vpack.c.bf16 %v2340_v49, %v2339_v58  ;;  %v15511_v5 = vunpack.i.h.bf16 %v15418_v43  ;;  %vm15512_vm0 = vcmp.lt.s32.totalorder %v9221_v28, 127  ;;  %v12596_v59 = vpop.permute.xlu1 %8515 }
 0x407   :  { %v2347_v33 = vpack.c.bf16 %v2338_v10, %v2337_v52  ;;  %vm15514_vm5 = vmmov %vm15512_vm0  ;;  %v15515_v47 = vunpack.i.l.bf16 %v15418_v43  ;;  %v7508_v38 = vld [vmem:[#allocation2 + $0x394] sm:$0xf0]  ;;  %v6692_v56 = vor.u32 %v7478_v8, %v6691_v27  ;;  %v8508_v43 = vunpack.i.h.bf16 %v12314_v32  ;;  %4026 = vmatmul.bf16.gmra.mxu1 %v12540_v31  ;;  %v12603_v52 = vpop.permute.xlu2 %8565 }
 0x408   :  { %v2146_v60 = vsel %vm15512_vm0, %v15511_v5, %v8473_v45  ;;  %v15513_v14 = vmov %v15511_v5  ;;  %vm15516_vm12 = vmmov %vm15512_vm0  ;;  %2354 = vst [vmem:[#allocation2 + $0x318] sm:$0xff] %v2348_v29  ;;  %v6764_v54 = vor.u32 %v7496_v55, %v6763_v40  ;;  %v8507_v16 = vunpack.i.l.bf16 %v12314_v32  ;;  %4069 = vmatmul.bf16.gmra.mxu3 %v12542_v30  ;;  %v15519_v5 = vld [vmem:[#allocation62_spill] sm:$0xff] }
 0x409   :  { %v2152_v18 = vsel %vm15514_vm5, %v8473_v45, %v15513_v14  ;;  %v2163_v39 = vsel %vm15358_vm14, %v2146_v60, 0.0  ;;  %v2145_v23 = vsel %vm15516_vm12, %v15515_v47, %v8472_v13  ;;  %v15517_v37 = vmov %v15515_v47  ;;  %vm15518_vm13 = vmmov %vm15512_vm0  ;;  %v6811_v41 = vld [vmem:[#allocation2 + $0x390] sm:$0xf]  ;;  %v12593_v45 = vpop.permute.xlu0 %8525  ;;  %2353 = vst [vmem:[#allocation2 + $0x310] sm:$0xff] %v2347_v33  ;;  %4085 = vmatpush.bf16.msrb.mxu0 %v6692_v56  ;;  %v6331_v56 = vld [vmem:[#allocation4 + $0xb0] sm:$0xf] }
 0x40a   :  { %v2151_v11 = vsel %vm15518_vm13, %v8472_v13, %v15517_v37  ;;  %v2164_v22 = vsel %vm15360_vm8, %v2152_v18, 0.0  ;;  %v2161_v12 = vsel %vm15358_vm14, %v2145_v23, 0.0  ;;  %v8498_v58 = vunpack.i.h.bf16 %v12472_v24  ;;  %4108 = vmatpush.bf16.msrb.mxu1 %v6764_v54  ;;  %vm15521_vm2 = vmmov %vm15512_vm0 }
 0x40b   :  { %v2162_v2 = vsel %vm15360_vm8, %v2151_v11, 0.0  ;;  %v2170_v13 = vpack.c.bf16 %v2164_v22, %v2163_v39  ;;  %v8497_v8 = vunpack.i.l.bf16 %v12472_v24  ;;  %v8488_v49 = vunpack.i.h.bf16 %v12474_v1  ;;  %vm15524_vm5 = vmmov %vm15512_vm0  ;;  %v7494_v39 = vld [vmem:[#allocation2 + $0x324] sm:$0xf0] }
 0x40c   :  { %v2169_v35 = vpack.c.bf16 %v2162_v2, %v2161_v12  ;;  %v8523_v10 = vunpack.i.h.bf16 %v12390_v4  ;;  %v8487_v27 = vunpack.i.l.bf16 %v12474_v1  ;;  %v12608_v29 = vor.u32 %v7384_v61, %v6325_v3  ;;  %vm15526_vm12 = vmmov %vm15512_vm0  ;;  %v6755_v3 = vld [vmem:[#allocation2 + $0x320] sm:$0xf] }
 0x40d   :  { %2176 = vst [vmem:[#allocation2 + $0x298] sm:$0xff] %v2170_v13  ;;  %v6812_v33 = vor.u32 %v7508_v38, %v6811_v41  ;;  %v15520_v60 = vunpack.i.h.bf16 %v15519_v5  ;;  %v15523_v14 = vunpack.i.l.bf16 %v15519_v5  ;;  %vm15527_vm13 = vcmp.lt.s32.totalorder %v9221_v28, 111 }
 0x40e   :  { %2175 = vst [vmem:[#allocation2 + $0x290] sm:$0xff] %v2169_v35  ;;  %v2446_v12 = vsel %vm15527_vm13, %v8488_v49, %v8493_v62  ;;  %v6756_v5 = vor.u32 %v7494_v39, %v6755_v3  ;;  %v8538_v25 = vunpack.i.h.bf16 %v12457_v26  ;;  %v12666_v39 = vpop.permute.xlu1 %8530  ;;  %4050 = vmatmul.bf16.gmra.mxu2 %v12608_v29 }
 0x40f   :  { %v2144_v24 = vsel %vm15521_vm2, %v15520_v60, %v8498_v58  ;;  %v15522_v40 = vmov %v15520_v60  ;;  %v2143_v18 = vsel %vm15524_vm5, %v15523_v14, %v8497_v8  ;;  %v15525_v1 = vmov %v15523_v14  ;;  %4134 = vmatpush.bf16.msrb.mxu2 %v6812_v33  ;;  %vm15528_vm2 = vmmov %vm15527_vm13 }
 0x410   :  { %v2150_v55 = vsel %vm15512_vm0, %v8498_v58, %v15522_v40  ;;  %v2149_v61 = vsel %vm15526_vm12, %v8497_v8, %v15525_v1  ;;  %v2159_v47 = vsel %vm15358_vm14, %v2144_v24, 0.0  ;;  %v2157_v37 = vsel %vm15358_vm14, %v2143_v18, 0.0  ;;  %vm15529_vm0 = vmmov %vm15528_vm2  ;;  %v7390_v58 = vld [vmem:[#allocation4 + $0xd4] sm:$0xf0]  ;;  %v7492_v8 = vld [vmem:[#allocation2 + $0x314] sm:$0xf0]  ;;  %4109 = vmatpush.bf16.msrb.mxu1 %v6756_v5 }
 0x411   :  { %v2160_v23 = vsel %vm15360_vm8, %v2150_v55, 0.0  ;;  %v2158_v11 = vsel %vm15360_vm8, %v2149_v61, 0.0  ;;  %v2452_v2 = vsel %vm15528_vm2, %v8493_v62, %v8488_v49  ;;  %v2463_v41 = vsel %vm15389_vm4, %v2446_v12, 0.0  ;;  %vm15530_vm5 = vmmov %vm15529_vm0  ;;  %v6747_v60 = vld [vmem:[#allocation2 + $0x310] sm:$0xf]  ;;  %v12658_v24 = vpop.permute.xlu0 %8540  ;;  %v12692_v12 = vpop.permute.xlu2 %8580 }
 0x412   :  { %v2168_v38 = vpack.c.bf16 %v2160_v23, %v2159_v47  ;;  %v2167_v22 = vpack.c.bf16 %v2158_v11, %v2157_v37  ;;  %v2464_v13 = vsel %vm15391_vm11, %v2452_v2, 0.0  ;;  %v2445_v35 = vsel %vm15529_vm0, %v8487_v27, %v8492_v42 }
 0x413   :  { %v2451_v54 = vsel %vm15530_vm5, %v8492_v42, %v8487_v27  ;;  %v2470_v62 = vpack.c.bf16 %v2464_v13, %v2463_v41  ;;  %v2461_v49 = vsel %vm15389_vm4, %v2445_v35, 0.0  ;;  %v8522_v40 = vunpack.i.l.bf16 %v12390_v4 }
 0x414   :  { %2174 = vst [vmem:[#allocation2 + $0x288] sm:$0xff] %v2168_v38  ;;  %v2462_v33 = vsel %vm15391_vm11, %v2451_v54, 0.0  ;;  %v8503_v27 = vunpack.i.h.bf16 %v12530_v9  ;;  %v8537_v55 = vunpack.i.l.bf16 %v12457_v26  ;;  %v8513_v14 = vunpack.i.h.bf16 %v12528_v46  ;;  %v7476_v1 = vld [vmem:[#allocation2 + $0x294] sm:$0xf0]  ;;  %v12785_v26 = vld [vmem:[#allocation2 + $0xc8] sm:$0xf0] }
 0x415   :  { %2173 = vst [vmem:[#allocation2 + $0x280] sm:$0xff] %v2167_v22  ;;  %v2469_v42 = vpack.c.bf16 %v2462_v33, %v2461_v49  ;;  %v8502_v18 = vunpack.i.l.bf16 %v12530_v9  ;;  %v6748_v61 = vor.u32 %v7492_v8, %v6747_v60  ;;  %vm15531_vm12 = vcmp.lt.s32.totalorder %v9221_v28, 113  ;;  %v6683_v9 = vld [vmem:[#allocation2 + $0x290] sm:$0xf]  ;;  %v7365_v60 = vld [vmem:[#allocation4 + $0x14] sm:$0xf] }
 0x416   :  { %2476 = vst [vmem:[#allocation2 + $0x388] sm:$0xff] %v2470_v62  ;;  %v2322_v47 = vsel %vm15531_vm12, %v8503_v27, %v8508_v43  ;;  %vm15532_vm13 = vmmov %vm15531_vm12  ;;  %v12677_v37 = vor.u32 %v7390_v58, %v6331_v56  ;;  %v8528_v11 = vunpack.i.h.bf16 %v12593_v45  ;;  %v6684_v13 = vor.u32 %v7476_v1, %v6683_v9  ;;  %v15537_v58 = vld [vmem:[#allocation48_spill] sm:$0xff]  ;;  %v15539_v62 = vld [vmem:[#allocation49_spill] sm:$0xff] }
 0x417   :  { %2475 = vst [vmem:[#allocation2 + $0x380] sm:$0xff] %v2469_v42  ;;  %v2328_v23 = vsel %vm15532_vm13, %v8508_v43, %v8503_v27  ;;  %v2335_v3 = vsel %vm15502_vm15, %v2322_v47, 0.0  ;;  %vm15533_vm2 = vmmov %vm15531_vm12  ;;  %4110 = vmatpush.bf16.msrb.mxu1 %v6748_v61  ;;  %vm15535_vm5 = vcmp.lt.s32.totalorder %v9221_v28, 95  ;;  %v8527_v54 = vunpack.i.l.bf16 %v12593_v45  ;;  %v7423_v1 = vld [vmem:[#allocation2 + $0xf4] sm:$0xf] }
 0x418   :  { %v2336_v38 = vsel %vm15505_vm9, %v2328_v23, 0.0  ;;  %v2321_v22 = vsel %vm15533_vm2, %v8502_v18, %v8507_v16  ;;  %vm15534_vm0 = vmmov %vm15533_vm2  ;;  %v2744_v32 = vsel %vm15535_vm5, %v8523_v10, %v8528_v11  ;;  %4086 = vmatpush.bf16.msrb.mxu0 %v6684_v13  ;;  %vm15538_vm13 = vnez %v15537_v58  ;;  %v6477_v61 = vld [vmem:[#allocation2 + $0xf8] sm:$0xf0]  ;;  %4074 = vmatmul.bf16.gmra.mxu3 %v12677_v37 }
 0x419   :  { %v2327_v43 = vsel %vm15534_vm0, %v8507_v16, %v8502_v18  ;;  %v2346_v2 = vpack.c.bf16 %v2336_v38, %v2335_v3  ;;  %v2333_v56 = vsel %vm15502_vm15, %v2321_v22, 0.0  ;;  %vm15536_vm12 = vmmov %vm15535_vm5  ;;  %v2759_v8 = vsel %vm15538_vm13, %v2744_v32, 0.0  ;;  %v12718_v47 = vpop.permute.xlu0 %8555  ;;  %v7421_v32 = vld [vmem:[#allocation2 + $0xe4] sm:$0xf] }
 0x41a   :  { %v2334_v41 = vsel %vm15505_vm9, %v2327_v43, 0.0  ;;  %v2750_v16 = vsel %vm15536_vm12, %v8528_v11, %v8523_v10  ;;  %vm15540_vm2 = vnez %v15539_v62  ;;  %v8518_v33 = vunpack.i.h.bf16 %v12596_v59  ;;  %vm15541_vm0 = vmmov %vm15535_vm5 }
 0x41b   :  { %v2345_v35 = vpack.c.bf16 %v2334_v41, %v2333_v56  ;;  %2352 = vst [vmem:[#allocation2 + $0x308] sm:$0xff] %v2346_v2  ;;  %v2760_v49 = vsel %vm15540_vm2, %v2750_v16, 0.0  ;;  %v8517_v5 = vunpack.i.l.bf16 %v12596_v59  ;;  %v8512_v4 = vunpack.i.l.bf16 %v12528_v46  ;;  %vm15542_vm5 = vmmov %vm15541_vm0  ;;  %v7474_v18 = vld [vmem:[#allocation2 + $0x284] sm:$0xf0]  ;;  %v12734_v56 = vpop.permute.xlu1 %8545  ;;  %v6469_v16 = vld [vmem:[#allocation2 + $0xe8] sm:$0xf0] }
 0x41c   :  { %v2768_v42 = vpack.c.bf16 %v2760_v49, %v2759_v8  ;;  %v2743_v45 = vsel %vm15541_vm0, %v8522_v40, %v8527_v54  ;;  %v2749_v10 = vsel %vm15542_vm5, %v8527_v54, %v8522_v40  ;;  %v6675_v27 = vld [vmem:[#allocation2 + $0x280] sm:$0xf]  ;;  %vm15543_vm12 = vmmov %vm15541_vm0  ;;  %v2752_v9 = vsel %vm15541_vm0, %v8518_v33, %v8513_v14  ;;  %v6253_v40 = vld [vmem:[#allocation4 + $0x38] sm:$0xf0] }
 0x41d   :  { %2351 = vst [vmem:[#allocation2 + $0x300] sm:$0xff] %v2345_v35  ;;  %v2757_v59 = vsel %vm15538_vm13, %v2743_v45, 0.0  ;;  %v2758_v46 = vsel %vm15540_vm2, %v2749_v10, 0.0  ;;  %v2746_v23 = vsel %vm15543_vm12, %v8513_v14, %v8518_v33  ;;  %v7506_v11 = vld [vmem:[#allocation2 + $0x384] sm:$0xf0]  ;;  %v2764_v22 = vsel %vm15540_vm2, %v2752_v9, 0.0  ;;  %vm15544_vm5 = vmmov %vm15541_vm0 }
 0x41e   :  { %2774 = vst [vmem:[#allocation2 + $0x468] sm:$0xff] %v2768_v42  ;;  %v2767_v3 = vpack.c.bf16 %v2758_v46, %v2757_v59  ;;  %v2763_v38 = vsel %vm15538_vm13, %v2746_v23, 0.0  ;;  %v2745_v43 = vsel %vm15544_vm5, %v8512_v4, %v8517_v5  ;;  %v6803_v2 = vld [vmem:[#allocation2 + $0x380] sm:$0xf]  ;;  %vm15545_vm12 = vmmov %vm15541_vm0  ;;  %v6676_v35 = vor.u32 %v7474_v18, %v6675_v27  ;;  %v7366_v42 = vld [vmem:[#allocation4 + $0x1c] sm:$0xf] }
 0x41f   :  { %v2770_v41 = vpack.c.bf16 %v2764_v22, %v2763_v38  ;;  %v2751_v14 = vsel %vm15545_vm12, %v8517_v5, %v8512_v4  ;;  %v2761_v13 = vsel %vm15538_vm13, %v2745_v43, 0.0  ;;  %v8553_v54 = vunpack.i.h.bf16 %v12520_v50  ;;  %v6261_v45 = vld [vmem:[#allocation4 + $0x40] sm:$0xf0]  ;;  %v6413_v59 = vld [vmem:[#allocation2 + $0x78] sm:$0xf0]  ;;  %v12751_v22 = vpop.permute.xlu2 %8595  ;;  %vm15546_vm5 = vmmov %vm15541_vm0 }
 0x420   :  { %2773 = vst [vmem:[#allocation2 + $0x460] sm:$0xff] %v2767_v3  ;;  %v2762_v8 = vsel %vm15540_vm2, %v2751_v14, 0.0  ;;  %v6804_v49 = vor.u32 %v7506_v11, %v6803_v2  ;;  %v12744_v33 = vor.u32 %v7365_v60, %v6253_v40  ;;  %v8552_v10 = vunpack.i.l.bf16 %v12520_v50  ;;  %4087 = vmatpush.bf16.msrb.mxu0 %v6676_v35  ;;  %v7407_v18 = vld [vmem:[#allocation2 + $0x74] sm:$0xf]  ;;  %v6461_v40 = vld [vmem:[#allocation2 + $0xd8] sm:$0xf0]  ;;  %vm15547_vm12 = vmmov %vm15541_vm0 }
 0x421   :  { %v8568_v5 = vunpack.i.h.bf16 %v12603_v52  ;;  %2776 = vst [vmem:[#allocation2 + $0x478] sm:$0xff] %v2770_v41  ;;  %v2769_v4 = vpack.c.bf16 %v2762_v8, %v2761_v13  ;;  %v6480_v27 = vor.u32 %v7423_v1, %v6477_v61  ;;  %v6472_v23 = vor.u32 %v7421_v32, %v6469_v16  ;;  %v7419_v11 = vld [vmem:[#allocation2 + $0xd4] sm:$0xf]  ;;  %v6259_v3 = vld [vmem:[#allocation4 + $0x18] sm:$0xf]  ;;  %vm15548_vm11 = vmmov %vm15541_vm0 }
 0x422   :  { %4135 = vmatpush.bf16.msrb.mxu2 %v6804_v49  ;;  %v8533_v9 = vunpack.i.h.bf16 %v12666_v39  ;;  %v8532_v60 = vunpack.i.l.bf16 %v12666_v39  ;;  %v7371_v38 = vld [vmem:[#allocation4 + $0x3c] sm:$0xf0]  ;;  %v8543_v43 = vunpack.i.h.bf16 %v12658_v24  ;;  %v12756_v2 = vor.u32 %v7366_v42, %v6261_v45  ;;  %v7490_v14 = vld [vmem:[#allocation2 + $0x304] sm:$0xf0]  ;;  %v7405_v16 = vld [vmem:[#allocation2 + $0x64] sm:$0xf] }
 0x423   :  { %2775 = vst [vmem:[#allocation2 + $0x470] sm:$0xff] %v2769_v4  ;;  %4088 = vmatmul.bf16.vlgmr.msrb.gmra.mxu0 %v12744_v33  ;;  %v6405_v8 = vld [vmem:[#allocation2 + $0x68] sm:$0xf0]  ;;  %v12775_v49 = vld [vmem:[#allocation2 + $0xc4] sm:$0xf]  ;;  %v6416_v61 = vor.u32 %v7407_v18, %v6413_v59  ;;  %v12789_v1 = vpop.permute.xlu1 %8560  ;;  %v12791_v46 = vor.u32 %v7371_v38, %v6259_v3  ;;  %v8558_v58 = vunpack.i.h.bf16 %v12718_v47  ;;  %v8548_v18 = vunpack.i.h.bf16 %v12734_v56 }
 0x424   :  { %v6739_v41 = vld [vmem:[#allocation2 + $0x300] sm:$0xf]  ;;  %v2742_v39 = vsel %vm15541_vm0, %v8533_v9, %v8538_v25  ;;  %v2748_v13 = vsel %vm15546_vm5, %v8538_v25, %v8533_v9  ;;  %v2741_v35 = vsel %vm15547_vm12, %v8532_v60, %v8537_v55  ;;  %v2747_v32 = vsel %vm15548_vm11, %v8537_v55, %v8532_v60  ;;  %v7403_v3 = vld [vmem:[#allocation2 + $0x54] sm:$0xf]  ;;  %v15552_v38 = vld [vmem:[#allocation44_spill] sm:$0xff] }
 0x425   :  { %v2755_v42 = vsel %vm15538_vm13, %v2742_v39, 0.0  ;;  %v2756_v25 = vsel %vm15540_vm2, %v2748_v13, 0.0  ;;  %v2753_v45 = vsel %vm15538_vm13, %v2741_v35, 0.0  ;;  %v2754_v4 = vsel %vm15540_vm2, %v2747_v32, 0.0  ;;  %4136 = vmatmul.bf16.vlgmr.msrb.gmra.mxu2 %v12756_v2 }
 0x426   :  { %4224 = vmatpush.bf16.msra.mxu2 %v6480_v27  ;;  %v12787_v27 = vpop.permute.xlu0 %8570  ;;  %v2766_v55 = vpack.c.bf16 %v2756_v25, %v2755_v42  ;;  %v2765_v9 = vpack.c.bf16 %v2754_v4, %v2753_v45  ;;  %v6740_v60 = vor.u32 %v7490_v14, %v6739_v41  ;;  %v6464_v39 = vor.u32 %v7419_v11, %v6461_v40  ;;  %v15554_v41 = vld [vmem:[#allocation45_spill] sm:$0xff]  ;;  %v6445_v45 = vld [vmem:[#allocation2 + $0xb8] sm:$0xf0]  ;;  %v12832_v4 = vld [vmem:[#allocation2 + $0x48] sm:$0xf0] }
 0x427   :  { %v8557_v13 = vunpack.i.l.bf16 %v12718_v47  ;;  %v6408_v62 = vor.u32 %v7405_v16, %v6405_v8  ;;  %v6456_v35 = vor.u32 %v12775_v49, %v12785_v26  ;;  %v8547_v59 = vunpack.i.l.bf16 %v12734_v56  ;;  %v7415_v25 = vld [vmem:[#allocation2 + $0xb4] sm:$0xf] }
 0x428   :  { %2772 = vst [vmem:[#allocation2 + $0x458] sm:$0xff] %v2766_v55  ;;  %4111 = vmatpush.bf16.msrb.mxu1 %v6740_v60  ;;  %vm15549_vm11 = vcmp.lt.s32.totalorder %v9221_v28, 96  ;;  %v7536_v56 = vld [vmem:[#allocation2 + $0x474] sm:$0xf0]  ;;  %vm15553_vm0 = vnez %v15552_v38  ;;  %vm15555_vm5 = vnez %v15554_v41  ;;  %v15565_v38 = vunpack.i.h.bf16 %v12692_v12 }
 0x429   :  { %2771 = vst [vmem:[#allocation2 + $0x450] sm:$0xff] %v2765_v9  ;;  %v2684_v47 = vsel %vm15549_vm11, %v8553_v54, %v8558_v58  ;;  %vm15550_vm13 = vmmov %vm15549_vm11 }
 0x42a   :  { %4225 = vmatpush.bf16.msra.mxu2 %v6472_v23  ;;  %v8542_v23 = vunpack.i.l.bf16 %v12658_v24  ;;  %v2690_v11 = vsel %vm15550_vm13, %v8558_v58, %v8553_v54  ;;  %vm15551_vm2 = vmmov %vm15549_vm11  ;;  %v6397_v24 = vld [vmem:[#allocation2 + $0x58] sm:$0xf0]  ;;  %v6923_v16 = vld [vmem:[#allocation2 + $0x470] sm:$0xf] }
 0x42b   :  { %v2683_v40 = vsel %vm15551_vm2, %v8552_v10, %v8557_v13  ;;  %v2700_v14 = vsel %vm15555_vm5, %v2690_v11, 0.0  ;;  %vm15556_vm12 = vmmov %vm15551_vm2  ;;  %4112 = vmatmul.bf16.vlgmr.msrb.gmra.mxu1 %v12791_v46  ;;  %v6293_v58 = vld [vmem:[#allocation4 + $0x88] sm:$0xf0]  ;;  %v6924_v11 = vor.u32 %v7536_v56, %v6923_v16  ;;  %v6333_v56 = vld [vmem:[#allocation4 + $0xd8] sm:$0xf0] }
 0x42c   :  { %4200 = vmatpush.bf16.msra.mxu1 %v6416_v61  ;;  %v2699_v61 = vsel %vm15553_vm0, %v2684_v47, 0.0  ;;  %v2689_v32 = vsel %vm15556_vm12, %v8557_v13, %v8552_v10  ;;  %v2697_v54 = vsel %vm15553_vm0, %v2683_v40, 0.0  ;;  %vm15557_vm11 = vmmov %vm15551_vm2  ;;  %v12830_v10 = vld [vmem:[#allocation2 + $0x44] sm:$0xf]  ;;  %v2685_v60 = vsel %vm15551_vm2, %v8542_v23, %v8547_v59  ;;  %v12840_v13 = vpop.permute.xlu2 %8610  ;;  %v6915_v40 = vld [vmem:[#allocation2 + $0x460] sm:$0xf] }
 0x42d   :  { %v2708_v8 = vpack.c.bf16 %v2700_v14, %v2699_v61  ;;  %v2698_v49 = vsel %vm15555_vm5, %v2689_v32, 0.0  ;;  %v2686_v42 = vsel %vm15557_vm11, %v8543_v43, %v8548_v18  ;;  %vm15558_vm13 = vmmov %vm15551_vm2  ;;  %v2701_v47 = vsel %vm15553_vm0, %v2685_v60, 0.0  ;;  %v7534_v61 = vld [vmem:[#allocation2 + $0x464] sm:$0xf0]  ;;  %4152 = vmatpush.bf16.msra.mxu3 %v6924_v11  ;;  %v7385_v60 = vld [vmem:[#allocation4 + $0xb4] sm:$0xf] }
 0x42e   :  { %4226 = vmatpush.bf16.msra.mxu2 %v6464_v39  ;;  %v2692_v50 = vsel %vm15558_vm13, %v8548_v18, %v8543_v43  ;;  %v2707_v26 = vpack.c.bf16 %v2698_v49, %v2697_v54  ;;  %v2703_v55 = vsel %vm15553_vm0, %v2686_v42, 0.0  ;;  %v7375_v39 = vld [vmem:[#allocation4 + $0x64] sm:$0xf]  ;;  %vm15559_vm12 = vmmov %vm15551_vm2  ;;  %v6400_v54 = vor.u32 %v7403_v3, %v6397_v24 }
 0x42f   :  { %v2704_v9 = vsel %vm15555_vm5, %v2692_v50, 0.0  ;;  %2714 = vst [vmem:[#allocation2 + $0x438] sm:$0xff] %v2708_v8  ;;  %v2691_v18 = vsel %vm15559_vm12, %v8547_v59, %v8542_v23  ;;  %v6448_v49 = vor.u32 %v7415_v25, %v6445_v45  ;;  %v6437_v8 = vld [vmem:[#allocation2 + $0xa8] sm:$0xf0]  ;;  %v12850_v23 = vor.u32 %v7375_v39, %v6293_v58  ;;  %v7532_v16 = vld [vmem:[#allocation2 + $0x454] sm:$0xf0]  ;;  %v12853_v50 = vpop.permute.xlu0 %8585  ;;  %vm15560_vm11 = vmmov %vm15551_vm2 }
 0x430   :  { %4201 = vmatpush.bf16.msra.mxu1 %v6408_v62  ;;  %v2710_v43 = vpack.c.bf16 %v2704_v9, %v2703_v55  ;;  %2713 = vst [vmem:[#allocation2 + $0x430] sm:$0xff] %v2707_v26  ;;  %v2702_v32 = vsel %vm15555_vm5, %v2691_v18, 0.0  ;;  %v7413_v62 = vld [vmem:[#allocation2 + $0xa4] sm:$0xf]  ;;  %v12855_v26 = vpop.permute.xlu1 %8575  ;;  %v6916_v55 = vor.u32 %v7534_v61, %v6915_v40  ;;  %v6392_v3 = vor.u32 %v12830_v10, %v12832_v4  ;;  %v7376_v25 = vld [vmem:[#allocation4 + $0x6c] sm:$0xf]  ;;  %vm15561_vm13 = vmmov %vm15551_vm2 }
 0x431   :  { %v2709_v59 = vpack.c.bf16 %v2702_v32, %v2701_v47  ;;  %v8562_v24 = vunpack.i.l.bf16 %v12789_v1  ;;  %v6907_v45 = vld [vmem:[#allocation2 + $0x450] sm:$0xf]  ;;  %v6440_v9 = vor.u32 %v7413_v62, %v6437_v8  ;;  %v6301_v39 = vld [vmem:[#allocation4 + $0x90] sm:$0xf0]  ;;  %v8588_v18 = vunpack.i.h.bf16 %v12853_v50  ;;  %vm15564_vm12 = vmmov %vm15551_vm2 }
 0x432   :  { %4227 = vmatpush.bf16.msra.mxu2 %v6456_v35  ;;  %2716 = vst [vmem:[#allocation2 + $0x448] sm:$0xff] %v2710_v43  ;;  %v8563_v35 = vunpack.i.h.bf16 %v12789_v1  ;;  %v6908_v58 = vor.u32 %v7532_v16, %v6907_v45  ;;  %v7399_v43 = vld [vmem:[#allocation2 + $0x34] sm:$0xf]  ;;  %v15562_v4 = vunpack.i.l.bf16 %v12603_v52  ;;  %v6381_v61 = vld [vmem:[#allocation2 + $0x38] sm:$0xf0]  ;;  %4153 = vmatpush.bf16.msra.mxu3 %v6916_v55 }
 0x433   :  { %2715 = vst [vmem:[#allocation2 + $0x440] sm:$0xff] %v2709_v59  ;;  %v12879_v32 = vld [vmem:[#allocation2 + $0x94] sm:$0xf]  ;;  %4093 = vmatmul.bf16.gmra.mxu0 %v12850_v23  ;;  %v8573_v59 = vunpack.i.h.bf16 %v12787_v27  ;;  %v6299_v55 = vld [vmem:[#allocation4 + $0x68] sm:$0xf]  ;;  %v6384_v45 = vor.u32 %v7399_v43, %v6381_v61  ;;  %v8578_v61 = vunpack.i.h.bf16 %v12855_v26 }
 0x434   :  { %4202 = vmatpush.bf16.msra.mxu1 %v6400_v54  ;;  %v2682_v10 = vsel %vm15560_vm11, %v8563_v35, %v8568_v5  ;;  %v2688_v1 = vsel %vm15561_vm13, %v8568_v5, %v8563_v35  ;;  %v2681_v47 = vsel %vm15551_vm2, %v8562_v24, %v15562_v4  ;;  %v15563_v11 = vmov %v15562_v4  ;;  %v12881_v54 = vld [vmem:[#allocation2 + $0x98] sm:$0xf0]  ;;  %v15571_v43 = vld [vmem:[#allocation41_spill] sm:$0xff] }
 0x435   :  { %v2687_v40 = vsel %vm15564_vm12, %v15563_v11, %v8562_v24  ;;  %v2695_v5 = vsel %vm15553_vm0, %v2682_v10, 0.0  ;;  %v2696_v62 = vsel %vm15555_vm5, %v2688_v1, 0.0  ;;  %v2693_v8 = vsel %vm15553_vm0, %v2681_v47, 0.0  ;;  %v7381_v24 = vld [vmem:[#allocation4 + $0x8c] sm:$0xf0]  ;;  %v15569_v47 = vld [vmem:[#allocation40_spill] sm:$0xff] }
 0x436   :  { %4228 = vmatpush.bf16.msra.mxu2 %v6448_v49  ;;  %v2694_v52 = vsel %vm15555_vm5, %v2687_v40, 0.0  ;;  %v2706_v16 = vpack.c.bf16 %v2696_v62, %v2695_v5  ;;  %v12893_v49 = vor.u32 %v7376_v25, %v6301_v39  ;;  %v6432_v10 = vor.u32 %v12879_v32, %v12881_v54  ;;  %v7397_v25 = vld [vmem:[#allocation2 + $0x24] sm:$0xf]  ;;  %v6373_v39 = vld [vmem:[#allocation2 + $0x28] sm:$0xf0]  ;;  %4154 = vmatpush.bf16.msra.mxu3 %v6908_v58 }
 0x437   :  { %v2705_v35 = vpack.c.bf16 %v2694_v52, %v2693_v8  ;;  %vm15566_vm0 = vcmp.lt.s32.totalorder %v9221_v28, 97  ;;  %v15567_v1 = vmov %v15565_v38  ;;  %vm15570_vm11 = vnez %v15569_v47  ;;  %v6421_v5 = vld [vmem:[#allocation2 + $0x88] sm:$0xf0]  ;;  %v12916_v62 = vld [vmem:[#allocation2 + $0x2f4] sm:$0xf] }
 0x438   :  { %4203 = vmatpush.bf16.msra.mxu1 %v6392_v3  ;;  %v2624_v41 = vsel %vm15566_vm0, %v15565_v38, %v8588_v18  ;;  %vm15568_vm5 = vmmov %vm15566_vm0  ;;  %2712 = vst [vmem:[#allocation2 + $0x428] sm:$0xff] %v2706_v16  ;;  %vm15572_vm13 = vnez %v15571_v43  ;;  %v8587_v40 = vunpack.i.l.bf16 %v12853_v50  ;;  %v8572_v32 = vunpack.i.l.bf16 %v12787_v27  ;;  %v12918_v8 = vld [vmem:[#allocation2 + $0x2f8] sm:$0xf0]  ;;  %v12921_v50 = vld [vmem:[#allocation2 + $0x14] sm:$0xf]  ;;  %v12927_v27 = vpop.permute.xlu1 %8590  ;;  %4141 = vmatmul.bf16.gmra.mxu2 %v12893_v49 }
 0x439   :  { %v2630_v4 = vsel %vm15568_vm5, %v8588_v18, %v15567_v1  ;;  %v2639_v3 = vsel %vm15570_vm11, %v2624_v41, 0.0  ;;  %2711 = vst [vmem:[#allocation2 + $0x420] sm:$0xff] %v2705_v35  ;;  %v12912_v54 = vor.u32 %v7381_v24, %v6299_v55  ;;  %v12914_v18 = vld [vmem:[#allocation2 + $0x84] sm:$0xf]  ;;  %v8577_v16 = vunpack.i.l.bf16 %v12855_v26  ;;  %v12923_v38 = vld [vmem:[#allocation2 + $0x18] sm:$0xf0]  ;;  %vm15574_vm2 = vmmov %vm15566_vm0 }
 0x43a   :  { %v2640_v11 = vsel %vm15572_vm13, %v2630_v4, 0.0  ;;  %4229 = vmatpush.bf16.msra.mxu2 %v6440_v9  ;;  %v12925_v9 = vpop.permute.xlu0 %8600  ;;  %v15573_v58 = vunpack.i.l.bf16 %v12692_v12  ;;  %vm15576_vm12 = vmmov %vm15566_vm0  ;;  %v2626_v24 = vsel %vm15566_vm0, %v8573_v59, %v8578_v61  ;;  %v6899_v1 = vld [vmem:[#allocation2 + $0x440] sm:$0xf]  ;;  %v7530_v4 = vld [vmem:[#allocation2 + $0x444] sm:$0xf0] }
 0x43b   :  { %v2648_v52 = vpack.c.bf16 %v2640_v11, %v2639_v3  ;;  %vm15577_vm5 = vmmov %vm15566_vm0  ;;  %v12942_v3 = vld [vmem:[#allocation2 + $0x2e4] sm:$0xf]  ;;  %v12944_v11 = vld [vmem:[#allocation2 + $0x2e8] sm:$0xf0]  ;;  %4117 = vmatmul.bf16.gmra.mxu1 %v12912_v54 }
 0x43c   :  { %v2623_v35 = vsel %vm15574_vm2, %v15573_v58, %v8587_v40  ;;  %v15575_v55 = vmov %v15573_v58  ;;  %v2632_v41 = vsel %vm15577_vm5, %v8578_v61, %v8573_v59  ;;  %4204 = vmatpush.bf16.msra.mxu1 %v6384_v45  ;;  %v2643_v58 = vsel %vm15570_vm11, %v2626_v24, 0.0  ;;  %v12954_v61 = vld [vmem:[#allocation2 + $0x4] sm:$0xf]  ;;  %vm15578_vm2 = vmmov %vm15566_vm0  ;;  %v7528_v14 = vld [vmem:[#allocation2 + $0x434] sm:$0xf0] }
 0x43d   :  { %v2629_v26 = vsel %vm15576_vm12, %v8587_v40, %v15575_v55  ;;  %2654 = vst [vmem:[#allocation2 + $0x408] sm:$0xff] %v2648_v52  ;;  %v2637_v12 = vsel %vm15570_vm11, %v2623_v35, 0.0  ;;  %v2644_v59 = vsel %vm15572_vm13, %v2632_v41, 0.0  ;;  %v2625_v45 = vsel %vm15578_vm2, %v8572_v32, %v8577_v16  ;;  %vm15579_vm12 = vmmov %vm15566_vm0  ;;  %v6891_v35 = vld [vmem:[#allocation2 + $0x430] sm:$0xf] }
 0x43e   :  { %v2638_v40 = vsel %vm15572_vm13, %v2629_v26, 0.0  ;;  %v2650_v42 = vpack.c.bf16 %v2644_v59, %v2643_v58  ;;  %v2631_v52 = vsel %vm15579_vm12, %v8577_v16, %v8572_v32  ;;  %4230 = vmatpush.bf16.msra.mxu2 %v6432_v10  ;;  %v6376_v26 = vor.u32 %v7397_v25, %v6373_v39  ;;  %v12969_v58 = vld [vmem:[#allocation2 + $0x278] sm:$0xf0]  ;;  %v12976_v39 = vld [vmem:[#allocation2 + $0x2d4] sm:$0xf] }
 0x43f   :  { %v2647_v55 = vpack.c.bf16 %v2638_v40, %v2637_v12  ;;  %v2641_v24 = vsel %vm15570_vm11, %v2625_v45, 0.0  ;;  %v2642_v41 = vsel %vm15572_vm13, %v2631_v52, 0.0  ;;  %v6900_v12 = vor.u32 %v7530_v4, %v6899_v1  ;;  %v12967_v40 = vld [vmem:[#allocation2 + $0x274] sm:$0xf]  ;;  %v12978_v47 = vld [vmem:[#allocation2 + $0x2d8] sm:$0xf0] }
 0x440   :  { %v6424_v32 = vor.u32 %v12914_v18, %v6421_v5  ;;  %v6736_v16 = vor.u32 %v12916_v62, %v12918_v8  ;;  %v2649_v10 = vpack.c.bf16 %v2642_v41, %v2641_v24  ;;  %v6368_v25 = vor.u32 %v12921_v50, %v12923_v38  ;;  %4205 = vmatpush.bf16.msra.mxu1 %v6376_v26  ;;  %v7526_v5 = vld [vmem:[#allocation2 + $0x424] sm:$0xf0]  ;;  %v15588_v41 = vld [vmem:[#allocation46_spill] sm:$0xff] }
 0x441   :  { %2653 = vst [vmem:[#allocation2 + $0x400] sm:$0xff] %v2647_v55  ;;  %4155 = vmatpush.bf16.msra.mxu3 %v6900_v12  ;;  %v6728_v43 = vor.u32 %v12942_v3, %v12944_v11  ;;  %v12982_v1 = vor.u32 %v7385_v60, %v6333_v56  ;;  %v6892_v18 = vor.u32 %v7528_v14, %v6891_v35  ;;  %v8593_v50 = vunpack.i.h.bf16 %v12927_v27  ;;  %v7386_v60 = vld [vmem:[#allocation4 + $0xbc] sm:$0xf]  ;;  %v6341_v3 = vld [vmem:[#allocation4 + $0xe0] sm:$0xf0] }
 0x442   :  { %2656 = vst [vmem:[#allocation2 + $0x418] sm:$0xff] %v2650_v42  ;;  %v6360_v62 = vor.u32 %v12954_v61, %v12960_v17  ;;  %v6672_v8 = vor.u32 %v12967_v40, %v12969_v58  ;;  %v8592_v38 = vunpack.i.l.bf16 %v12927_v27  ;;  %v6883_v42 = vld [vmem:[#allocation2 + $0x420] sm:$0xf]  ;;  %4231 = vmatpush.bf16.msra.mxu2 %v6424_v32  ;;  %v6720_v4 = vor.u32 %v12976_v39, %v12978_v47  ;;  %v13010_v35 = vld [vmem:[#allocation2 + $0x268] sm:$0xf0]  ;;  %v8616_v24 = vpop.permute.xlu0 %8615 }
 0x443   :  { %2655 = vst [vmem:[#allocation2 + $0x410] sm:$0xff] %v2649_v10  ;;  %v8603_v56 = vunpack.i.h.bf16 %v12925_v9  ;;  %v8602_v14 = vunpack.i.l.bf16 %v12925_v9  ;;  %v6884_v11 = vor.u32 %v7526_v5, %v6883_v42  ;;  %v15580_v17 = vunpack.i.h.bf16 %v12751_v22  ;;  %v6339_v26 = vld [vmem:[#allocation4 + $0xb8] sm:$0xf]  ;;  %v15590_v40 = vld [vmem:[#allocation47_spill] sm:$0xff]  ;;  %v8606_v10 = vpop.permute.xlu1 %8605  ;;  %4098 = vmatmul.bf16.gmra.mxu0 %v12982_v1 }
 0x444   :  { %vm15581_vm11 = vcmp.lt.s32.totalorder %v9221_v28, 94  ;;  %v15584_v55 = vunpack.i.l.bf16 %v12751_v22  ;;  %4206 = vmatpush.bf16.msra.mxu1 %v6368_v25  ;;  %vm15589_vm2 = vnez %v15588_v41  ;;  %vm15591_vm12 = vnez %v15590_v40  ;;  %v7469_v25 = vld [vmem:[#allocation2 + $0x264] sm:$0xf] }
 0x445   :  { %v2806_v59 = vsel %vm15581_vm11, %v8593_v50, %v15580_v17  ;;  %v15582_v27 = vmov %v15580_v17  ;;  %vm15583_vm13 = vmmov %vm15581_vm11  ;;  %4156 = vmatpush.bf16.msra.mxu3 %v6892_v18  ;;  %v13020_v5 = vor.u32 %v7386_v60, %v6341_v3  ;;  %v8618_v18 = vunpack.i.h.bf16 %v8616_v24 }
 0x446   :  { %4320 = vmatpush.bf16.msrb.mxu2 %v6736_v16  ;;  %v2812_v61 = vsel %vm15583_vm13, %v15582_v27, %v8593_v50  ;;  %vm15585_vm0 = vmmov %vm15581_vm11  ;;  %v15586_v9 = vmov %v15584_v55  ;;  %v2823_v12 = vsel %vm15589_vm2, %v2806_v59, 0.0  ;;  %v7391_v16 = vld [vmem:[#allocation4 + $0xdc] sm:$0xf0]  ;;  %v3969_v50 = vpop.f32.mrf.mxu3  ;;  %v8617_v42 = vunpack.i.l.bf16 %v8616_v24 }
 0x447   :  { %v2805_v45 = vsel %vm15585_vm0, %v8592_v38, %v15584_v55  ;;  %vm15587_vm5 = vmmov %vm15585_vm0  ;;  %v2824_v58 = vsel %vm15591_vm12, %v2812_v61, 0.0  ;;  %v8608_v17 = vunpack.i.h.bf16 %v8606_v10  ;;  %v8607_v59 = vunpack.i.l.bf16 %v8606_v10  ;;  %v6653_v10 = vld [vmem:[#allocation2 + $0x258] sm:$0xf0] }
 0x448   :  { %v2811_v52 = vsel %vm15587_vm5, %v15586_v9, %v8592_v38  ;;  %v2821_v32 = vsel %vm15589_vm2, %v2805_v45, 0.0  ;;  %v2830_v39 = vpack.c.bf16 %v2824_v58, %v2823_v12  ;;  %v6664_v38 = vor.u32 %v7469_v25, %v13010_v35  ;;  %vm15593_vm11 = vmmov %vm15585_vm0  ;;  %4207 = vmatpush.bf16.msra.mxu1 %v6360_v62  ;;  %4146 = vmatmul.bf16.gmra.mxu2 %v13020_v5  ;;  %v7521_v53 = vld [vmem:[#allocation2 + $0x404] sm:$0xf] }
 0x449   :  { %v2822_v22 = vsel %vm15591_vm12, %v2811_v52, 0.0  ;;  %v13024_v27 = vor.u32 %v7391_v16, %v6339_v26  ;;  %v15592_v61 = vunpack.i.h.bf16 %v12840_v13  ;;  %vm15595_vm13 = vmmov %vm15585_vm0  ;;  %v7524_v45 = vld [vmem:[#allocation2 + $0x414] sm:$0xf0]  ;;  %4157 = vmatpush.bf16.msra.mxu3 %v6884_v11  ;;  %v15596_v52 = vunpack.i.l.bf16 %v12840_v13  ;;  %v6709_v16 = vld [vmem:[#allocation2 + $0x2c8] sm:$0xf0] }
 0x44a   :  { %v2829_v47 = vpack.c.bf16 %v2822_v22, %v2821_v32  ;;  %4321 = vmatpush.bf16.msrb.mxu2 %v6728_v43  ;;  %2836 = vst [vmem:[#allocation2 + $0x4a8] sm:$0xff] %v2830_v39  ;;  %vm15598_vm5 = vmmov %vm15585_vm0  ;;  %v6875_v12 = vld [vmem:[#allocation2 + $0x410] sm:$0xf]  ;;  %v7481_v22 = vld [vmem:[#allocation2 + $0x2c4] sm:$0xf] }
 0x44b   :  { %v2802_v60 = vsel %vm15593_vm11, %v15592_v61, %v8618_v18  ;;  %v15594_v3 = vmov %v15592_v61  ;;  %v2801_v35 = vsel %vm15585_vm0, %v15596_v52, %v8617_v42  ;;  %v15597_v26 = vmov %v15596_v52  ;;  %vm15599_vm11 = vmmov %vm15585_vm0  ;;  %v3993_v52 = vpop.f32.mrf.mxu0  ;;  %4122 = vmatmul.bf16.gmra.mxu1 %v13024_v27 }
 0x44c   :  { %v2808_v55 = vsel %vm15595_vm13, %v8618_v18, %v15594_v3  ;;  %2835 = vst [vmem:[#allocation2 + $0x4a0] sm:$0xff] %v2829_v47  ;;  %v2815_v43 = vsel %vm15589_vm2, %v2802_v60, 0.0  ;;  %v2807_v24 = vsel %vm15598_vm5, %v8617_v42, %v15597_v26  ;;  %4296 = vmatpush.bf16.msrb.mxu1 %v6672_v8  ;;  %v2813_v11 = vsel %vm15589_vm2, %v2801_v35, 0.0  ;;  %vm15600_vm13 = vmmov %vm15585_vm0  ;;  %v7439_v60 = vld [vmem:[#allocation2 + $0x174] sm:$0xf] }
 0x44d   :  { %v2816_v9 = vsel %vm15591_vm12, %v2808_v55, 0.0  ;;  %v2814_v58 = vsel %vm15591_vm12, %v2807_v24, 0.0  ;;  %v2804_v32 = vsel %vm15599_vm11, %v8603_v56, %v8608_v17  ;;  %v2810_v13 = vsel %vm15600_vm13, %v8608_v17, %v8603_v56  ;;  %vm15601_vm5 = vmmov %vm15585_vm0  ;;  %v13064_v56 = vpop.permute.xlu0 %3025  ;;  %v7467_v17 = vld [vmem:[#allocation2 + $0x254] sm:$0xf]  ;;  %v7372_v35 = vld [vmem:[#allocation4 + $0x44] sm:$0xf0] }
 0x44e   :  { %v2826_v62 = vpack.c.bf16 %v2816_v9, %v2815_v43  ;;  %v2825_v39 = vpack.c.bf16 %v2814_v58, %v2813_v11  ;;  %v2819_v8 = vsel %vm15589_vm2, %v2804_v32, 0.0  ;;  %v2803_v47 = vsel %vm15585_vm0, %v8602_v14, %v8607_v59  ;;  %4322 = vmatpush.bf16.msrb.mxu2 %v6720_v4  ;;  %v7479_v3 = vld [vmem:[#allocation2 + $0x2b4] sm:$0xf]  ;;  %v6867_v43 = vld [vmem:[#allocation2 + $0x400] sm:$0xf]  ;;  %v13071_v58 = vpop.f32.mrf.mxu3 }
 0x44f   :  { %v2820_v25 = vsel %vm15591_vm12, %v2810_v13, 0.0  ;;  %v2809_v18 = vsel %vm15601_vm5, %v8607_v59, %v8602_v14  ;;  %v2817_v42 = vsel %vm15589_vm2, %v2803_v47, 0.0  ;;  %v6876_v61 = vor.u32 %v7524_v45, %v6875_v12  ;;  %v7522_v9 = vld [vmem:[#allocation2 + $0x404] sm:$0xf0]  ;;  %v6541_v59 = vld [vmem:[#allocation2 + $0x178] sm:$0xf0] }
 0x450   :  { %2832 = vst [vmem:[#allocation2 + $0x488] sm:$0xff] %v2826_v62  ;;  %v2828_v4 = vpack.c.bf16 %v2820_v25, %v2819_v8  ;;  %v2818_v55 = vsel %vm15591_vm12, %v2809_v18, 0.0  ;;  %4297 = vmatpush.bf16.msrb.mxu1 %v6664_v38  ;;  %v6712_v14 = vor.u32 %v7481_v22, %v6709_v16  ;;  %v6267_v45 = vld [vmem:[#allocation4 + $0x20] sm:$0xf]  ;;  %v6701_v26 = vld [vmem:[#allocation2 + $0x2b8] sm:$0xf0]  ;;  %v3970_v24 = vadd.f32 %v3969_v50, %v13064_v56 }
 0x451   :  { %2831 = vst [vmem:[#allocation2 + $0x480] sm:$0xff] %v2825_v39  ;;  %v2827_v41 = vpack.c.bf16 %v2818_v55, %v2817_v42  ;;  %4158 = vmatpush.bf16.msra.mxu3 %v6876_v61  ;;  %v7542_v12 = vld [vmem:[#allocation2 + $0x4a4] sm:$0xf0]  ;;  %v6656_v40 = vor.u32 %v7467_v17, %v6653_v10  ;;  %v6868_v62 = vor.u32 %v7522_v9, %v6867_v43  ;;  %v6645_v38 = vld [vmem:[#allocation2 + $0x248] sm:$0xf0]  ;;  %vm14700_vm2 = vcmask 392192  }
 0x452   :  { %2834 = vst [vmem:[#allocation2 + $0x498] sm:$0xff] %v2828_v4  ;;  %4323 = vmatpush.bf16.msrb.mxu2 %v6712_v14  ;;  %v6544_v32 = vor.u32 %v7439_v60, %v6541_v59  ;;  %v13073_v22 = vor.u32 %v7372_v35, %v6267_v45  ;;  %v6704_v39 = vor.u32 %v7479_v3, %v6701_v26  ;;  %v7437_v13 = vld [vmem:[#allocation2 + $0x164] sm:$0xf]  ;;  %v6533_v8 = vld [vmem:[#allocation2 + $0x168] sm:$0xf0]  ;;  %vm15610_vm12 = vcmp.lt.s32.totalorder %v9221_v28, 127 }
 0x453   :  { %2833 = vst [vmem:[#allocation2 + $0x490] sm:$0xff] %v2827_v41  ;;  %v6947_v11 = vld [vmem:[#allocation2 + $0x4a0] sm:$0xf]  ;;  %v7465_v47 = vld [vmem:[#allocation2 + $0x244] sm:$0xf]  ;;  %v13075_v10 = vadd.f32 %v3993_v52, %v3970_v24  ;;  %v6536_v60 = vor.u32 %v7437_v13, %v6533_v8  ;;  %v13078_v41 = vpop.f32.mrf.mxu0  ;;  %vm15611_vm11 = vmmov %vm15610_vm12  ;;  %vm15614_vm5 = vcmp.lt.s32.totalorder %v9221_v28, 17 }
 0x454   :  { %v6948_v16 = vor.u32 %v7542_v12, %v6947_v11  ;;  %4298 = vmatpush.bf16.msrb.mxu1 %v6656_v40  ;;  %v7477_v50 = vld [vmem:[#allocation2 + $0x2a4] sm:$0xf]  ;;  %v6693_v25 = vld [vmem:[#allocation2 + $0x2a8] sm:$0xf0]  ;;  %v6648_v18 = vor.u32 %v7465_v47, %v6645_v38  ;;  %v7463_v42 = vld [vmem:[#allocation2 + $0x234] sm:$0xf] }
 0x455   :  { %4159 = vmatpush.bf16.msra.mxu3 %v6868_v62  ;;  %v6637_v61 = vld [vmem:[#allocation2 + $0x238] sm:$0xf0]  ;;  %v6696_v17 = vor.u32 %v7477_v50, %v6693_v25  ;;  %v7435_v3 = vld [vmem:[#allocation2 + $0x154] sm:$0xf]  ;;  %v7461_v59 = vld [vmem:[#allocation2 + $0x224] sm:$0xf] }
 0x456   :  { %4181 = vmatpush.bf16.msra.mxu0 %v6948_v16  ;;  %4324 = vmatpush.bf16.msrb.mxu2 %v6704_v39  ;;  %v6525_v4 = vld [vmem:[#allocation2 + $0x158] sm:$0xf0]  ;;  %v7475_v43 = vld [vmem:[#allocation2 + $0x294] sm:$0xf]  ;;  %v6640_v52 = vor.u32 %v7463_v42, %v6637_v61  ;;  %v6629_v45 = vld [vmem:[#allocation2 + $0x228] sm:$0xf0]  ;;  %v3974_v13 = vpop.f32.mrf.mxu3 }
 0x457   :  { %v6685_v9 = vld [vmem:[#allocation2 + $0x298] sm:$0xf0]  ;;  %v7473_v26 = vld [vmem:[#allocation2 + $0x284] sm:$0xf]  ;;  %v6677_v24 = vld [vmem:[#allocation2 + $0x288] sm:$0xf0]  ;;  %v6528_v12 = vor.u32 %v7435_v3, %v6525_v4  ;;  %v6632_v42 = vor.u32 %v7461_v59, %v6629_v45 }
 0x458   :  { %4160 = vmatmul.bf16.vlgmr.msra.gmra.mxu3 %v13073_v22  ;;  %4299 = vmatpush.bf16.msrb.mxu1 %v6648_v18  ;;  %v7433_v40 = vld [vmem:[#allocation2 + $0x144] sm:$0xf]  ;;  %v6931_v62 = vld [vmem:[#allocation2 + $0x480] sm:$0xf]  ;;  %v7538_v11 = vld [vmem:[#allocation2 + $0x484] sm:$0xf0]  ;;  %v6688_v38 = vor.u32 %v7475_v43, %v6685_v9  ;;  %v13080_v18 = vpop.permute.xlu1 %3035 }
 0x459   :  { %4248 = vmatpush.bf16.msrb.mxu3 %v6544_v32  ;;  %v7540_v55 = vld [vmem:[#allocation2 + $0x494] sm:$0xf0]  ;;  %v6517_v32 = vld [vmem:[#allocation2 + $0x148] sm:$0xf0]  ;;  %v7367_v16 = vld [vmem:[#allocation4 + $0x24] sm:$0xf]  ;;  %4232 = vmatmul.bf16.vlgmr.msra.gmra.mxu2 %v11967_v34  ;;  %v3975_v59 = vadd.f32 %v3974_v13, %v13080_v18 }
 0x45a   :  { %v6939_v14 = vld [vmem:[#allocation2 + $0x490] sm:$0xf]  ;;  %4325 = vmatpush.bf16.msrb.mxu2 %v6696_v17  ;;  %v6269_v39 = vld [vmem:[#allocation4 + $0x48] sm:$0xf0]  ;;  %v7459_v8 = vld [vmem:[#allocation2 + $0x214] sm:$0xf]  ;;  %v6932_v17 = vor.u32 %v7538_v11, %v6931_v62  ;;  %v6520_v3 = vor.u32 %v7433_v40, %v6517_v32 }
 0x45b   :  { %v6940_v35 = vor.u32 %v7540_v55, %v6939_v14  ;;  %v6621_v47 = vld [vmem:[#allocation2 + $0x218] sm:$0xf0]  ;;  %v7455_v50 = vld [vmem:[#allocation2 + $0x1f4] sm:$0xf]  ;;  %v7541_v61 = vld [vmem:[#allocation2 + $0x4a4] sm:$0xf]  ;;  %v13083_v9 = vor.u32 %v7367_v16, %v6269_v39  ;;  %v6680_v14 = vor.u32 %v7473_v26, %v6677_v24  ;;  %4208 = vmatmul.bf16.vlgmr.msra.gmra.mxu1 %v11707_v6  ;;  %v3998_v13 = vpop.f32.mrf.mxu0 }
 0x45c   :  { %4300 = vmatpush.bf16.msrb.mxu1 %v6640_v52  ;;  %v6605_v25 = vld [vmem:[#allocation2 + $0x1f8] sm:$0xf0]  ;;  %v7431_v4 = vld [vmem:[#allocation2 + $0x134] sm:$0xf]  ;;  %v6307_v43 = vld [vmem:[#allocation4 + $0x70] sm:$0xf]  ;;  %v6624_v62 = vor.u32 %v7459_v8, %v6621_v47 }
 0x45d   :  { %4249 = vmatpush.bf16.msrb.mxu3 %v6536_v60  ;;  %4182 = vmatpush.bf16.msra.mxu0 %v6940_v35  ;;  %v6949_v60 = vld [vmem:[#allocation2 + $0x4a8] sm:$0xf0]  ;;  %v6509_v55 = vld [vmem:[#allocation2 + $0x138] sm:$0xf0]  ;;  %v7539_v52 = vld [vmem:[#allocation2 + $0x494] sm:$0xf] }
 0x45e   :  { %4326 = vmatpush.bf16.msrb.mxu2 %v6688_v38  ;;  %v6941_v35 = vld [vmem:[#allocation2 + $0x498] sm:$0xf0]  ;;  %v7382_v38 = vld [vmem:[#allocation4 + $0x94] sm:$0xf0]  ;;  %v6952_v45 = vor.u32 %v7541_v61, %v6949_v60  ;;  %v7453_v34 = vld [vmem:[#allocation2 + $0x1e4] sm:$0xf]  ;;  %v6512_v16 = vor.u32 %v7431_v4, %v6509_v55  ;;  %v13091_v61 = vadd.f32 %v3998_v13, %v3975_v59  ;;  %v13093_v4 = vpop.f32.mrf.mxu3  ;;  %v13096_v59 = vpop.permute.xlu2 %3040 }
 0x45f   :  { %v6597_v40 = vld [vmem:[#allocation2 + $0x1e8] sm:$0xf0]  ;;  %v6944_v11 = vor.u32 %v7539_v52, %v6941_v35  ;;  %v7457_v32 = vld [vmem:[#allocation2 + $0x204] sm:$0xf]  ;;  %v7535_v24 = vld [vmem:[#allocation2 + $0x474] sm:$0xf]  ;;  %v13087_v39 = vor.u32 %v7382_v38, %v6307_v43 }
 0x460   :  { %4301 = vmatpush.bf16.msrb.mxu1 %v6632_v42  ;;  %v6613_v26 = vld [vmem:[#allocation2 + $0x208] sm:$0xf0]  ;;  %v6925_v6 = vld [vmem:[#allocation2 + $0x478] sm:$0xf0]  ;;  %v6600_v42 = vor.u32 %v7453_v34, %v6597_v40  ;;  %v7451_v8 = vld [vmem:[#allocation2 + $0x1d4] sm:$0xf] }
 0x461   :  { %4250 = vmatpush.bf16.msrb.mxu3 %v6528_v12  ;;  %4183 = vmatpush.bf16.msra.mxu0 %v6932_v17  ;;  %v6608_v12 = vor.u32 %v7455_v50, %v6605_v25  ;;  %v7429_v50 = vld [vmem:[#allocation2 + $0x124] sm:$0xf]  ;;  %v6501_v25 = vld [vmem:[#allocation2 + $0x128] sm:$0xf0]  ;;  %v6589_v47 = vld [vmem:[#allocation2 + $0x1d8] sm:$0xf0]  ;;  %v6616_v60 = vor.u32 %v7457_v32, %v6613_v26  ;;  %v6928_v55 = vor.u32 %v7535_v24, %v6925_v6 }
 0x462   :  { %4327 = vmatpush.bf16.msrb.mxu2 %v6680_v14  ;;  %v7537_v17 = vld [vmem:[#allocation2 + $0x484] sm:$0xf]  ;;  %v6504_v14 = vor.u32 %v7429_v50, %v6501_v25  ;;  %v6917_v52 = vld [vmem:[#allocation2 + $0x468] sm:$0xf0]  ;;  %v7427_v35 = vld [vmem:[#allocation2 + $0x114] sm:$0xf]  ;;  %v6592_v38 = vor.u32 %v7451_v8, %v6589_v47 }
 0x463   :  { %v7533_v43 = vld [vmem:[#allocation2 + $0x464] sm:$0xf]  ;;  %v6581_v40 = vld [vmem:[#allocation2 + $0x1c8] sm:$0xf0]  ;;  %v6909_v32 = vld [vmem:[#allocation2 + $0x458] sm:$0xf0]  ;;  %v13098_v24 = vpop.f32.mrf.mxu0 }
 0x464   :  { %6953 = vmatmul.msk.bf16.vlgmr.msra.gmra.mxu0 %vm14700_vm2, %v13083_v9  ;;  %4302 = vmatpush.bf16.msrb.mxu1 %v6624_v62  ;;  %v7449_v34 = vld [vmem:[#allocation2 + $0x1c4] sm:$0xf]  ;;  %v6920_v62 = vor.u32 %v7533_v43, %v6917_v52  ;;  %v6485_v13 = vld [vmem:[#allocation2 + $0x108] sm:$0xf0]  ;;  %v7503_v50 = vld [vmem:[#allocation2 + $0x374] sm:$0xf] }
 0x465   :  { %4251 = vmatpush.bf16.msrb.mxu3 %v6520_v3  ;;  %4272 = vmatpush.bf16.msrb.mxu0 %v6608_v12  ;;  %v6933_v3 = vld [vmem:[#allocation2 + $0x488] sm:$0xf0]  ;;  %v6493_v12 = vld [vmem:[#allocation2 + $0x118] sm:$0xf0]  ;;  %v6584_v6 = vor.u32 %v7449_v34, %v6581_v40  ;;  %v7447_v47 = vld [vmem:[#allocation2 + $0x1b4] sm:$0xf] }
 0x466   :  { %4421 = vmatpush.bf16.msra.mxu2 %v6952_v45  ;;  %v6936_v45 = vor.u32 %v7537_v17, %v6933_v3  ;;  %v6496_v26 = vor.u32 %v7427_v35, %v6493_v12  ;;  %v6797_v25 = vld [vmem:[#allocation2 + $0x378] sm:$0xf0]  ;;  %v6309_v8 = vld [vmem:[#allocation4 + $0x98] sm:$0xf0]  ;;  %v7529_v43 = vld [vmem:[#allocation2 + $0x444] sm:$0xf] }
 0x467   :  { %v15602_v17 = vld [vmem:[#allocation8_spill] sm:$0xff]  ;;  %v6347_v52 = vld [vmem:[#allocation4 + $0xc0] sm:$0xf]  ;;  %v7392_v35 = vld [vmem:[#allocation4 + $0xe4] sm:$0xf0] }
 0x468   :  { %4165 = vmatmul.bf16.gmra.mxu3 %v13087_v39  ;;  %4303 = vmatpush.bf16.msrb.mxu1 %v6616_v60  ;;  %v6573_v60 = vld [vmem:[#allocation2 + $0x1b8] sm:$0xf0]  ;;  %v15603_v34 = vld [vmem:[#allocation51_spill] sm:$0xff]  ;;  %v6901_v40 = vld [vmem:[#allocation2 + $0x448] sm:$0xf0] }
 0x469   :  { %4252 = vmatpush.bf16.msrb.mxu3 %v6512_v16  ;;  %4273 = vmatpush.bf16.msrb.mxu0 %v6600_v42  ;;  %v7425_v16 = vld [vmem:[#allocation2 + $0x104] sm:$0xf]  ;;  %vm15612_vm13 = vmmov %vm15611_vm11 }
 0x46a   :  { %4422 = vmatpush.bf16.msra.mxu2 %v6944_v11  ;;  %v7531_v11 = vld [vmem:[#allocation2 + $0x454] sm:$0xf]  ;;  %v7377_v42 = vld [vmem:[#allocation4 + $0x74] sm:$0xf]  ;;  %v6488_v3 = vor.u32 %v7425_v16, %v6485_v13  ;;  %v13105_v16 = vpop.permute.xlu2 %3045  ;;  %v13107_v13 = vor.u32 %v7392_v35, %v6347_v52  ;;  %v6557_v52 = vld [vmem:[#allocation2 + $0x198] sm:$0xf0] }
 0x46b   :  { %4237 = vmatmul.bf16.gmra.mxu2 %v15602_v17  ;;  %v13101_v12 = vor.u32 %v7377_v42, %v6309_v8  ;;  %4213 = vmatmul.bf16.gmra.mxu1 %v15603_v34  ;;  %v7527_v42 = vld [vmem:[#allocation2 + $0x434] sm:$0xf]  ;;  %v7525_v35 = vld [vmem:[#allocation2 + $0x424] sm:$0xf]  ;;  %v6885_v34 = vld [vmem:[#allocation2 + $0x428] sm:$0xf0] }
 0x46c   :  { %4392 = vmatpush.bf16.msra.mxu1 %v6928_v55  ;;  %v6912_v55 = vor.u32 %v7531_v11, %v6909_v32  ;;  %v7445_v11 = vld [vmem:[#allocation2 + $0x1a4] sm:$0xf]  ;;  %v6565_v32 = vld [vmem:[#allocation2 + $0x1a8] sm:$0xf0]  ;;  %v7499_v17 = vld [vmem:[#allocation2 + $0x354] sm:$0xf] }
 0x46d   :  { %4253 = vmatpush.bf16.msrb.mxu3 %v6504_v14  ;;  %4274 = vmatpush.bf16.msrb.mxu0 %v6592_v38  ;;  %v6800_v14 = vor.u32 %v7503_v50, %v6797_v25  ;;  %v3979_v38 = vpop.f32.mrf.mxu3  ;;  %v6904_v25 = vor.u32 %v7529_v43, %v6901_v40  ;;  %vm15613_vm0 = vmmov %vm15611_vm11 }
 0x46e   :  { %4423 = vmatpush.bf16.msra.mxu2 %v6936_v45  ;;  %v4017_v45 = vpop.f32.mrf.mxu1  ;;  %v3980_v50 = vadd.f32 %v3979_v38, %v13105_v16 }
 0x46f   :  { %v4018_v19 = vadd.f32 %v4017_v45, %v13075_v10  ;;  %v6568_v10 = vor.u32 %v7445_v11, %v6565_v32  ;;  %v6549_v11 = vld [vmem:[#allocation2 + $0x188] sm:$0xf0]  ;;  %v7519_v32 = vld [vmem:[#allocation2 + $0x3f4] sm:$0xf] }
 0x470   :  { %4393 = vmatpush.bf16.msra.mxu1 %v6920_v62  ;;  %v6576_v62 = vor.u32 %v7447_v47, %v6573_v60  ;;  %v4003_v47 = vpop.f32.mrf.mxu0  ;;  %v6893_v60 = vld [vmem:[#allocation2 + $0x438] sm:$0xf0] }
 0x471   :  { %4254 = vmatpush.bf16.msrb.mxu3 %v6496_v26  ;;  %4275 = vmatpush.bf16.msrb.mxu0 %v6584_v6  ;;  %v7501_v26 = vld [vmem:[#allocation2 + $0x364] sm:$0xf]  ;;  %v6789_v6 = vld [vmem:[#allocation2 + $0x368] sm:$0xf0]  ;;  %v6896_v43 = vor.u32 %v7527_v42, %v6893_v60  ;;  %v7495_v60 = vld [vmem:[#allocation2 + $0x334] sm:$0xf] }
 0x472   :  { %v6792_v8 = vor.u32 %v7501_v26, %v6789_v6  ;;  %v6773_v26 = vld [vmem:[#allocation2 + $0x348] sm:$0xf0]  ;;  %v7441_v6 = vld [vmem:[#allocation2 + $0x184] sm:$0xf] }
 0x473   :  { %v6552_v42 = vor.u32 %v7441_v6, %v6549_v11  ;;  %v6869_v6 = vld [vmem:[#allocation2 + $0x408] sm:$0xf0]  ;;  %v7493_v11 = vld [vmem:[#allocation2 + $0x324] sm:$0xf] }
 0x474   :  { %4394 = vmatpush.bf16.msra.mxu1 %v6912_v55  ;;  %6954 = vmatmul.msk.bf16.gmra.mxu0 %vm14700_vm2, %v13101_v12  ;;  %v13112_v55 = vadd.f32 %v4003_v47, %v3980_v50  ;;  %v6861_v50 = vld [vmem:[#allocation2 + $0x3f8] sm:$0xf0] }
 0x475   :  { %4255 = vmatpush.bf16.msrb.mxu3 %v6488_v3  ;;  %4276 = vmatpush.bf16.msrb.mxu0 %v6576_v62  ;;  %v6781_v3 = vld [vmem:[#allocation2 + $0x358] sm:$0xf0]  ;;  %v7497_v62 = vld [vmem:[#allocation2 + $0x344] sm:$0xf] }
 0x476   :  { %v6784_v38 = vor.u32 %v7499_v17, %v6781_v3  ;;  %v13115_v45 = vpop.f32.mrf.mxu1  ;;  %v6776_v47 = vor.u32 %v7497_v62, %v6773_v26  ;;  %v6765_v17 = vld [vmem:[#allocation2 + $0x338] sm:$0xf0]  ;;  %v6864_v3 = vor.u32 %v7519_v32, %v6861_v50  ;;  %v15604_v26 = vld [vmem:[#allocation7_spill] sm:$0xff]  ;;  %v6757_v32 = vld [vmem:[#allocation2 + $0x328] sm:$0xf0] }
 0x478   :  { %4395 = vmatpush.bf16.msra.mxu1 %v6904_v25  ;;  %4170 = vmatmul.bf16.gmra.mxu3 %v13107_v13  ;;  %v6888_v25 = vor.u32 %v7525_v35, %v6885_v34  ;;  %v6768_v35 = vor.u32 %v7495_v60, %v6765_v17  ;;  %v6749_v60 = vld [vmem:[#allocation2 + $0x318] sm:$0xf0] }
 0x479   :  { %4344 = vmatpush.bf16.msra.mxu3 %v6800_v14  ;;  %v7443_v14 = vld [vmem:[#allocation2 + $0x194] sm:$0xf]  ;;  %4277 = vmatpush.bf16.msrb.mxu0 %v6568_v10  ;;  %v6877_v10 = vld [vmem:[#allocation2 + $0x418] sm:$0xf0] }
 0x47a   :  { %v6560_v40 = vor.u32 %v7443_v14, %v6557_v52  ;;  %v7387_v14 = vld [vmem:[#allocation4 + $0xc4] sm:$0xf]  ;;  %v6349_v52 = vld [vmem:[#allocation4 + $0xe8] sm:$0xf0] }
 0x47b   :  { %4242 = vmatmul.bf16.gmra.mxu2 %v12362_v15  ;;  %4218 = vmatmul.bf16.gmra.mxu1 %v15604_v26  ;;  %v13121_v50 = vor.u32 %v7387_v14, %v6349_v52 }
 0x47c   :  { %4396 = vmatpush.bf16.msra.mxu1 %v6896_v43  ;;  %v7517_v43 = vld [vmem:[#allocation2 + $0x3e4] sm:$0xf] }
 0x47d   :  { %4345 = vmatpush.bf16.msra.mxu3 %v6792_v8  ;;  %4278 = vmatpush.bf16.msrb.mxu0 %v6560_v40  ;;  %v7523_v8 = vld [vmem:[#allocation2 + $0x414] sm:$0xf]  ;;  %v4041_v40 = vpop.f32.mrf.mxu2 }
 0x47e   :  { %v6880_v51 = vor.u32 %v7523_v8, %v6877_v10  ;;  %v13118_v34 = vadd.f32 %v4041_v40, %v4018_v19  ;;  %v4022_v62 = vpop.f32.mrf.mxu1  ;;  %v6845_v8 = vld [vmem:[#allocation2 + $0x3d8] sm:$0xf0]  ;;  %v6872_v10 = vor.u32 %v7521_v53, %v6869_v6  ;;  %v7491_v19 = vld [vmem:[#allocation2 + $0x314] sm:$0xf]  ;;  %v7489_v53 = vld [vmem:[#allocation2 + $0x304] sm:$0xf] }
 0x47f   :  { %v4023_v15 = vadd.f32 %v4022_v62, %v13091_v61  ;;  %v6837_v61 = vld [vmem:[#allocation2 + $0x3c8] sm:$0xf0]  ;;  %v6752_v14 = vor.u32 %v7491_v19, %v6749_v60  ;;  %v7511_v40 = vld [vmem:[#allocation2 + $0x3b4] sm:$0xf] }
 0x480   :  { %4397 = vmatpush.bf16.msra.mxu1 %v6888_v25  ;;  %v6821_v6 = vld [vmem:[#allocation2 + $0x3a8] sm:$0xf0] }
 0x481   :  { %4346 = vmatpush.bf16.msra.mxu3 %v6784_v38  ;;  %4279 = vmatpush.bf16.msrb.mxu0 %v6552_v42  ;;  %v6853_v38 = vld [vmem:[#allocation2 + $0x3e8] sm:$0xf0]  ;;  %v6760_v42 = vor.u32 %v7493_v11, %v6757_v32 }
 0x482   :  { %v6856_v25 = vor.u32 %v7517_v43, %v6853_v38  ;;  %v6741_v43 = vld [vmem:[#allocation2 + $0x308] sm:$0xf0] }
 0x483   :  { %v6744_v62 = vor.u32 %v7489_v53, %v6741_v43  ;;  %v6805_v60 = vld [vmem:[#allocation2 + $0x388] sm:$0xf0] }
 0x484   :  { %4398 = vmatpush.bf16.msra.mxu1 %v6880_v51  ;;  %6955 = vmatmul.msk.bf16.gmra.mxu0 %vm14700_vm2, %v13121_v50 }
 0x485   :  { %4347 = vmatpush.bf16.msra.mxu3 %v6776_v47  ;;  %4368 = vmatpush.bf16.msra.mxu0 %v6864_v3  ;;  %v7515_v47 = vld [vmem:[#allocation2 + $0x3d4] sm:$0xf]  ;;  %v7513_v3 = vld [vmem:[#allocation2 + $0x3c4] sm:$0xf]  ;;  %v13127_v51 = vpop.f32.mrf.mxu2 }
 0x486   :  { %v6848_v17 = vor.u32 %v7515_v47, %v6845_v8  ;;  %v13129_v52 = vpop.f32.mrf.mxu1  ;;  %v6840_v38 = vor.u32 %v7513_v3, %v6837_v61 }
 0x488   :  { %4399 = vmatpush.bf16.msra.mxu1 %v6872_v10  ;;  %4256 = vmatmul.bf16.vlgmr.msrb.gmra.mxu3 %v12278_v48  ;;  %v7509_v48 = vld [vmem:[#allocation2 + $0x3a4] sm:$0xf]  ;;  %v7507_v10 = vld [vmem:[#allocation2 + $0x394] sm:$0xf] }
 0x489   :  { %4348 = vmatpush.bf16.msra.mxu3 %v6768_v35  ;;  %4369 = vmatpush.bf16.msra.mxu0 %v6856_v25  ;;  %v6829_v35 = vld [vmem:[#allocation2 + $0x3b8] sm:$0xf0]  ;;  %v6824_v8 = vor.u32 %v7509_v48, %v6821_v6 }
 0x48a   :  { %v6832_v26 = vor.u32 %v7511_v40, %v6829_v35 }
 0x48b   :  { %4328 = vmatmul.bf16.vlgmr.msrb.gmra.mxu2 %v12744_v33  ;;  %4304 = vmatmul.bf16.vlgmr.msrb.gmra.mxu1 %v12455_v57  ;;  %v7505_v33 = vld [vmem:[#allocation2 + $0x384] sm:$0xf]  ;;  %v13142_v57 = vpop.f32.mrf.mxu0 }
 0x48c   :  { %v6808_v3 = vor.u32 %v7505_v33, %v6805_v60 }
 0x48d   :  { %4349 = vmatpush.bf16.msra.mxu3 %v6760_v42  ;;  %4370 = vmatpush.bf16.msra.mxu0 %v6848_v17  ;;  %v4046_v11 = vpop.f32.mrf.mxu2  ;;  %v6813_v42 = vld [vmem:[#allocation2 + $0x398] sm:$0xf0]  ;;  %v13138_v17 = vpop.f32.mrf.mxu3 }
 0x48e   :  { %v13132_v32 = vadd.f32 %v4046_v11, %v4023_v15  ;;  %v4027_v25 = vpop.f32.mrf.mxu1  ;;  %v6816_v19 = vor.u32 %v7507_v10, %v6813_v42 }
 0x48f   :  { %v4028_v47 = vadd.f32 %v4027_v25, %v13112_v55 }
 0x491   :  { %4350 = vmatpush.bf16.msra.mxu3 %v6752_v14  ;;  %4371 = vmatpush.bf16.msra.mxu0 %v6840_v38 }
 0x494   :  { %4280 = vmatmul.bf16.vlgmr.msrb.gmra.mxu0 %v12382_v7 }
 0x495   :  { %4351 = vmatpush.bf16.msra.mxu3 %v6744_v62  ;;  %4372 = vmatpush.bf16.msra.mxu0 %v6832_v26  ;;  %v13140_v15 = vpop.f32.mrf.mxu2  ;;  %v4065_v55 = vpop.f32.mrf.mxu3 }
 0x496   :  { %v13149_v7 = vpop.f32.mrf.mxu1 }
 0x498   :  { %4261 = vmatmul.bf16.gmra.mxu3 %v12453_v0 }
 0x499   :  { %4373 = vmatpush.bf16.msra.mxu0 %v6824_v8 }
 0x49b   :  { %4333 = vmatmul.bf16.gmra.mxu2 %v12850_v23  ;;  %4309 = vmatmul.bf16.gmra.mxu1 %v12542_v30 }
 0x49d   :  { %4374 = vmatpush.bf16.msra.mxu0 %v6816_v19  ;;  %v4051_v61 = vpop.f32.mrf.mxu2  ;;  %v4067_v43 = vpop.f32.mrf.mxu3  ;;  %v4066_v19 = vadd.f32 %v4065_v55, %v13118_v34 }
 0x49e   :  { %v13145_v14 = vadd.f32 %v4051_v61, %v4028_v47 }
 0x4a0   :  { %v4089_v0 = vpop.f32.mrf.mxu0 }
 0x4a1   :  { %4375 = vmatpush.bf16.msra.mxu0 %v6808_v3  ;;  %v4090_v33 = vadd.f32 %v4089_v0, %v4066_v19  ;;  %v3977_v0 = vadd.f32 %v13093_v4, %v13096_v59 }
 0x4a4   :  { %4285 = vmatmul.bf16.gmra.mxu0 %v12498_v63 }
 0x4a5   :  { %v13152_v53 = vpop.f32.mrf.mxu2  ;;  %v13156_v35 = vpop.f32.mrf.mxu3 }
 0x4a8   :  { %4266 = vmatmul.bf16.gmra.mxu3 %v12540_v31  ;;  %v4113_v38 = vpop.f32.mrf.mxu1  ;;  %v4091_v23 = vpop.f32.mrf.mxu0 }
 0x4a9   :  { %v4114_v3 = vadd.f32 %v4113_v38, %v4090_v33  ;;  %v4001_v38 = vadd.f32 %v13098_v24, %v3977_v0 }
 0x4ab   :  { %4338 = vmatmul.bf16.gmra.mxu2 %v12982_v1  ;;  %4314 = vmatmul.bf16.gmra.mxu1 %v12677_v37 }
 0x4ad   :  { %v4137_v40 = vpop.f32.mrf.mxu2  ;;  %v4072_v31 = vpop.f32.mrf.mxu3 }
 0x4b0   :  { %v4115_v63 = vpop.f32.mrf.mxu1  ;;  %v13160_v62 = vpop.f32.mrf.mxu0 }
 0x4b4   :  { %4290 = vmatmul.bf16.gmra.mxu0 %v12608_v29 }
 0x4b5   :  { %v4139_v30 = vpop.f32.mrf.mxu2 }
 0x4b8   :  { %4352 = vmatmul.bf16.vlgmr.msra.gmra.mxu3 %v12791_v46  ;;  %v13162_v26 = vpop.f32.mrf.mxu1  ;;  %v4096_v37 = vpop.f32.mrf.mxu0 }
 0x4b9   :  { %v13173_v46 = vpop.f32.mrf.mxu3 }
 0x4ba   :  { %v4076_v0 = vadd.f32 %v13173_v46, %v13145_v14 }
 0x4bb   :  { %6956 = vmatmul.msk.bf16.vlgmr.msra.gmra.mxu2 %vm14700_vm2, %v13083_v9  ;;  %4400 = vmatmul.bf16.vlgmr.msra.gmra.mxu1 %v13073_v22  ;;  %v13183_v9 = vpop.permute.xlu1 %3030 }
 0x4bd   :  { %v13166_v1 = vpop.f32.mrf.mxu2 }
 0x4c0   :  { %v13170_v29 = vpop.f32.mrf.mxu1  ;;  %v13177_v6 = vpop.f32.mrf.mxu0 }
 0x4c4   :  { %4376 = vmatmul.bf16.vlgmr.msra.gmra.mxu0 %v12756_v2  ;;  %v13186_v2 = vpop.f32.mrf.mxu3 }
 0x4c5   :  { %v13175_v48 = vpop.f32.mrf.mxu2 }
 0x4c8   :  { %4357 = vmatmul.bf16.gmra.mxu3 %v12912_v54  ;;  %v13179_v11 = vpop.f32.mrf.mxu1  ;;  %v3972_v54 = vadd.f32 %v13071_v58, %v13183_v9 }
 0x4ca   :  { %v3996_v47 = vadd.f32 %v13078_v41, %v3972_v54 }
 0x4cb   :  { %6957 = vmatmul.msk.bf16.gmra.mxu2 %vm14700_vm2, %v13101_v12  ;;  %4405 = vmatmul.bf16.gmra.mxu1 %v13087_v39  ;;  %v13197_v12 = vpop.f32.mrf.mxu0 }
 0x4cc   :  { %v4020_v8 = vadd.f32 %v13115_v45, %v3996_v47  ;;  %v4138_v47 = vadd.f32 %v4137_v40, %v4114_v3  ;;  %v4025_v40 = vadd.f32 %v13129_v52, %v4001_v38 }
 0x4cd   :  { %v13188_v22 = vpop.f32.mrf.mxu2 }
 0x4ce   :  { %v4044_v42 = vadd.f32 %v13127_v51, %v4020_v8  ;;  %v4049_v4 = vadd.f32 %v13140_v15, %v4025_v40 }
 0x4d0   :  { %v13193_v25 = vpop.f32.mrf.mxu1  ;;  %v4068_v58 = vadd.f32 %v4067_v43, %v4044_v42  ;;  %v4073_v42 = vadd.f32 %v4072_v31, %v4049_v4 }
 0x4d2   :  { %v4092_v60 = vadd.f32 %v4091_v23, %v4068_v58  ;;  %v4097_v15 = vadd.f32 %v4096_v37, %v4073_v42 }
 0x4d4   :  { %4381 = vmatmul.bf16.gmra.mxu0 %v12893_v49  ;;  %v4116_v61 = vadd.f32 %v4115_v63, %v4092_v60  ;;  %v4121_v31 = vadd.f32 %v13170_v29, %v4097_v15  ;;  %v3051_v60 = vpop.permute.xlu0 %3050 }
 0x4d5   :  { %v13200_v39 = vpop.f32.mrf.mxu2 }
 0x4d6   :  { %v4140_v34 = vadd.f32 %v4139_v30, %v4116_v61  ;;  %v4145_v3 = vadd.f32 %v13175_v48, %v4121_v31 }
 0x4d8   :  { %4362 = vmatmul.bf16.gmra.mxu3 %v13024_v27  ;;  %v4209_v49 = vpop.f32.mrf.mxu1 }
 0x4d9   :  { %v4210_v41 = vadd.f32 %v4209_v49, %v13064_v56 }
 0x4db   :  { %v4161_v10 = vpop.f32.mrf.mxu3  ;;  %6958 = vmatmul.msk.bf16.gmra.mxu2 %vm14700_vm2, %v13121_v50  ;;  %4410 = vmatmul.bf16.gmra.mxu1 %v13107_v13 }
 0x4dc   :  { %v4162_v55 = vadd.f32 %v4161_v10, %v4138_v47  ;;  %v4071_v10 = vadd.f32 %v13156_v35, %v13132_v32 }
 0x4dd   :  { %v4233_v45 = vpop.f32.mrf.mxu2 }
 0x4de   :  { %v13208_v51 = vadd.f32 %v4233_v45, %v4210_v41  ;;  %v4095_v52 = vadd.f32 %v13160_v62, %v4071_v10 }
 0x4e0   :  { %v13213_v56 = vpop.f32.mrf.mxu1  ;;  %v4119_v32 = vadd.f32 %v13162_v26, %v4095_v52  ;;  %v3982_v26 = vadd.f32 %v13138_v17, %v3051_v60 }
 0x4e1   :  { %v4185_v27 = vpop.f32.mrf.mxu0 }
 0x4e2   :  { %v13215_v50 = vadd.f32 %v4185_v27, %v4162_v55  ;;  %v4006_v48 = vadd.f32 %v13142_v57, %v3982_v26 }
 0x4e3   :  { %v4163_v54 = vpop.f32.mrf.mxu3 }
 0x4e4   :  { %4386 = vmatmul.bf16.gmra.mxu0 %v13020_v5  ;;  %v4164_v43 = vadd.f32 %v4163_v54, %v4140_v34  ;;  %v4440_v5 = vmax.f32 %v13215_v50, 0.0  ;;  %v4030_v47 = vadd.f32 %v13149_v7, %v4006_v48 }
 0x4e5   :  { %v13221_v63 = vpop.f32.mrf.mxu2 }
 0x4e6   :  { %v4054_v55 = vadd.f32 %v13152_v53, %v4030_v47 }
 0x4e8   :  { %v4214_v19 = vpop.f32.mrf.mxu1  ;;  %v4078_v7 = vadd.f32 %v13186_v2, %v4054_v55 }
 0x4e9   :  { %v4187_v13 = vpop.f32.mrf.mxu0  ;;  %v4215_v58 = vadd.f32 %v4214_v19, %v13080_v18  ;;  %v4143_v18 = vadd.f32 %v13166_v1, %v4119_v32 }
 0x4ea   :  { %v13218_v23 = vadd.f32 %v4187_v13, %v4164_v43  ;;  %v4100_v13 = vadd.f32 %v13177_v6, %v4076_v0  ;;  %v4102_v14 = vadd.f32 %v13197_v12, %v4078_v7 }
 0x4eb   :  { %v4166_v30 = vpop.f32.mrf.mxu3 }
 0x4ec   :  { %v14699_v8 = vmax.f32 %v13218_v23, 0.0  ;;  %v4167_v41 = vadd.f32 %v4166_v30, %v4143_v18  ;;  %v4124_v53 = vadd.f32 %v13179_v11, %v4100_v13  ;;  %v4126_v6 = vadd.f32 %v13193_v25, %v4102_v14 }
 0x4ee   :  { %v13232_v24 = vpack.i.bf16 %v14699_v8, %v4440_v5  ;;  %v4238_v33 = vpop.f32.mrf.mxu2  ;;  %v4148_v30 = vadd.f32 %v13188_v22, %v4124_v53  ;;  %v4150_v42 = vadd.f32 %v13200_v39, %v4126_v6 }
 0x4ef   :  { %v13244_v49 = vadd.f32 %v4238_v33, %v4215_v58 }
 0x4f0   :  { %8635 = vrot.lane.b32.xlu2 %v13232_v24, %s9025_s7  ;;  %8625 = vrot.lane.b32.xlu1 %v13232_v24, %s14941_s6  ;;  %v13248_v27 = vpop.f32.mrf.mxu1 }
 0x4f1   :  { %8620 = vrot.lane.b32.xlu0 %v13232_v24, %s9017_s26  ;;  %v4190_v35 = vpop.f32.mrf.mxu0 }
 0x4f2   :  { %v13255_v29 = vadd.f32 %v4190_v35, %v4167_v41 }
 0x4f3   :  { %v4168_v62 = vpop.f32.mrf.mxu3 }
 0x4f4   :  { %v4169_v37 = vadd.f32 %v4168_v62, %v4145_v3  ;;  %v14698_v34 = vmax.f32 %v13255_v29, 0.0 }
 0x4f6   :  { %v13260_v61 = vpop.f32.mrf.mxu2 }
 0x4f8   :  { %8645 = vrot.lane.b32.xlu2 %v13232_v24, %s15102_s0  ;;  %8640 = vrot.lane.b32.xlu1 %v13232_v24, %s9015_s24  ;;  %v4219_v43 = vpop.f32.mrf.mxu1 }
 0x4f9   :  { %8630 = vrot.lane.b32.xlu0 %v13232_v24, %s9016_s25  ;;  %v4192_v1 = vpop.f32.mrf.mxu0  ;;  %v4220_v38 = vadd.f32 %v4219_v43, %v13105_v16 }
 0x4fa   :  { %v13262_v54 = vadd.f32 %v4192_v1, %v4169_v37 }
 0x4fb   :  { %v4171_v45 = vpop.f32.mrf.mxu3 }
 0x4fc   :  { %v14697_v17 = vmax.f32 %v13262_v54, 0.0  ;;  %v4172_v52 = vadd.f32 %v4171_v45, %v4148_v30 }
 0x4fe   :  { %v13274_v57 = vpack.i.bf16 %v14697_v17, %v14698_v34  ;;  %v4243_v46 = vpop.f32.mrf.mxu2 }
 0x4ff   :  { %v13287_v16 = vadd.f32 %v4243_v46, %v4220_v38 }
 0x500   :  { %8660 = vrot.lane.b32.xlu2 %v13274_v57, %s9016_s25  ;;  %8655 = vrot.lane.b32.xlu1 %v13274_v57, %s9017_s26  ;;  %v4221_v4 = vpop.f32.mrf.mxu1 }
 0x501   :  { %8650 = vrot.lane.b32.xlu0 %v13232_v24, %s14939_s5  ;;  %v4195_v2 = vpop.f32.mrf.mxu0  ;;  %v4222_v10 = vadd.f32 %v4221_v4, %v3051_v60 }
 0x502   :  { %v13298_v19 = vadd.f32 %v4195_v2, %v4172_v52 }
 0x503   :  { %v4173_v40 = vpop.f32.mrf.mxu3 }
 0x504   :  { %v4174_v11 = vadd.f32 %v4173_v40, %v4150_v42  ;;  %v14696_v39 = vmax.f32 %v13298_v19, 0.0  ;;  %v4212_v40 = vadd.f32 %v13213_v56, %v13183_v9 }
 0x506   :  { %v4245_v12 = vpop.f32.mrf.mxu2 }
 0x507   :  { %v13300_v22 = vadd.f32 %v4245_v12, %v4222_v10  ;;  %v4236_v10 = vadd.f32 %v13221_v63, %v4212_v40 }
 0x508   :  { %8670 = vrot.lane.b32.xlu2 %v13274_v57, %s9015_s24  ;;  %8665 = vrot.lane.b32.xlu1 %v13274_v57, %s9025_s7  ;;  %v4305_v35 = vpop.f32.mrf.mxu1 }
 0x509   :  { %8675 = vrot.lane.b32.xlu0 %v13274_v57, %s15102_s0  ;;  %v4197_v58 = vpop.f32.mrf.mxu0 }
 0x50a   :  { %v13302_v15 = vadd.f32 %v4197_v58, %v4174_v11 }
 0x50b   :  { %v4257_v25 = vpop.f32.mrf.mxu3 }
 0x50c   :  { %v14695_v32 = vmax.f32 %v13302_v15, 0.0  ;;  %v4258_v53 = vadd.f32 %v4257_v25, %v13208_v51 }
 0x50e   :  { %v13310_v31 = vpack.i.bf16 %v14695_v32, %v14696_v39  ;;  %v4329_v62 = vpop.f32.mrf.mxu2 }
 0x510   :  { %8685 = vrot.lane.b32.xlu1 %v13274_v57, %s9026_s19  ;;  %8690 = vrot.lane.b32.xlu2 %v13310_v31, %s9016_s25  ;;  %v4307_v60 = vpop.f32.mrf.mxu1 }
 0x511   :  { %8680 = vrot.lane.b32.xlu0 %v13274_v57, %s14939_s5  ;;  %v4281_v18 = vpop.f32.mrf.mxu0 }
 0x512   :  { %v4282_v2 = vadd.f32 %v4281_v18, %v4258_v53  ;;  %v4217_v53 = vadd.f32 %v13248_v27, %v13096_v59 }
 0x513   :  { %v4259_v33 = vpop.f32.mrf.mxu3 }
 0x514   :  { %v4306_v42 = vadd.f32 %v4305_v35, %v4282_v2  ;;  %v4260_v52 = vadd.f32 %v4259_v33, %v4236_v10  ;;  %v4241_v2 = vadd.f32 %v13260_v61, %v4217_v53  ;;  %v15605_v61 = vmax.f32 %v13218_v23, 0.0 }
 0x516   :  { %v4331_v41 = vpop.f32.mrf.mxu2  ;;  %v4330_v58 = vadd.f32 %v4329_v62, %v4306_v42 }
 0x518   :  { %8700 = vrot.lane.b32.xlu1 %v13310_v31, %s9015_s24  ;;  %8715 = vrot.lane.b32.xlu2 %v13310_v31, %s9026_s19  ;;  %v4310_v37 = vpop.f32.mrf.mxu1 }
 0x519   :  { %8695 = vrot.lane.b32.xlu0 %v13310_v31, %s9025_s7  ;;  %v4283_v26 = vpop.f32.mrf.mxu0 }
 0x51a   :  { %v4284_v12 = vadd.f32 %v4283_v26, %v4260_v52 }
 0x51b   :  { %v4262_v3 = vpop.f32.mrf.mxu3 }
 0x51c   :  { %v4308_v17 = vadd.f32 %v4307_v60, %v4284_v12  ;;  %v4263_v9 = vadd.f32 %v4262_v3, %v13244_v49 }
 0x51e   :  { %v4334_v48 = vpop.f32.mrf.mxu2  ;;  %v4332_v63 = vadd.f32 %v4331_v41, %v4308_v17 }
 0x520   :  { %8710 = vrot.lane.b32.xlu1 %v13310_v31, %s14939_s5  ;;  %v4312_v47 = vpop.f32.mrf.mxu1 }
 0x521   :  { %8705 = vrot.lane.b32.xlu0 %v13310_v31, %s15102_s0  ;;  %v4286_v45 = vpop.f32.mrf.mxu0 }
 0x522   :  { %v4287_v8 = vadd.f32 %v4286_v45, %v4263_v9 }
 0x523   :  { %v4264_v1 = vpop.f32.mrf.mxu3 }
 0x524   :  { %v4311_v10 = vadd.f32 %v4310_v37, %v4287_v8 }
 0x526   :  { %v13328_v0 = vpop.f32.mrf.mxu2  ;;  %v4335_v27 = vadd.f32 %v4334_v48, %v4311_v10 }
 0x528   :  { %v13330_v38 = vpop.f32.mrf.mxu1 }
 0x529   :  { %v4288_v43 = vpop.f32.mrf.mxu0 }
 0x52b   :  { %v4267_v55 = vpop.f32.mrf.mxu3 }
 0x52e   :  { %v13334_v13 = vpop.f32.mrf.mxu2 }
 0x530   :  { %v13337_v46 = vpop.f32.mrf.mxu1 }
 0x531   :  { %v4291_v14 = vpop.f32.mrf.mxu0 }
 0x533   :  { %v13332_v7 = vpop.f32.mrf.mxu3 }
 0x536   :  { %v13341_v6 = vpop.f32.mrf.mxu2 }
 0x538   :  { %v4401_v11 = vpop.f32.mrf.mxu1 }
 0x539   :  { %v13343_v4 = vpop.f32.mrf.mxu0 }
 0x53b   :  { %v4353_v30 = vpop.f32.mrf.mxu3 }
 0x53c   :  { %v4354_v32 = vadd.f32 %v4353_v30, %v4330_v58 }
 0x53e   :  { %v4425_v25 = vpop.f32.mrf.mxu2 }
 0x540   :  { %v4403_v18 = vpop.f32.mrf.mxu1 }
 0x541   :  { %v4377_v39 = vpop.f32.mrf.mxu0 }
 0x542   :  { %v4378_v34 = vadd.f32 %v4377_v39, %v4354_v32 }
 0x543   :  { %v4355_v51 = vpop.f32.mrf.mxu3 }
 0x544   :  { %v4402_v56 = vadd.f32 %v4401_v11, %v4378_v34  ;;  %v4356_v33 = vadd.f32 %v4355_v51, %v4332_v63  ;;  %v4265_v34 = vadd.f32 %v4264_v1, %v4241_v2 }
 0x546   :  { %v4426_v35 = vadd.f32 %v4425_v25, %v4402_v56  ;;  %v4427_v62 = vpop.f32.mrf.mxu2  ;;  %v4289_v60 = vadd.f32 %v4288_v43, %v4265_v34  ;;  %v15606_v25 = vmax.f32 %v13255_v29, 0.0 }
 0x548   :  { %v4441_v40 = vmax.f32 %v4426_v35, 0.0  ;;  %v4406_v59 = vpop.f32.mrf.mxu1  ;;  %v4313_v42 = vadd.f32 %v4312_v47, %v4289_v60 }
 0x549   :  { %v4379_v30 = vpop.f32.mrf.mxu0 }
 0x54a   :  { %v4692_v39 = vpack.c.bf16 %v4441_v40, %v4440_v5  ;;  %v4380_v49 = vadd.f32 %v4379_v30, %v4356_v33  ;;  %v4268_v5 = vadd.f32 %v4267_v55, %v13287_v16  ;;  %v4337_v23 = vadd.f32 %v13328_v0, %v4313_v42 }
 0x54b   :  { %v4358_v26 = vpop.f32.mrf.mxu3 }
 0x54c   :  { %4698 = vst [vmem:[#allocation2 + $0xc0] sm:$0xff] %v4692_v39  ;;  %v4404_v32 = vadd.f32 %v4403_v18, %v4380_v49  ;;  %v4359_v3 = vadd.f32 %v4358_v26, %v4335_v27  ;;  %v4292_v48 = vadd.f32 %v4291_v14, %v4268_v5  ;;  %v4270_v14 = vadd.f32 %v13332_v7, %v13300_v22 }
 0x54e   :  { %v4428_v17 = vadd.f32 %v4427_v62, %v4404_v32  ;;  %v4430_v45 = vpop.f32.mrf.mxu2  ;;  %v4316_v16 = vadd.f32 %v13330_v38, %v4292_v48  ;;  %v4294_v0 = vadd.f32 %v13343_v4, %v4270_v14  ;;  %v5006_v48 = vld [vmem:[%s14395_s10 + $0x10] sm:$0xff] }
 0x550   :  { %v4443_v41 = vmax.f32 %v4428_v17, 0.0  ;;  %v4408_v43 = vpop.f32.mrf.mxu1  ;;  %v4340_v29 = vadd.f32 %v13334_v13, %v4316_v16  ;;  %v4318_v7 = vadd.f32 %v13337_v46, %v4294_v0 }
 0x551   :  { %v4382_v11 = vpop.f32.mrf.mxu0 }
 0x552   :  { %v4693_v8 = vpack.c.bf16 %v4443_v41, %v15605_v61  ;;  %v4383_v37 = vadd.f32 %v4382_v11, %v4359_v3  ;;  %v13354_v50 = vpack.i.bf16 %v4443_v41, %v4441_v40  ;;  %v15607_v40 = vmax.f32 %v13262_v54, 0.0 }
 0x553   :  { %v4360_v52 = vpop.f32.mrf.mxu3  ;;  %v4342_v13 = vadd.f32 %v13341_v6, %v4318_v7  ;;  %v15608_v54 = vmax.f32 %v13298_v19, 0.0  ;;  %v15609_v41 = vmax.f32 %v13302_v15, 0.0 }
 0x554   :  { %4699 = vst [vmem:[#allocation2 + $0xc8] sm:$0xff] %v4693_v8  ;;  %v4407_v1 = vadd.f32 %v4406_v59, %v4383_v37  ;;  %8735 = vrot.lane.b32.xlu0 %v13354_v50, %s9025_s7  ;;  %8725 = vrot.lane.b32.xlu2 %v13354_v50, %s14941_s6  ;;  %v4361_v12 = vadd.f32 %v4360_v52, %v4337_v23  ;;  %v13391_v52 = vpop.permute.xlu2 %8635 }
 0x555   :  { %8720 = vrot.lane.b32.xlu1 %v13354_v50, %s9017_s26 }
 0x556   :  { %v4431_v47 = vadd.f32 %v4430_v45, %v4407_v1  ;;  %v4432_v55 = vpop.f32.mrf.mxu2 }
 0x558   :  { %v4445_v58 = vmax.f32 %v4431_v47, 0.0  ;;  %v4411_v33 = vpop.f32.mrf.mxu1 }
 0x559   :  { %v4384_v51 = vpop.f32.mrf.mxu0 }
 0x55a   :  { %v4694_v9 = vpack.c.bf16 %v4445_v58, %v15606_v25  ;;  %v4385_v56 = vadd.f32 %v4384_v51, %v4361_v12 }
 0x55b   :  { %v4363_v18 = vpop.f32.mrf.mxu3 }
 0x55c   :  { %4700 = vst [vmem:[#allocation2 + $0xd0] sm:$0xff] %v4694_v9  ;;  %v4409_v53 = vadd.f32 %v4408_v43, %v4385_v56  ;;  %8745 = vrot.lane.b32.xlu0 %v13354_v50, %s15102_s0  ;;  %8740 = vrot.lane.b32.xlu2 %v13354_v50, %s9015_s24  ;;  %v4364_v63 = vadd.f32 %v4363_v18, %v4340_v29  ;;  %v13400_v19 = vpop.permute.xlu2 %8645  ;;  %v5005_v43 = vld [vmem:[%s14395_s10 + $0x8] sm:$0xff] }
 0x55d   :  { %8730 = vrot.lane.b32.xlu1 %v13354_v50, %s9016_s25 }
 0x55e   :  { %v4433_v38 = vadd.f32 %v4432_v55, %v4409_v53  ;;  %v4435_v2 = vpop.f32.mrf.mxu2 }
 0x560   :  { %v4447_v35 = vmax.f32 %v4433_v38, 0.0  ;;  %v4413_v59 = vpop.f32.mrf.mxu1 }
 0x561   :  { %v4387_v22 = vpop.f32.mrf.mxu0 }
 0x562   :  { %v4695_v26 = vpack.c.bf16 %v4447_v35, %v15607_v40  ;;  %v4388_v62 = vadd.f32 %v4387_v22, %v4364_v63  ;;  %v8754_v30 = vpack.i.bf16 %v4447_v35, %v4445_v58  ;;  %v8626_v11 = vpop.permute.xlu1 %8625 }
 0x563   :  { %v4365_v39 = vpop.f32.mrf.mxu3  ;;  %v13404_v15 = vpop.permute.xlu0 %8620  ;;  %v8628_v51 = vunpack.i.h.bf16 %v8626_v11  ;;  %v8627_v25 = vunpack.i.l.bf16 %v8626_v11 }
 0x564   :  { %4701 = vst [vmem:[#allocation2 + $0xd8] sm:$0xff] %v4695_v26  ;;  %v4412_v10 = vadd.f32 %v4411_v33, %v4388_v62  ;;  %8755 = vrot.lane.b32.xlu0 %v8754_v30, %s9016_s25  ;;  %8750 = vrot.lane.b32.xlu2 %v8754_v30, %s9017_s26  ;;  %v4366_v49 = vadd.f32 %v4365_v39, %v4342_v13  ;;  %v13409_v61 = vpop.permute.xlu2 %8660 }
 0x565   :  { %8770 = vrot.lane.b32.xlu1 %v8754_v30, %s15102_s0  ;;  %v8662_v11 = vunpack.i.l.bf16 %v13409_v61 }
 0x566   :  { %v4436_v4 = vadd.f32 %v4435_v2, %v4412_v10  ;;  %v4437_v17 = vpop.f32.mrf.mxu2 }
 0x568   :  { %v4449_v46 = vmax.f32 %v4436_v4, 0.0 }
 0x569   :  { %v4389_v34 = vpop.f32.mrf.mxu0 }
 0x56a   :  { %v4696_v32 = vpack.c.bf16 %v4449_v46, %v15608_v54  ;;  %v4390_v60 = vadd.f32 %v4389_v34, %v4366_v49  ;;  %v8641_v37 = vpop.permute.xlu1 %8640  ;;  %v15619_v34 = vld [vmem:[#allocation16_spill] sm:$0xff] }
 0x56b   :  { %v13411_v8 = vpop.permute.xlu0 %8630  ;;  %v8643_v26 = vunpack.i.h.bf16 %v8641_v37  ;;  %v8642_v62 = vunpack.i.l.bf16 %v8641_v37 }
 0x56c   :  { %4702 = vst [vmem:[#allocation2 + $0xe0] sm:$0xff] %v4696_v32  ;;  %v4414_v27 = vadd.f32 %v4413_v59, %v4390_v60  ;;  %8765 = vrot.lane.b32.xlu0 %v8754_v30, %s9015_s24  ;;  %8760 = vrot.lane.b32.xlu2 %v8754_v30, %s9025_s7 }
 0x56d   :  { %8775 = vrot.lane.b32.xlu1 %v8754_v30, %s14939_s5 }
 0x56e   :  { %v4438_v3 = vadd.f32 %v4437_v17, %v4414_v27  ;;  %v8638_v17 = vunpack.i.h.bf16 %v13391_v52 }
 0x570   :  { %v4451_v6 = vmax.f32 %v4438_v3, 0.0  ;;  %v8637_v3 = vunpack.i.l.bf16 %v13391_v52 }
 0x572   :  { %v4697_v45 = vpack.c.bf16 %v4451_v6, %v15609_v41  ;;  %v8784_v42 = vpack.i.bf16 %v4451_v6, %v4449_v46  ;;  %v13425_v1 = vpop.permute.xlu1 %8655  ;;  %v8648_v41 = vunpack.i.h.bf16 %v13400_v19 }
 0x573   :  { %v13422_v5 = vpop.permute.xlu0 %8650 }
 0x574   :  { %4703 = vst [vmem:[#allocation2 + $0xe8] sm:$0xff] %v4697_v45  ;;  %8785 = vrot.lane.b32.xlu0 %v8784_v42, %s9016_s25  ;;  %8780 = vrot.lane.b32.xlu2 %v8754_v30, %s9026_s19  ;;  %v8647_v45 = vunpack.i.l.bf16 %v13400_v19 }
 0x575   :  { %8790 = vrot.lane.b32.xlu1 %v8784_v42, %s9025_s7 }
 0x57a   :  { %v13439_v47 = vpop.permute.xlu1 %8665 }
 0x57c   :  { %8830 = vrot.lane.b32.xlu0 %v13310_v31, %s9017_s26  ;;  %8800 = vrot.lane.b32.xlu2 %v13310_v31, %s14941_s6  ;;  %v13417_v31 = vpop.permute.xlu2 %8670 }
 0x57d   :  { %8795 = vrot.lane.b32.xlu1 %v13354_v50, %s14939_s5 }
 0x582   :  { %v13448_v16 = vpop.permute.xlu1 %8685 }
 0x584   :  { %8835 = vrot.lane.b32.xlu0 %v8784_v42, %s9026_s19  ;;  %8805 = vrot.lane.b32.xlu2 %v8784_v42, %s9015_s24  ;;  %v13433_v23 = vpop.permute.xlu2 %8690 }
 0x585   :  { %8810 = vrot.lane.b32.xlu1 %v8784_v42, %s15102_s0 }
 0x58a   :  { %v13468_v7 = vpop.permute.xlu1 %8700 }
 0x58c   :  { %8840 = vrot.lane.b32.xlu0 %v8784_v42, %s14941_s6  ;;  %8820 = vrot.lane.b32.xlu2 %v8784_v42, %s14939_s5  ;;  %v13444_v12 = vpop.permute.xlu2 %8715 }
 0x58d   :  { %8815 = vrot.lane.b32.xlu1 %v13232_v24, %s9026_s19  ;;  %v5004_v24 = vld [vmem:[%s14395_s10] sm:$0xff] }
 0x594   :  { %8855 = vrot.lane.b32.xlu0 %v8754_v30, %s14941_s6  ;;  %8825 = vrot.lane.b32.xlu2 %v13354_v50, %s9026_s19  ;;  %v13437_v50 = vpop.permute.xlu0 %8675 }
 0x595   :  { %8845 = vrot.lane.b32.xlu1 %v8784_v42, %s9017_s26  ;;  %v8663_v42 = vunpack.i.h.bf16 %v13409_v61 }
 0x59c   :  { %5019 = vperm.xlu0 %7896, %v5006_v48   ;;  %8850 = vrot.lane.b32.xlu2 %v13274_v57, %s14941_s6  ;;  %v13446_v58 = vpop.permute.xlu0 %8680  ;;  %v8673_v48 = vunpack.i.h.bf16 %v13417_v31 }
 0x59d   :  { %5009 = vperm.xlu1 %7897, %v5004_v24   ;;  %v8672_v24 = vunpack.i.l.bf16 %v13417_v31 }
 0x5a4   :  { %5014 = vperm.xlu2 %7898, %v5005_v43   ;;  %v13466_v22 = vpop.permute.xlu0 %8695  ;;  %v8623_v43 = vunpack.i.h.bf16 %v13404_v15 }
 0x5ae   :  { %v8726_v55 = vpop.permute.xlu2 %8725 }
 0x5af   :  { %v8728_v57 = vunpack.i.h.bf16 %v8726_v55  ;;  %v8727_v9 = vunpack.i.l.bf16 %v8726_v55  ;;  %v13495_v55 = vpop.permute.xlu0 %8705 }
 0x5b1   :  { %v4729_v56 = vsel %vm15610_vm12, %v8628_v51, %v8728_v57  ;;  %v4735_v18 = vsel %vm15611_vm11, %v8728_v57, %v8628_v51  ;;  %v4728_v14 = vsel %vm15612_vm13, %v8627_v25, %v8727_v9  ;;  %v4734_v53 = vsel %vm15613_vm0, %v8727_v9, %v8627_v25  ;;  %vm15615_vm12 = vmmov %vm15614_vm5  ;;  %v7576_v25 = vld [vmem:[#allocation2 + $0xe4] sm:$0xf0] }
 0x5b2   :  { %v4742_v0 = vsel %vm15358_vm14, %v4729_v56, 0.0  ;;  %v4743_v29 = vsel %vm15360_vm8, %v4735_v18, 0.0  ;;  %v4740_v38 = vsel %vm15358_vm14, %v4728_v14, 0.0  ;;  %v4741_v63 = vsel %vm15360_vm8, %v4734_v53, 0.0  ;;  %vm15616_vm11 = vmmov %vm15614_vm5  ;;  %v13501_v14 = vpop.permute.xlu1 %8710 }
 0x5b3   :  { %v4753_v35 = vpack.c.bf16 %v4743_v29, %v4742_v0  ;;  %v4752_v33 = vpack.c.bf16 %v4741_v63, %v4740_v38  ;;  %vm15617_vm13 = vmmov %vm15614_vm5  ;;  %vm15620_vm0 = vnez %v15619_v34  ;;  %v8622_v57 = vunpack.i.l.bf16 %v13404_v15 }
 0x5b4   :  { %v8633_v18 = vunpack.i.h.bf16 %v13411_v8  ;;  %v8658_v0 = vunpack.i.h.bf16 %v13425_v1  ;;  %v8657_v29 = vunpack.i.l.bf16 %v13425_v1 }
 0x5b5   :  { %4759 = vst [vmem:[#allocation2 + $0xf8] sm:$0xff] %v4753_v35  ;;  %v7089_v35 = vld [vmem:[#allocation2 + $0xe0] sm:$0xf] }
 0x5b6   :  { %4758 = vst [vmem:[#allocation2 + $0xf0] sm:$0xff] %v4752_v33  ;;  %v8741_v40 = vpop.permute.xlu2 %8740  ;;  %v8632_v33 = vunpack.i.l.bf16 %v13411_v8 }
 0x5b7   :  { %v8743_v2 = vunpack.i.h.bf16 %v8741_v40  ;;  %v8742_v30 = vunpack.i.l.bf16 %v8741_v40 }
 0x5b9   :  { %v4477_v10 = vsel %vm15614_vm5, %v8643_v26, %v8743_v2  ;;  %v4483_v39 = vsel %vm15615_vm12, %v8743_v2, %v8643_v26  ;;  %v4476_v13 = vsel %vm15616_vm11, %v8642_v62, %v8742_v30  ;;  %v4482_v4 = vsel %vm15617_vm13, %v8742_v30, %v8642_v62 }
 0x5ba   :  { %v4490_v46 = vsel %vm15126_vm3, %v4483_v39, 0.0  ;;  %v4491_v54 = vsel %vm15620_vm0, %v4477_v10, 0.0  ;;  %v4488_v32 = vsel %vm15126_vm3, %v4482_v4, 0.0  ;;  %v4489_v60 = vsel %vm15620_vm0, %v4476_v13, 0.0  ;;  %v15625_v39 = vld [vmem:[#allocation19_spill] sm:$0xff]  ;;  %v15626_v4 = vld [vmem:[#allocation20_spill] sm:$0xff] }
 0x5bb   :  { %v4501_v59 = vpack.c.bf16 %v4491_v54, %v4490_v46  ;;  %v4500_v27 = vpack.c.bf16 %v4489_v60, %v4488_v32  ;;  %v8668_v26 = vunpack.i.h.bf16 %v13439_v47  ;;  %v7090_v62 = vor.u32 %v7576_v25, %v7089_v35  ;;  %v7574_v60 = vld [vmem:[#allocation2 + $0xd4] sm:$0xf0] }
 0x5bc   :  { %v7578_v6 = vld [vmem:[#allocation2 + $0xf4] sm:$0xf0]  ;;  %vm15621_vm5 = vcmp.lt.s32.totalorder %v9221_v28, 15  ;;  %v8677_v25 = vunpack.i.l.bf16 %v13437_v50  ;;  %v8703_v35 = vunpack.i.h.bf16 %v13468_v7 }
 0x5bd   :  { %4507 = vst [vmem:[#allocation2 + $0x8] sm:$0xff] %v4501_v59  ;;  %v7097_v37 = vld [vmem:[#allocation2 + $0xf0] sm:$0xf]  ;;  %vm15622_vm12 = vmmov %vm15621_vm5  ;;  %v8667_v59 = vunpack.i.l.bf16 %v13439_v47  ;;  %v8702_v47 = vunpack.i.l.bf16 %v13468_v7 }
 0x5be   :  { %4506 = vst [vmem:[#allocation2] sm:$0xff] %v4500_v27  ;;  %v7098_v51 = vor.u32 %v7578_v6, %v7097_v37  ;;  %v8751_v53 = vpop.permute.xlu2 %8750  ;;  %vm15623_vm11 = vmmov %vm15621_vm5  ;;  %v8678_v27 = vunpack.i.h.bf16 %v13437_v50 }
 0x5bf   :  { %v8753_v38 = vunpack.i.h.bf16 %v8751_v53  ;;  %v8752_v63 = vunpack.i.l.bf16 %v8751_v53  ;;  %vm15624_vm13 = vmmov %vm15621_vm5  ;;  %v8688_v53 = vunpack.i.h.bf16 %v13448_v16 }
 0x5c0   :  { %5348 = vmatpush.bf16.msrb.mxu0 %v7098_v51  ;;  %v7572_v51 = vld [vmem:[#allocation2 + $0xc4] sm:$0xf0] }
 0x5c1   :  { %v4599_v2 = vsel %vm15621_vm5, %v8658_v0, %v8753_v38  ;;  %v4605_v30 = vsel %vm15622_vm12, %v8753_v38, %v8658_v0  ;;  %v4598_v1 = vsel %vm15623_vm11, %v8657_v29, %v8752_v63  ;;  %v4604_v10 = vsel %vm15624_vm13, %v8752_v63, %v8657_v29  ;;  %v7081_v38 = vld [vmem:[#allocation2 + $0xd0] sm:$0xf] }
 0x5c2   :  { %v4614_v13 = vsel %vm15183_vm10, %v4605_v30, 0.0  ;;  %v4615_v46 = vsel %vm15181_vm1, %v4599_v2, 0.0  ;;  %v4612_v54 = vsel %vm15183_vm10, %v4604_v10, 0.0  ;;  %v4613_v32 = vsel %vm15181_vm1, %v4598_v1, 0.0 }
 0x5c3   :  { %v4623_v6 = vpack.c.bf16 %v4615_v46, %v4614_v13  ;;  %v4622_v37 = vpack.c.bf16 %v4613_v32, %v4612_v54  ;;  %v8687_v0 = vunpack.i.l.bf16 %v13448_v16  ;;  %v8683_v29 = vunpack.i.h.bf16 %v13446_v58 }
 0x5c4   :  { %5349 = vmatpush.bf16.msrb.mxu0 %v7090_v62  ;;  %v7082_v30 = vor.u32 %v7574_v60, %v7081_v38  ;;  %v7073_v62 = vld [vmem:[#allocation2 + $0xc0] sm:$0xf]  ;;  %v8698_v1 = vunpack.i.h.bf16 %v13466_v22  ;;  %vm15627_vm5 = vcmp.lt.s32.totalorder %v9221_v28, 112 }
 0x5c5   :  { %4629 = vst [vmem:[#allocation2 + $0x78] sm:$0xff] %v4623_v6  ;;  %v7074_v32 = vor.u32 %v7572_v51, %v7073_v62  ;;  %vm15628_vm12 = vmmov %vm15627_vm5 }
 0x5c6   :  { %v8736_v2 = vpop.permute.xlu0 %8735  ;;  %4628 = vst [vmem:[#allocation2 + $0x70] sm:$0xff] %v4622_v37  ;;  %v8761_v46 = vpop.permute.xlu2 %8760  ;;  %vm15629_vm11 = vmmov %vm15627_vm5 }
 0x5c7   :  { %v8738_v10 = vunpack.i.h.bf16 %v8736_v2  ;;  %v8737_v13 = vunpack.i.l.bf16 %v8736_v2  ;;  %v8721_v54 = vpop.permute.xlu1 %8720  ;;  %v8763_v40 = vunpack.i.h.bf16 %v8761_v46  ;;  %v8762_v56 = vunpack.i.l.bf16 %v8761_v46  ;;  %vm15630_vm13 = vmmov %vm15627_vm5 }
 0x5c8   :  { %v8723_v9 = vunpack.i.h.bf16 %v8721_v54  ;;  %v8722_v63 = vunpack.i.l.bf16 %v8721_v54  ;;  %5350 = vmatpush.bf16.msrb.mxu0 %v7082_v30 }
 0x5c9   :  { %v4849_v6 = vsel %vm15627_vm5, %v8638_v17, %v8738_v10  ;;  %v4855_v60 = vsel %vm15628_vm12, %v8738_v10, %v8638_v17  ;;  %v4848_v37 = vsel %vm15629_vm11, %v8637_v3, %v8737_v13  ;;  %v4854_v51 = vsel %vm15630_vm13, %v8737_v13, %v8637_v3  ;;  %vm15631_vm12 = vmmov %vm15627_vm5 }
 0x5ca   :  { %v4862_v38 = vsel %vm15441_vm6, %v4849_v6, 0.0  ;;  %v4863_v2 = vsel %vm15447_vm7, %v4855_v60, 0.0  ;;  %v4860_v30 = vsel %vm15441_vm6, %v4848_v37, 0.0  ;;  %v4861_v17 = vsel %vm15447_vm7, %v4854_v51, 0.0  ;;  %vm15632_vm11 = vmmov %vm15627_vm5 }
 0x5cb   :  { %v4873_v62 = vpack.c.bf16 %v4863_v2, %v4862_v38  ;;  %v4872_v10 = vpack.c.bf16 %v4861_v17, %v4860_v30  ;;  %v4851_v52 = vsel %vm15627_vm5, %v8668_v26, %v8763_v40  ;;  %v4857_v3 = vsel %vm15631_vm12, %v8763_v40, %v8668_v26  ;;  %vm15633_vm13 = vmmov %vm15627_vm5 }
 0x5cc   :  { %v4866_v13 = vsel %vm15441_vm6, %v4851_v52, 0.0  ;;  %v4867_v46 = vsel %vm15447_vm7, %v4857_v3, 0.0  ;;  %v4850_v54 = vsel %vm15632_vm11, %v8667_v59, %v8762_v56  ;;  %v4856_v6 = vsel %vm15633_vm13, %v8762_v56, %v8667_v59  ;;  %5351 = vmatpush.bf16.msrb.mxu0 %v7074_v32 }
 0x5cd   :  { %4879 = vst [vmem:[#allocation2 + $0x158] sm:$0xff] %v4873_v62  ;;  %v4875_v60 = vpack.c.bf16 %v4867_v46, %v4866_v13  ;;  %v4864_v37 = vsel %vm15441_vm6, %v4850_v54, 0.0  ;;  %v4865_v40 = vsel %vm15447_vm7, %v4856_v6, 0.0  ;;  %vm15634_vm5 = vcmp.lt.s32.totalorder %v9221_v28, 15  ;;  %v15640_v54 = vld [vmem:[#allocation32_spill] sm:$0xff] }
 0x5ce   :  { %v4597_v26 = vsel %vm15634_vm5, %v8623_v43, %v8723_v9  ;;  %4878 = vst [vmem:[#allocation2 + $0x150] sm:$0xff] %v4872_v10  ;;  %v4874_v51 = vpack.c.bf16 %v4865_v40, %v4864_v37  ;;  %vm15635_vm12 = vmmov %vm15634_vm5  ;;  %v8746_v38 = vpop.permute.xlu0 %8745  ;;  %v8781_v17 = vpop.permute.xlu2 %8780 }
 0x5cf   :  { %v4603_v56 = vsel %vm15635_vm12, %v8723_v9, %v8623_v43  ;;  %v4611_v59 = vsel %vm15181_vm1, %v4597_v26, 0.0  ;;  %vm15636_vm11 = vmmov %vm15634_vm5  ;;  %4881 = vst [vmem:[#allocation2 + $0x168] sm:$0xff] %v4875_v60  ;;  %v8748_v9 = vunpack.i.h.bf16 %v8746_v38  ;;  %v8731_v62 = vpop.permute.xlu1 %8730  ;;  %v8747_v3 = vunpack.i.l.bf16 %v8746_v38  ;;  %v15641_v60 = vld [vmem:[#allocation33_spill] sm:$0xff] }
 0x5d0   :  { %v4596_v32 = vsel %vm15636_vm11, %v8622_v57, %v8722_v63  ;;  %v4610_v2 = vsel %vm15183_vm10, %v4603_v56, 0.0  ;;  %vm15637_vm13 = vmmov %vm15634_vm5  ;;  %4880 = vst [vmem:[#allocation2 + $0x160] sm:$0xff] %v4874_v51  ;;  %v8783_v13 = vunpack.i.h.bf16 %v8781_v17  ;;  %vm15638_vm5 = vcmp.lt.s32.totalorder %v9221_v28, 113  ;;  %v7562_v51 = vld [vmem:[#allocation2 + $0x74] sm:$0xf0] }
 0x5d1   :  { %v4602_v30 = vsel %vm15637_vm13, %v8722_v63, %v8622_v57  ;;  %v4609_v43 = vsel %vm15181_vm1, %v4596_v32, 0.0  ;;  %v4621_v10 = vpack.c.bf16 %v4611_v59, %v4610_v2  ;;  %v4789_v15 = vsel %vm15638_vm5, %v8648_v41, %v8748_v9  ;;  %vm15639_vm12 = vmmov %vm15638_vm5  ;;  %v7033_v38 = vld [vmem:[#allocation2 + $0x70] sm:$0xf] }
 0x5d2   :  { %v4608_v52 = vsel %vm15183_vm10, %v4602_v30, 0.0  ;;  %v4795_v57 = vsel %vm15639_vm12, %v8748_v9, %v8648_v41  ;;  %v8782_v63 = vunpack.i.l.bf16 %v8781_v17  ;;  %v4802_v6 = vsel %vm15502_vm15, %v4789_v15, 0.0  ;;  %vm15642_vm11 = vmmov %vm15638_vm5  ;;  %v15648_v9 = vld [vmem:[#allocation35_spill] sm:$0xff] }
 0x5d3   :  { %v4620_v46 = vpack.c.bf16 %v4609_v43, %v4608_v52  ;;  %4627 = vst [vmem:[#allocation2 + $0x68] sm:$0xff] %v4621_v10  ;;  %v4803_v37 = vsel %vm15505_vm9, %v4795_v57, 0.0  ;;  %v4788_v40 = vsel %vm15642_vm11, %v8647_v45, %v8747_v3  ;;  %vm15643_vm13 = vmmov %vm15638_vm5  ;;  %vm15644_vm5 = vcmp.lt.s32.totalorder %v9221_v28, 111 }
 0x5d4   :  { %v4794_v26 = vsel %vm15643_vm13, %v8747_v3, %v8647_v45  ;;  %v4813_v41 = vpack.c.bf16 %v4803_v37, %v4802_v6  ;;  %v4800_v56 = vsel %vm15502_vm15, %v4788_v40, 0.0  ;;  %v4911_v32 = vsel %vm15644_vm5, %v8688_v53, %v8783_v13  ;;  %vm15645_vm12 = vmmov %vm15644_vm5  ;;  %v15652_v40 = vld [vmem:[#allocation17_spill] sm:$0xff] }
 0x5d5   :  { %4626 = vst [vmem:[#allocation2 + $0x60] sm:$0xff] %v4620_v46  ;;  %v4801_v59 = vsel %vm15505_vm9, %v4794_v26, 0.0  ;;  %v4917_v19 = vsel %vm15645_vm12, %v8783_v13, %v8688_v53  ;;  %v4926_v30 = vsel %vm15389_vm4, %v4911_v32, 0.0  ;;  %vm15647_vm11 = vmmov %vm15644_vm5  ;;  %vm15649_vm13 = vnez %v15648_v9  ;;  %v15654_v26 = vld [vmem:[#allocation18_spill] sm:$0xff] }
 0x5d6   :  { %v4812_v2 = vpack.c.bf16 %v4801_v59, %v4800_v56  ;;  %v4910_v43 = vsel %vm15647_vm11, %v8687_v0, %v8782_v63  ;;  %4819 = vst [vmem:[#allocation2 + $0x128] sm:$0xff] %v4813_v41  ;;  %v4927_v17 = vsel %vm15649_vm13, %v4917_v19, 0.0  ;;  %v4916_v10 = vsel %vm15644_vm5, %v8782_v63, %v8687_v0  ;;  %v8756_v63 = vpop.permute.xlu0 %8755  ;;  %v13655_v37 = vpop.permute.xlu2 %8800 }
 0x5d7   :  { %v4924_v53 = vsel %vm15389_vm4, %v4910_v43, 0.0  ;;  %v8733_v52 = vunpack.i.h.bf16 %v8731_v62  ;;  %v4935_v3 = vpack.c.bf16 %v4927_v17, %v4926_v30  ;;  %v4925_v13 = vsel %vm15649_vm13, %v4916_v10, 0.0  ;;  %v8771_v56 = vpop.permute.xlu1 %8770 }
 0x5d8   :  { %4818 = vst [vmem:[#allocation2 + $0x120] sm:$0xff] %v4812_v2  ;;  %v8732_v46 = vunpack.i.l.bf16 %v8731_v62  ;;  %v7034_v15 = vor.u32 %v7562_v51, %v7033_v38  ;;  %v8697_v57 = vunpack.i.l.bf16 %v13466_v22  ;;  %v4934_v6 = vpack.c.bf16 %v4925_v13, %v4924_v53 }
 0x5d9   :  { %vm15650_vm12 = vcmp.lt.s32.totalorder %v9221_v28, 16  ;;  %4941 = vst [vmem:[#allocation2 + $0x198] sm:$0xff] %v4935_v3  ;;  %vm15653_vm5 = vnez %v15652_v40  ;;  %vm15655_vm2 = vnez %v15654_v26  ;;  %v8758_v2 = vunpack.i.h.bf16 %v8756_v63 }
 0x5da   :  { %v4537_v16 = vsel %vm15650_vm12, %v8633_v18, %v8733_v52  ;;  %vm15651_vm11 = vmmov %vm15650_vm12  ;;  %5330 = vmatpush.bf16.msrb.mxu3 %v7034_v15  ;;  %4940 = vst [vmem:[#allocation2 + $0x190] sm:$0xff] %v4934_v6  ;;  %v8713_v19 = vunpack.i.h.bf16 %v13501_v14  ;;  %v8712_v30 = vunpack.i.l.bf16 %v13501_v14  ;;  %v8757_v8 = vunpack.i.l.bf16 %v8756_v63 }
 0x5db   :  { %v4543_v0 = vsel %vm15651_vm11, %v8733_v52, %v8633_v18  ;;  %v4551_v51 = vsel %vm15655_vm2, %v4537_v16, 0.0  ;;  %vm15656_vm1 = vmmov %vm15651_vm11  ;;  %v8773_v10 = vunpack.i.h.bf16 %v8771_v56  ;;  %v8772_v53 = vunpack.i.l.bf16 %v8771_v56  ;;  %v7560_v52 = vld [vmem:[#allocation2 + $0x64] sm:$0xf0] }
 0x5dc   :  { %v4550_v62 = vsel %vm15653_vm5, %v4543_v0, 0.0  ;;  %v4536_v41 = vsel %vm15656_vm1, %v8632_v33, %v8732_v46  ;;  %vm15657_vm12 = vmmov %vm15656_vm1  ;;  %v7025_v15 = vld [vmem:[#allocation2 + $0x60] sm:$0xf]  ;;  %v8652_v14 = vunpack.i.l.bf16 %v13422_v5 }
 0x5dd   :  { %v4542_v18 = vsel %vm15657_vm12, %v8732_v46, %v8632_v33  ;;  %v4561_v59 = vpack.c.bf16 %v4551_v51, %v4550_v62  ;;  %v4549_v38 = vsel %vm15655_vm2, %v4536_v41, 0.0  ;;  %v4539_v33 = vsel %vm15656_vm1, %v8663_v42, %v8758_v2  ;;  %vm15658_vm11 = vmmov %vm15656_vm1 }
 0x5de   :  { %v4548_v32 = vsel %vm15653_vm5, %v4542_v18, 0.0  ;;  %v4545_v17 = vsel %vm15658_vm11, %v8758_v2, %v8663_v42  ;;  %v4555_v13 = vsel %vm15655_vm2, %v4539_v33, 0.0  ;;  %vm15659_vm12 = vmmov %vm15656_vm1  ;;  %v4544_v42 = vsel %vm15656_vm1, %v8757_v8, %v8662_v11 }
 0x5df   :  { %v4560_v43 = vpack.c.bf16 %v4549_v38, %v4548_v32  ;;  %4567 = vst [vmem:[#allocation2 + $0x38] sm:$0xff] %v4561_v59  ;;  %v4554_v3 = vsel %vm15653_vm5, %v4545_v17, 0.0  ;;  %v4538_v46 = vsel %vm15659_vm12, %v8662_v11, %v8757_v8  ;;  %v4552_v16 = vsel %vm15653_vm5, %v4544_v42, 0.0  ;;  %v8766_v59 = vpop.permute.xlu0 %8765  ;;  %v8806_v32 = vpop.permute.xlu2 %8805 }
 0x5e0   :  { %v4563_v6 = vpack.c.bf16 %v4555_v13, %v4554_v3  ;;  %v4553_v0 = vsel %vm15655_vm2, %v4538_v46, 0.0  ;;  %vm15660_vm11 = vcmp.lt.s32.totalorder %v9221_v28, 113  ;;  %v7026_v56 = vor.u32 %v7560_v52, %v7025_v15  ;;  %v8776_v33 = vpop.permute.xlu1 %8775 }
 0x5e1   :  { %4566 = vst [vmem:[#allocation2 + $0x30] sm:$0xff] %v4560_v43  ;;  %v4791_v63 = vsel %vm15660_vm11, %v8678_v27, %v8773_v10  ;;  %v4562_v62 = vpack.c.bf16 %v4553_v0, %v4552_v16  ;;  %vm15661_vm12 = vmmov %vm15660_vm11  ;;  %v8768_v43 = vunpack.i.h.bf16 %v8766_v59  ;;  %v8767_v8 = vunpack.i.l.bf16 %v8766_v59 }
 0x5e2   :  { %v4797_v61 = vsel %vm15661_vm12, %v8773_v10, %v8678_v27  ;;  %v4806_v11 = vsel %vm15502_vm15, %v4791_v63, 0.0  ;;  %vm15662_vm1 = vmmov %vm15660_vm11  ;;  %4569 = vst [vmem:[#allocation2 + $0x48] sm:$0xff] %v4563_v6  ;;  %5331 = vmatpush.bf16.msrb.mxu3 %v7026_v56  ;;  %v8808_v50 = vunpack.i.h.bf16 %v8806_v32  ;;  %v8807_v10 = vunpack.i.l.bf16 %v8806_v32 }
 0x5e3   :  { %v4790_v51 = vsel %vm15662_vm1, %v8677_v25, %v8772_v53  ;;  %v4807_v41 = vsel %vm15505_vm9, %v4797_v61, 0.0  ;;  %vm15663_vm11 = vmmov %vm15662_vm1  ;;  %4568 = vst [vmem:[#allocation2 + $0x40] sm:$0xff] %v4562_v62  ;;  %v8778_v3 = vunpack.i.h.bf16 %v8776_v33  ;;  %vm15664_vm12 = vcmp.lt.s32.totalorder %v9221_v28, 17 }
 0x5e4   :  { %v4796_v18 = vsel %vm15663_vm11, %v8772_v53, %v8677_v25  ;;  %v4804_v27 = vsel %vm15502_vm15, %v4790_v51, 0.0  ;;  %v4815_v38 = vpack.c.bf16 %v4807_v41, %v4806_v11  ;;  %v4479_v25 = vsel %vm15664_vm12, %v8673_v48, %v8768_v43  ;;  %vm15665_vm1 = vmmov %vm15664_vm12 }
 0x5e5   :  { %v4805_v2 = vsel %vm15505_vm9, %v4796_v18, 0.0  ;;  %v4485_v53 = vsel %vm15665_vm1, %v8768_v43, %v8673_v48  ;;  %vm15666_vm11 = vmmov %vm15665_vm1  ;;  %v4495_v42 = vsel %vm15620_vm0, %v4479_v25, 0.0  ;;  %v4480_v62 = vsel %vm15665_vm1, %v8702_v47, %v8807_v10 }
 0x5e6   :  { %v4814_v17 = vpack.c.bf16 %v4805_v2, %v4804_v27  ;;  %4821 = vst [vmem:[#allocation2 + $0x138] sm:$0xff] %v4815_v38  ;;  %v4478_v52 = vsel %vm15666_vm11, %v8672_v24, %v8767_v8  ;;  %vm15667_vm10 = vmmov %vm15665_vm1  ;;  %v4494_v46 = vsel %vm15126_vm3, %v4485_v53, 0.0  ;;  %v4497_v51 = vsel %vm15620_vm0, %v4480_v62, 0.0  ;;  %v15675_v38 = vld [vmem:[#allocation23_spill] sm:$0xff] }
 0x5e7   :  { %v4484_v13 = vsel %vm15667_vm10, %v8767_v8, %v8672_v24  ;;  %v4493_v15 = vsel %vm15620_vm0, %v4478_v52, 0.0  ;;  %v4503_v6 = vpack.c.bf16 %v4495_v42, %v4494_v46  ;;  %vm15668_vm12 = vmmov %vm15665_vm1  ;;  %v8777_v56 = vunpack.i.l.bf16 %v8776_v33  ;;  %v8786_v59 = vpop.permute.xlu0 %8785  ;;  %v8821_v32 = vpop.permute.xlu2 %8820 }
 0x5e8   :  { %4820 = vst [vmem:[#allocation2 + $0x130] sm:$0xff] %v4814_v17  ;;  %v4492_v48 = vsel %vm15126_vm3, %v4484_v13, 0.0  ;;  %v4481_v31 = vsel %vm15668_vm12, %v8703_v35, %v8808_v50  ;;  %vm15669_vm10 = vmmov %vm15665_vm1  ;;  %vm15671_vm12 = vcmp.lt.s32.totalorder %v9221_v28, 1  ;;  %v8788_v43 = vunpack.i.h.bf16 %v8786_v59 }
 0x5e9   :  { %v4502_v16 = vpack.c.bf16 %v4493_v15, %v4492_v48  ;;  %v4487_v24 = vsel %vm15669_vm10, %v8808_v50, %v8703_v35  ;;  %v4499_v63 = vsel %vm15620_vm0, %v4481_v31, 0.0  ;;  %vm15670_vm11 = vmmov %vm15665_vm1  ;;  %4509 = vst [vmem:[#allocation2 + $0x18] sm:$0xff] %v4503_v6  ;;  %v4659_v41 = vsel %vm15671_vm12, %v8683_v29, %v8778_v3  ;;  %v8791_v50 = vpop.permute.xlu1 %8790 }
 0x5ea   :  { %v4498_v0 = vsel %vm15126_vm3, %v4487_v24, 0.0  ;;  %v4486_v61 = vsel %vm15670_vm11, %v8807_v10, %v8702_v47  ;;  %vm15672_vm10 = vmmov %vm15671_vm12  ;;  %v15673_v47 = vld [vmem:[#allocation24_spill] sm:$0xff]  ;;  %vm15676_vm11 = vnez %v15675_v38  ;;  %v8787_v8 = vunpack.i.l.bf16 %v8786_v59 }
 0x5eb   :  { %v4505_v11 = vpack.c.bf16 %v4499_v63, %v4498_v0  ;;  %v4496_v35 = vsel %vm15126_vm3, %v4486_v61, 0.0  ;;  %4508 = vst [vmem:[#allocation2 + $0x10] sm:$0xff] %v4502_v16  ;;  %v4665_v7 = vsel %vm15672_vm10, %v8778_v3, %v8683_v29  ;;  %vm15674_vm1 = vnez %v15673_v47  ;;  %vm15678_vm12 = vmmov %vm15672_vm10 }
 0x5ec   :  { %v4504_v18 = vpack.c.bf16 %v4497_v51, %v4496_v35  ;;  %v4675_v27 = vsel %vm15674_vm1, %v4659_v41, 0.0  ;;  %v4674_v2 = vsel %vm15676_vm11, %v4665_v7, 0.0  ;;  %v8823_v17 = vunpack.i.h.bf16 %v8821_v32 }
 0x5ed   :  { %4511 = vst [vmem:[#allocation2 + $0x28] sm:$0xff] %v4505_v11  ;;  %v4683_v10 = vpack.c.bf16 %v4675_v27, %v4674_v2  ;;  %v15677_v25 = vunpack.i.l.bf16 %v13446_v58  ;;  %v8822_v53 = vunpack.i.l.bf16 %v8821_v32  ;;  %v15680_v46 = vunpack.i.h.bf16 %v13433_v23 }
 0x5ee   :  { %4510 = vst [vmem:[#allocation2 + $0x20] sm:$0xff] %v4504_v18  ;;  %vm15681_vm0 = vcmp.lt.s32.totalorder %v9221_v28, 16  ;;  %v15684_v31 = vunpack.i.l.bf16 %v13433_v23  ;;  %v8793_v32 = vunpack.i.h.bf16 %v8791_v50  ;;  %v8792_v2 = vunpack.i.l.bf16 %v8791_v50 }
 0x5ef   :  { %v4658_v29 = vsel %vm15678_vm12, %v15677_v25, %v8777_v56  ;;  %v15679_v3 = vmov %v15677_v25  ;;  %v4541_v42 = vsel %vm15681_vm0, %v15680_v46, %v8788_v43  ;;  %v15682_v48 = vmov %v15680_v46  ;;  %vm15683_vm12 = vmmov %vm15681_vm0  ;;  %4689 = vst [vmem:[#allocation2 + $0xa8] sm:$0xff] %v4683_v10 }
 0x5f0   :  { %v4664_v33 = vsel %vm15672_vm10, %v8777_v56, %v15679_v3  ;;  %v4673_v13 = vsel %vm15674_vm1, %v4658_v29, 0.0  ;;  %v4547_v58 = vsel %vm15683_vm12, %v8788_v43, %v15682_v48  ;;  %v4559_v16 = vsel %vm15655_vm2, %v4541_v42, 0.0  ;;  %vm15685_vm10 = vmmov %vm15681_vm0  ;;  %v13843_v43 = vpop.permute.xlu0 %8830 }
 0x5f1   :  { %v4672_v52 = vsel %vm15676_vm11, %v4664_v33, 0.0  ;;  %v4558_v6 = vsel %vm15653_vm5, %v4547_v58, 0.0  ;;  %v4540_v24 = vsel %vm15685_vm10, %v15684_v31, %v8787_v8  ;;  %v15686_v63 = vmov %v15684_v31  ;;  %v13876_v58 = vpop.permute.xlu2 %8825 }
 0x5f2   :  { %v4682_v15 = vpack.c.bf16 %v4673_v13, %v4672_v52  ;;  %v4565_v0 = vpack.c.bf16 %v4559_v16, %v4558_v6  ;;  %v4546_v62 = vsel %vm15681_vm0, %v8787_v8, %v15686_v63  ;;  %v4557_v61 = vsel %vm15655_vm2, %v4540_v24, 0.0  ;;  %v13878_v6 = vld [vmem:[#allocation2 + $0x160] sm:$0xf]  ;;  %v13880_v16 = vld [vmem:[#allocation2 + $0x164] sm:$0xf0] }
 0x5f3   :  { %vm15687_vm12 = vcmp.lt.s32.totalorder %v9221_v28, 1  ;;  %v4556_v35 = vsel %vm15653_vm5, %v4546_v62, 0.0  ;;  %v8717_v8 = vunpack.i.l.bf16 %v13444_v12  ;;  %v8708_v52 = vunpack.i.h.bf16 %v13495_v55  ;;  %v13888_v62 = vld [vmem:[#allocation2 + $0x40] sm:$0xf] }
 0x5f4   :  { %v4661_v11 = vsel %vm15687_vm12, %v8713_v19, %v8823_v17  ;;  %4688 = vst [vmem:[#allocation2 + $0xa0] sm:$0xff] %v4682_v15  ;;  %vm15688_vm10 = vmmov %vm15687_vm12  ;;  %v4564_v18 = vpack.c.bf16 %v4557_v61, %v4556_v35  ;;  %v8803_v42 = vunpack.i.h.bf16 %v13655_v37  ;;  %v8802_v48 = vunpack.i.l.bf16 %v13655_v37  ;;  %v13890_v61 = vld [vmem:[#allocation2 + $0x44] sm:$0xf0] }
 0x5f5   :  { %v4667_v23 = vsel %vm15688_vm10, %v8823_v17, %v8713_v19  ;;  %v4679_v51 = vsel %vm15674_vm1, %v4661_v11, 0.0  ;;  %vm15689_vm0 = vmmov %vm15688_vm10  ;;  %4571 = vst [vmem:[#allocation2 + $0x58] sm:$0xff] %v4565_v0  ;;  %v8653_v17 = vunpack.i.h.bf16 %v13422_v5  ;;  %vm15691_vm10 = vcmp.lt.s32.totalorder %v9221_v28, 112 }
 0x5f6   :  { %v4660_v41 = vsel %vm15689_vm0, %v8712_v30, %v8822_v53  ;;  %v4678_v7 = vsel %vm15676_vm11, %v4667_v23, 0.0  ;;  %vm15690_vm12 = vmmov %vm15689_vm0  ;;  %4570 = vst [vmem:[#allocation2 + $0x50] sm:$0xff] %v4564_v18  ;;  %v4853_v25 = vsel %vm15691_vm10, %v8698_v1, %v8793_v32  ;;  %v8833_v31 = vunpack.i.h.bf16 %v13843_v43 }
 0x5f7   :  { %v4666_v27 = vsel %vm15690_vm12, %v8822_v53, %v8712_v30  ;;  %v4677_v19 = vsel %vm15674_vm1, %v4660_v41, 0.0  ;;  %v4685_v56 = vpack.c.bf16 %v4679_v51, %v4678_v7  ;;  %v8796_v30 = vpop.permute.xlu1 %8795  ;;  %vm15692_vm0 = vmmov %vm15691_vm10  ;;  %v4870_v3 = vsel %vm15441_vm6, %v4853_v25, 0.0 }
 0x5f8   :  { %v4676_v59 = vsel %vm15676_vm11, %v4666_v27, 0.0  ;;  %v4859_v50 = vsel %vm15692_vm0, %v8793_v32, %v8698_v1  ;;  %vm15693_vm12 = vmmov %vm15692_vm0  ;;  %v8798_v46 = vunpack.i.h.bf16 %v8796_v30  ;;  %v8797_v15 = vunpack.i.l.bf16 %v8796_v30 }
 0x5f9   :  { %v4684_v10 = vpack.c.bf16 %v4677_v19, %v4676_v59  ;;  %4691 = vst [vmem:[#allocation2 + $0xb8] sm:$0xff] %v4685_v56  ;;  %v4852_v29 = vsel %vm15693_vm12, %v8697_v57, %v8792_v2  ;;  %vm15694_vm2 = vmmov %vm15692_vm0  ;;  %v4871_v33 = vsel %vm15447_vm7, %v4859_v50, 0.0  ;;  %v8832_v24 = vunpack.i.l.bf16 %v13843_v43  ;;  %v8836_v56 = vpop.permute.xlu0 %8835 }
 0x5fa   :  { %v4858_v5 = vsel %vm15694_vm2, %v8792_v2, %v8697_v57  ;;  %v4868_v1 = vsel %vm15441_vm6, %v4852_v29, 0.0  ;;  %v4877_v13 = vpack.c.bf16 %v4871_v33, %v4870_v3  ;;  %v8707_v57 = vunpack.i.l.bf16 %v13495_v55 }
 0x5fb   :  { %4690 = vst [vmem:[#allocation2 + $0xb0] sm:$0xff] %v4684_v10  ;;  %v4869_v53 = vsel %vm15447_vm7, %v4858_v5, 0.0  ;;  %vm15695_vm2 = vcmp.lt.s32.totalorder %v9221_v28, 1  ;;  %v8828_v18 = vunpack.i.h.bf16 %v13876_v58  ;;  %v8838_v2 = vunpack.i.h.bf16 %v8836_v56 }
 0x5fc   :  { %v4876_v22 = vpack.c.bf16 %v4869_v53, %v4868_v1  ;;  %4883 = vst [vmem:[#allocation2 + $0x178] sm:$0xff] %v4877_v13  ;;  %v4657_v0 = vsel %vm15695_vm2, %v8653_v17, %v8798_v46  ;;  %vm15696_vm10 = vmmov %vm15695_vm2  ;;  %v7558_v41 = vld [vmem:[#allocation2 + $0x54] sm:$0xf0]  ;;  %v7010_v30 = vor.u32 %v13890_v61, %v13888_v62  ;;  %v7154_v29 = vor.u32 %v13880_v16, %v13878_v6 }
 0x5fd   :  { %v4663_v63 = vsel %vm15696_vm10, %v8798_v46, %v8653_v17  ;;  %v4671_v35 = vsel %vm15674_vm1, %v4657_v0, 0.0  ;;  %vm15697_vm0 = vmmov %vm15695_vm2  ;;  %v7017_v59 = vld [vmem:[#allocation2 + $0x50] sm:$0xf]  ;;  %v8837_v17 = vunpack.i.l.bf16 %v8836_v56  ;;  %v15699_v5 = vunpack.i.h.bf16 %v13444_v12 }
 0x5fe   :  { %4882 = vst [vmem:[#allocation2 + $0x170] sm:$0xff] %v4876_v22  ;;  %v4670_v11 = vsel %vm15676_vm11, %v4663_v63, 0.0  ;;  %v4656_v23 = vsel %vm15697_vm0, %v8652_v14, %v8797_v15  ;;  %vm15698_vm12 = vmmov %vm15697_vm0  ;;  %v7018_v50 = vor.u32 %v7558_v41, %v7017_v59  ;;  %vm15700_vm2 = vcmp.lt.s32.totalorder %v9221_v28, 111  ;;  %v7001_v46 = vld [vmem:[#allocation2 + $0x30] sm:$0xf] }
 0x5ff   :  { %v4662_v51 = vsel %vm15698_vm12, %v8797_v15, %v8652_v14  ;;  %v4681_v7 = vpack.c.bf16 %v4671_v35, %v4670_v11  ;;  %v4669_v19 = vsel %vm15674_vm1, %v4656_v23, 0.0  ;;  %v8811_v10 = vpop.permute.xlu1 %8810  ;;  %v4913_v3 = vsel %vm15700_vm2, %v15699_v5, %v8838_v2  ;;  %vm15702_vm10 = vmmov %vm15700_vm2  ;;  %v7554_v15 = vld [vmem:[#allocation2 + $0x34] sm:$0xf0]  ;;  %v13929_v11 = vld [vmem:[#allocation2 + $0x150] sm:$0xf] }
 0x600   :  { %v4668_v27 = vsel %vm15676_vm11, %v4662_v51, 0.0  ;;  %v8813_v14 = vunpack.i.h.bf16 %v8811_v10  ;;  %v8812_v25 = vunpack.i.l.bf16 %v8811_v10  ;;  %v15701_v33 = vmov %v15699_v5  ;;  %vm15703_vm0 = vmmov %vm15700_vm2  ;;  %v7570_v22 = vld [vmem:[#allocation2 + $0xb4] sm:$0xf0]  ;;  %5332 = vmatpush.bf16.msrb.mxu3 %v7018_v50  ;;  %v13951_v10 = vpop.permute.xlu2 %8850 }
 0x601   :  { %v4680_v32 = vpack.c.bf16 %v4669_v19, %v4668_v27  ;;  %4687 = vst [vmem:[#allocation2 + $0x98] sm:$0xff] %v4681_v7  ;;  %v4919_v1 = vsel %vm15702_vm10, %v8838_v2, %v15701_v33  ;;  %v4912_v53 = vsel %vm15703_vm0, %v8717_v8, %v8837_v17  ;;  %vm15704_vm12 = vmmov %vm15703_vm0  ;;  %v4930_v0 = vsel %vm15389_vm4, %v4913_v3, 0.0  ;;  %v7568_v27 = vld [vmem:[#allocation2 + $0xa4] sm:$0xf0]  ;;  %v6993_v33 = vld [vmem:[#allocation2 + $0x20] sm:$0xf] }
 0x602   :  { %v4918_v13 = vsel %vm15704_vm12, %v8837_v17, %v8717_v8  ;;  %v4931_v63 = vsel %vm15649_vm13, %v4919_v1, 0.0  ;;  %v4928_v12 = vsel %vm15389_vm4, %v4912_v53, 0.0  ;;  %v7065_v61 = vld [vmem:[#allocation2 + $0xb0] sm:$0xf]  ;;  %v13931_v8 = vld [vmem:[#allocation2 + $0x154] sm:$0xf0]  ;;  %v8827_v1 = vunpack.i.l.bf16 %v13876_v58 }
 0x603   :  { %4686 = vst [vmem:[#allocation2 + $0x90] sm:$0xff] %v4680_v32  ;;  %v4929_v62 = vsel %vm15649_vm13, %v4918_v13, 0.0  ;;  %v4937_v35 = vpack.c.bf16 %v4931_v63, %v4930_v0  ;;  %vm15705_vm2 = vcmp.lt.s32.totalorder %v9221_v28, 113  ;;  %v7594_v7 = vld [vmem:[#allocation2 + $0x174] sm:$0xf0]  ;;  %v7066_v3 = vor.u32 %v7570_v22, %v7065_v61 }
 0x604   :  { %v4936_v23 = vpack.c.bf16 %v4929_v62, %v4928_v12  ;;  %v4793_v51 = vsel %vm15705_vm2, %v8708_v52, %v8813_v14  ;;  %vm15706_vm10 = vmmov %vm15705_vm2  ;;  %v13937_v19 = vld [vmem:[#allocation2 + $0x24] sm:$0xf0]  ;;  %v7057_v17 = vld [vmem:[#allocation2 + $0xa0] sm:$0xf]  ;;  %5333 = vmatpush.bf16.msrb.mxu3 %v7010_v30  ;;  %v7146_v62 = vor.u32 %v13931_v8, %v13929_v11  ;;  %v8853_v22 = vunpack.i.h.bf16 %v13951_v10 }
 0x605   :  { %v4799_v41 = vsel %vm15706_vm10, %v8813_v14, %v8708_v52  ;;  %v4810_v56 = vsel %vm15502_vm15, %v4793_v51, 0.0  ;;  %vm15707_vm0 = vmmov %vm15705_vm2  ;;  %v7161_v2 = vld [vmem:[#allocation2 + $0x170] sm:$0xf]  ;;  %4943 = vst [vmem:[#allocation2 + $0x1a8] sm:$0xff] %v4937_v35  ;;  %5352 = vmatpush.bf16.msrb.mxu0 %v7066_v3  ;;  %v7058_v13 = vor.u32 %v7568_v27, %v7057_v17  ;;  %vm15709_vm2 = vcmp.lt.s32.totalorder %v9221_v28, 127 }
 0x606   :  { %v4811_v59 = vsel %vm15505_vm9, %v4799_v41, 0.0  ;;  %v4792_v32 = vsel %vm15707_vm0, %v8707_v57, %v8812_v25  ;;  %vm15708_vm12 = vmmov %vm15707_vm0  ;;  %4942 = vst [vmem:[#allocation2 + $0x1a0] sm:$0xff] %v4936_v23  ;;  %v7162_v53 = vor.u32 %v7594_v7, %v7161_v2  ;;  %v6994_v23 = vor.u32 %v13937_v19, %v6993_v33  ;;  %v13978_v51 = vld [vmem:[#allocation2 + $0x10] sm:$0xf]  ;;  %v7550_v41 = vld [vmem:[#allocation2 + $0x14] sm:$0xf0] }
 0x607   :  { %v4798_v52 = vsel %vm15708_vm12, %v8812_v25, %v8707_v57  ;;  %v4817_v14 = vpack.c.bf16 %v4811_v59, %v4810_v56  ;;  %v4808_v50 = vsel %vm15502_vm15, %v4792_v32, 0.0  ;;  %v8841_v57 = vpop.permute.xlu0 %8840  ;;  %v7002_v25 = vor.u32 %v7554_v15, %v7001_v46  ;;  %v8816_v12 = vpop.permute.xlu1 %8815  ;;  %vm15710_vm10 = vmmov %vm15709_vm2  ;;  %v13988_v56 = vld [vmem:[#allocation2] sm:$0xf]  ;;  %v7177_v17 = vld [vmem:[#allocation2 + $0x190] sm:$0xf] }
 0x608   :  { %v4809_v5 = vsel %vm15505_vm9, %v4798_v52, 0.0  ;;  %v8843_v0 = vunpack.i.h.bf16 %v8841_v57  ;;  %v8842_v63 = vunpack.i.l.bf16 %v8841_v57  ;;  %5366 = vmatpush.bf16.msrb.mxu1 %v7162_v53  ;;  %v8818_v61 = vunpack.i.h.bf16 %v8816_v12  ;;  %vm15711_vm0 = vmmov %vm15709_vm2  ;;  %v7566_v8 = vld [vmem:[#allocation2 + $0x94] sm:$0xf0] }
 0x609   :  { %v4816_v55 = vpack.c.bf16 %v4809_v5, %v4808_v50  ;;  %4823 = vst [vmem:[#allocation2 + $0x148] sm:$0xff] %v4817_v14  ;;  %v8817_v35 = vunpack.i.l.bf16 %v8816_v12  ;;  %vm15712_vm12 = vmmov %vm15711_vm0  ;;  %5334 = vmatpush.bf16.msrb.mxu3 %v7002_v25  ;;  %5353 = vmatpush.bf16.msrb.mxu0 %v7058_v13  ;;  %v7598_v14 = vld [vmem:[#allocation2 + $0x194] sm:$0xf0]  ;;  %v14000_v50 = vld [vmem:[#allocation2 + $0x74] sm:$0xf]  ;;  %v8852_v25 = vunpack.i.l.bf16 %v13951_v10 }
 0x60a   :  { %v4732_v30 = vsel %vm15709_vm2, %v8802_v48, %v8842_v63  ;;  %v4733_v46 = vsel %vm15710_vm10, %v8803_v42, %v8843_v0  ;;  %v4738_v15 = vsel %vm15711_vm0, %v8842_v63, %v8802_v48  ;;  %v4739_v11 = vsel %vm15712_vm12, %v8843_v0, %v8803_v42  ;;  %v7049_v37 = vld [vmem:[#allocation2 + $0x90] sm:$0xf]  ;;  %v13990_v42 = vld [vmem:[#allocation2 + $0x4] sm:$0xf0] }
 0x60b   :  { %4822 = vst [vmem:[#allocation2 + $0x140] sm:$0xff] %v4816_v55  ;;  %v4748_v7 = vsel %vm15358_vm14, %v4732_v30, 0.0  ;;  %v4749_v27 = vsel %vm15360_vm8, %v4738_v15, 0.0  ;;  %v4750_v19 = vsel %vm15358_vm14, %v4733_v46, 0.0  ;;  %v4751_v48 = vsel %vm15360_vm8, %v4739_v11, 0.0 }
 0x60c   :  { %v4756_v59 = vpack.c.bf16 %v4749_v27, %v4748_v7  ;;  %v4757_v32 = vpack.c.bf16 %v4751_v48, %v4750_v19  ;;  %vm15713_vm2 = vcmp.lt.s32.totalorder %v9221_v28, 111  ;;  %5367 = vmatpush.bf16.msrb.mxu1 %v7154_v29  ;;  %v7600_v33 = vld [vmem:[#allocation2 + $0x1a4] sm:$0xf0]  ;;  %v14013_v55 = vld [vmem:[#allocation2 + $0x78] sm:$0xf0]  ;;  %v7050_v29 = vor.u32 %v7566_v8, %v7049_v37 }
 0x60d   :  { %v4909_v52 = vsel %vm15713_vm2, %v8818_v61, %v8828_v18  ;;  %vm15714_vm10 = vmmov %vm15713_vm2  ;;  %v7185_v57 = vld [vmem:[#allocation2 + $0x1a0] sm:$0xf]  ;;  %5335 = vmatpush.bf16.msrb.mxu3 %v6994_v23  ;;  %v6978_v15 = vor.u32 %v13990_v42, %v13988_v56  ;;  %v7178_v11 = vor.u32 %v7598_v14, %v7177_v17  ;;  %v6961_v48 = vld [vmem:[%s14394_s9] sm:$0xf] }
 0x60e   :  { %v4915_v2 = vsel %vm15714_vm10, %v8828_v18, %v8818_v61  ;;  %v4922_v5 = vsel %vm15389_vm4, %v4909_v52, 0.0  ;;  %vm15715_vm0 = vmmov %vm15713_vm2  ;;  %4762 = vst [vmem:[#allocation2 + $0x110] sm:$0xff] %v4756_v59  ;;  %v7186_v12 = vor.u32 %v7600_v33, %v7185_v57  ;;  %5354 = vmatpush.bf16.msrb.mxu0 %v7050_v29  ;;  %vm15717_vm2 = vcmp.lt.s32.totalorder %v9221_v28, 127  ;;  %v7545_v10 = vld [vmem:[%s14394_s9 + $0xc] sm:$0xf0] }
 0x60f   :  { %v4923_v3 = vsel %vm15649_vm13, %v4915_v2, 0.0  ;;  %v4908_v58 = vsel %vm15715_vm0, %v8817_v35, %v8827_v1  ;;  %vm15716_vm12 = vmmov %vm15715_vm0  ;;  %4763 = vst [vmem:[#allocation2 + $0x118] sm:$0xff] %v4757_v32  ;;  %v8856_v0 = vpop.permute.xlu0 %8855  ;;  %v8846_v30 = vpop.permute.xlu1 %8845  ;;  %v7129_v17 = vld [vmem:[#allocation2 + $0x130] sm:$0xf]  ;;  %v7586_v14 = vld [vmem:[#allocation2 + $0x134] sm:$0xf0] }
 0x610   :  { %v4914_v18 = vsel %vm15716_vm12, %v8827_v1, %v8817_v35  ;;  %v4933_v53 = vpack.c.bf16 %v4923_v3, %v4922_v5  ;;  %v4920_v6 = vsel %vm15389_vm4, %v4908_v58, 0.0  ;;  %v6986_v1 = vor.u32 %v7550_v41, %v13978_v51  ;;  %v7588_v63 = vld [vmem:[#allocation2 + $0x144] sm:$0xf0]  ;;  %5368 = vmatpush.bf16.msrb.mxu1 %v7146_v62  ;;  %5389 = vmatpush.bf16.msrb.mxu2 %v7186_v12  ;;  %vm15718_vm10 = vmmov %vm15717_vm2  ;;  %v7544_v33 = vld [vmem:[%s14394_s9 + $0xc] sm:$0xf] }
 0x611   :  { %v4921_v16 = vsel %vm15649_vm13, %v4914_v18, 0.0  ;;  %v8858_v61 = vunpack.i.h.bf16 %v8856_v0  ;;  %v8857_v35 = vunpack.i.l.bf16 %v8856_v0  ;;  %v8848_v8 = vunpack.i.h.bf16 %v8846_v30  ;;  %vm15719_vm0 = vmmov %vm15717_vm2  ;;  %v7027_v18 = vld [vmem:[#allocation2 + $0x68] sm:$0xf0]  ;;  %v7599_v0 = vld [vmem:[#allocation2 + $0x1a4] sm:$0xf] }
 0x612   :  { %v4932_v13 = vpack.c.bf16 %v4921_v16, %v4920_v6  ;;  %4939 = vst [vmem:[#allocation2 + $0x188] sm:$0xff] %v4933_v53  ;;  %v7137_v46 = vld [vmem:[#allocation2 + $0x140] sm:$0xf]  ;;  %v8847_v7 = vunpack.i.l.bf16 %v8846_v30  ;;  %v7038_v51 = vor.u32 %v14000_v50, %v14013_v55  ;;  %vm15720_vm12 = vmmov %vm15719_vm0  ;;  %5336 = vmatpush.bf16.msrb.mxu3 %v6986_v1  ;;  %v6971_v55 = vld [vmem:[%s14394_s9 + $0x18] sm:$0xf0]  ;;  %v14081_v6 = vor.u32 %v7545_v10, %v6961_v48 }
 0x613   :  { %v7138_v23 = vor.u32 %v7588_v63, %v7137_v46  ;;  %v4730_v41 = vsel %vm15717_vm2, %v8852_v25, %v8857_v35  ;;  %v4731_v27 = vsel %vm15718_vm10, %v8853_v22, %v8858_v61  ;;  %v4736_v19 = vsel %vm15719_vm0, %v8857_v35, %v8852_v25  ;;  %v7121_v16 = vld [vmem:[#allocation2 + $0x120] sm:$0xf]  ;;  %v7187_v29 = vld [vmem:[#allocation2 + $0x1a8] sm:$0xf0]  ;;  %v7584_v1 = vld [vmem:[#allocation2 + $0x124] sm:$0xf0] }
 0x614   :  { %4938 = vst [vmem:[#allocation2 + $0x180] sm:$0xff] %v4932_v13  ;;  %v4737_v62 = vsel %vm15720_vm12, %v8858_v61, %v8853_v22  ;;  %v4744_v37 = vsel %vm15358_vm14, %v4730_v41, 0.0  ;;  %v4745_v56 = vsel %vm15360_vm8, %v4736_v19, 0.0  ;;  %v4746_v42 = vsel %vm15358_vm14, %v4731_v27, 0.0  ;;  %5390 = vmatpush.bf16.msrb.mxu2 %v7178_v11  ;;  %v7557_v30 = vld [vmem:[#allocation2 + $0x54] sm:$0xf] }
 0x615   :  { %v4747_v59 = vsel %vm15360_vm8, %v4737_v62, 0.0  ;;  %v4754_v22 = vpack.c.bf16 %v4745_v56, %v4744_v37  ;;  %vm15721_vm2 = vcmp.lt.s32.totalorder %v9221_v28, 15  ;;  %vm15723_vm0 = vnez %v15625_v39  ;;  %5369 = vmatpush.bf16.msrb.mxu1 %v7138_v23  ;;  %v7113_v23 = vld [vmem:[#allocation2 + $0x110] sm:$0xf]  ;;  %v7555_v41 = vld [vmem:[#allocation2 + $0x44] sm:$0xf] }
 0x616   :  { %v4755_v32 = vpack.c.bf16 %v4747_v59, %v4746_v42  ;;  %v4601_v52 = vsel %vm15721_vm2, %v8833_v31, %v8848_v8  ;;  %vm15722_vm10 = vmmov %vm15721_vm2  ;;  %vm15724_vm12 = vnez %v15626_v4  ;;  %v4606_v58 = vsel %vm15721_vm2, %v8847_v7, %v8832_v24  ;;  %5337 = vmatpush.bf16.msrb.mxu3 %v6978_v15  ;;  %v7019_v15 = vld [vmem:[#allocation2 + $0x58] sm:$0xf0]  ;;  %v7011_v27 = vld [vmem:[#allocation2 + $0x48] sm:$0xf0] }
 0x617   :  { %v4607_v2 = vsel %vm15722_vm10, %v8848_v8, %v8833_v31  ;;  %v4619_v5 = vsel %vm15724_vm12, %v4601_v52, 0.0  ;;  %vm15725_vm9 = vmmov %vm15721_vm2  ;;  %v7559_v31 = vld [vmem:[#allocation2 + $0x64] sm:$0xf]  ;;  %4760 = vst [vmem:[#allocation2 + $0x100] sm:$0xff] %v4754_v22  ;;  %v4616_v43 = vsel %vm15723_vm0, %v4606_v58, 0.0  ;;  %v7130_v25 = vor.u32 %v7586_v14, %v7129_v17 }
 0x618   :  { %v4618_v50 = vsel %vm15723_vm0, %v4607_v2, 0.0  ;;  %v4600_v3 = vsel %vm15725_vm9, %v8832_v24, %v8847_v7  ;;  %4761 = vst [vmem:[#allocation2 + $0x108] sm:$0xff] %v4755_v32  ;;  %v7030_v61 = vor.u32 %v7559_v31, %v7027_v18  ;;  %v7190_v35 = vor.u32 %v7599_v0, %v7187_v29  ;;  %v7597_v8 = vld [vmem:[#allocation2 + $0x194] sm:$0xf]  ;;  %v7179_v7 = vld [vmem:[#allocation2 + $0x198] sm:$0xf0] }
 0x619   :  { %v4625_v53 = vpack.c.bf16 %v4619_v5, %v4618_v50  ;;  %v4617_v24 = vsel %vm15724_vm12, %v4600_v3, 0.0  ;;  %v7596_v13 = vld [vmem:[#allocation2 + $0x184] sm:$0xf0]  ;;  %5370 = vmatpush.bf16.msrb.mxu1 %v7130_v25  ;;  %5338 = vmatmul.bf16.vlgmr.msrb.gmra.mxu3 %v14081_v6  ;;  %v14084_v46 = vor.u32 %v7544_v33, %v6971_v55  ;;  %v7122_v11 = vor.u32 %v7584_v1, %v7121_v16  ;;  %v7577_v19 = vld [vmem:[#allocation2 + $0xf4] sm:$0xf]  ;;  %v14097_v2 = vld [vmem:[%s14394_s9 + $0x20] sm:$0xff] }
 0x61a   :  { %v4624_v57 = vpack.c.bf16 %v4617_v24, %v4616_v43  ;;  %5402 = vmatpush.bf16.msra.mxu3 %v7038_v51  ;;  %v7582_v51 = vld [vmem:[#allocation2 + $0x114] sm:$0xf0]  ;;  %v7099_v62 = vld [vmem:[#allocation2 + $0xf8] sm:$0xf0]  ;;  %v7022_v48 = vor.u32 %v7557_v30, %v7019_v15  ;;  %v7182_v37 = vor.u32 %v7597_v8, %v7179_v7  ;;  %vm15726_vm9 = vcmask 392192  }
 0x61b   :  { %4631 = vst [vmem:[#allocation2 + $0x88] sm:$0xff] %v4625_v53  ;;  %v7169_v63 = vld [vmem:[#allocation2 + $0x180] sm:$0xf]  ;;  %v7543_v59 = vld [vmem:[%s14394_s9 + $0x4] sm:$0xf]  ;;  %v7114_v10 = vor.u32 %v7582_v51, %v7113_v23  ;;  %v7014_v33 = vor.u32 %v7555_v41, %v7011_v27  ;;  %v7102_v55 = vor.u32 %v7577_v19, %v7099_v62  ;;  %v5036_v43 = vunpack.c.l.b16 %v14097_v2  ;;  %vm15727_vm10 = vmmov %vm15726_vm9 }
 0x61c   :  { %4630 = vst [vmem:[#allocation2 + $0x80] sm:$0xff] %v4624_v57  ;;  %v7170_v12 = vor.u32 %v7596_v13, %v7169_v63  ;;  %v7593_v32 = vld [vmem:[#allocation2 + $0x174] sm:$0xf]  ;;  %v6963_v52 = vld [vmem:[%s14394_s9 + $0x10] sm:$0xf0]  ;;  %v14111_v57 = vld [vmem:[%s14394_s9 + $0x28] sm:$0xff]  ;;  %vm15736_vm13 = vnez %v15619_v34 }
 0x61d   :  { %5371 = vmatpush.bf16.msrb.mxu1 %v7122_v11  ;;  %v7595_v14 = vld [vmem:[#allocation2 + $0x184] sm:$0xf]  ;;  %v7171_v50 = vld [vmem:[#allocation2 + $0x188] sm:$0xf0]  ;;  %v7163_v58 = vld [vmem:[#allocation2 + $0x178] sm:$0xf0]  ;;  %v14105_v53 = vor.u32 %v7543_v59, %v6963_v52  ;;  %v5039_v30 = vunpack.c.h.b16 %v14111_v57 }
 0x61e   :  { %5391 = vmatpush.bf16.msrb.mxu2 %v7170_v12  ;;  %5403 = vmatpush.bf16.msra.mxu3 %v7030_v61  ;;  %v7105_v56 = vld [vmem:[#allocation2 + $0x100] sm:$0xf]  ;;  %v7546_v18 = vld [vmem:[%s14394_s9 + $0x14] sm:$0xf0]  ;;  %v7174_v24 = vor.u32 %v7595_v14, %v7171_v50  ;;  %v7553_v16 = vld [vmem:[#allocation2 + $0x34] sm:$0xf]  ;;  %v7166_v25 = vor.u32 %v7593_v32, %v7163_v58 }
 0x61f   :  { %v7580_v42 = vld [vmem:[#allocation2 + $0x104] sm:$0xf0]  ;;  %v6969_v31 = vld [vmem:[%s14394_s9 + $0x8] sm:$0xf]  ;;  %v7003_v29 = vld [vmem:[#allocation2 + $0x38] sm:$0xf0]  ;;  %v14121_v62 = vpack.c.b16 %v5039_v30, %v5039_v30 }
 0x620   :  { %v7106_v3 = vor.u32 %v7580_v42, %v7105_v56  ;;  %v14113_v13 = vor.u32 %v7546_v18, %v6969_v31  ;;  %v7091_v0 = vld [vmem:[#allocation2 + $0xe8] sm:$0xf0]  ;;  %v7591_v1 = vld [vmem:[#allocation2 + $0x164] sm:$0xf]  ;;  %v7006_v12 = vor.u32 %v7553_v16, %v7003_v29  ;;  %v7083_v23 = vld [vmem:[#allocation2 + $0xd8] sm:$0xf0]  ;;  %v5038_v18 = vunpack.c.l.b16 %v14111_v57 }
 0x621   :  { %7191 = vmatmul.msk.bf16.vlgmr.msrb.gmra.mxu2 %vm15726_vm9, %v14084_v46  ;;  %5372 = vmatpush.bf16.msrb.mxu1 %v7114_v10  ;;  %v7155_v63 = vld [vmem:[#allocation2 + $0x168] sm:$0xf0]  ;;  %v7575_v61 = vld [vmem:[#allocation2 + $0xe4] sm:$0xf]  ;;  %v7589_v51 = vld [vmem:[#allocation2 + $0x154] sm:$0xf] }
 0x622   :  { %5461 = vmatpush.bf16.msra.mxu2 %v7190_v35  ;;  %v7564_v22 = vld [vmem:[#allocation2 + $0x84] sm:$0xf0]  ;;  %5404 = vmatpush.bf16.msra.mxu3 %v7022_v48  ;;  %v14116_v35 = vpack.c.b16 %v5036_v43, %v5036_v43  ;;  %v7094_v11 = vor.u32 %v7575_v61, %v7091_v0  ;;  %v7551_v15 = vld [vmem:[#allocation2 + $0x24] sm:$0xf]  ;;  %v6995_v8 = vld [vmem:[#allocation2 + $0x28] sm:$0xf0]  ;;  %v7158_v7 = vor.u32 %v7591_v1, %v7155_v63 }
 0x623   :  { %v7041_v17 = vld [vmem:[#allocation2 + $0x80] sm:$0xf]  ;;  %v7147_v41 = vld [vmem:[#allocation2 + $0x158] sm:$0xf0]  ;;  %v6998_v27 = vor.u32 %v7551_v15, %v6995_v8  ;;  %v7573_v19 = vld [vmem:[#allocation2 + $0xd4] sm:$0xf] }
 0x624   :  { %v7042_v5 = vor.u32 %v7564_v22, %v7041_v17  ;;  %v7086_v48 = vor.u32 %v7573_v19, %v7083_v23  ;;  %v6987_v56 = vld [vmem:[#allocation2 + $0x18] sm:$0xf0]  ;;  %v7150_v42 = vor.u32 %v7589_v51, %v7147_v41  ;;  %v7075_v59 = vld [vmem:[#allocation2 + $0xc8] sm:$0xf0]  ;;  %v7587_v10 = vld [vmem:[#allocation2 + $0x144] sm:$0xf]  ;;  %v5037_v17 = vunpack.c.h.b16 %v14097_v2 }
 0x625   :  { %5373 = vmatpush.bf16.msrb.mxu1 %v7106_v3  ;;  %v7139_v22 = vld [vmem:[#allocation2 + $0x148] sm:$0xf0]  ;;  %v7571_v52 = vld [vmem:[#allocation2 + $0xc4] sm:$0xf]  ;;  %v7569_v58 = vld [vmem:[#allocation2 + $0xb4] sm:$0xf] }
 0x626   :  { %5462 = vmatpush.bf16.msra.mxu2 %v7182_v37  ;;  %5355 = vmatpush.bf16.msrb.mxu0 %v7042_v5  ;;  %v7549_v37 = vld [vmem:[#allocation2 + $0x14] sm:$0xf]  ;;  %v7078_v14 = vor.u32 %v7571_v52, %v7075_v59  ;;  %v7547_v50 = vld [vmem:[#allocation2 + $0x4] sm:$0xf]  ;;  %v6979_v5 = vld [vmem:[#allocation2 + $0x8] sm:$0xf0]  ;;  %v7142_v3 = vor.u32 %v7587_v10, %v7139_v22 }
 0x627   :  { %5405 = vmatpush.bf16.msra.mxu3 %v7014_v33  ;;  %v6990_v32 = vor.u32 %v7549_v37, %v6987_v56  ;;  %v7067_v31 = vld [vmem:[#allocation2 + $0xb8] sm:$0xf0]  ;;  %v7585_v33 = vld [vmem:[#allocation2 + $0x134] sm:$0xf]  ;;  %v6982_v43 = vor.u32 %v7547_v50, %v6979_v5  ;;  %v7567_v2 = vld [vmem:[#allocation2 + $0xa4] sm:$0xf]  ;;  %v5010_v56 = vpop.permute.xlu1 %5009 }
 0x628   :  { %5374 = vmatmul.bf16.vlgmr.msrb.gmra.mxu1 %v14113_v13  ;;  %v7070_v16 = vor.u32 %v7569_v58, %v7067_v31  ;;  %v7059_v0 = vld [vmem:[#allocation2 + $0xa8] sm:$0xf0]  ;;  %v7583_v1 = vld [vmem:[#allocation2 + $0x124] sm:$0xf]  ;;  %v7565_v61 = vld [vmem:[#allocation2 + $0x94] sm:$0xf]  ;;  %v5020_v58 = vpop.permute.xlu0 %5019 }
 0x629   :  { %5438 = vmatpush.bf16.msra.mxu1 %v7166_v25  ;;  %5356 = vmatmul.bf16.vlgmr.msrb.gmra.mxu0 %v14105_v53  ;;  %v5046_v25 = vpack.c.b16 %v5038_v18, %v5038_v18  ;;  %v7123_v63 = vld [vmem:[#allocation2 + $0x128] sm:$0xf0]  ;;  %v7051_v30 = vld [vmem:[#allocation2 + $0x98] sm:$0xf0]  ;;  %v7563_v23 = vld [vmem:[#allocation2 + $0x84] sm:$0xf] }
 0x62a   :  { %5420 = vmatpush.bf16.msra.mxu0 %v7102_v55  ;;  %5463 = vmatpush.bf16.msra.mxu2 %v7174_v24  ;;  %v7131_v55 = vld [vmem:[#allocation2 + $0x138] sm:$0xf0]  ;;  %v5045_v24 = vpack.c.b16 %v5037_v17, %v5037_v17  ;;  %v7126_v57 = vor.u32 %v7583_v1, %v7123_v63  ;;  %v7054_v8 = vor.u32 %v7565_v61, %v7051_v30  ;;  %v7043_v51 = vld [vmem:[#allocation2 + $0x88] sm:$0xf0]  ;;  %v7579_v41 = vld [vmem:[#allocation2 + $0x104] sm:$0xf] }
 0x62b   :  { %5406 = vmatpush.bf16.msra.mxu3 %v7006_v12  ;;  %v7134_v29 = vor.u32 %v7585_v33, %v7131_v55  ;;  %v7062_v12 = vor.u32 %v7567_v2, %v7059_v0  ;;  %v7115_v15 = vld [vmem:[#allocation2 + $0x118] sm:$0xf0]  ;;  %vm15728_vm2 = vmmov %vm15726_vm9  ;;  %v7046_v19 = vor.u32 %v7563_v23, %v7043_v51 }
 0x62c   :  { %5343 = vmatmul.bf16.gmra.mxu3 %v14116_v35  ;;  %vm15729_vm9 = vmmov %vm15728_vm2 }
 0x62d   :  { %5439 = vmatpush.bf16.msra.mxu1 %v7158_v7 }
 0x62e   :  { %5421 = vmatpush.bf16.msra.mxu0 %v7094_v11  ;;  %v7581_v11 = vld [vmem:[#allocation2 + $0x114] sm:$0xf] }
 0x62f   :  { %5407 = vmatpush.bf16.msra.mxu3 %v6998_v27  ;;  %v7118_v7 = vor.u32 %v7581_v11, %v7115_v15  ;;  %v7107_v27 = vld [vmem:[#allocation2 + $0x108] sm:$0xf0] }
 0x631   :  { %5440 = vmatpush.bf16.msra.mxu1 %v7150_v42  ;;  %7192 = vmatmul.msk.bf16.gmra.mxu2 %vm15727_vm10, %v14121_v62  ;;  %vm15730_vm10 = vcmp.lt.s32.totalorder %v9221_v28, 1 }
 0x632   :  { %5422 = vmatpush.bf16.msra.mxu0 %v7086_v48  ;;  %v7110_v48 = vor.u32 %v7579_v41, %v7107_v27 }
 0x633   :  { %5408 = vmatpush.bf16.msra.mxu3 %v6990_v32  ;;  %v5015_v32 = vpop.permute.xlu2 %5014 }
 0x635   :  { %5441 = vmatpush.bf16.msra.mxu1 %v7142_v3 }
 0x636   :  { %5423 = vmatpush.bf16.msra.mxu0 %v7078_v14 }
 0x637   :  { %5409 = vmatpush.bf16.msra.mxu3 %v6982_v43 }
 0x638   :  { %5379 = vmatmul.bf16.gmra.mxu1 %v5046_v25 }
 0x639   :  { %5442 = vmatpush.bf16.msra.mxu1 %v7134_v29  ;;  %5361 = vmatmul.bf16.gmra.mxu0 %v5045_v24 }
 0x63a   :  { %5424 = vmatpush.bf16.msra.mxu0 %v7070_v16 }
 0x63c   :  { %5410 = vmatmul.bf16.vlgmr.msra.gmra.mxu3 %v14081_v6 }
 0x63d   :  { %5443 = vmatpush.bf16.msra.mxu1 %v7126_v57 }
 0x63e   :  { %5425 = vmatpush.bf16.msra.mxu0 %v7062_v12 }
 0x641   :  { %5444 = vmatpush.bf16.msra.mxu1 %v7118_v7  ;;  %7193 = vmatmul.msk.bf16.vlgmr.msra.gmra.mxu2 %vm15728_vm2, %v14084_v46  ;;  %vm15731_vm2 = vmmov %vm15730_vm10 }
 0x642   :  { %5426 = vmatpush.bf16.msra.mxu0 %v7054_v8 }
 0x645   :  { %5445 = vmatpush.bf16.msra.mxu1 %v7110_v48 }
 0x646   :  { %5427 = vmatpush.bf16.msra.mxu0 %v7046_v19 }
 0x648   :  { %5446 = vmatmul.bf16.vlgmr.msra.gmra.mxu1 %v14113_v13 }
 0x649   :  { %5428 = vmatmul.bf16.vlgmr.msra.gmra.mxu0 %v14105_v53 }
 0x64c   :  { %5415 = vmatmul.bf16.gmra.mxu3 %v14116_v35 }
 0x651   :  { %7194 = vmatmul.msk.bf16.gmra.mxu2 %vm15729_vm9, %v14121_v62  ;;  %vm15732_vm9 = vcmp.lt.s32.totalorder %v9221_v28, 17 }
 0x658   :  { %5451 = vmatmul.bf16.gmra.mxu1 %v5046_v25 }
 0x659   :  { %5433 = vmatmul.bf16.gmra.mxu0 %v5045_v24 }
 0x69c   :  { %v5339_v6 = vpop.f32.mrf.mxu3 }
 0x69d   :  { %v5340_v46 = vadd.f32 %v5339_v6, %v5010_v56 }
 0x6a4   :  { %v5393_v37 = vpop.f32.mrf.mxu2  ;;  %v5341_v59 = vpop.f32.mrf.mxu3 }
 0x6a5   :  { %v5375_v10 = vpop.f32.mrf.mxu1  ;;  %v5342_v53 = vadd.f32 %v5341_v59, %v5015_v32 }
 0x6a6   :  { %v5357_v42 = vpop.f32.mrf.mxu0 }
 0x6a7   :  { %v5358_v22 = vadd.f32 %v5357_v42, %v5340_v46 }
 0x6a9   :  { %v5376_v17 = vadd.f32 %v5375_v10, %v5358_v22 }
 0x6ab   :  { %v5394_v5 = vadd.f32 %v5393_v37, %v5376_v17 }
 0x6ac   :  { %v5395_v52 = vpop.f32.mrf.mxu2 }
 0x6ad   :  { %v5377_v50 = vpop.f32.mrf.mxu1  ;;  %v5474_v18 = vmax.f32 %v5394_v5, 0.0 }
 0x6ae   :  { %v5359_v13 = vpop.f32.mrf.mxu0 }
 0x6af   :  { %v5360_v14 = vadd.f32 %v5359_v13, %v5342_v53  ;;  %v5344_v35 = vpop.f32.mrf.mxu3 }
 0x6b0   :  { %v5345_v33 = vadd.f32 %v5344_v35, %v5020_v58 }
 0x6b1   :  { %v5378_v62 = vadd.f32 %v5377_v50, %v5360_v14 }
 0x6b3   :  { %v5396_v3 = vadd.f32 %v5395_v52, %v5378_v62 }
 0x6b4   :  { %v5398_v31 = vpop.f32.mrf.mxu2 }
 0x6b5   :  { %v5476_v55 = vmax.f32 %v5396_v3, 0.0  ;;  %v5380_v25 = vpop.f32.mrf.mxu1 }
 0x6b6   :  { %v5362_v43 = vpop.f32.mrf.mxu0 }
 0x6b7   :  { %v5363_v24 = vadd.f32 %v5362_v43, %v5345_v33  ;;  %v14135_v16 = vpack.i.bf16 %v5476_v55, %v5474_v18  ;;  %v5346_v29 = vpop.f32.mrf.mxu3 }
 0x6b9   :  { %v5381_v2 = vadd.f32 %v5380_v25, %v5363_v24  ;;  %8865 = vrot.lane.b32.xlu1 %v14135_v16, %s9015_s24  ;;  %8860 = vrot.lane.b32.xlu0 %v14135_v16, %s9017_s26 }
 0x6bb   :  { %v5399_v0 = vadd.f32 %v5398_v31, %v5381_v2 }
 0x6bc   :  { %v5400_v1 = vpop.f32.mrf.mxu2 }
 0x6bd   :  { %v5478_v63 = vmax.f32 %v5399_v0, 0.0  ;;  %v5382_v61 = vpop.f32.mrf.mxu1 }
 0x6be   :  { %v5364_v12 = vpop.f32.mrf.mxu0 }
 0x6bf   :  { %v8869_v57 = vpack.i.bf16 %v5478_v63, %v5476_v55  ;;  %v5411_v30 = vpop.f32.mrf.mxu3 }
 0x6c0   :  { %v5412_v15 = vadd.f32 %v5411_v30, %v5010_v56 }
 0x6c1   :  { %8870 = vrot.lane.b32.xlu2 %v8869_v57, %s14939_s5 }
 0x6c4   :  { %v5465_v11 = vpop.f32.mrf.mxu2 }
 0x6c5   :  { %v5447_v51 = vpop.f32.mrf.mxu1 }
 0x6c6   :  { %v5429_v8 = vpop.f32.mrf.mxu0 }
 0x6c7   :  { %v5430_v7 = vadd.f32 %v5429_v8, %v5412_v15  ;;  %v5413_v23 = vpop.f32.mrf.mxu3 }
 0x6c8   :  { %v5414_v48 = vadd.f32 %v5413_v23, %v5015_v32 }
 0x6c9   :  { %v5448_v41 = vadd.f32 %v5447_v51, %v5430_v7  ;;  %8875 = vrot.lane.b32.xlu2 %v8869_v57, %s9016_s25 }
 0x6cb   :  { %v5466_v27 = vadd.f32 %v5465_v11, %v5448_v41 }
 0x6cc   :  { %v5467_v19 = vpop.f32.mrf.mxu2 }
 0x6cd   :  { %v5475_v6 = vmax.f32 %v5466_v27, 0.0  ;;  %v5449_v22 = vpop.f32.mrf.mxu1 }
 0x6ce   :  { %v5431_v37 = vpop.f32.mrf.mxu0 }
 0x6cf   :  { %v5600_v42 = vpack.c.bf16 %v5475_v6, %v5474_v18  ;;  %v5432_v46 = vadd.f32 %v5431_v37, %v5414_v48  ;;  %v8889_v59 = vpack.i.bf16 %v5475_v6, %v5474_v18  ;;  %v5416_v10 = vpop.f32.mrf.mxu3 }
 0x6d0   :  { %v5417_v17 = vadd.f32 %v5416_v10, %v5020_v58 }
 0x6d1   :  { %5603 = vst [vmem:[#allocation2 + $0x60] sm:$0xff] %v5600_v42  ;;  %v5450_v52 = vadd.f32 %v5449_v22, %v5432_v46  ;;  %8890 = vrot.lane.b32.xlu0 %v8889_v59, %s9016_s25  ;;  %8885 = vrot.lane.b32.xlu2 %v8889_v59, %s14939_s5 }
 0x6d2   :  { %8880 = vrot.lane.b32.xlu1 %v8889_v59, %s14941_s6 }
 0x6d3   :  { %v5468_v56 = vadd.f32 %v5467_v19, %v5450_v52 }
 0x6d4   :  { %v5470_v53 = vpop.f32.mrf.mxu2 }
 0x6d5   :  { %v5477_v13 = vmax.f32 %v5468_v56, 0.0  ;;  %v5452_v5 = vpop.f32.mrf.mxu1 }
 0x6d6   :  { %v5434_v32 = vpop.f32.mrf.mxu0 }
 0x6d7   :  { %v5601_v14 = vpack.c.bf16 %v5477_v13, %v5476_v55  ;;  %v5435_v35 = vadd.f32 %v5434_v32, %v5417_v17  ;;  %v8899_v50 = vpack.i.bf16 %v5477_v13, %v5475_v6  ;;  %v5418_v62 = vpop.f32.mrf.mxu3  ;;  %v5754_v55 = vld [vmem:[%s14397_s12] sm:$0x3] }
 0x6d9   :  { %5604 = vst [vmem:[#allocation2 + $0x68] sm:$0xff] %v5601_v14  ;;  %v5453_v3 = vadd.f32 %v5452_v5, %v5435_v35  ;;  %8900 = vrot.lane.b32.xlu2 %v8899_v50, %s9015_s24 }
 0x6da   :  { %8895 = vrot.lane.b32.xlu1 %v8899_v50, %s9017_s26 }
 0x6db   :  { %v5471_v31 = vadd.f32 %v5470_v53, %v5453_v3 }
 0x6dc   :  { %v5472_v18 = vpop.f32.mrf.mxu2 }
 0x6dd   :  { %v5479_v33 = vmax.f32 %v5471_v31, 0.0  ;;  %v5454_v25 = vpop.f32.mrf.mxu1 }
 0x6de   :  { %v5436_v43 = vpop.f32.mrf.mxu0 }
 0x6df   :  { %v5602_v24 = vpack.c.bf16 %v5479_v33, %v5478_v63  ;;  %v8904_v29 = vpack.i.bf16 %v5479_v33, %v5477_v13  ;;  %v8934_v58 = vpack.i.bf16 %v5479_v33, %v5478_v63 }
 0x6e1   :  { %5605 = vst [vmem:[#allocation2 + $0x70] sm:$0xff] %v5602_v24  ;;  %8905 = vrot.lane.b32.xlu0 %v8904_v29, %s14939_s5  ;;  %8935 = vrot.lane.b32.xlu2 %v8934_v58, %s9015_s24 }
 0x6e2   :  { %8915 = vrot.lane.b32.xlu1 %v8934_v58, %s9017_s26 }
 0x6e9   :  { %8910 = vrot.lane.b32.xlu0 %v14135_v16, %s9026_s19  ;;  %8940 = vrot.lane.b32.xlu2 %v8869_v57, %s9025_s7 }
 0x6ea   :  { %8925 = vrot.lane.b32.xlu1 %v8934_v58, %s9026_s19 }
 0x6f1   :  { %8920 = vrot.lane.b32.xlu0 %v8904_v29, %s9016_s25  ;;  %8945 = vrot.lane.b32.xlu2 %v8889_v59, %s9025_s7 }
 0x6f2   :  { %8930 = vrot.lane.b32.xlu1 %v8899_v50, %s9026_s19 }
 0x6f9   :  { %8950 = vrot.lane.b32.xlu0 %v8904_v29, %s9025_s7  ;;  %8970 = vrot.lane.b32.xlu2 %v8869_v57, %s14941_s6 }
 0x6fa   :  { %8960 = vrot.lane.b32.xlu1 %v8934_v58, %s15102_s0 }
 0x701   :  { %8955 = vrot.lane.b32.xlu0 %v14135_v16, %s15102_s0 }
 0x702   :  { %8965 = vrot.lane.b32.xlu1 %v8899_v50, %s15102_s0 }
 0x709   :  { %8975 = vrot.lane.b32.xlu0 %v8904_v29, %s14941_s6 }
 0x70a   :  { %5757 = vperm.xlu1 %7897, %v5754_v55  }
 0x71b   :  { %v14168_v2 = vpop.permute.xlu2 %8870 }
 0x723   :  { %v14170_v0 = vpop.permute.xlu2 %8875 }
 0x72b   :  { %v8886_v1 = vpop.permute.xlu2 %8885  ;;  %v8866_v15 = vpop.permute.xlu1 %8865 }
 0x72c   :  { %v8888_v63 = vunpack.i.h.bf16 %v8886_v1  ;;  %v8887_v12 = vunpack.i.l.bf16 %v8886_v1  ;;  %v8868_v7 = vunpack.i.h.bf16 %v8866_v15  ;;  %v8867_v23 = vunpack.i.l.bf16 %v8866_v15  ;;  %v8861_v52 = vpop.permute.xlu0 %8860 }
 0x72e   :  { %v5582_v57 = vsel %vm15730_vm10, %v8887_v12, %v8888_v63  ;;  %v5585_v16 = vsel %vm15731_vm2, %v8888_v63, %v8887_v12  ;;  %vm15733_vm10 = vmmov %vm15732_vm9 }
 0x72f   :  { %v5588_v61 = vsel %vm15676_vm11, %v5585_v16, 0.0  ;;  %v5589_v30 = vsel %vm15674_vm1, %v5582_v57, 0.0  ;;  %vm15734_vm2 = vmmov %vm15732_vm9  ;;  %v8863_v57 = vunpack.i.h.bf16 %v8861_v52 }
 0x730   :  { %v5594_v11 = vpack.c.bf16 %v5589_v30, %v5588_v61  ;;  %vm15735_vm15 = vmmov %vm15734_vm2 }
 0x732   :  { %5597 = vst [vmem:[#allocation2 + $0x48] sm:$0xff] %v5594_v11 }
 0x733   :  { %v8901_v8 = vpop.permute.xlu2 %8900 }
 0x734   :  { %v8903_v51 = vunpack.i.h.bf16 %v8901_v8  ;;  %v8902_v41 = vunpack.i.l.bf16 %v8901_v8 }
 0x736   :  { %v5493_v27 = vsel %vm15732_vm9, %v8868_v7, %v8903_v51  ;;  %v5496_v19 = vsel %vm15733_vm10, %v8903_v51, %v8868_v7  ;;  %v5492_v48 = vsel %vm15734_vm2, %v8867_v23, %v8902_v41  ;;  %v5495_v6 = vsel %vm15735_vm15, %v8902_v41, %v8867_v23  ;;  %vm15737_vm15 = vmmov %vm15734_vm2 }
 0x737   :  { %v5500_v37 = vsel %vm15126_vm3, %v5496_v19, 0.0  ;;  %v5501_v42 = vsel %vm15736_vm13, %v5493_v27, 0.0  ;;  %v5498_v46 = vsel %vm15126_vm3, %v5495_v6, 0.0  ;;  %v5499_v59 = vsel %vm15736_vm13, %v5492_v48, 0.0  ;;  %vm15738_vm9 = vmmov %vm15734_vm2 }
 0x738   :  { %v5505_v10 = vpack.c.bf16 %v5501_v42, %v5500_v37  ;;  %v5504_v22 = vpack.c.bf16 %v5499_v59, %v5498_v46  ;;  %vm15739_vm10 = vcmp.lt.s32.totalorder %v9221_v28, 16  ;;  %v8862_v7 = vunpack.i.l.bf16 %v8861_v52  ;;  %v7253_v42 = vld [vmem:[#allocation2 + $0x70] sm:$0xf]  ;;  %v7615_v52 = vld [vmem:[#allocation2 + $0x74] sm:$0xf] }
 0x739   :  { %vm15740_vm2 = vmmov %vm15739_vm10 }
 0x73a   :  { %5508 = vst [vmem:[#allocation2 + $0x8] sm:$0xff] %v5505_v10 }
 0x73b   :  { %5507 = vst [vmem:[#allocation2] sm:$0xff] %v5504_v22  ;;  %v8936_v56 = vpop.permute.xlu2 %8935 }
 0x73c   :  { %v8938_v53 = vunpack.i.h.bf16 %v8936_v56  ;;  %v8937_v17 = vunpack.i.l.bf16 %v8936_v56  ;;  %v7614_v56 = vld [vmem:[#allocation2 + $0x64] sm:$0xf0] }
 0x73e   :  { %v5494_v13 = vsel %vm15737_vm15, %v8937_v17, %v8938_v53  ;;  %v5497_v32 = vsel %vm15738_vm9, %v8938_v53, %v8937_v17  ;;  %vm15744_vm9 = vcmp.lt.s32.totalorder %v9221_v28, 112  ;;  %v7247_v53 = vld [vmem:[#allocation2 + $0x68] sm:$0xf0] }
 0x73f   :  { %v5502_v14 = vsel %vm15126_vm3, %v5497_v32, 0.0  ;;  %v5503_v35 = vsel %vm15736_vm13, %v5494_v13, 0.0  ;;  %vm15741_vm3 = vnez %v15654_v26  ;;  %vm15742_vm13 = vcmp.lt.s32.totalorder %v9221_v28, 127 }
 0x740   :  { %v5506_v50 = vpack.c.bf16 %v5503_v35, %v5502_v14  ;;  %vm15743_vm15 = vmmov %vm15742_vm13 }
 0x742   :  { %5509 = vst [vmem:[#allocation2 + $0x10] sm:$0xff] %v5506_v50 }
 0x743   :  { %v8891_v5 = vpop.permute.xlu0 %8890  ;;  %v14204_v31 = vpop.permute.xlu2 %8940 }
 0x744   :  { %v8893_v62 = vunpack.i.h.bf16 %v8891_v5  ;;  %v8892_v3 = vunpack.i.l.bf16 %v8891_v5  ;;  %v8881_v18 = vpop.permute.xlu1 %8880 }
 0x745   :  { %v8883_v33 = vunpack.i.h.bf16 %v8881_v18  ;;  %v8882_v43 = vunpack.i.l.bf16 %v8881_v18  ;;  %v8872_v18 = vunpack.i.l.bf16 %v14168_v2 }
 0x746   :  { %v5522_v24 = vsel %vm15739_vm10, %v8892_v3, %v8893_v62  ;;  %v5525_v49 = vsel %vm15740_vm2, %v8893_v62, %v8892_v3  ;;  %vm15745_vm10 = vmmov %vm15744_vm9  ;;  %vm15746_vm2 = vcmp.lt.s32.totalorder %v9221_v28, 15  ;;  %v8873_v3 = vunpack.i.h.bf16 %v14168_v2 }
 0x747   :  { %v5528_v34 = vsel %vm15653_vm5, %v5525_v49, 0.0  ;;  %v5529_v29 = vsel %vm15741_vm3, %v5522_v24, 0.0  ;;  %v5618_v58 = vsel %vm15742_vm13, %v8882_v43, %v8883_v33  ;;  %v5621_v25 = vsel %vm15743_vm15, %v8883_v33, %v8882_v43  ;;  %vm15747_vm13 = vmmov %vm15746_vm2  ;;  %v7245_v49 = vld [vmem:[#allocation2 + $0x60] sm:$0xf] }
 0x748   :  { %v5534_v55 = vpack.c.bf16 %v5529_v29, %v5528_v34  ;;  %v5624_v1 = vsel %vm15358_vm14, %v5618_v58, 0.0  ;;  %v5625_v63 = vsel %vm15360_vm8, %v5621_v25, 0.0  ;;  %vm15748_vm15 = vmmov %vm15746_vm2  ;;  %v7613_v34 = vld [vmem:[#allocation2 + $0x64] sm:$0xf]  ;;  %v7246_v25 = vor.u32 %v7614_v56, %v7245_v49 }
 0x749   :  { %v5630_v12 = vpack.c.bf16 %v5625_v63, %v5624_v1 }
 0x74a   :  { %5537 = vst [vmem:[#allocation2 + $0x18] sm:$0xff] %v5534_v55  ;;  %v7250_v55 = vor.u32 %v7613_v34, %v7247_v53 }
 0x74b   :  { %5633 = vst [vmem:[#allocation2 + $0x78] sm:$0xff] %v5630_v12  ;;  %v8946_v16 = vpop.permute.xlu2 %8945 }
 0x74c   :  { %v8896_v61 = vpop.permute.xlu1 %8895  ;;  %v8948_v30 = vunpack.i.h.bf16 %v8946_v16  ;;  %v8947_v11 = vunpack.i.l.bf16 %v8946_v16 }
 0x74d   :  { %v8898_v15 = vunpack.i.h.bf16 %v8896_v61  ;;  %v8897_v8 = vunpack.i.l.bf16 %v8896_v61 }
 0x74e   :  { %v5678_v23 = vsel %vm15744_vm9, %v8947_v11, %v8948_v30  ;;  %v5681_v51 = vsel %vm15745_vm10, %v8948_v30, %v8947_v11  ;;  %vm15749_vm9 = vmmov %vm15746_vm2  ;;  %vm15750_vm10 = vcmp.lt.s32.totalorder %v9221_v28, 1 }
 0x74f   :  { %v5553_v41 = vsel %vm15746_vm2, %v8863_v57, %v8898_v15  ;;  %v5556_v27 = vsel %vm15747_vm13, %v8898_v15, %v8863_v57  ;;  %v5684_v19 = vsel %vm15441_vm6, %v5678_v23, 0.0  ;;  %v5685_v48 = vsel %vm15447_vm7, %v5681_v51, 0.0  ;;  %vm15751_vm2 = vmmov %vm15750_vm10 }
 0x750   :  { %v5560_v6 = vsel %vm15723_vm0, %v5556_v27, 0.0  ;;  %v5561_v37 = vsel %vm15724_vm12, %v5553_v41, 0.0  ;;  %v5690_v46 = vpack.c.bf16 %v5685_v48, %v5684_v19  ;;  %v5552_v10 = vsel %vm15748_vm15, %v8862_v7, %v8897_v8  ;;  %vm15752_vm13 = vmmov %vm15751_vm2 }
 0x751   :  { %v5565_v59 = vpack.c.bf16 %v5561_v37, %v5560_v6  ;;  %v5555_v22 = vsel %vm15749_vm9, %v8897_v8, %v8862_v7  ;;  %v5559_v13 = vsel %vm15724_vm12, %v5552_v10, 0.0  ;;  %vm15753_vm15 = vmmov %vm15751_vm2  ;;  %v8878_v10 = vunpack.i.h.bf16 %v14170_v0 }
 0x752   :  { %v5558_v17 = vsel %vm15723_vm0, %v5555_v22, 0.0  ;;  %v7616_v32 = vld [vmem:[#allocation2 + $0x74] sm:$0xf0]  ;;  %v7255_v14 = vld [vmem:[#allocation2 + $0x78] sm:$0xf0]  ;;  %5693 = vst [vmem:[#allocation2 + $0xa8] sm:$0xff] %v5690_v46  ;;  %v8877_v22 = vunpack.i.l.bf16 %v14170_v0 }
 0x753   :  { %v5564_v35 = vpack.c.bf16 %v5559_v13, %v5558_v17  ;;  %v8906_v50 = vpop.permute.xlu0 %8905  ;;  %v7254_v5 = vor.u32 %v7616_v32, %v7253_v42  ;;  %v7258_v62 = vor.u32 %v7615_v52, %v7255_v14  ;;  %5568 = vst [vmem:[#allocation2 + $0x38] sm:$0xff] %v5565_v59  ;;  %v7610_v59 = vld [vmem:[#allocation2 + $0x44] sm:$0xf0] }
 0x754   :  { %v8908_v33 = vunpack.i.h.bf16 %v8906_v50  ;;  %v8907_v43 = vunpack.i.l.bf16 %v8906_v50  ;;  %v8916_v24 = vpop.permute.xlu1 %8915 }
 0x755   :  { %5567 = vst [vmem:[#allocation2 + $0x30] sm:$0xff] %v5564_v35  ;;  %v8918_v29 = vunpack.i.h.bf16 %v8916_v24  ;;  %v8917_v58 = vunpack.i.l.bf16 %v8916_v24  ;;  %5910 = vmatpush.bf16.msrb.mxu3 %v7254_v5  ;;  %5936 = vmatpush.bf16.msrb.mxu0 %v7258_v62 }
 0x756   :  { %v5584_v1 = vsel %vm15750_vm10, %v8873_v3, %v8908_v33  ;;  %v5587_v63 = vsel %vm15751_vm2, %v8908_v33, %v8873_v3  ;;  %v5583_v2 = vsel %vm15752_vm13, %v8872_v18, %v8907_v43  ;;  %v5586_v12 = vsel %vm15753_vm15, %v8907_v43, %v8872_v18  ;;  %vm15754_vm10 = vmmov %vm15749_vm9  ;;  %v7231_v43 = vld [vmem:[#allocation2 + $0x48] sm:$0xf0] }
 0x757   :  { %v5592_v57 = vsel %vm15676_vm11, %v5587_v63, 0.0  ;;  %v5593_v16 = vsel %vm15674_vm1, %v5584_v1, 0.0  ;;  %v5590_v61 = vsel %vm15676_vm11, %v5586_v12, 0.0  ;;  %v5591_v30 = vsel %vm15674_vm1, %v5583_v2, 0.0 }
 0x758   :  { %v5596_v11 = vpack.c.bf16 %v5593_v16, %v5592_v57  ;;  %v5595_v15 = vpack.c.bf16 %v5591_v30, %v5590_v61  ;;  %v5554_v8 = vsel %vm15749_vm9, %v8917_v58, %v8918_v29  ;;  %v5557_v7 = vsel %vm15754_vm10, %v8918_v29, %v8917_v58  ;;  %v5726_v29 = vld [vmem:[%s14396_s11] sm:$0x3] }
 0x759   :  { %v5562_v23 = vsel %vm15723_vm0, %v5557_v7, 0.0  ;;  %v5563_v51 = vsel %vm15724_vm12, %v5554_v8, 0.0  ;;  %5911 = vmatpush.bf16.msrb.mxu3 %v7246_v25  ;;  %5937 = vmatpush.bf16.msrb.mxu0 %v7250_v55  ;;  %vm15755_vm1 = vcmp.lt.s32.totalorder %v9221_v28, 111  ;;  %vm15757_vm0 = vnez %v15648_v9  ;;  %5761 = vst [vmem:[#allocation1] ss:$9 sm:$0xff] %v5726_v29 }
 0x75a   :  { %5599 = vst [vmem:[#allocation2 + $0x58] sm:$0xff] %v5596_v11  ;;  %v5566_v38 = vpack.c.bf16 %v5563_v51, %v5562_v23  ;;  %vm15756_vm11 = vmmov %vm15755_vm1  ;;  %vm5903_vm12 = vcmask 1043456   ;;  %vm15758_vm2 = vcmp.lt.s32.totalorder %v9221_v28, 16  ;;  %v7608_v16 = vld [vmem:[#allocation2 + $0x34] sm:$0xf0] }
 0x75b   :  { %5598 = vst [vmem:[#allocation2 + $0x50] sm:$0xff] %v5595_v15  ;;  %v8911_v47 = vpop.permute.xlu0 %8910  ;;  %vm15759_vm13 = vmmov %vm15758_vm2  ;;  %v7223_v23 = vld [vmem:[#allocation2 + $0x38] sm:$0xf0] }
 0x75c   :  { %5569 = vst [vmem:[#allocation2 + $0x40] sm:$0xff] %v5566_v38  ;;  %v8926_v41 = vpop.permute.xlu1 %8925  ;;  %v8913_v53 = vunpack.i.h.bf16 %v8911_v47  ;;  %v8912_v5 = vunpack.i.l.bf16 %v8911_v47  ;;  %vm15760_vm15 = vmmov %vm15758_vm2  ;;  %v7221_v8 = vld [vmem:[#allocation2 + $0x30] sm:$0xf]  ;;  %v7607_v7 = vld [vmem:[#allocation2 + $0x34] sm:$0xf] }
 0x75d   :  { %v8928_v27 = vunpack.i.h.bf16 %v8926_v41  ;;  %v8927_v19 = vunpack.i.l.bf16 %v8926_v41  ;;  %vm15761_vm9 = vmmov %vm15758_vm2 }
 0x75e   :  { %vm15762_vm10 = vmmov %vm15755_vm1 }
 0x75f   :  { %v5710_v48 = vsel %vm15755_vm1, %v8927_v19, %v8928_v27  ;;  %v5713_v39 = vsel %vm15756_vm11, %v8928_v27, %v8927_v19 }
 0x760   :  { %v5718_v4 = vsel %vm15389_vm4, %v5710_v48, 0.0  ;;  %v5719_v6 = vsel %vm15757_vm0, %v5713_v39, 0.0 }
 0x761   :  { %v14280_v37 = vpack.c.bf16 %v5719_v6, %v5718_v4  ;;  %v7612_v42 = vld [vmem:[#allocation2 + $0x54] sm:$0xf0]  ;;  %v7239_v46 = vld [vmem:[#allocation2 + $0x58] sm:$0xf0]  ;;  %v7222_v4 = vor.u32 %v7608_v16, %v7221_v8  ;;  %v7226_v6 = vor.u32 %v7607_v7, %v7223_v23 }
 0x762   :  { %v7237_v52 = vld [vmem:[#allocation2 + $0x50] sm:$0xf]  ;;  %v7611_v56 = vld [vmem:[#allocation2 + $0x54] sm:$0xf] }
 0x763   :  { %5725 = vst [vmem:[#allocation2 + $0xd0] sm:$0xff] %v14280_v37  ;;  %v8921_v17 = vpop.permute.xlu0 %8920  ;;  %v7238_v13 = vor.u32 %v7612_v42, %v7237_v52  ;;  %v7242_v32 = vor.u32 %v7611_v56, %v7239_v46  ;;  %v7229_v14 = vld [vmem:[#allocation2 + $0x40] sm:$0xf]  ;;  %v7609_v35 = vld [vmem:[#allocation2 + $0x44] sm:$0xf]  ;;  %v5845_v50 = vunpack.c.h.b16 %v14280_v37  ;;  %v8943_v42 = vunpack.i.h.bf16 %v14204_v31 }
 0x764   :  { %v8923_v62 = vunpack.i.h.bf16 %v8921_v17  ;;  %v8922_v3 = vunpack.i.l.bf16 %v8921_v17  ;;  %v8931_v18 = vpop.permute.xlu1 %8930  ;;  %v7230_v33 = vor.u32 %v7610_v59, %v7229_v14  ;;  %v7234_v49 = vor.u32 %v7609_v35, %v7231_v43  ;;  %v7604_v43 = vld [vmem:[#allocation2 + $0x14] sm:$0xf0] }
 0x765   :  { %v8933_v0 = vunpack.i.h.bf16 %v8931_v18  ;;  %v8932_v24 = vunpack.i.l.bf16 %v8931_v18  ;;  %5912 = vmatpush.bf16.msrb.mxu3 %v7238_v13  ;;  %5938 = vmatpush.bf16.msrb.mxu0 %v7242_v32  ;;  %v5873_v34 = vpack.c.b16 %v5845_v50, %v5845_v50  ;;  %v8942_v46 = vunpack.i.l.bf16 %v14204_v31 }
 0x766   :  { %v5524_v58 = vsel %vm15758_vm2, %v8878_v10, %v8923_v62  ;;  %v5527_v25 = vsel %vm15759_vm13, %v8923_v62, %v8878_v10  ;;  %v5523_v55 = vsel %vm15760_vm15, %v8877_v22, %v8922_v3  ;;  %v5526_v1 = vsel %vm15761_vm9, %v8922_v3, %v8877_v22 }
 0x767   :  { %v5532_v63 = vsel %vm15653_vm5, %v5527_v25, 0.0  ;;  %v5533_v2 = vsel %vm15741_vm3, %v5524_v58, 0.0  ;;  %v5530_v12 = vsel %vm15653_vm5, %v5526_v1, 0.0  ;;  %v5531_v57 = vsel %vm15741_vm3, %v5523_v55, 0.0  ;;  %vm15763_vm5 = vmmov %vm15755_vm1  ;;  %v7207_v25 = vld [vmem:[#allocation2 + $0x18] sm:$0xf0] }
 0x768   :  { %v5536_v61 = vpack.c.bf16 %v5533_v2, %v5532_v63  ;;  %v5535_v30 = vpack.c.bf16 %v5531_v57, %v5530_v12  ;;  %v5709_v11 = vsel %vm15762_vm10, %v8913_v53, %v8933_v0  ;;  %v5712_v15 = vsel %vm15755_vm1, %v8933_v0, %v8913_v53  ;;  %vm15764_vm3 = vmmov %vm15755_vm1 }
 0x769   :  { %v5716_v51 = vsel %vm15389_vm4, %v5709_v11, 0.0  ;;  %v5717_v40 = vsel %vm15757_vm0, %v5712_v15, 0.0  ;;  %v5708_v26 = vsel %vm15763_vm5, %v8912_v5, %v8932_v24  ;;  %v5711_v38 = vsel %vm15764_vm3, %v8932_v24, %v8912_v5  ;;  %5913 = vmatpush.bf16.msrb.mxu3 %v7230_v33  ;;  %5939 = vmatpush.bf16.msrb.mxu0 %v7234_v49 }
 0x76a   :  { %5539 = vst [vmem:[#allocation2 + $0x28] sm:$0xff] %v5536_v61  ;;  %v5721_v47 = vpack.c.bf16 %v5717_v40, %v5716_v51  ;;  %v5714_v41 = vsel %vm15389_vm4, %v5708_v26, 0.0  ;;  %v5715_v27 = vsel %vm15757_vm0, %v5711_v38, 0.0  ;;  %v5908_v19 = vsel %vm5903_vm12, %v5873_v34, 0  ;;  %v7205_v61 = vld [vmem:[#allocation2 + $0x10] sm:$0xf] }
 0x76b   :  { %5538 = vst [vmem:[#allocation2 + $0x20] sm:$0xff] %v5535_v30  ;;  %v5720_v48 = vpack.c.bf16 %v5715_v27, %v5714_v41  ;;  %v8951_v39 = vpop.permute.xlu0 %8950  ;;  %5951 = vmatpush.bf16.msrb.mxu1 %v5908_v19  ;;  %vm15765_vm4 = vcmp.lt.s32.totalorder %v9221_v28, 112  ;;  %vm15769_vm13 = vcmp.lt.s32.totalorder %v9221_v28, 113  ;;  %vm15771_vm9 = vnez %v15640_v54  ;;  %v7603_v30 = vld [vmem:[#allocation2 + $0x14] sm:$0xf] }
 0x76c   :  { %5724 = vst [vmem:[#allocation2 + $0xc8] sm:$0xff] %v5721_v47  ;;  %v8953_v59 = vunpack.i.h.bf16 %v8951_v39  ;;  %v8952_v10 = vunpack.i.l.bf16 %v8951_v39  ;;  %v8961_v45 = vpop.permute.xlu1 %8960  ;;  %vm15766_vm11 = vmmov %vm15765_vm4  ;;  %vm15772_vm10 = vnez %v15641_v60  ;;  %v5844_v11 = vunpack.c.l.b16 %v14280_v37  ;;  %v7197_v26 = vld [vmem:[#allocation2] sm:$0xf]  ;;  %v7602_v38 = vld [vmem:[#allocation2 + $0x4] sm:$0xf0]  ;;  %v8971_v39 = vpop.permute.xlu2 %8970 }
 0x76d   :  { %5723 = vst [vmem:[#allocation2 + $0xc0] sm:$0xff] %v5720_v48  ;;  %v8963_v22 = vunpack.i.h.bf16 %v8961_v45  ;;  %v8962_v9 = vunpack.i.l.bf16 %v8961_v45  ;;  %5914 = vmatpush.bf16.msrb.mxu3 %v7222_v4  ;;  %5940 = vmatpush.bf16.msrb.mxu0 %v7226_v6  ;;  %vm15767_vm0 = vmmov %vm15765_vm4  ;;  %v7206_v15 = vor.u32 %v7604_v43, %v7205_v61  ;;  %v7210_v8 = vor.u32 %v7603_v30, %v7207_v25  ;;  %v7601_v47 = vld [vmem:[#allocation2 + $0x4] sm:$0xf]  ;;  %v7199_v48 = vld [vmem:[#allocation2 + $0x8] sm:$0xf0] }
 0x76e   :  { %v5679_v52 = vsel %vm15765_vm4, %v8942_v46, %v8952_v10  ;;  %v5680_v56 = vsel %vm15766_vm11, %v8943_v42, %v8953_v59  ;;  %v5682_v53 = vsel %vm15767_vm0, %v8952_v10, %v8942_v46  ;;  %vm15768_vm2 = vmmov %vm15767_vm0  ;;  %v5872_v46 = vpack.c.b16 %v5844_v11, %v5844_v11  ;;  %v7622_v25 = vld [vmem:[#allocation2 + $0xa4] sm:$0xf0] }
 0x76f   :  { %v5683_v31 = vsel %vm15768_vm2, %v8953_v59, %v8943_v42  ;;  %v5686_v17 = vsel %vm15441_vm6, %v5679_v52, 0.0  ;;  %v5687_v13 = vsel %vm15447_vm7, %v5682_v53, 0.0  ;;  %v5688_v32 = vsel %vm15441_vm6, %v5680_v56, 0.0  ;;  %vm15770_vm15 = vmmov %vm15769_vm13  ;;  %v5763_v61 = vld [vmem:[#allocation1 + $0x9] sm:$0xff] }
 0x770   :  { %v5689_v14 = vsel %vm15447_vm7, %v5683_v31, 0.0  ;;  %v5691_v35 = vpack.c.bf16 %v5687_v13, %v5686_v17  ;;  %v5650_v5 = vsel %vm15769_vm13, %v8962_v9, %v8963_v22  ;;  %v5653_v62 = vsel %vm15770_vm15, %v8963_v22, %v8962_v9  ;;  %vm15773_vm6 = vmmov %vm15769_vm13  ;;  %v5762_v31 = vld [vmem:[#allocation1] sm:$0xff] }
 0x771   :  { %v5692_v50 = vpack.c.bf16 %v5689_v14, %v5688_v32  ;;  %v5658_v3 = vsel %vm15771_vm9, %v5650_v5, 0.0  ;;  %v5659_v18 = vsel %vm15772_vm10, %v5653_v62, 0.0  ;;  %v7606_v33 = vld [vmem:[#allocation2 + $0x24] sm:$0xf0]  ;;  %v7215_v44 = vld [vmem:[#allocation2 + $0x28] sm:$0xf0]  ;;  %vm15774_vm7 = vmmov %vm15773_vm6  ;;  %v7198_v45 = vor.u32 %v7602_v38, %v7197_v26 }
 0x772   :  { %5694 = vst [vmem:[#allocation2 + $0xb0] sm:$0xff] %v5691_v35  ;;  %v5662_v21 = vpack.c.bf16 %v5659_v18, %v5658_v3  ;;  %v7213_v0 = vld [vmem:[#allocation2 + $0x20] sm:$0xf]  ;;  %v7605_v24 = vld [vmem:[#allocation2 + $0x24] sm:$0xf]  ;;  %vm15775_vm1 = vmmov %vm15773_vm6  ;;  %v7202_v22 = vor.u32 %v7601_v47, %v7199_v48  ;;  %v8973_v52 = vunpack.i.h.bf16 %v8971_v39  ;;  %v8972_v54 = vunpack.i.l.bf16 %v8971_v39 }
 0x773   :  { %5695 = vst [vmem:[#allocation2 + $0xb8] sm:$0xff] %v5692_v50  ;;  %v8956_v49 = vpop.permute.xlu0 %8955  ;;  %v7214_v34 = vor.u32 %v7606_v33, %v7213_v0  ;;  %v7218_v29 = vor.u32 %v7605_v24, %v7215_v44  ;;  %v7295_v58 = vld [vmem:[#allocation2 + $0xc8] sm:$0xf0]  ;;  %vm15776_vm5 = vmmov %vm15775_vm1  ;;  %v5905_v53 = vsel %vm5903_vm12, %v5872_v46, 0  ;;  %vm15777_vm3 = vcmp.lt.s32.totalorder %v9221_v28, 127 }
 0x774   :  { %5665 = vst [vmem:[#allocation2 + $0xa0] sm:$0xff] %v5662_v21  ;;  %v8958_v55 = vunpack.i.h.bf16 %v8956_v49  ;;  %v8957_v1 = vunpack.i.l.bf16 %v8956_v49  ;;  %v8966_v63 = vpop.permute.xlu1 %8965  ;;  %v7625_v2 = vld [vmem:[#allocation2 + $0xc4] sm:$0xf]  ;;  %vm15778_vm4 = vmmov %vm15777_vm3  ;;  %v7293_v50 = vld [vmem:[#allocation2 + $0xc0] sm:$0xf] }
 0x775   :  { %v8968_v12 = vunpack.i.h.bf16 %v8966_v63  ;;  %v8967_v57 = vunpack.i.l.bf16 %v8966_v63  ;;  %5915 = vmatpush.bf16.msrb.mxu3 %v7214_v34  ;;  %5941 = vmatpush.bf16.msrb.mxu0 %v7218_v29  ;;  %v7298_v16 = vor.u32 %v7625_v2, %v7295_v58  ;;  %vm15779_vm11 = vmmov %vm15777_vm3  ;;  %v7626_v5 = vld [vmem:[#allocation2 + $0xc4] sm:$0xf0]  ;;  %v7279_v44 = vld [vmem:[#allocation2 + $0xa8] sm:$0xf0] }
 0x776   :  { %vm15780_vm0 = vmmov %vm15777_vm3  ;;  %v7294_v0 = vor.u32 %v7626_v5, %v7293_v50 }
 0x777   :  { %v5649_v7 = vsel %vm15773_vm6, %v8958_v55, %v8968_v12  ;;  %v5652_v23 = vsel %vm15774_vm7, %v8968_v12, %v8958_v55  ;;  %v5648_v51 = vsel %vm15775_vm1, %v8957_v1, %v8967_v57  ;;  %v5651_v40 = vsel %vm15776_vm5, %v8967_v57, %v8957_v1  ;;  %5952 = vmatpush.bf16.msrb.mxu1 %v7298_v16 }
 0x778   :  { %v5656_v37 = vsel %vm15771_vm9, %v5649_v7, 0.0  ;;  %v5657_v41 = vsel %vm15772_vm10, %v5652_v23, 0.0  ;;  %v5654_v27 = vsel %vm15771_vm9, %v5648_v51, 0.0  ;;  %v5655_v19 = vsel %vm15772_vm10, %v5651_v40, 0.0 }
 0x779   :  { %v5661_v4 = vpack.c.bf16 %v5657_v41, %v5656_v37  ;;  %v5660_v6 = vpack.c.bf16 %v5655_v19, %v5654_v27  ;;  %5916 = vmatpush.bf16.msrb.mxu3 %v7206_v15  ;;  %5942 = vmatpush.bf16.msrb.mxu0 %v7210_v8  ;;  %v7623_v42 = vld [vmem:[#allocation2 + $0xb4] sm:$0xf]  ;;  %v7285_v24 = vld [vmem:[#allocation2 + $0xb0] sm:$0xf] }
 0x77a   :  { %v7287_v59 = vld [vmem:[#allocation2 + $0xb8] sm:$0xf0]  ;;  %v7624_v34 = vld [vmem:[#allocation2 + $0xb4] sm:$0xf0] }
 0x77b   :  { %5664 = vst [vmem:[#allocation2 + $0x98] sm:$0xff] %v5661_v4  ;;  %v8976_v10 = vpop.permute.xlu0 %8975  ;;  %v7290_v9 = vor.u32 %v7623_v42, %v7287_v59  ;;  %v7621_v17 = vld [vmem:[#allocation2 + $0xa4] sm:$0xf]  ;;  %v7286_v58 = vor.u32 %v7624_v34, %v7285_v24  ;;  %v7277_v20 = vld [vmem:[#allocation2 + $0xa0] sm:$0xf] }
 0x77c   :  { %5663 = vst [vmem:[#allocation2 + $0x90] sm:$0xff] %v5660_v6  ;;  %v8978_v56 = vunpack.i.h.bf16 %v8976_v10  ;;  %v8977_v60 = vunpack.i.l.bf16 %v8976_v10  ;;  %v7282_v21 = vor.u32 %v7621_v17, %v7279_v44  ;;  %v7278_v55 = vor.u32 %v7622_v25, %v7277_v20  ;;  %v5758_v26 = vpop.permute.xlu1 %5757 }
 0x77d   :  { %5917 = vmatpush.bf16.msrb.mxu3 %v7198_v45  ;;  %5943 = vmatpush.bf16.msrb.mxu0 %v7202_v22 }
 0x77e   :  { %v5619_v13 = vsel %vm15777_vm3, %v8972_v54, %v8977_v60  ;;  %v5620_v32 = vsel %vm15778_vm4, %v8973_v52, %v8978_v56  ;;  %v5622_v14 = vsel %vm15779_vm11, %v8977_v60, %v8972_v54  ;;  %v5623_v35 = vsel %vm15780_vm0, %v8978_v56, %v8973_v52  ;;  %5953 = vmatpush.bf16.msrb.mxu1 %v7290_v9 }
 0x77f   :  { %v5626_v62 = vsel %vm15358_vm14, %v5619_v13, 0.0  ;;  %v5627_v3 = vsel %vm15360_vm8, %v5622_v14, 0.0  ;;  %v5628_v18 = vsel %vm15358_vm14, %v5620_v32, 0.0  ;;  %v5629_v33 = vsel %vm15360_vm8, %v5623_v35, 0.0 }
 0x780   :  { %v5631_v43 = vpack.c.bf16 %v5627_v3, %v5626_v62  ;;  %v5632_v28 = vpack.c.bf16 %v5629_v33, %v5628_v18  ;;  %5918 = vmatmul.bf16.vlgmr.msrb.gmra.mxu3 %v5762_v31  ;;  %5944 = vmatmul.bf16.vlgmr.msrb.gmra.mxu0 %v5762_v31  ;;  %vm5900_vm14 = vcmask 719872   ;;  %vm5969_vm8 = vcmask 1041408  }
 0x781   :  { %5925 = vmatpush.bf16.msra.mxu3 %v5905_v53 }
 0x782   :  { %5634 = vst [vmem:[#allocation2 + $0x80] sm:$0xff] %v5631_v43  ;;  %5954 = vmatpush.bf16.msrb.mxu1 %v7282_v21  ;;  %v7271_v49 = vld [vmem:[#allocation2 + $0x98] sm:$0xf0]  ;;  %v7620_v12 = vld [vmem:[#allocation2 + $0x94] sm:$0xf0] }
 0x783   :  { %5635 = vst [vmem:[#allocation2 + $0x88] sm:$0xff] %v5632_v28  ;;  %v7619_v36 = vld [vmem:[#allocation2 + $0x94] sm:$0xf]  ;;  %v7269_v2 = vld [vmem:[#allocation2 + $0x90] sm:$0xf] }
 0x784   :  { %v7274_v29 = vor.u32 %v7619_v36, %v7271_v49  ;;  %v7270_v16 = vor.u32 %v7620_v12, %v7269_v2 }
 0x785   :  { %5926 = vmatpush.bf16.msra.mxu3 %v7294_v0 }
 0x786   :  { %5955 = vmatpush.bf16.msrb.mxu1 %v7274_v29 }
 0x789   :  { %5927 = vmatpush.bf16.msra.mxu3 %v7286_v58  ;;  %v7617_v1 = vld [vmem:[#allocation2 + $0x84] sm:$0xf]  ;;  %v7261_v30 = vld [vmem:[#allocation2 + $0x80] sm:$0xf] }
 0x78a   :  { %v7263_v63 = vld [vmem:[#allocation2 + $0x88] sm:$0xf0]  ;;  %v7618_v11 = vld [vmem:[#allocation2 + $0x84] sm:$0xf0] }
 0x78b   :  { %v7266_v57 = vor.u32 %v7617_v1, %v7263_v63  ;;  %v7262_v15 = vor.u32 %v7618_v11, %v7261_v30 }
 0x78d   :  { %5928 = vmatpush.bf16.msra.mxu3 %v7278_v55  ;;  %5956 = vmatpush.bf16.msrb.mxu1 %v7266_v57 }
 0x790   :  { %7300 = vmatmul.msk.bf16.vlgmr.msrb.gmra.mxu1 %vm5900_vm14, %v5763_v61 }
 0x791   :  { %5929 = vmatpush.bf16.msra.mxu3 %v7270_v16 }
 0x795   :  { %5930 = vmatpush.bf16.msra.mxu3 %v7262_v15 }
 0x798   :  { %7299 = vmatmul.msk.bf16.vlgmr.msra.gmra.mxu3 %vm5900_vm14, %v5763_v61 }
 0x7fd   :  { %v5945_v8 = vpop.f32.mrf.mxu0 }
 0x7fe   :  { %v5946_v38 = vadd.f32 %v5945_v8, %v5758_v26 }
 0x803   :  { %v5919_v7 = vpop.f32.mrf.mxu3 }
 0x804   :  { %v5920_v27 = vadd.f32 %v5919_v7, %v5758_v26 }
 0x805   :  { %v5947_v23 = vpop.f32.mrf.mxu0 }
 0x80b   :  { %v5921_v51 = vpop.f32.mrf.mxu3 }
 0x80d   :  { %v5958_v40 = vpop.f32.mrf.mxu1 }
 0x80e   :  { %v5959_v47 = vadd.f32 %v5958_v40, %v5946_v38 }
 0x810   :  { %v5963_v41 = vadd.f32 1.0, %v5959_v47 }
 0x812   :  { %v5965_v48 = vmul.f32 %v5963_v41, %v5963_v41 }
 0x814   :  { %v5968_v6 = vrot.slane %v5965_v48, 6 }
 0x815   :  { %v5960_v37 = vpop.f32.mrf.mxu1 }
 0x81b   :  { %v5932_v19 = vpop.f32.mrf.mxu3 }
 0x81c   :  { %v5933_v39 = vadd.f32 %v5932_v19, %v5920_v27 }
 0x81e   :  { %v5962_v4 = vadd.f32 1.0, %v5933_v39 }
 0x820   :  { %v5964_v42 = vmul.f32 %v5962_v4, %v5962_v4 }
 0x822   :  { %v5970_v46 = vsel %vm5969_vm8, %v5964_v42, %v5968_v6 }
 0x823   :  { %5972 = vst [vmem:[%s14398_s13] sm:$0xf] %v5970_v46  ;;  %v5934_v59 = vpop.f32.mrf.mxu3 }
 0x824   :  { %5977 = vsyncpa [#allocation5], 1 }

</bundles_post_ra>
